<compile_context>
chip_gen: v6e
topology: v6e:2x2x1
jax: 0.10.0
libtpu: 0.0.40
codegen_flags: <defaults>
</compile_context>

<pallas_src>
import functools

import jax
import jax.numpy as jnp
from jax import lax
from jax.experimental import pallas as pl
from jax.experimental.pallas import tpu as pltpu

_BN_EPS = 1e-5
_CPAD = 128          # lane-dense channel count carried through the kernel


def _branch1_kernel(p1_ref, w1_ref, g1_ref, be1_ref,
                    w2_ref, g2_ref, be2_ref, mask_ref,
                    o_ref, a1_ref, *, kh, kw, row_stride, n_valid):
    m1 = p1_ref.shape[0]          # N * H1 * W1 (block1 output frame, flattened)
    cpad = o_ref.shape[1]

    # ---------------- Block 1: conv-as-matmul + BN (batch stats) + ReLU --------
    acc1 = jnp.dot(p1_ref[...], w1_ref[...], preferred_element_type=jnp.float32)
    inv_m1 = 1.0 / m1
    mean1 = jnp.sum(acc1, axis=0, keepdims=True) * inv_m1
    c1 = acc1 - mean1                                  # conv bias would cancel here
    var1 = jnp.sum(c1 * c1, axis=0, keepdims=True) * inv_m1   # centered -> >= 0
    y1 = c1 * (g1_ref[...] * lax.rsqrt(var1 + _BN_EPS)) + be1_ref[...]
    y1 = jnp.maximum(y1, 0.0)

    # Park block1's activation in VMEM scratch; zero the pad tail so the shifted
    # windows below stay finite even for the (discarded) invalid output rows.
    pad_rows = a1_ref.shape[0] - m1
    a1_ref[0:m1, :] = y1
    a1_ref[m1:m1 + pad_rows, :] = jnp.zeros((pad_rows, cpad), jnp.float32)

    # ---------------- Block 2: implicit im2col — accumulating taps --------------
    acc2 = jnp.zeros((m1, cpad), jnp.float32)
    for di in range(kh):
        for dj in range(kw):
            shift = di * row_stride + dj              # static row offset of this tap
            tap = di * kw + dj
            win = a1_ref[shift:shift + m1, :]         # shifted view of block1 output
            acc2 = acc2 + jnp.dot(win, w2_ref[tap],
                                  preferred_element_type=jnp.float32)

    # BN statistics over the n_valid rows that correspond to real HoxWo outputs.
    valid = mask_ref[...] > 0.5                       # (m1, 1), broadcast over lanes
    inv_m2 = 1.0 / n_valid
    mean2 = jnp.sum(jnp.where(valid, acc2, 0.0), axis=0, keepdims=True) * inv_m2
    c2 = acc2 - mean2
    var2 = jnp.sum(jnp.where(valid, c2 * c2, 0.0), axis=0, keepdims=True) * inv_m2
    y2 = c2 * (g2_ref[...] * lax.rsqrt(var2 + _BN_EPS)) + be2_ref[...]
    o_ref[...] = jnp.maximum(y2, 0.0)                 # lane-dense (m1, 128) store


def _im2col(x_nhwc, kh, kw):
    # Valid patches, channel ordering (kh, kw, cin) with cin fastest — matches
    # the (KH, KW, Cin, Cout) weight reshape below.
    n, h, w, c = x_nhwc.shape
    ho, wo = h - kh + 1, w - kw + 1
    cols = []
    for i in range(kh):
        for j in range(kw):
            cols.append(x_nhwc[:, i:i + ho, j:j + wo, :])
    patches = jnp.concatenate(cols, axis=-1)                   # (N, Ho, Wo, KH*KW*C)
    return patches.reshape(n * ho * wo, kh * kw * c), (n, ho, wo)


def branch1_forward(x_nchw, params):
    w1, _b1, g1, be1 = params["block1"]   # conv biases unused: cancelled by BN mean
    w2, _b2, g2, be2 = params["block2"]

    x = jnp.transpose(x_nchw, (0, 2, 3, 1)).astype(jnp.float32)      # NCHW -> NHWC
    kh, kw, cin, cout1 = w1.shape
    cin2, cout2 = w2.shape[2], w2.shape[3]

    # Block1 im2col stays in XLA (Cin=3 is too thin to benefit from in-kernel form).
    patches, (n, h1, w1d) = _im2col(x, kh, kw)                       # (N*14*14, 27)
    m1 = patches.shape[0]
    ho, wo = h1 - kh + 1, w1d - kw + 1                               # block2 output HxW

    def pad_last(a, target):
        return jnp.pad(a, [(0, 0)] * (a.ndim - 1) + [(0, target - a.shape[-1])])

    # Block1 params, Cout padded 64 -> 128 (gamma/beta pad = 0 => padded ch stay 0).
    w1_mat = pad_last(w1.reshape(kh * kw * cin, cout1), _CPAD)       # (27, 128)
    g1p = pad_last(g1.reshape(1, cout1), _CPAD)
    be1p = pad_last(be1.reshape(1, cout1), _CPAD)

    # Block2 tap weights: (KH*KW, Cin_pad, Cout_pad), zero-padded both channel dims.
    w2_taps = w2.reshape(kh * kw, cin2, cout2)
    w2_taps = jnp.pad(w2_taps, ((0, 0), (0, _CPAD - cin2), (0, _CPAD - cout2)))
    g2p = pad_last(g2.reshape(1, cout2), _CPAD)
    be2p = pad_last(be2.reshape(1, cout2), _CPAD)

    # Rows of the flattened (N, H1, W1) frame that hold a valid HoxWo output.
    mask = jnp.pad(jnp.ones((n, ho, wo), jnp.float32),
                   ((0, 0), (0, h1 - ho), (0, w1d - wo))).reshape(m1, 1)

    max_shift = (kh - 1) * w1d + (kw - 1)
    pad_rows = ((max_shift + 7) // 8) * 8             # sublane-aligned scratch tail

    kernel = functools.partial(_branch1_kernel, kh=kh, kw=kw,
                               row_stride=w1d, n_valid=n * ho * wo)

    out = pl.pallas_call(
        kernel,
        out_shape=jax.ShapeDtypeStruct((m1, _CPAD), jnp.float32),
        in_specs=[pl.BlockSpec(memory_space=pltpu.MemorySpace.VMEM)] * 8,
        out_specs=pl.BlockSpec(memory_space=pltpu.MemorySpace.VMEM),
        scratch_shapes=[pltpu.VMEM((m1 + pad_rows, _CPAD), jnp.float32)],
    )(patches, w1_mat, g1p, be1p, w2_taps, g2p, be2p, mask)

    # Kernel output lives on the full (N, H1, W1) frame with 128 padded channels:
    # keep the valid HoxWo window and the real 64 channels, back to NCHW.
    out = out.reshape(n, h1, w1d, _CPAD)[:, :ho, :wo, :cout2]
    return jnp.transpose(out, (0, 3, 1, 2))


def init_params(key):
    ks = jax.random.split(key, 8)

    def conv_w(k, cin, cout):
        # weight layout (KH, KW, Cin, Cout)  <->  torch (Cout, Cin, KH, KW)
        return jax.random.normal(k, (3, 3, cin, cout), jnp.float32) * 0.1

    return {
        "block1": (
            conv_w(ks[0], 3, 64),
            jax.random.normal(ks[1], (64,), jnp.float32) * 0.05,        # conv bias
            1.0 + jax.random.normal(ks[2], (64,), jnp.float32) * 0.05,  # BN gamma
            jax.random.normal(ks[3], (64,), jnp.float32) * 0.05,        # BN beta
        ),
        "block2": (
            conv_w(ks[4], 64, 64),
            jax.random.normal(ks[5], (64,), jnp.float32) * 0.05,
            1.0 + jax.random.normal(ks[6], (64,), jnp.float32) * 0.05,
            jax.random.normal(ks[7], (64,), jnp.float32) * 0.05,
        ),
    }


def _ref_block(x_nhwc, w, b, g, be):
    # Pure-JAX reference (includes the conv bias; it cancels inside training BN).
    y = lax.conv_general_dilated(x_nhwc, w, (1, 1), "VALID",
                                 dimension_numbers=("NHWC", "HWIO", "NHWC"))
    y = y + b
    mean = jnp.mean(y, axis=(0, 1, 2), keepdims=True)
    var = jnp.mean(jnp.square(y - mean), axis=(0, 1, 2), keepdims=True)
    y = (y - mean) * g * lax.rsqrt(var + _BN_EPS) + be
    return jnp.maximum(y, 0.0)


if __name__ == "__main__":
    key = jax.random.PRNGKey(0)
    pkey, xkey = jax.random.split(key)
    params = init_params(pkey)
    x = jax.random.normal(xkey, (2, 3, 16, 16), jnp.float32)   # NCHW like PyTorch

    out = jax.block_until_ready(branch1_forward(x, params))
    assert out.shape == (2, 64, 12, 12), out.shape

    # Verify against a pure-JAX reference of the same forward semantics.
    xr = jnp.transpose(x, (0, 2, 3, 1))
    yr = _ref_block(xr, *params["block1"])
    yr = _ref_block(yr, *params["block2"])
    ref = jnp.transpose(jnp.maximum(yr, 0.0), (0, 3, 1, 2))
    err = float(jnp.max(jnp.abs(out - ref)))
    assert jnp.allclose(out, ref, atol=1e-3, rtol=1e-3), err

    print("KERNEL_OK")
</pallas_src>

<mosaic_0001>
module attributes {stable_mosaic.version = 11 : i64} {
  func.func @_branch1_kernel(%arg0: memref<392x27xf32, #tpu.memory_space<vmem>>, %arg1: memref<27x128xf32, #tpu.memory_space<vmem>>, %arg2: memref<1x128xf32, #tpu.memory_space<vmem>>, %arg3: memref<1x128xf32, #tpu.memory_space<vmem>>, %arg4: memref<9x128x128xf32, #tpu.memory_space<vmem>>, %arg5: memref<1x128xf32, #tpu.memory_space<vmem>>, %arg6: memref<1x128xf32, #tpu.memory_space<vmem>>, %arg7: memref<392x1xf32, #tpu.memory_space<vmem>>, %arg8: memref<392x128xf32, #tpu.memory_space<vmem>>, %arg9: memref<424x128xf32, #tpu.memory_space<vmem>>) attributes {dimension_semantics = [], scalar_prefetch = 0 : i64, scratch_operands = 1 : i64, tpu.core_type = #tpu.core_type<tc>} {
    %c0 = arith.constant 0 : index
    %c0_0 = arith.constant 0 : index
    %0 = vector.load %arg0[%c0, %c0_0] : memref<392x27xf32, #tpu.memory_space<vmem>>, vector<392x27xf32>
    %c0_1 = arith.constant 0 : index
    %c0_2 = arith.constant 0 : index
    %1 = vector.load %arg1[%c0_1, %c0_2] : memref<27x128xf32, #tpu.memory_space<vmem>>, vector<27x128xf32>
    %cst = arith.constant dense<0.000000e+00> : vector<392x128xf32>
    %2 = tpu.matmul %0, %1, %cst {dimension_numbers = #tpu.dot_dimension_numbers<[1], [0], [0], [1], [0, 0, 1, 1], [], []>} : vector<392x27xf32>, vector<27x128xf32>, vector<392x128xf32> -> vector<392x128xf32>
    %cst_3 = arith.constant dense<0.000000e+00> : vector<128xf32>
    %3 = vector.multi_reduction <add>, %2, %cst_3 [0] : vector<392x128xf32> to vector<128xf32>
    %4 = vector.shape_cast %3 : vector<128xf32> to vector<1x128xf32>
    %cst_4 = arith.constant 0.00255102036 : f32
    %5 = vector.broadcast %cst_4 : f32 to vector<1x128xf32>
    %6 = arith.mulf %4, %5 : vector<1x128xf32>
    %7 = vector.broadcast %6 : vector<1x128xf32> to vector<392x128xf32>
    %8 = arith.subf %2, %7 : vector<392x128xf32>
    %9 = arith.mulf %8, %8 : vector<392x128xf32>
    %cst_5 = arith.constant dense<0.000000e+00> : vector<128xf32>
    %10 = vector.multi_reduction <add>, %9, %cst_5 [0] : vector<392x128xf32> to vector<128xf32>
    %11 = vector.shape_cast %10 : vector<128xf32> to vector<1x128xf32>
    %cst_6 = arith.constant 0.00255102036 : f32
    %12 = vector.broadcast %cst_6 : f32 to vector<1x128xf32>
    %13 = arith.mulf %11, %12 : vector<1x128xf32>
    %c0_7 = arith.constant 0 : index
    %c0_8 = arith.constant 0 : index
    %14 = vector.load %arg2[%c0_7, %c0_8] : memref<1x128xf32, #tpu.memory_space<vmem>>, vector<1x128xf32>
    %cst_9 = arith.constant 9.99999974E-6 : f32
    %15 = vector.broadcast %cst_9 : f32 to vector<1x128xf32>
    %16 = arith.addf %13, %15 : vector<1x128xf32>
    %17 = math.rsqrt %16 : vector<1x128xf32>
    %18 = arith.mulf %14, %17 : vector<1x128xf32>
    %19 = vector.broadcast %18 : vector<1x128xf32> to vector<392x128xf32>
    %20 = arith.mulf %8, %19 : vector<392x128xf32>
    %c0_10 = arith.constant 0 : index
    %c0_11 = arith.constant 0 : index
    %21 = vector.load %arg3[%c0_10, %c0_11] : memref<1x128xf32, #tpu.memory_space<vmem>>, vector<1x128xf32>
    %22 = vector.broadcast %21 : vector<1x128xf32> to vector<392x128xf32>
    %23 = arith.addf %20, %22 : vector<392x128xf32>
    %cst_12 = arith.constant 0.000000e+00 : f32
    %24 = vector.broadcast %cst_12 : f32 to vector<392x128xf32>
    %25 = arith.maximumf %23, %24 : vector<392x128xf32>
    %c0_13 = arith.constant 0 : index
    %c0_14 = arith.constant 0 : index
    %26 = vector.load %arg9[%c0_13, %c0_14] : memref<424x128xf32, #tpu.memory_space<vmem>>, vector<392x128xf32>
    tpu.vector_store %arg9[%c0_13, %c0_14], %25 {strides = array<i32>} : memref<424x128xf32, #tpu.memory_space<vmem>>, vector<392x128xf32>,
    %cst_15 = arith.constant 0.000000e+00 : f32
    %27 = vector.broadcast %cst_15 : f32 to vector<32x128xf32>
    %c392 = arith.constant 392 : index
    %c0_16 = arith.constant 0 : index
    %28 = vector.load %arg9[%c392, %c0_16] : memref<424x128xf32, #tpu.memory_space<vmem>>, vector<32x128xf32>
    tpu.vector_store %arg9[%c392, %c0_16], %27 {strides = array<i32>} : memref<424x128xf32, #tpu.memory_space<vmem>>, vector<32x128xf32>,
    %cst_17 = arith.constant 0.000000e+00 : f32
    %29 = vector.broadcast %cst_17 : f32 to vector<392x128xf32>
    %c0_18 = arith.constant 0 : index
    %c0_19 = arith.constant 0 : index
    %30 = vector.load %arg9[%c0_18, %c0_19] : memref<424x128xf32, #tpu.memory_space<vmem>>, vector<392x128xf32>
    %c0_20 = arith.constant 0 : index
    %c0_21 = arith.constant 0 : index
    %c0_22 = arith.constant 0 : index
    %31 = vector.load %arg4[%c0_20, %c0_21, %c0_22] : memref<9x128x128xf32, #tpu.memory_space<vmem>>, vector<1x128x128xf32>
    %32 = vector.shape_cast %31 : vector<1x128x128xf32> to vector<128x128xf32>
    %cst_23 = arith.constant dense<0.000000e+00> : vector<392x128xf32>
    %33 = tpu.matmul %30, %32, %cst_23 {dimension_numbers = #tpu.dot_dimension_numbers<[1], [0], [0], [1], [0, 0, 1, 1], [], []>} : vector<392x128xf32>, vector<128x128xf32>, vector<392x128xf32> -> vector<392x128xf32>
    %34 = arith.addf %29, %33 : vector<392x128xf32>
    %c1 = arith.constant 1 : index
    %c0_24 = arith.constant 0 : index
    %35 = vector.load %arg9[%c1, %c0_24] : memref<424x128xf32, #tpu.memory_space<vmem>>, vector<392x128xf32>
    %c1_25 = arith.constant 1 : index
    %c0_26 = arith.constant 0 : index
    %c0_27 = arith.constant 0 : index
    %36 = vector.load %arg4[%c1_25, %c0_26, %c0_27] : memref<9x128x128xf32, #tpu.memory_space<vmem>>, vector<1x128x128xf32>
    %37 = vector.shape_cast %36 : vector<1x128x128xf32> to vector<128x128xf32>
    %cst_28 = arith.constant dense<0.000000e+00> : vector<392x128xf32>
    %38 = tpu.matmul %35, %37, %cst_28 {dimension_numbers = #tpu.dot_dimension_numbers<[1], [0], [0], [1], [0, 0, 1, 1], [], []>} : vector<392x128xf32>, vector<128x128xf32>, vector<392x128xf32> -> vector<392x128xf32>
    %39 = arith.addf %34, %38 : vector<392x128xf32>
    %c2 = arith.constant 2 : index
    %c0_29 = arith.constant 0 : index
    %40 = vector.load %arg9[%c2, %c0_29] : memref<424x128xf32, #tpu.memory_space<vmem>>, vector<392x128xf32>
    %c2_30 = arith.constant 2 : index
    %c0_31 = arith.constant 0 : index
    %c0_32 = arith.constant 0 : index
    %41 = vector.load %arg4[%c2_30, %c0_31, %c0_32] : memref<9x128x128xf32, #tpu.memory_space<vmem>>, vector<1x128x128xf32>
    %42 = vector.shape_cast %41 : vector<1x128x128xf32> to vector<128x128xf32>
    %cst_33 = arith.constant dense<0.000000e+00> : vector<392x128xf32>
    %43 = tpu.matmul %40, %42, %cst_33 {dimension_numbers = #tpu.dot_dimension_numbers<[1], [0], [0], [1], [0, 0, 1, 1], [], []>} : vector<392x128xf32>, vector<128x128xf32>, vector<392x128xf32> -> vector<392x128xf32>
    %44 = arith.addf %39, %43 : vector<392x128xf32>
    %c14 = arith.constant 14 : index
    %c0_34 = arith.constant 0 : index
    %45 = vector.load %arg9[%c14, %c0_34] : memref<424x128xf32, #tpu.memory_space<vmem>>, vector<392x128xf32>
    %c3 = arith.constant 3 : index
    %c0_35 = arith.constant 0 : index
    %c0_36 = arith.constant 0 : index
    %46 = vector.load %arg4[%c3, %c0_35, %c0_36] : memref<9x128x128xf32, #tpu.memory_space<vmem>>, vector<1x128x128xf32>
    %47 = vector.shape_cast %46 : vector<1x128x128xf32> to vector<128x128xf32>
    %cst_37 = arith.constant dense<0.000000e+00> : vector<392x128xf32>
    %48 = tpu.matmul %45, %47, %cst_37 {dimension_numbers = #tpu.dot_dimension_numbers<[1], [0], [0], [1], [0, 0, 1, 1], [], []>} : vector<392x128xf32>, vector<128x128xf32>, vector<392x128xf32> -> vector<392x128xf32>
    %49 = arith.addf %44, %48 : vector<392x128xf32>
    %c15 = arith.constant 15 : index
    %c0_38 = arith.constant 0 : index
    %50 = vector.load %arg9[%c15, %c0_38] : memref<424x128xf32, #tpu.memory_space<vmem>>, vector<392x128xf32>
    %c4 = arith.constant 4 : index
    %c0_39 = arith.constant 0 : index
    %c0_40 = arith.constant 0 : index
    %51 = vector.load %arg4[%c4, %c0_39, %c0_40] : memref<9x128x128xf32, #tpu.memory_space<vmem>>, vector<1x128x128xf32>
    %52 = vector.shape_cast %51 : vector<1x128x128xf32> to vector<128x128xf32>
    %cst_41 = arith.constant dense<0.000000e+00> : vector<392x128xf32>
    %53 = tpu.matmul %50, %52, %cst_41 {dimension_numbers = #tpu.dot_dimension_numbers<[1], [0], [0], [1], [0, 0, 1, 1], [], []>} : vector<392x128xf32>, vector<128x128xf32>, vector<392x128xf32> -> vector<392x128xf32>
    %54 = arith.addf %49, %53 : vector<392x128xf32>
    %c16 = arith.constant 16 : index
    %c0_42 = arith.constant 0 : index
    %55 = vector.load %arg9[%c16, %c0_42] : memref<424x128xf32, #tpu.memory_space<vmem>>, vector<392x128xf32>
    %c5 = arith.constant 5 : index
    %c0_43 = arith.constant 0 : index
    %c0_44 = arith.constant 0 : index
    %56 = vector.load %arg4[%c5, %c0_43, %c0_44] : memref<9x128x128xf32, #tpu.memory_space<vmem>>, vector<1x128x128xf32>
    %57 = vector.shape_cast %56 : vector<1x128x128xf32> to vector<128x128xf32>
    %cst_45 = arith.constant dense<0.000000e+00> : vector<392x128xf32>
    %58 = tpu.matmul %55, %57, %cst_45 {dimension_numbers = #tpu.dot_dimension_numbers<[1], [0], [0], [1], [0, 0, 1, 1], [], []>} : vector<392x128xf32>, vector<128x128xf32>, vector<392x128xf32> -> vector<392x128xf32>
    %59 = arith.addf %54, %58 : vector<392x128xf32>
    %c28 = arith.constant 28 : index
    %c0_46 = arith.constant 0 : index
    %60 = vector.load %arg9[%c28, %c0_46] : memref<424x128xf32, #tpu.memory_space<vmem>>, vector<392x128xf32>
    %c6 = arith.constant 6 : index
    %c0_47 = arith.constant 0 : index
    %c0_48 = arith.constant 0 : index
    %61 = vector.load %arg4[%c6, %c0_47, %c0_48] : memref<9x128x128xf32, #tpu.memory_space<vmem>>, vector<1x128x128xf32>
    %62 = vector.shape_cast %61 : vector<1x128x128xf32> to vector<128x128xf32>
    %cst_49 = arith.constant dense<0.000000e+00> : vector<392x128xf32>
    %63 = tpu.matmul %60, %62, %cst_49 {dimension_numbers = #tpu.dot_dimension_numbers<[1], [0], [0], [1], [0, 0, 1, 1], [], []>} : vector<392x128xf32>, vector<128x128xf32>, vector<392x128xf32> -> vector<392x128xf32>
    %64 = arith.addf %59, %63 : vector<392x128xf32>
    %c29 = arith.constant 29 : index
    %c0_50 = arith.constant 0 : index
    %65 = vector.load %arg9[%c29, %c0_50] : memref<424x128xf32, #tpu.memory_space<vmem>>, vector<392x128xf32>
    %c7 = arith.constant 7 : index
    %c0_51 = arith.constant 0 : index
    %c0_52 = arith.constant 0 : index
    %66 = vector.load %arg4[%c7, %c0_51, %c0_52] : memref<9x128x128xf32, #tpu.memory_space<vmem>>, vector<1x128x128xf32>
    %67 = vector.shape_cast %66 : vector<1x128x128xf32> to vector<128x128xf32>
    %cst_53 = arith.constant dense<0.000000e+00> : vector<392x128xf32>
    %68 = tpu.matmul %65, %67, %cst_53 {dimension_numbers = #tpu.dot_dimension_numbers<[1], [0], [0], [1], [0, 0, 1, 1], [], []>} : vector<392x128xf32>, vector<128x128xf32>, vector<392x128xf32> -> vector<392x128xf32>
    %69 = arith.addf %64, %68 : vector<392x128xf32>
    %c30 = arith.constant 30 : index
    %c0_54 = arith.constant 0 : index
    %70 = vector.load %arg9[%c30, %c0_54] : memref<424x128xf32, #tpu.memory_space<vmem>>, vector<392x128xf32>
    %c8 = arith.constant 8 : index
    %c0_55 = arith.constant 0 : index
    %c0_56 = arith.constant 0 : index
    %71 = vector.load %arg4[%c8, %c0_55, %c0_56] : memref<9x128x128xf32, #tpu.memory_space<vmem>>, vector<1x128x128xf32>
    %72 = vector.shape_cast %71 : vector<1x128x128xf32> to vector<128x128xf32>
    %cst_57 = arith.constant dense<0.000000e+00> : vector<392x128xf32>
    %73 = tpu.matmul %70, %72, %cst_57 {dimension_numbers = #tpu.dot_dimension_numbers<[1], [0], [0], [1], [0, 0, 1, 1], [], []>} : vector<392x128xf32>, vector<128x128xf32>, vector<392x128xf32> -> vector<392x128xf32>
    %74 = arith.addf %69, %73 : vector<392x128xf32>
    %c0_58 = arith.constant 0 : index
    %c0_59 = arith.constant 0 : index
    %75 = vector.load %arg7[%c0_58, %c0_59] : memref<392x1xf32, #tpu.memory_space<vmem>>, vector<392x1xf32>
    %cst_60 = arith.constant 5.000000e-01 : f32
    %76 = vector.broadcast %cst_60 : f32 to vector<392x1xf32>
    %77 = arith.cmpf ogt, %75, %76 : vector<392x1xf32>
    %cst_61 = arith.constant 0.000000e+00 : f32
    %78 = vector.shape_cast %77 : vector<392x1xi1> to vector<392x1xi1>
    %79 = vector.broadcast %78 : vector<392x1xi1> to vector<392x128xi1>
    %80 = vector.broadcast %cst_61 : f32 to vector<392x128xf32>
    %81 = arith.select %79, %74, %80 : vector<392x128xi1>, vector<392x128xf32>
    %cst_62 = arith.constant dense<0.000000e+00> : vector<128xf32>
    %82 = vector.multi_reduction <add>, %81, %cst_62 [0] : vector<392x128xf32> to vector<128xf32>
    %83 = vector.shape_cast %82 : vector<128xf32> to vector<1x128xf32>
    %cst_63 = arith.constant 0.00347222225 : f32
    %84 = vector.broadcast %cst_63 : f32 to vector<1x128xf32>
    %85 = arith.mulf %83, %84 : vector<1x128xf32>
    %86 = vector.broadcast %85 : vector<1x128xf32> to vector<392x128xf32>
    %87 = arith.subf %74, %86 : vector<392x128xf32>
    %88 = arith.mulf %87, %87 : vector<392x128xf32>
    %cst_64 = arith.constant 0.000000e+00 : f32
    %89 = vector.shape_cast %77 : vector<392x1xi1> to vector<392x1xi1>
    %90 = vector.broadcast %89 : vector<392x1xi1> to vector<392x128xi1>
    %91 = vector.broadcast %cst_64 : f32 to vector<392x128xf32>
    %92 = arith.select %90, %88, %91 : vector<392x128xi1>, vector<392x128xf32>
    %cst_65 = arith.constant dense<0.000000e+00> : vector<128xf32>
    %93 = vector.multi_reduction <add>, %92, %cst_65 [0] : vector<392x128xf32> to vector<128xf32>
    %94 = vector.shape_cast %93 : vector<128xf32> to vector<1x128xf32>
    %cst_66 = arith.constant 0.00347222225 : f32
    %95 = vector.broadcast %cst_66 : f32 to vector<1x128xf32>
    %96 = arith.mulf %94, %95 : vector<1x128xf32>
    %c0_67 = arith.constant 0 : index
    %c0_68 = arith.constant 0 : index
    %97 = vector.load %arg5[%c0_67, %c0_68] : memref<1x128xf32, #tpu.memory_space<vmem>>, vector<1x128xf32>
    %cst_69 = arith.constant 9.99999974E-6 : f32
    %98 = vector.broadcast %cst_69 : f32 to vector<1x128xf32>
    %99 = arith.addf %96, %98 : vector<1x128xf32>
    %100 = math.rsqrt %99 : vector<1x128xf32>
    %101 = arith.mulf %97, %100 : vector<1x128xf32>
    %102 = vector.broadcast %101 : vector<1x128xf32> to vector<392x128xf32>
    %103 = arith.mulf %87, %102 : vector<392x128xf32>
    %c0_70 = arith.constant 0 : index
    %c0_71 = arith.constant 0 : index
    %104 = vector.load %arg6[%c0_70, %c0_71] : memref<1x128xf32, #tpu.memory_space<vmem>>, vector<1x128xf32>
    %105 = vector.broadcast %104 : vector<1x128xf32> to vector<392x128xf32>
    %106 = arith.addf %103, %105 : vector<392x128xf32>
    %cst_72 = arith.constant 0.000000e+00 : f32
    %107 = vector.broadcast %cst_72 : f32 to vector<392x128xf32>
    %108 = arith.maximumf %106, %107 : vector<392x128xf32>
    %c0_73 = arith.constant 0 : index
    %c0_74 = arith.constant 0 : index
    %109 = vector.load %arg8[%c0_73, %c0_74] : memref<392x128xf32, #tpu.memory_space<vmem>>, vector<392x128xf32>
    tpu.vector_store %arg8[%c0_73, %c0_74], %108 {strides = array<i32>} : memref<392x128xf32, #tpu.memory_space<vmem>>, vector<392x128xf32>,
    return
  }
}

</mosaic_0001>

<bundles_post_ra>
// kernel: tpu_custom_call.1
= control target key start
LH: loop header
LB: loop body
LE: loop exit
PB: predicated region body
PF: predicated region fallthrough
CT: control target
= control target key end

     0   :  { %13 = vsyncpa [#allocation4], 0  ;;  %s12228_s0 = inlined_call_operand.vmem [shape: f32[392,27], index: 0, kind: input, shape index: {}]   ;;  %s12229_s1 = inlined_call_operand.vmem [shape: f32[27,128], index: 1, kind: input, shape index: {}]   ;;  %s12230_s2 = inlined_call_operand.vmem [shape: f32[1,128], index: 2, kind: input, shape index: {}]   ;;  %s12231_s3 = inlined_call_operand.vmem [shape: f32[1,128], index: 3, kind: input, shape index: {}]   ;;  %s12232_s4 = inlined_call_operand.hbm [shape: f32[9,128,128], index: 4, kind: input, shape index: {}]   ;;  %s12233_s5 = inlined_call_operand.vmem [shape: f32[1,128], index: 5, kind: input, shape index: {}]   ;;  %s12234_s6 = inlined_call_operand.vmem [shape: f32[1,128], index: 6, kind: input, shape index: {}]   ;;  %s12235_s7 = inlined_call_operand.vmem [shape: f32[392,1], index: 7, kind: input, shape index: {}]   ;;  %s12236_s8 = inlined_call_operand.hbm [shape: f32[392,128], index: 8, kind: output, shape index: {}]  }
   0x1   :  { %14 = vsyncpa [#allocation5], 0  ;;  %s8140_s27 = smov [#allocation3]  }
   0x2   :  { %s28_s28 = sshll.u32 %s8140_s27, 4  ;;  %s29_s28 = int_to_ptr.vmem [resolvable:$true] %s28_s28 }
   0x3   :  { %s8104_s29 = scalar_lea.vmem %s29_s28, 18432  ;;  %p8109_p1 = scmp.lt.s32.totalorder %s29_s28, %s29_s28 }
   0x4   :  { %p8105_p0 = scmp.ne.s32.totalorder %s29_s28, %s8104_s29  ;;  %p8110_p2 = scmp.lt.s32.totalorder %s8104_s29, %s8104_s29 }
   0x6   :  { %p8111_p3 = por %p8110_p2, %p8109_p1 }
   0x8   :  { %p8112_p4 = pnand %p8111_p3, %p8105_p0 }
   0xa   :  { %8115 = shalt.err (!%p8112_p4)
}
   0xb   :  { %s8141_s30 = smov 128   ;;  %s8142_s9 = smov 8  }
   0xc   :  { %34 = dma.hbm_to_vmem [thread:$0]  %s12232_s4, 18432, %s29_s28, [#allocation4], %s8141_s30, %s8141_s30, %s8142_s9  }
   0xd   :  { %8136 = dma.done.wait [#allocation4], 18432  }
   0xe   :  { %8137 = vsyncadd [#allocation4], 4294948864  ;;  %v12237_v0 = vmov 0.0   ;;  %vm8144_vm0 = vmmov 0   ;;  %vm245_vm1 = vcmask 1042432   ;;  %v95_v2 = vld [vmem:[%s12229_s1 + $0x10] sm:$0xff] }
   0xf   :  { %6279 = vmatprep.subr.mxu0 %v12237_v0  ;;  %980 = vst [vmem:[#allocation2 + $0x188] sm:$0xff] %v12237_v0  ;;  %981 = vst [vmem:[#allocation2 + $0x190] sm:$0xff] %v12237_v0  ;;  %6287 = vmatprep.mubr.msk.f32.mxu0 %vm8144_vm0, %v12237_v0  ;;  %v96_v1 = vld [vmem:[%s12229_s1 + $0x18] sm:$0x7]  ;;  %v94_v3 = vld [vmem:[%s12229_s1 + $0x8] sm:$0xff]  ;;  %vm97_vm2 = vcmask 220160  }
  0x10   :  { %982 = vst [vmem:[#allocation2 + $0x198] sm:$0xff] %v12237_v0  ;;  %983 = vst [vmem:[#allocation2 + $0x1a0] sm:$0xff] %v12237_v0  ;;  %6434 = vmatprep.subr.mxu1 %v12237_v0  ;;  %6466 = vmatprep.mubr.msk.f32.mxu1 %vm8144_vm0, %v12237_v0  ;;  %v93_v4 = vld [vmem:[%s12229_s1] sm:$0xff]  ;;  %v45_v6 = vld [vmem:[%s12228_s0 + $0x8] sm:$0xff] }
  0x11   :  { %6280 = vmatpush3.msk.msra.mxu0 %vm245_vm1, %v96_v1  ;;  %v44_v5 = vld [vmem:[%s12228_s0] sm:$0xff]  ;;  %v46_v7 = vld [vmem:[%s12228_s0 + $0x10] sm:$0xff]  ;;  %v47_v8 = vld [vmem:[%s12228_s0 + $0x18] sm:$0xff] }
  0x12   :  { %6281 = vmatprep.subr.mxu0 %v12237_v0  ;;  %v48_v9 = vld [vmem:[%s12228_s0 + $0x20] sm:$0xff]  ;;  %v49_v10 = vld [vmem:[%s12228_s0 + $0x28] sm:$0xff]  ;;  %v50_v11 = vld [vmem:[%s12228_s0 + $0x30] sm:$0xff] }
  0x13   :  { %6282 = vmatpush3.msra.mxu0 %v95_v2  ;;  %v51_v12 = vld [vmem:[%s12228_s0 + $0x38] sm:$0xff]  ;;  %v52_v13 = vld [vmem:[%s12228_s0 + $0x40] sm:$0xff]  ;;  %v53_v14 = vld [vmem:[%s12228_s0 + $0x48] sm:$0xff] }
  0x14   :  { %6283 = vmatprep.subr.mxu0 %v12237_v0  ;;  %v54_v15 = vld [vmem:[%s12228_s0 + $0x50] sm:$0xff]  ;;  %v55_v16 = vld [vmem:[%s12228_s0 + $0x58] sm:$0xff]  ;;  %v56_v17 = vld [vmem:[%s12228_s0 + $0x60] sm:$0xff] }
  0x15   :  { %6284 = vmatpush3.msra.mxu0 %v94_v3  ;;  %v57_v18 = vld [vmem:[%s12228_s0 + $0x68] sm:$0xff]  ;;  %v58_v19 = vld [vmem:[%s12228_s0 + $0x70] sm:$0xff]  ;;  %v59_v20 = vld [vmem:[%s12228_s0 + $0x78] sm:$0xff] }
  0x16   :  { %6285 = vmatprep.subr.mxu0 %v12237_v0  ;;  %v60_v21 = vld [vmem:[%s12228_s0 + $0x80] sm:$0xff]  ;;  %v61_v22 = vld [vmem:[%s12228_s0 + $0x88] sm:$0xff]  ;;  %v62_v23 = vld [vmem:[%s12228_s0 + $0x90] sm:$0xff] }
  0x17   :  { %6286 = vmatpush3.msra.mxu0 %v93_v4  ;;  %v63_v24 = vld [vmem:[%s12228_s0 + $0x98] sm:$0xff]  ;;  %v64_v25 = vld [vmem:[%s12228_s0 + $0xa0] sm:$0xff]  ;;  %v65_v26 = vld [vmem:[%s12228_s0 + $0xa8] sm:$0xff] }
  0x18   :  { %6288 = vmatmul.mubr.msk.f32.vlgmr.msra.gmra.mxu0 %vm97_vm2, %v44_v5  ;;  %6613 = vmatprep.subr.mxu0 %v12237_v0  ;;  %v66_v27 = vld [vmem:[%s12228_s0 + $0xb0] sm:$0xff]  ;;  %v67_v28 = vld [vmem:[%s12228_s0 + $0xb8] sm:$0xff]  ;;  %v68_v29 = vld [vmem:[%s12228_s0 + $0xc0] sm:$0xff] }
  0x19   :  { %6290 = vmatprep.mubr.msk.f32.mxu0 %vm8144_vm0, %v12237_v0  ;;  %v69_v30 = vld [vmem:[%s12228_s0 + $0xc8] sm:$0xff]  ;;  %v70_v31 = vld [vmem:[%s12228_s0 + $0xd0] sm:$0xff]  ;;  %v71_v32 = vld [vmem:[%s12228_s0 + $0xd8] sm:$0xff] }
  0x1a   :  { %v72_v33 = vld [vmem:[%s12228_s0 + $0xe0] sm:$0xff]  ;;  %v73_v34 = vld [vmem:[%s12228_s0 + $0xe8] sm:$0xff]  ;;  %v74_v35 = vld [vmem:[%s12228_s0 + $0xf0] sm:$0xff] }
  0x1b   :  { %v75_v36 = vld [vmem:[%s12228_s0 + $0xf8] sm:$0xff]  ;;  %v76_v37 = vld [vmem:[%s12228_s0 + $0x100] sm:$0xff]  ;;  %v77_v38 = vld [vmem:[%s12228_s0 + $0x108] sm:$0xff] }
  0x1c   :  { %6291 = vmatmul.mubr.msk.f32.gmra.mxu0 %vm97_vm2, %v45_v6  ;;  %v78_v39 = vld [vmem:[%s12228_s0 + $0x110] sm:$0xff]  ;;  %v79_v40 = vld [vmem:[%s12228_s0 + $0x118] sm:$0xff]  ;;  %v80_v41 = vld [vmem:[%s12228_s0 + $0x120] sm:$0xff] }
  0x1d   :  { %6293 = vmatprep.mubr.msk.f32.mxu0 %vm8144_vm0, %v12237_v0  ;;  %v81_v42 = vld [vmem:[%s12228_s0 + $0x128] sm:$0xff]  ;;  %v82_v43 = vld [vmem:[%s12228_s0 + $0x130] sm:$0xff]  ;;  %v83_v44 = vld [vmem:[%s12228_s0 + $0x138] sm:$0xff] }
  0x1e   :  { %v84_v45 = vld [vmem:[%s12228_s0 + $0x140] sm:$0xff]  ;;  %v85_v46 = vld [vmem:[%s12228_s0 + $0x148] sm:$0xff]  ;;  %v86_v47 = vld [vmem:[%s12228_s0 + $0x150] sm:$0xff] }
  0x1f   :  { %v87_v48 = vld [vmem:[%s12228_s0 + $0x158] sm:$0xff]  ;;  %v88_v49 = vld [vmem:[%s12228_s0 + $0x160] sm:$0xff]  ;;  %v89_v50 = vld [vmem:[%s12228_s0 + $0x168] sm:$0xff] }
  0x20   :  { %6294 = vmatmul.mubr.msk.f32.gmra.mxu0 %vm97_vm2, %v46_v7  ;;  %v90_v51 = vld [vmem:[%s12228_s0 + $0x170] sm:$0xff]  ;;  %v91_v52 = vld [vmem:[%s12228_s0 + $0x178] sm:$0xff]  ;;  %v92_v53 = vld [vmem:[%s12228_s0 + $0x180] sm:$0xff] }
  0x21   :  { %6296 = vmatprep.mubr.msk.f32.mxu0 %vm8144_vm0, %v12237_v0 }
  0x24   :  { %6297 = vmatmul.mubr.msk.f32.gmra.mxu0 %vm97_vm2, %v47_v8 }
  0x25   :  { %6299 = vmatprep.mubr.msk.f32.mxu0 %vm8144_vm0, %v12237_v0 }
  0x28   :  { %6300 = vmatmul.mubr.msk.f32.gmra.mxu0 %vm97_vm2, %v48_v9 }
  0x29   :  { %6302 = vmatprep.mubr.msk.f32.mxu0 %vm8144_vm0, %v12237_v0 }
  0x2c   :  { %6303 = vmatmul.mubr.msk.f32.gmra.mxu0 %vm97_vm2, %v49_v10 }
  0x2d   :  { %6305 = vmatprep.mubr.msk.f32.mxu0 %vm8144_vm0, %v12237_v0 }
  0x30   :  { %6306 = vmatmul.mubr.msk.f32.gmra.mxu0 %vm97_vm2, %v50_v11 }
  0x31   :  { %6308 = vmatprep.mubr.msk.f32.mxu0 %vm8144_vm0, %v12237_v0 }
  0x34   :  { %6309 = vmatmul.mubr.msk.f32.gmra.mxu0 %vm97_vm2, %v51_v12 }
  0x35   :  { %6311 = vmatprep.mubr.msk.f32.mxu0 %vm8144_vm0, %v12237_v0 }
  0x38   :  { %6312 = vmatmul.mubr.msk.f32.gmra.mxu0 %vm97_vm2, %v52_v13 }
  0x39   :  { %6314 = vmatprep.mubr.msk.f32.mxu0 %vm8144_vm0, %v12237_v0 }
  0x3c   :  { %6315 = vmatmul.mubr.msk.f32.gmra.mxu0 %vm97_vm2, %v53_v14 }
  0x3d   :  { %6317 = vmatprep.mubr.msk.f32.mxu0 %vm8144_vm0, %v12237_v0 }
  0x40   :  { %6318 = vmatmul.mubr.msk.f32.gmra.mxu0 %vm97_vm2, %v54_v15 }
  0x41   :  { %6320 = vmatprep.mubr.msk.f32.mxu0 %vm8144_vm0, %v12237_v0 }
  0x44   :  { %6321 = vmatmul.mubr.msk.f32.gmra.mxu0 %vm97_vm2, %v55_v16 }
  0x45   :  { %6323 = vmatprep.mubr.msk.f32.mxu0 %vm8144_vm0, %v12237_v0 }
  0x48   :  { %6324 = vmatmul.mubr.msk.f32.gmra.mxu0 %vm97_vm2, %v56_v17 }
  0x49   :  { %6326 = vmatprep.mubr.msk.f32.mxu0 %vm8144_vm0, %v12237_v0 }
  0x4c   :  { %6327 = vmatmul.mubr.msk.f32.gmra.mxu0 %vm97_vm2, %v57_v18 }
  0x4d   :  { %6329 = vmatprep.mubr.msk.f32.mxu0 %vm8144_vm0, %v12237_v0 }
  0x50   :  { %6330 = vmatmul.mubr.msk.f32.gmra.mxu0 %vm97_vm2, %v58_v19 }
  0x51   :  { %6332 = vmatprep.mubr.msk.f32.mxu0 %vm8144_vm0, %v12237_v0 }
  0x54   :  { %6333 = vmatmul.mubr.msk.f32.gmra.mxu0 %vm97_vm2, %v59_v20 }
  0x55   :  { %6335 = vmatprep.mubr.msk.f32.mxu0 %vm8144_vm0, %v12237_v0 }
  0x58   :  { %6336 = vmatmul.mubr.msk.f32.gmra.mxu0 %vm97_vm2, %v60_v21 }
  0x59   :  { %6338 = vmatprep.mubr.msk.f32.mxu0 %vm8144_vm0, %v12237_v0 }
  0x5c   :  { %6339 = vmatmul.mubr.msk.f32.gmra.mxu0 %vm97_vm2, %v61_v22 }
  0x5d   :  { %6341 = vmatprep.mubr.msk.f32.mxu0 %vm8144_vm0, %v12237_v0 }
  0x60   :  { %6342 = vmatmul.mubr.msk.f32.gmra.mxu0 %vm97_vm2, %v62_v23 }
  0x61   :  { %6344 = vmatprep.mubr.msk.f32.mxu0 %vm8144_vm0, %v12237_v0 }
  0x64   :  { %6345 = vmatmul.mubr.msk.f32.gmra.mxu0 %vm97_vm2, %v63_v24 }
  0x65   :  { %6347 = vmatprep.mubr.msk.f32.mxu0 %vm8144_vm0, %v12237_v0 }
  0x68   :  { %6348 = vmatmul.mubr.msk.f32.gmra.mxu0 %vm97_vm2, %v64_v25 }
  0x69   :  { %6350 = vmatprep.mubr.msk.f32.mxu0 %vm8144_vm0, %v12237_v0 }
  0x6c   :  { %6351 = vmatmul.mubr.msk.f32.gmra.mxu0 %vm97_vm2, %v65_v26 }
  0x6d   :  { %6353 = vmatprep.mubr.msk.f32.mxu0 %vm8144_vm0, %v12237_v0 }
  0x70   :  { %6354 = vmatmul.mubr.msk.f32.gmra.mxu0 %vm97_vm2, %v66_v27 }
  0x71   :  { %6356 = vmatprep.mubr.msk.f32.mxu0 %vm8144_vm0, %v12237_v0 }
  0x74   :  { %6357 = vmatmul.mubr.msk.f32.gmra.mxu0 %vm97_vm2, %v67_v28 }
  0x75   :  { %6359 = vmatprep.mubr.msk.f32.mxu0 %vm8144_vm0, %v12237_v0 }
  0x78   :  { %6360 = vmatmul.mubr.msk.f32.gmra.mxu0 %vm97_vm2, %v68_v29 }
  0x79   :  { %6362 = vmatprep.mubr.msk.f32.mxu0 %vm8144_vm0, %v12237_v0 }
  0x7c   :  { %6363 = vmatmul.mubr.msk.f32.gmra.mxu0 %vm97_vm2, %v69_v30 }
  0x7d   :  { %6365 = vmatprep.mubr.msk.f32.mxu0 %vm8144_vm0, %v12237_v0 }
  0x80   :  { %6366 = vmatmul.mubr.msk.f32.gmra.mxu0 %vm97_vm2, %v70_v31 }
  0x81   :  { %6368 = vmatprep.mubr.msk.f32.mxu0 %vm8144_vm0, %v12237_v0 }
  0x84   :  { %6369 = vmatmul.mubr.msk.f32.gmra.mxu0 %vm97_vm2, %v71_v32 }
  0x85   :  { %6371 = vmatprep.mubr.msk.f32.mxu0 %vm8144_vm0, %v12237_v0 }
  0x88   :  { %6372 = vmatmul.mubr.msk.f32.gmra.mxu0 %vm97_vm2, %v72_v33 }
  0x89   :  { %6374 = vmatprep.mubr.msk.f32.mxu0 %vm8144_vm0, %v12237_v0 }
  0x8c   :  { %6375 = vmatmul.mubr.msk.f32.gmra.mxu0 %vm97_vm2, %v73_v34 }
  0x8d   :  { %6377 = vmatprep.mubr.msk.f32.mxu0 %vm8144_vm0, %v12237_v0 }
  0x90   :  { %6378 = vmatmul.mubr.msk.f32.gmra.mxu0 %vm97_vm2, %v74_v35 }
  0x91   :  { %6380 = vmatprep.mubr.msk.f32.mxu0 %vm8144_vm0, %v12237_v0 }
  0x94   :  { %6381 = vmatmul.mubr.msk.f32.gmra.mxu0 %vm97_vm2, %v75_v36 }
  0x95   :  { %6383 = vmatprep.mubr.msk.f32.mxu0 %vm8144_vm0, %v12237_v0 }
  0x98   :  { %6384 = vmatmul.mubr.msk.f32.gmra.mxu0 %vm97_vm2, %v76_v37 }
  0x99   :  { %6386 = vmatprep.mubr.msk.f32.mxu0 %vm8144_vm0, %v12237_v0 }
  0x9c   :  { %6387 = vmatmul.mubr.msk.f32.gmra.mxu0 %vm97_vm2, %v77_v38 }
  0x9d   :  { %6389 = vmatprep.mubr.msk.f32.mxu0 %vm8144_vm0, %v12237_v0 }
  0xa0   :  { %6390 = vmatmul.mubr.msk.f32.gmra.mxu0 %vm97_vm2, %v78_v39 }
  0xa1   :  { %6392 = vmatprep.mubr.msk.f32.mxu0 %vm8144_vm0, %v12237_v0 }
  0xa4   :  { %6393 = vmatmul.mubr.msk.f32.gmra.mxu0 %vm97_vm2, %v79_v40 }
  0xa5   :  { %6395 = vmatprep.mubr.msk.f32.mxu0 %vm8144_vm0, %v12237_v0 }
  0xa8   :  { %6396 = vmatmul.mubr.msk.f32.gmra.mxu0 %vm97_vm2, %v80_v41 }
  0xa9   :  { %6398 = vmatprep.mubr.msk.f32.mxu0 %vm8144_vm0, %v12237_v0 }
  0xac   :  { %6399 = vmatmul.mubr.msk.f32.gmra.mxu0 %vm97_vm2, %v81_v42 }
  0xad   :  { %6401 = vmatprep.mubr.msk.f32.mxu0 %vm8144_vm0, %v12237_v0 }
  0xb0   :  { %6402 = vmatmul.mubr.msk.f32.gmra.mxu0 %vm97_vm2, %v82_v43 }
  0xb1   :  { %6404 = vmatprep.mubr.msk.f32.mxu0 %vm8144_vm0, %v12237_v0 }
  0xb4   :  { %6405 = vmatmul.mubr.msk.f32.gmra.mxu0 %vm97_vm2, %v83_v44 }
  0xb5   :  { %6407 = vmatprep.mubr.msk.f32.mxu0 %vm8144_vm0, %v12237_v0 }
  0xb8   :  { %6408 = vmatmul.mubr.msk.f32.gmra.mxu0 %vm97_vm2, %v84_v45 }
  0xb9   :  { %6410 = vmatprep.mubr.msk.f32.mxu0 %vm8144_vm0, %v12237_v0 }
  0xbc   :  { %6411 = vmatmul.mubr.msk.f32.gmra.mxu0 %vm97_vm2, %v85_v46 }
  0xbd   :  { %6413 = vmatprep.mubr.msk.f32.mxu0 %vm8144_vm0, %v12237_v0 }
  0xc0   :  { %6414 = vmatmul.mubr.msk.f32.gmra.mxu0 %vm97_vm2, %v86_v47 }
  0xc1   :  { %6416 = vmatprep.mubr.msk.f32.mxu0 %vm8144_vm0, %v12237_v0 }
  0xc4   :  { %6417 = vmatmul.mubr.msk.f32.gmra.mxu0 %vm97_vm2, %v87_v48 }
  0xc5   :  { %6419 = vmatprep.mubr.msk.f32.mxu0 %vm8144_vm0, %v12237_v0 }
  0xc8   :  { %6420 = vmatmul.mubr.msk.f32.gmra.mxu0 %vm97_vm2, %v88_v49 }
  0xc9   :  { %6422 = vmatprep.mubr.msk.f32.mxu0 %vm8144_vm0, %v12237_v0 }
  0xcc   :  { %6423 = vmatmul.mubr.msk.f32.gmra.mxu0 %vm97_vm2, %v89_v50 }
  0xcd   :  { %6425 = vmatprep.mubr.msk.f32.mxu0 %vm8144_vm0, %v12237_v0 }
  0xd0   :  { %6426 = vmatmul.mubr.msk.f32.gmra.mxu0 %vm97_vm2, %v90_v51 }
  0xd1   :  { %6428 = vmatprep.mubr.msk.f32.mxu0 %vm8144_vm0, %v12237_v0 }
  0xd4   :  { %6429 = vmatmul.mubr.msk.f32.gmra.mxu0 %vm97_vm2, %v91_v52 }
  0xd5   :  { %6431 = vmatprep.mubr.msk.f32.mxu0 %vm8144_vm0, %v12237_v0 }
  0xd8   :  { %v8515_v54 = vpop.f32.mrf.mxu0  ;;  %6432 = vmatmul.mubr.msk.f32.gmra.mxu0 %vm97_vm2, %v92_v53 }
  0xd9   :  { %6645 = vmatprep.mubr.msk.f32.mxu0 %vm8144_vm0, %v12237_v0 }
  0xda   :  { %v6289_v55 = vpop.f32.mrf.mxu0 }
  0xdc   :  { %v8520_v56 = vpop.f32.mrf.mxu0 }
  0xdd   :  { %v559_v41 = vadd.f32 %v8520_v56, %v8515_v54 }
  0xde   :  { %v6292_v57 = vpop.f32.mrf.mxu0 }
  0xe0   :  { %v8522_v58 = vpop.f32.mrf.mxu0 }
  0xe1   :  { %v560_v43 = vadd.f32 %v559_v41, %v8522_v58 }
  0xe2   :  { %v6295_v59 = vpop.f32.mrf.mxu0 }
  0xe4   :  { %v8524_v60 = vpop.f32.mrf.mxu0 }
  0xe5   :  { %v561_v45 = vadd.f32 %v560_v43, %v8524_v60 }
  0xe6   :  { %v6298_v61 = vpop.f32.mrf.mxu0 }
  0xe8   :  { %v8526_v62 = vpop.f32.mrf.mxu0 }
  0xe9   :  { %v562_v47 = vadd.f32 %v561_v45, %v8526_v62 }
  0xea   :  { %v6301_v63 = vpop.f32.mrf.mxu0 }
  0xec   :  { %v8528_v1 = vpop.f32.mrf.mxu0 }
  0xed   :  { %v563_v49 = vadd.f32 %v562_v47, %v8528_v1 }
  0xee   :  { %v6304_v2 = vpop.f32.mrf.mxu0 }
  0xf0   :  { %v8530_v3 = vpop.f32.mrf.mxu0 }
  0xf1   :  { %v564_v51 = vadd.f32 %v563_v49, %v8530_v3 }
  0xf2   :  { %v6307_v4 = vpop.f32.mrf.mxu0 }
  0xf4   :  { %v8532_v5 = vpop.f32.mrf.mxu0 }
  0xf5   :  { %v565_v53 = vadd.f32 %v564_v51, %v8532_v5 }
  0xf6   :  { %v6310_v6 = vpop.f32.mrf.mxu0 }
  0xf8   :  { %v8534_v7 = vpop.f32.mrf.mxu0 }
  0xf9   :  { %v566_v57 = vadd.f32 %v565_v53, %v8534_v7 }
  0xfa   :  { %v6313_v8 = vpop.f32.mrf.mxu0 }
  0xfc   :  { %v8536_v9 = vpop.f32.mrf.mxu0 }
  0xfd   :  { %v567_v61 = vadd.f32 %v566_v57, %v8536_v9 }
  0xfe   :  { %v6316_v10 = vpop.f32.mrf.mxu0 }
 0x100   :  { %v8538_v11 = vpop.f32.mrf.mxu0 }
 0x101   :  { %v568_v2 = vadd.f32 %v567_v61, %v8538_v11 }
 0x102   :  { %v6319_v12 = vpop.f32.mrf.mxu0 }
 0x104   :  { %v8540_v13 = vpop.f32.mrf.mxu0 }
 0x105   :  { %v569_v6 = vadd.f32 %v568_v2, %v8540_v13 }
 0x106   :  { %v6322_v14 = vpop.f32.mrf.mxu0 }
 0x108   :  { %v8542_v15 = vpop.f32.mrf.mxu0 }
 0x109   :  { %v570_v10 = vadd.f32 %v569_v6, %v8542_v15 }
 0x10a   :  { %v6325_v16 = vpop.f32.mrf.mxu0 }
 0x10c   :  { %v8544_v17 = vpop.f32.mrf.mxu0 }
 0x10d   :  { %v571_v14 = vadd.f32 %v570_v10, %v8544_v17 }
 0x10e   :  { %v6328_v18 = vpop.f32.mrf.mxu0 }
 0x110   :  { %v8546_v19 = vpop.f32.mrf.mxu0 }
 0x111   :  { %v572_v18 = vadd.f32 %v571_v14, %v8546_v19 }
 0x112   :  { %v6331_v20 = vpop.f32.mrf.mxu0 }
 0x114   :  { %v8548_v21 = vpop.f32.mrf.mxu0 }
 0x116   :  { %v6334_v22 = vpop.f32.mrf.mxu0 }
 0x117   :  { %v573_v22 = vadd.f32 %v572_v18, %v8548_v21 }
 0x118   :  { %v8550_v23 = vpop.f32.mrf.mxu0 }
 0x11a   :  { %v6337_v24 = vpop.f32.mrf.mxu0 }
 0x11c   :  { %v8552_v25 = vpop.f32.mrf.mxu0 }
 0x11e   :  { %v6340_v26 = vpop.f32.mrf.mxu0 }
 0x11f   :  { %v574_v26 = vadd.f32 %v573_v22, %v8550_v23 }
 0x120   :  { %v8554_v27 = vpop.f32.mrf.mxu0 }
 0x122   :  { %v6343_v28 = vpop.f32.mrf.mxu0 }
 0x124   :  { %v8556_v29 = vpop.f32.mrf.mxu0 }
 0x126   :  { %v6346_v30 = vpop.f32.mrf.mxu0 }
 0x127   :  { %v575_v30 = vadd.f32 %v574_v26, %v8552_v25 }
 0x128   :  { %v8558_v31 = vpop.f32.mrf.mxu0 }
 0x12a   :  { %v6349_v32 = vpop.f32.mrf.mxu0 }
 0x12c   :  { %v8560_v33 = vpop.f32.mrf.mxu0 }
 0x12e   :  { %v6352_v34 = vpop.f32.mrf.mxu0 }
 0x12f   :  { %v576_v34 = vadd.f32 %v575_v30, %v8554_v27 }
 0x130   :  { %v8562_v35 = vpop.f32.mrf.mxu0 }
 0x132   :  { %v6355_v36 = vpop.f32.mrf.mxu0 }
 0x134   :  { %v8564_v37 = vpop.f32.mrf.mxu0 }
 0x136   :  { %v6358_v38 = vpop.f32.mrf.mxu0 }
 0x137   :  { %v577_v38 = vadd.f32 %v576_v34, %v8556_v29 }
 0x138   :  { %v8566_v39 = vpop.f32.mrf.mxu0 }
 0x139   :  { %v578_v41 = vadd.f32 %v577_v38, %v8558_v31 }
 0x13a   :  { %v6361_v40 = vpop.f32.mrf.mxu0 }
 0x13c   :  { %v8570_v42 = vpop.f32.mrf.mxu0 }
 0x13e   :  { %v6364_v44 = vpop.f32.mrf.mxu0 }
 0x13f   :  { %v579_v44 = vadd.f32 %v578_v41, %v8560_v33 }
 0x140   :  { %v8574_v46 = vpop.f32.mrf.mxu0 }
 0x141   :  { %v580_v47 = vadd.f32 %v579_v44, %v8562_v35 }
 0x142   :  { %v6367_v48 = vpop.f32.mrf.mxu0 }
 0x143   :  { %v581_v49 = vadd.f32 %v580_v47, %v8564_v37 }
 0x144   :  { %v8578_v50 = vpop.f32.mrf.mxu0 }
 0x146   :  { %v6370_v52 = vpop.f32.mrf.mxu0 }
 0x147   :  { %v582_v52 = vadd.f32 %v581_v49, %v8566_v39 }
 0x148   :  { %v8582_v55 = vpop.f32.mrf.mxu0 }
 0x149   :  { %v583_v57 = vadd.f32 %v582_v52, %v8570_v42 }
 0x14a   :  { %v6373_v59 = vpop.f32.mrf.mxu0 }
 0x14b   :  { %v584_v61 = vadd.f32 %v583_v57, %v8574_v46 }
 0x14c   :  { %v8586_v63 = vpop.f32.mrf.mxu0 }
 0x14e   :  { %v6376_v4 = vpop.f32.mrf.mxu0 }
 0x14f   :  { %v585_v4 = vadd.f32 %v584_v61, %v8578_v50 }
 0x150   :  { %v8590_v8 = vpop.f32.mrf.mxu0 }
 0x151   :  { %v586_v10 = vadd.f32 %v585_v4, %v8582_v55 }
 0x152   :  { %v6379_v12 = vpop.f32.mrf.mxu0 }
 0x153   :  { %v587_v14 = vadd.f32 %v586_v10, %v8586_v63 }
 0x154   :  { %v8594_v16 = vpop.f32.mrf.mxu0 }
 0x156   :  { %v6382_v20 = vpop.f32.mrf.mxu0 }
 0x157   :  { %v588_v20 = vadd.f32 %v587_v14, %v8590_v8 }
 0x158   :  { %v8598_v24 = vpop.f32.mrf.mxu0 }
 0x159   :  { %v589_v26 = vadd.f32 %v588_v20, %v8594_v16 }
 0x15a   :  { %v6385_v28 = vpop.f32.mrf.mxu0 }
 0x15b   :  { %v590_v30 = vadd.f32 %v589_v26, %v8598_v24 }
 0x15c   :  { %v8602_v32 = vpop.f32.mrf.mxu0 }
 0x15e   :  { %v6388_v36 = vpop.f32.mrf.mxu0 }
 0x15f   :  { %v591_v36 = vadd.f32 %v590_v30, %v8602_v32 }
 0x160   :  { %v8606_v40 = vpop.f32.mrf.mxu0 }
 0x161   :  { %v592_v41 = vadd.f32 %v591_v36, %v8606_v40 }
 0x162   :  { %v6391_v43 = vpop.f32.mrf.mxu0 }
 0x164   :  { %v8610_v45 = vpop.f32.mrf.mxu0 }
 0x165   :  { %v593_v44 = vadd.f32 %v592_v41, %v8610_v45 }
 0x166   :  { %v6394_v48 = vpop.f32.mrf.mxu0 }
 0x168   :  { %v8614_v51 = vpop.f32.mrf.mxu0 }
 0x169   :  { %12366 = vst [vmem:[#allocation9_spill] sm:$0xff] %v8614_v51  ;;  %v594_v48 = vadd.f32 %v593_v44, %v8614_v51 }
 0x16a   :  { %v6397_v53 = vpop.f32.mrf.mxu0 }
 0x16c   :  { %v8618_v59 = vpop.f32.mrf.mxu0 }
 0x16d   :  { %12367 = vst [vmem:[#allocation10_spill] sm:$0xff] %v8618_v59  ;;  %v595_v52 = vadd.f32 %v594_v48, %v8618_v59 }
 0x16e   :  { %v6400_v2 = vpop.f32.mrf.mxu0 }
 0x170   :  { %v8622_v6 = vpop.f32.mrf.mxu0 }
 0x171   :  { %12368 = vst [vmem:[#allocation11_spill] sm:$0xff] %v8622_v6  ;;  %v596_v57 = vadd.f32 %v595_v52, %v8622_v6 }
 0x172   :  { %v6403_v12 = vpop.f32.mrf.mxu0 }
 0x174   :  { %v510_v18 = vpop.f32.mrf.mxu0 }
 0x175   :  { %v597_v2 = vadd.f32 %v596_v57, %v510_v18 }
 0x176   :  { %v6406_v22 = vpop.f32.mrf.mxu0 }
 0x178   :  { %v515_v28 = vpop.f32.mrf.mxu0 }
 0x179   :  { %v598_v10 = vadd.f32 %v597_v2, %v515_v28 }
 0x17a   :  { %v6409_v34 = vpop.f32.mrf.mxu0 }
 0x17c   :  { %v520_v38 = vpop.f32.mrf.mxu0 }
 0x17d   :  { %v599_v14 = vadd.f32 %v598_v10, %v520_v38 }
 0x17e   :  { %v6412_v43 = vpop.f32.mrf.mxu0 }
 0x180   :  { %v525_v47 = vpop.f32.mrf.mxu0 }
 0x181   :  { %v600_v22 = vadd.f32 %v599_v14, %v525_v47 }
 0x182   :  { %v6415_v49 = vpop.f32.mrf.mxu0 }
 0x184   :  { %v530_v53 = vpop.f32.mrf.mxu0 }
 0x185   :  { %v601_v30 = vadd.f32 %v600_v22, %v530_v53 }
 0x186   :  { %v6418_v61 = vpop.f32.mrf.mxu0 }
 0x188   :  { %v535_v4 = vpop.f32.mrf.mxu0 }
 0x189   :  { %v602_v36 = vadd.f32 %v601_v30, %v535_v4 }
 0x18a   :  { %v6421_v12 = vpop.f32.mrf.mxu0 }
 0x18c   :  { %v540_v20 = vpop.f32.mrf.mxu0 }
 0x18d   :  { %v603_v43 = vadd.f32 %v602_v36, %v540_v20 }
 0x18e   :  { %v6424_v26 = vpop.f32.mrf.mxu0 }
 0x190   :  { %v545_v34 = vpop.f32.mrf.mxu0 }
 0x191   :  { %v604_v49 = vadd.f32 %v603_v43, %v545_v34 }
 0x192   :  { %v6427_v41 = vpop.f32.mrf.mxu0 }
 0x194   :  { %v550_v44 = vpop.f32.mrf.mxu0 }
 0x195   :  { %v605_v0 = vadd.f32 %v604_v49, %v550_v44 }
 0x196   :  { %v6430_v48 = vpop.f32.mrf.mxu0 }
 0x198   :  { %v555_v59 = vpop.f32.mrf.mxu0 }
 0x199   :  { %v606_v52 = vadd.f32 %v605_v0, %v555_v59 }
 0x19a   :  { %v6433_v61 = vpop.f32.mrf.mxu0 }
 0x19b   :  { %v607_v57 = vrot.slane %v606_v52, 4 }
 0x19d   :  { %v608_v6 = vadd.f32 %v607_v57, %v606_v52 }
 0x19f   :  { %v609_v2 = vrot.slane %v608_v6, 2 }
 0x1a1   :  { %v610_v12 = vadd.f32 %v609_v2, %v608_v6  ;;  %v1048_v2 = vld [vmem:[#allocation3 + $0x78] sm:$0xff] }
 0x1a2   :  { %6614 = vmatpush3.msra.mxu0 %v1048_v2 }
 0x1a3   :  { %v611_v10 = vrot.slane %v610_v12, 1 }
 0x1a5   :  { %v612_v51 = vadd.f32 %v611_v10, %v610_v12 }
 0x1a7   :  { %v8635_v14 = vmul.f32 0.0025510204, %v612_v51 }
 0x1a9   :  { %v8638_v22 = vsub.f32 %v510_v18, %v8635_v14  ;;  %v8641_v26 = vsub.f32 %v515_v28, %v8635_v14  ;;  %v8644_v30 = vsub.f32 %v520_v38, %v8635_v14  ;;  %v8647_v0 = vsub.f32 %v525_v47, %v8635_v14 }
 0x1aa   :  { %v8650_v36 = vsub.f32 %v530_v53, %v8635_v14  ;;  %v8653_v6 = vsub.f32 %v535_v4, %v8635_v14  ;;  %v8656_v51 = vsub.f32 %v540_v20, %v8635_v14  ;;  %v8659_v18 = vsub.f32 %v545_v34, %v8635_v14 }
 0x1ab   :  { %v8662_v28 = vsub.f32 %v550_v44, %v8635_v14  ;;  %v8665_v38 = vsub.f32 %v555_v59, %v8635_v14  ;;  %v8669_v47 = vsub.f32 %v8515_v54, %v8635_v14  ;;  %v8673_v53 = vsub.f32 %v8520_v56, %v8635_v14 }
 0x1ac   :  { %12369 = vst [vmem:[#allocation12_spill] sm:$0xff] %v8653_v6  ;;  %12370 = vst [vmem:[#allocation13_spill] sm:$0xff] %v8656_v51  ;;  %v8677_v4 = vsub.f32 %v8522_v58, %v8635_v14  ;;  %v8685_v59 = vsub.f32 %v8524_v60, %v8635_v14  ;;  %v8689_v54 = vsub.f32 %v8526_v62, %v8635_v14 }
 0x1ad   :  { %12371 = vst [vmem:[#allocation14_spill] sm:$0xff] %v8659_v18  ;;  %v663_v20 = vmul.f32 %v8669_v47, %v8669_v47  ;;  %v664_v34 = vmul.f32 %v8673_v53, %v8673_v53  ;;  %v8695_v58 = vsub.f32 %v8528_v1, %v8635_v14  ;;  %v8701_v60 = vsub.f32 %v8530_v3, %v8635_v14 }
 0x1ae   :  { %v665_v56 = vmul.f32 %v8677_v4, %v8677_v4  ;;  %v666_v43 = vmul.f32 %v8685_v59, %v8685_v59  ;;  %v667_v62 = vmul.f32 %v8689_v54, %v8689_v54  ;;  %v8707_v48 = vsub.f32 %v8532_v5, %v8635_v14 }
 0x1af   :  { %v712_v41 = vadd.f32 %v664_v34, %v663_v20  ;;  %v668_v1 = vmul.f32 %v8695_v58, %v8695_v58  ;;  %v8713_v61 = vsub.f32 %v8534_v7, %v8635_v14  ;;  %v669_v3 = vmul.f32 %v8701_v60, %v8701_v60  ;;  %v1047_v34 = vld [vmem:[#allocation3 + $0x70] sm:$0xff] }
 0x1b0   :  { %v8719_v12 = vsub.f32 %v8536_v9, %v8635_v14  ;;  %v670_v5 = vmul.f32 %v8707_v48, %v8707_v48  ;;  %v12372_v20 = vmov 0.0   ;;  %v8726_v7 = vsub.f32 %v8538_v11, %v8635_v14  ;;  %v1046_v9 = vld [vmem:[#allocation3 + $0x68] sm:$0xff]  ;;  %v1045_v11 = vld [vmem:[#allocation3 + $0x60] sm:$0xff] }
 0x1b1   :  { %v713_v44 = vadd.f32 %v712_v41, %v665_v56  ;;  %6615 = vmatprep.subr.mxu0 %v12372_v20  ;;  %v671_v56 = vmul.f32 %v8713_v61, %v8713_v61 }
 0x1b2   :  { %6616 = vmatpush3.msra.mxu0 %v1047_v34  ;;  %v8755_v34 = vsub.f32 %v8546_v19, %v8635_v14 }
 0x1b3   :  { %v714_v49 = vadd.f32 %v713_v44, %v666_v43  ;;  %6617 = vmatprep.subr.mxu0 %v12372_v20  ;;  %v8733_v43 = vsub.f32 %v8540_v13, %v8635_v14  ;;  %v672_v44 = vmul.f32 %v8719_v12, %v8719_v12  ;;  %v1044_v13 = vld [vmem:[#allocation3 + $0x58] sm:$0xff] }
 0x1b4   :  { %6618 = vmatpush3.msra.mxu0 %v1046_v9  ;;  %v1112_v9 = vld [vmem:[#allocation3 + $0xe8] sm:$0xff] }
 0x1b5   :  { %v715_v52 = vadd.f32 %v714_v49, %v667_v62  ;;  %6619 = vmatprep.subr.mxu0 %v12372_v20  ;;  %v8740_v49 = vsub.f32 %v8542_v15, %v8635_v14  ;;  %v674_v2 = vmul.f32 %v8733_v43, %v8733_v43  ;;  %v1043_v15 = vld [vmem:[#allocation3 + $0x50] sm:$0xff] }
 0x1b6   :  { %6620 = vmatpush3.msra.mxu0 %v1045_v11  ;;  %v1041_v11 = vld [vmem:[#allocation3 + $0x40] sm:$0xff] }
 0x1b7   :  { %v716_v57 = vadd.f32 %v715_v52, %v668_v1  ;;  %v673_v1 = vmul.f32 %v8726_v7, %v8726_v7  ;;  %6621 = vmatprep.subr.mxu0 %v12372_v20 }
 0x1b8   :  { %6622 = vmatpush3.msra.mxu0 %v1044_v13 }
 0x1b9   :  { %v717_v10 = vadd.f32 %v716_v57, %v669_v3  ;;  %v1114_v3 = vld [vmem:[#allocation3 + $0xf8] sm:$0xff]  ;;  %v8747_v57 = vsub.f32 %v8544_v17, %v8635_v14  ;;  %6623 = vmatprep.subr.mxu0 %v12372_v20  ;;  %v675_v17 = vmul.f32 %v8740_v49, %v8740_v49 }
 0x1ba   :  { %6435 = vmatpush3.msra.mxu1 %v1114_v3  ;;  %6624 = vmatpush3.msra.mxu0 %v1043_v15  ;;  %v1110_v3 = vld [vmem:[#allocation3 + $0xd8] sm:$0xff] }
 0x1bb   :  { %v718_v41 = vadd.f32 %v717_v10, %v670_v5  ;;  %6436 = vmatprep.subr.mxu1 %v12372_v20  ;;  %v1113_v10 = vld [vmem:[#allocation3 + $0xf0] sm:$0xff]  ;;  %6625 = vmatprep.subr.mxu0 %v12372_v20  ;;  %v676_v19 = vmul.f32 %v8747_v57, %v8747_v57 }
 0x1bc   :  { %6437 = vmatpush3.msra.mxu1 %v1113_v10  ;;  %v1109_v10 = vld [vmem:[#allocation3 + $0xd0] sm:$0xff] }
 0x1bd   :  { %v719_v62 = vadd.f32 %v718_v41, %v671_v56  ;;  %v1042_v41 = vld [vmem:[#allocation3 + $0x48] sm:$0xff]  ;;  %6438 = vmatprep.subr.mxu1 %v12372_v20 }
 0x1be   :  { %6626 = vmatpush3.msra.mxu0 %v1042_v41  ;;  %6439 = vmatpush3.msra.mxu1 %v1112_v9  ;;  %v1108_v9 = vld [vmem:[#allocation3 + $0xc8] sm:$0xff] }
 0x1bf   :  { %v720_v52 = vadd.f32 %v719_v62, %v672_v44  ;;  %v8763_v44 = vsub.f32 %v8548_v21, %v8635_v14  ;;  %6627 = vmatprep.subr.mxu0 %v12372_v20  ;;  %6440 = vmatprep.subr.mxu1 %v12372_v20  ;;  %v677_v21 = vmul.f32 %v8755_v34, %v8755_v34 }
 0x1c0   :  { %6628 = vmatpush3.msra.mxu0 %v1041_v11 }
 0x1c1   :  { %v721_v5 = vadd.f32 %v720_v52, %v673_v1  ;;  %v1111_v1 = vld [vmem:[#allocation3 + $0xe0] sm:$0xff]  ;;  %v8771_v52 = vsub.f32 %v8550_v23, %v8635_v14  ;;  %6629 = vmatprep.subr.mxu0 %v12372_v20  ;;  %v678_v23 = vmul.f32 %v8763_v44, %v8763_v44 }
 0x1c2   :  { %6441 = vmatpush3.msra.mxu1 %v1111_v1  ;;  %v1107_v1 = vld [vmem:[#allocation3 + $0xc0] sm:$0xff] }
 0x1c3   :  { %v722_v56 = vadd.f32 %v721_v5, %v674_v2  ;;  %6442 = vmatprep.subr.mxu1 %v12372_v20  ;;  %v1040_v2 = vld [vmem:[#allocation3 + $0x38] sm:$0xff]  ;;  %v8779_v5 = vsub.f32 %v8552_v25, %v8635_v14  ;;  %v679_v25 = vmul.f32 %v8771_v52, %v8771_v52 }
 0x1c4   :  { %6443 = vmatpush3.msra.mxu1 %v1110_v3  ;;  %6630 = vmatpush3.msra.mxu0 %v1040_v2  ;;  %v1106_v2 = vld [vmem:[#allocation3 + $0xb8] sm:$0xff] }
 0x1c5   :  { %v723_v62 = vadd.f32 %v722_v56, %v675_v17  ;;  %6444 = vmatprep.subr.mxu1 %v12372_v20  ;;  %6631 = vmatprep.subr.mxu0 %v12372_v20  ;;  %v1039_v17 = vld [vmem:[#allocation3 + $0x30] sm:$0xff]  ;;  %v8787_v56 = vsub.f32 %v8554_v27, %v8635_v14  ;;  %v680_v27 = vmul.f32 %v8779_v5, %v8779_v5 }
 0x1c6   :  { %6445 = vmatpush3.msra.mxu1 %v1109_v10  ;;  %6632 = vmatpush3.msra.mxu0 %v1039_v17  ;;  %v1105_v17 = vld [vmem:[#allocation3 + $0xb0] sm:$0xff] }
 0x1c7   :  { %v724_v13 = vadd.f32 %v723_v62, %v676_v19  ;;  %6446 = vmatprep.subr.mxu1 %v12372_v20  ;;  %6633 = vmatprep.subr.mxu0 %v12372_v20  ;;  %v1038_v19 = vld [vmem:[#allocation3 + $0x28] sm:$0xff]  ;;  %v8795_v62 = vsub.f32 %v8556_v29, %v8635_v14  ;;  %v681_v29 = vmul.f32 %v8787_v56, %v8787_v56 }
 0x1c8   :  { %6447 = vmatpush3.msra.mxu1 %v1108_v9  ;;  %6634 = vmatpush3.msra.mxu0 %v1038_v19  ;;  %v1104_v19 = vld [vmem:[#allocation3 + $0xa8] sm:$0xff] }
 0x1c9   :  { %v725_v15 = vadd.f32 %v724_v13, %v677_v21  ;;  %6448 = vmatprep.subr.mxu1 %v12372_v20  ;;  %6635 = vmatprep.subr.mxu0 %v12372_v20  ;;  %v1037_v21 = vld [vmem:[#allocation3 + $0x20] sm:$0xff]  ;;  %v8803_v13 = vsub.f32 %v8558_v31, %v8635_v14  ;;  %v682_v31 = vmul.f32 %v8795_v62, %v8795_v62 }
 0x1ca   :  { %6449 = vmatpush3.msra.mxu1 %v1107_v1  ;;  %6636 = vmatpush3.msra.mxu0 %v1037_v21  ;;  %v1103_v21 = vld [vmem:[#allocation3 + $0xa0] sm:$0xff] }
 0x1cb   :  { %v726_v41 = vadd.f32 %v725_v15, %v678_v23  ;;  %6450 = vmatprep.subr.mxu1 %v12372_v20  ;;  %6637 = vmatprep.subr.mxu0 %v12372_v20  ;;  %v1036_v23 = vld [vmem:[#allocation3 + $0x18] sm:$0xff]  ;;  %v8811_v15 = vsub.f32 %v8560_v33, %v8635_v14  ;;  %v683_v33 = vmul.f32 %v8803_v13, %v8803_v13 }
 0x1cc   :  { %6451 = vmatpush3.msra.mxu1 %v1106_v2  ;;  %6638 = vmatpush3.msra.mxu0 %v1036_v23  ;;  %v1102_v23 = vld [vmem:[#allocation3 + $0x98] sm:$0xff] }
 0x1cd   :  { %v727_v11 = vadd.f32 %v726_v41, %v679_v25  ;;  %6452 = vmatprep.subr.mxu1 %v12372_v20  ;;  %6639 = vmatprep.subr.mxu0 %v12372_v20  ;;  %v1035_v25 = vld [vmem:[#allocation3 + $0x10] sm:$0xff]  ;;  %v8819_v41 = vsub.f32 %v8562_v35, %v8635_v14  ;;  %v684_v35 = vmul.f32 %v8811_v15, %v8811_v15 }
 0x1ce   :  { %6453 = vmatpush3.msra.mxu1 %v1105_v17  ;;  %6640 = vmatpush3.msra.mxu0 %v1035_v25  ;;  %v1100_v25 = vld [vmem:[#allocation3 + $0x88] sm:$0xff] }
 0x1cf   :  { %v728_v3 = vadd.f32 %v727_v11, %v680_v27  ;;  %6454 = vmatprep.subr.mxu1 %v12372_v20  ;;  %6641 = vmatprep.subr.mxu0 %v12372_v20  ;;  %v1034_v27 = vld [vmem:[#allocation3 + $0x8] sm:$0xff]  ;;  %v8827_v11 = vsub.f32 %v8564_v37, %v8635_v14  ;;  %v685_v37 = vmul.f32 %v8819_v41, %v8819_v41 }
 0x1d0   :  { %6455 = vmatpush3.msra.mxu1 %v1104_v19  ;;  %6642 = vmatpush3.msra.mxu0 %v1034_v27  ;;  %v8857_v27 = vsub.f32 %v8578_v50, %v8635_v14  ;;  %v8871_v50 = vsub.f32 %v8586_v63, %v8635_v14 }
 0x1d1   :  { %v729_v10 = vadd.f32 %v728_v3, %v681_v29  ;;  %6456 = vmatprep.subr.mxu1 %v12372_v20  ;;  %6643 = vmatprep.subr.mxu0 %v12372_v20  ;;  %v1033_v29 = vld [vmem:[#allocation3] sm:$0xff]  ;;  %v8835_v3 = vsub.f32 %v8566_v39, %v8635_v14  ;;  %v686_v17 = vmul.f32 %v8827_v11, %v8827_v11 }
 0x1d2   :  { %6457 = vmatpush3.msra.mxu1 %v1103_v21  ;;  %6644 = vmatpush3.msra.mxu0 %v1033_v29  ;;  %v692_v63 = vmul.f32 %v8871_v50, %v8871_v50 }
 0x1d3   :  { %v730_v9 = vadd.f32 %v729_v10, %v682_v31  ;;  %6458 = vmatprep.subr.mxu1 %v12372_v20  ;;  %v1101_v31 = vld [vmem:[#allocation3 + $0x90] sm:$0xff]  ;;  %6971 = vmatprep.subr.mxu0 %v12372_v20  ;;  %v8843_v10 = vsub.f32 %v8570_v42, %v8635_v14  ;;  %v1099_v42 = vld [vmem:[#allocation3 + $0x80] sm:$0xff] }
 0x1d4   :  { %6459 = vmatpush3.msra.mxu1 %v1102_v23  ;;  %v8877_v23 = vsub.f32 %v8590_v8, %v8635_v14 }
 0x1d5   :  { %v731_v1 = vadd.f32 %v730_v9, %v683_v33  ;;  %6460 = vmatprep.subr.mxu1 %v12372_v20  ;;  %v8850_v33 = vsub.f32 %v8574_v46, %v8635_v14  ;;  %v687_v9 = vmul.f32 %v8835_v3, %v8835_v3  ;;  %v8864_v46 = vsub.f32 %v8582_v55, %v8635_v14 }
 0x1d6   :  { %6461 = vmatpush3.msra.mxu1 %v1101_v31  ;;  %v693_v8 = vmul.f32 %v8877_v23, %v8877_v23 }
 0x1d7   :  { %v732_v2 = vadd.f32 %v731_v1, %v684_v35  ;;  %6462 = vmatprep.subr.mxu1 %v12372_v20  ;;  %v688_v35 = vmul.f32 %v8843_v10, %v8843_v10  ;;  %v689_v21 = vmul.f32 %v8850_v33, %v8850_v33  ;;  %v691_v55 = vmul.f32 %v8864_v46, %v8864_v46 }
 0x1d8   :  { %6463 = vmatpush3.msra.mxu1 %v1100_v25 }
 0x1d9   :  { %v733_v39 = vadd.f32 %v732_v2, %v685_v37  ;;  %6464 = vmatprep.subr.mxu1 %v12372_v20  ;;  %v690_v37 = vmul.f32 %v8857_v27, %v8857_v27 }
 0x1da   :  { %6465 = vmatpush3.msra.mxu1 %v1099_v42  ;;  %v8901_v42 = vsub.f32 %v8606_v40, %v8635_v14 }
 0x1db   :  { %v734_v19 = vadd.f32 %v733_v39, %v686_v17  ;;  %6792 = vmatprep.subr.mxu1 %v12372_v20  ;;  %v8883_v17 = vsub.f32 %v8594_v16, %v8635_v14  ;;  %v8889_v39 = vsub.f32 %v8598_v24, %v8635_v14 }
 0x1dc   :  { %v697_v40 = vmul.f32 %v8901_v42, %v8901_v42 }
 0x1dd   :  { %v735_v1 = vadd.f32 %v734_v19, %v687_v9  ;;  %v8895_v9 = vsub.f32 %v8602_v32, %v8635_v14  ;;  %v694_v16 = vmul.f32 %v8883_v17, %v8883_v17  ;;  %v695_v24 = vmul.f32 %v8889_v39, %v8889_v39 }
 0x1df   :  { %v736_v29 = vadd.f32 %v735_v1, %v688_v35  ;;  %v8907_v1 = vsub.f32 %v8610_v45, %v8635_v14  ;;  %v696_v32 = vmul.f32 %v8895_v9, %v8895_v9 }
 0x1e1   :  { %v737_v2 = vadd.f32 %v736_v29, %v689_v21  ;;  %v12373_v29 = vld [vmem:[#allocation9_spill] sm:$0xff]  ;;  %v698_v45 = vmul.f32 %v8907_v1, %v8907_v1 }
 0x1e3   :  { %v738_v31 = vadd.f32 %v737_v2, %v690_v37  ;;  %v8913_v37 = vsub.f32 %v12373_v29, %v8635_v14 }
 0x1e5   :  { %v739_v20 = vadd.f32 %v738_v31, %v691_v55  ;;  %v12374_v55 = vld [vmem:[#allocation10_spill] sm:$0xff] }
 0x1e6   :  { %v8919_v31 = vsub.f32 %v12374_v55, %v8635_v14 }
 0x1e7   :  { %v740_v25 = vadd.f32 %v739_v20, %v692_v63  ;;  %v12375_v20 = vld [vmem:[#allocation11_spill] sm:$0xff] }
 0x1e9   :  { %v741_v19 = vadd.f32 %v740_v25, %v693_v8  ;;  %v8925_v8 = vsub.f32 %v12375_v20, %v8635_v14  ;;  %v699_v25 = vmul.f32 %v8913_v37, %v8913_v37  ;;  %v703_v14 = vmul.f32 %v8641_v26, %v8641_v26 }
 0x1ea   :  { %v706_v20 = vmul.f32 %v8650_v36, %v8650_v36 }
 0x1eb   :  { %v742_v35 = vadd.f32 %v741_v19, %v694_v16  ;;  %v700_v19 = vmul.f32 %v8919_v31, %v8919_v31 }
 0x1ed   :  { %v743_v21 = vadd.f32 %v742_v35, %v695_v24  ;;  %v701_v35 = vmul.f32 %v8925_v8, %v8925_v8 }
 0x1ef   :  { %v744_v2 = vadd.f32 %v743_v21, %v696_v32  ;;  %v702_v21 = vmul.f32 %v8638_v22, %v8638_v22 }
 0x1f1   :  { %v745_v63 = vadd.f32 %v744_v2, %v697_v40  ;;  %v704_v2 = vmul.f32 %v8644_v30, %v8644_v30 }
 0x1f3   :  { %v746_v16 = vadd.f32 %v745_v63, %v698_v45  ;;  %v705_v45 = vmul.f32 %v8647_v0, %v8647_v0 }
 0x1f5   :  { %v747_v24 = vadd.f32 %v746_v16, %v699_v25  ;;  %v707_v16 = vmul.f32 %v8653_v6, %v8653_v6 }
 0x1f7   :  { %v748_v32 = vadd.f32 %v747_v24, %v700_v19  ;;  %v708_v24 = vmul.f32 %v8656_v51, %v8656_v51 }
 0x1f9   :  { %v749_v29 = vadd.f32 %v748_v32, %v701_v35  ;;  %v709_v32 = vmul.f32 %v8659_v18, %v8659_v18  ;;  %v772_v18 = vlaneseq }
 0x1fb   :  { %v750_v40 = vadd.f32 %v749_v29, %v702_v21  ;;  %v710_v29 = vmul.f32 %v8662_v28, %v8662_v28 }
 0x1fd   :  { %v751_v55 = vadd.f32 %v750_v40, %v703_v14  ;;  %v711_v40 = vmul.f32 %v8665_v38, %v8665_v38 }
 0x1ff   :  { %v752_v63 = vadd.f32 %v751_v55, %v704_v2 }
 0x201   :  { %v753_v25 = vadd.f32 %v752_v63, %v705_v45 }
 0x203   :  { %v754_v19 = vadd.f32 %v753_v25, %v706_v20 }
 0x205   :  { %v755_v35 = vadd.f32 %v754_v19, %v707_v16 }
 0x207   :  { %v756_v21 = vadd.f32 %v755_v35, %v708_v24  ;;  %v8953_v24 = vshrl.u32 %v772_v18, 7  ;;  %v767_v35 = vld [vmem:[%s12230_s2] sm:$0x1] }
 0x209   :  { %v757_v14 = vadd.f32 %v756_v21, %v709_v32  ;;  %12376 = vst [vmem:[#allocation9_spill] sm:$0xff] %v8953_v24  ;;  %v12245_v32 = vsub.s32 0, %v8953_v24 }
 0x20b   :  { %v758_v2 = vadd.f32 %v757_v14, %v710_v29 }
 0x20d   :  { %v759_v55 = vadd.f32 %v758_v2, %v711_v40 }
 0x20f   :  { %v760_v45 = vrot.slane %v759_v55, 4 }
 0x211   :  { %v761_v63 = vadd.f32 %v760_v45, %v759_v55 }
 0x213   :  { %v762_v20 = vrot.slane %v761_v63, 2 }
 0x215   :  { %v763_v25 = vadd.f32 %v762_v20, %v761_v63 }
 0x217   :  { %v764_v6 = vrot.slane %v763_v25, 1 }
 0x219   :  { %v765_v51 = vadd.f32 %v764_v6, %v763_v25  ;;  %v8964_v6 = vld [vmem:[%s12231_s3] ss:$0 sm:$0xff] }
 0x21b   :  { %v766_v16 = vmul.f32 0.0025510204, %v765_v51 }
 0x21d   :  { %v768_v19 = vadd.f32 1e-05, %v766_v16 }
 0x21f   :  { %8086 = vrsqrt.f32 %v768_v19 }
 0x22c   :  { %v8087_v21 = vpop.eup %8086 }
 0x22d   :  { %v770_v29 = vmul.f32 %v8087_v21, %v767_v35  ;;  %v12377_v21 = vld [vmem:[#allocation12_spill] sm:$0xff] }
 0x22f   :  { %v775_v14 = vrot.slane %v770_v29, %v12245_v32  ;;  %v12378_v29 = vld [vmem:[#allocation13_spill] sm:$0xff] }
 0x231   :  { %v825_v51 = vmul.f32 %v775_v14, %v8665_v38  ;;  %v777_v18 = vmul.f32 %v775_v14, %v8669_v47  ;;  %v778_v40 = vmul.f32 %v775_v14, %v8673_v53  ;;  %v779_v2 = vmul.f32 %v775_v14, %v8677_v4 }
 0x232   :  { %v780_v55 = vmul.f32 %v775_v14, %v8685_v59  ;;  %v781_v45 = vmul.f32 %v775_v14, %v8689_v54  ;;  %v782_v63 = vmul.f32 %v775_v14, %v8695_v58  ;;  %v783_v20 = vmul.f32 %v775_v14, %v8701_v60 }
 0x233   :  { %v881_v25 = vadd.f32 %v8964_v6, %v825_v51  ;;  %v784_v16 = vmul.f32 %v775_v14, %v8707_v48  ;;  %v785_v38 = vmul.f32 %v775_v14, %v8713_v61  ;;  %v786_v47 = vmul.f32 %v775_v14, %v8719_v12  ;;  %v12379_v51 = vld [vmem:[#allocation14_spill] sm:$0xff] }
 0x234   :  { %v787_v53 = vmul.f32 %v775_v14, %v8726_v7  ;;  %v788_v4 = vmul.f32 %v775_v14, %v8733_v43  ;;  %v789_v59 = vmul.f32 %v775_v14, %v8740_v49  ;;  %v790_v54 = vmul.f32 %v775_v14, %v8747_v57 }
 0x235   :  { %v930_v19 = vmax.f32 %v881_v25, 0.0  ;;  %v791_v58 = vmul.f32 %v775_v14, %v8755_v34  ;;  %v792_v60 = vmul.f32 %v775_v14, %v8763_v44  ;;  %v793_v35 = vmul.f32 %v775_v14, %v8771_v52 }
 0x236   :  { %v794_v48 = vmul.f32 %v775_v14, %v8779_v5  ;;  %v795_v61 = vmul.f32 %v775_v14, %v8787_v56  ;;  %v796_v12 = vmul.f32 %v775_v14, %v8795_v62  ;;  %v797_v7 = vmul.f32 %v775_v14, %v8803_v13 }
 0x237   :  { %979 = vst [vmem:[#allocation2 + $0x180] sm:$0xff] %v930_v19  ;;  %v798_v43 = vmul.f32 %v775_v14, %v8811_v15  ;;  %v799_v49 = vmul.f32 %v775_v14, %v8819_v41  ;;  %v800_v57 = vmul.f32 %v775_v14, %v8827_v11  ;;  %v801_v34 = vmul.f32 %v775_v14, %v8835_v3 }
 0x238   :  { %v802_v44 = vmul.f32 %v775_v14, %v8843_v10  ;;  %v803_v52 = vmul.f32 %v775_v14, %v8850_v33  ;;  %v804_v5 = vmul.f32 %v775_v14, %v8857_v27  ;;  %v805_v56 = vmul.f32 %v775_v14, %v8864_v46 }
 0x239   :  { %v806_v62 = vmul.f32 %v775_v14, %v8871_v50  ;;  %v807_v13 = vmul.f32 %v775_v14, %v8877_v23  ;;  %v808_v15 = vmul.f32 %v775_v14, %v8883_v17  ;;  %v809_v41 = vmul.f32 %v775_v14, %v8889_v39 }
 0x23a   :  { %v810_v11 = vmul.f32 %v775_v14, %v8895_v9  ;;  %v811_v3 = vmul.f32 %v775_v14, %v8901_v42  ;;  %v812_v10 = vmul.f32 %v775_v14, %v8907_v1  ;;  %v813_v33 = vmul.f32 %v775_v14, %v8913_v37 }
 0x23b   :  { %v814_v27 = vmul.f32 %v775_v14, %v8919_v31  ;;  %v815_v46 = vmul.f32 %v775_v14, %v8925_v8  ;;  %v816_v50 = vmul.f32 %v775_v14, %v8638_v22  ;;  %v817_v23 = vmul.f32 %v775_v14, %v8641_v26 }
 0x23c   :  { %v818_v17 = vmul.f32 %v775_v14, %v8644_v30  ;;  %v819_v39 = vmul.f32 %v775_v14, %v8647_v0  ;;  %v820_v9 = vmul.f32 %v775_v14, %v8650_v36  ;;  %v821_v42 = vmul.f32 %v775_v14, %v12377_v21 }
 0x23d   :  { %v822_v1 = vmul.f32 %v775_v14, %v12378_v29  ;;  %v823_v37 = vmul.f32 %v775_v14, %v12379_v51  ;;  %v824_v31 = vmul.f32 %v775_v14, %v8662_v28  ;;  %v833_v8 = vadd.f32 %v8964_v6, %v777_v18 }
 0x23e   :  { %v9018_v22 = vadd.f32 %v8964_v6, %v778_v40  ;;  %v9021_v26 = vadd.f32 %v8964_v6, %v779_v2  ;;  %v9024_v30 = vadd.f32 %v8964_v6, %v780_v55  ;;  %v9027_v0 = vadd.f32 %v8964_v6, %v781_v45 }
 0x23f   :  { %v9030_v36 = vadd.f32 %v8964_v6, %v782_v63  ;;  %v9033_v25 = vadd.f32 %v8964_v6, %v783_v20  ;;  %v9036_v28 = vadd.f32 %v8964_v6, %v784_v16  ;;  %v9039_v14 = vadd.f32 %v8964_v6, %v785_v38 }
 0x240   :  { %v9042_v18 = vadd.f32 %v8964_v6, %v786_v47  ;;  %v9045_v40 = vadd.f32 %v8964_v6, %v787_v53  ;;  %v9048_v2 = vadd.f32 %v8964_v6, %v788_v4  ;;  %v9051_v55 = vadd.f32 %v8964_v6, %v789_v59 }
 0x241   :  { %v9054_v45 = vadd.f32 %v8964_v6, %v790_v54  ;;  %v9057_v63 = vadd.f32 %v8964_v6, %v791_v58  ;;  %v9060_v20 = vadd.f32 %v8964_v6, %v792_v60  ;;  %v9063_v16 = vadd.f32 %v8964_v6, %v793_v35 }
 0x242   :  { %v9066_v38 = vadd.f32 %v8964_v6, %v794_v48  ;;  %v9069_v47 = vadd.f32 %v8964_v6, %v795_v61  ;;  %v9072_v53 = vadd.f32 %v8964_v6, %v796_v12  ;;  %v9075_v4 = vadd.f32 %v8964_v6, %v797_v7 }
 0x243   :  { %v9078_v59 = vadd.f32 %v8964_v6, %v798_v43  ;;  %v9081_v54 = vadd.f32 %v8964_v6, %v799_v49  ;;  %v9084_v19 = vadd.f32 %v8964_v6, %v800_v57  ;;  %v9087_v58 = vadd.f32 %v8964_v6, %v801_v34 }
 0x244   :  { %v9090_v60 = vadd.f32 %v8964_v6, %v802_v44  ;;  %v9093_v35 = vadd.f32 %v8964_v6, %v803_v52  ;;  %v9096_v48 = vadd.f32 %v8964_v6, %v804_v5  ;;  %v9099_v61 = vadd.f32 %v8964_v6, %v805_v56 }
 0x245   :  { %v9102_v12 = vadd.f32 %v8964_v6, %v806_v62  ;;  %v9105_v7 = vadd.f32 %v8964_v6, %v807_v13  ;;  %v9108_v43 = vadd.f32 %v8964_v6, %v808_v15  ;;  %v9111_v49 = vadd.f32 %v8964_v6, %v809_v41 }
 0x246   :  { %v9114_v57 = vadd.f32 %v8964_v6, %v810_v11  ;;  %v9117_v34 = vadd.f32 %v8964_v6, %v811_v3  ;;  %v9120_v44 = vadd.f32 %v8964_v6, %v812_v10  ;;  %v9123_v52 = vadd.f32 %v8964_v6, %v813_v33 }
 0x247   :  { %v9126_v5 = vadd.f32 %v8964_v6, %v814_v27  ;;  %v9129_v56 = vadd.f32 %v8964_v6, %v815_v46  ;;  %v9132_v62 = vadd.f32 %v8964_v6, %v816_v50  ;;  %v9135_v13 = vadd.f32 %v8964_v6, %v817_v23  ;;  %v2225_v50 = vld [vmem:[#allocation3 + $0x1f8] sm:$0xff] }
 0x248   :  { %v9138_v15 = vadd.f32 %v8964_v6, %v818_v17  ;;  %v9141_v41 = vadd.f32 %v8964_v6, %v819_v39  ;;  %v9144_v11 = vadd.f32 %v8964_v6, %v820_v9  ;;  %v9147_v3 = vadd.f32 %v8964_v6, %v821_v42 }
 0x249   :  { %v9150_v10 = vadd.f32 %v8964_v6, %v822_v1  ;;  %v9153_v33 = vadd.f32 %v8964_v6, %v823_v37  ;;  %v9156_v27 = vadd.f32 %v8964_v6, %v824_v31  ;;  %v882_v46 = vmax.f32 %v833_v8, 0.0  ;;  %v2224_v6 = vld [vmem:[#allocation3 + $0x1f0] sm:$0xff] }
 0x24a   :  { %v883_v23 = vmax.f32 %v9018_v22, 0.0  ;;  %v12246_v17 = vmax.f32 %v9021_v26, 0.0  ;;  %v12248_v39 = vmax.f32 %v9024_v30, 0.0  ;;  %v12247_v9 = vmax.f32 %v9027_v0, 0.0  ;;  %v9176_v22 = vld [vmem:[#allocation2 + $0x188] sm:$0xff] }
 0x24b   :  { %v12249_v21 = vmax.f32 %v9030_v36, 0.0  ;;  %v12252_v42 = vmax.f32 %v9033_v25, 0.0  ;;  %v12251_v29 = vmax.f32 %v9036_v28, 0.0  ;;  %v12250_v1 = vmax.f32 %v9039_v14, 0.0  ;;  %931 = vst [vmem:[#allocation2] sm:$0xff] %v882_v46  ;;  %6646 = vmatmul.mubr.f32.vlgmr.msra.gmra.mxu0 %v882_v46 }
 0x24c   :  { %v12255_v51 = vmax.f32 %v9042_v18, 0.0  ;;  %v12254_v37 = vmax.f32 %v9045_v40, 0.0  ;;  %v12253_v31 = vmax.f32 %v9048_v2, 0.0  ;;  %932 = vst [vmem:[#allocation2 + $0x8] sm:$0xff] %v883_v23  ;;  %933 = vst [vmem:[#allocation2 + $0x10] sm:$0xff] %v12246_v17  ;;  %6648 = vmatprep.mubr.msk.f32.mxu0 %vm8144_vm0, %v9176_v22  ;;  %6972 = vmatpush3.msra.mxu0 %v2225_v50  ;;  %v12256_v46 = vmax.f32 %v9054_v45, 0.0 }
 0x24d   :  { %934 = vst [vmem:[#allocation2 + $0x18] sm:$0xff] %v12248_v39  ;;  %935 = vst [vmem:[#allocation2 + $0x20] sm:$0xff] %v12247_v9  ;;  %v12258_v32 = vmax.f32 %v9057_v63, 0.0  ;;  %v12257_v8 = vmax.f32 %v9060_v20, 0.0  ;;  %6973 = vmatprep.subr.mxu0 %v9176_v22  ;;  %v2223_v50 = vld [vmem:[#allocation3 + $0x1e8] sm:$0xff]  ;;  %v12259_v9 = vmax.f32 %v9066_v38, 0.0 }
 0x24e   :  { %936 = vst [vmem:[#allocation2 + $0x28] sm:$0xff] %v12249_v21  ;;  %937 = vst [vmem:[#allocation2 + $0x30] sm:$0xff] %v12252_v42  ;;  %v12260_v39 = vmax.f32 %v9069_v47, 0.0  ;;  %6974 = vmatpush3.msra.mxu0 %v2224_v6  ;;  %v12263_v42 = vmax.f32 %v9081_v54, 0.0  ;;  %v12262_v17 = vmax.f32 %v9084_v19, 0.0  ;;  %v12261_v21 = vmax.f32 %v9087_v58, 0.0 }
 0x24f   :  { %938 = vst [vmem:[#allocation2 + $0x38] sm:$0xff] %v12251_v29  ;;  %939 = vst [vmem:[#allocation2 + $0x40] sm:$0xff] %v12250_v1  ;;  %v12380_v1 = vmax.f32 %v9051_v55, 0.0  ;;  %v12264_v29 = vmax.f32 %v9078_v59, 0.0  ;;  %6649 = vmatmul.mubr.f32.gmra.mxu0 %v883_v23  ;;  %6975 = vmatprep.subr.mxu0 %v9176_v22  ;;  %v2222_v6 = vld [vmem:[#allocation3 + $0x1e0] sm:$0xff]  ;;  %v12383_v23 = vmax.f32 %v9075_v4, 0.0 }
 0x250   :  { %940 = vst [vmem:[#allocation2 + $0x48] sm:$0xff] %v12255_v51  ;;  %941 = vst [vmem:[#allocation2 + $0x50] sm:$0xff] %v12254_v37  ;;  %v12266_v37 = vmax.f32 %v9093_v35, 0.0  ;;  %v12265_v51 = vmax.f32 %v9096_v48, 0.0  ;;  %6651 = vmatprep.mubr.msk.f32.mxu0 %vm8144_vm0, %v9176_v22  ;;  %6976 = vmatpush3.msra.mxu0 %v2223_v50  ;;  %v12272_v50 = vmax.f32 %v9114_v57, 0.0 }
 0x251   :  { %942 = vst [vmem:[#allocation2 + $0x58] sm:$0xff] %v12253_v31  ;;  %943 = vst [vmem:[#allocation2 + $0x60] sm:$0xff] %v12380_v1  ;;  %v12381_v1 = vmax.f32 %v9063_v16, 0.0  ;;  %v12271_v31 = vmax.f32 %v9090_v60, 0.0  ;;  %6977 = vmatprep.subr.mxu0 %v9176_v22 }
 0x252   :  { %944 = vst [vmem:[#allocation2 + $0x68] sm:$0xff] %v12256_v46  ;;  %945 = vst [vmem:[#allocation2 + $0x70] sm:$0xff] %v12258_v32  ;;  %v12268_v32 = vmax.f32 %v9105_v7, 0.0  ;;  %v12270_v46 = vmax.f32 %v9108_v43, 0.0  ;;  %6978 = vmatpush3.msra.mxu0 %v2222_v6  ;;  %v12385_v6 = vmax.f32 %v9021_v26, 0.0  ;;  %v12387_v26 = vmax.f32 %v9123_v52, 0.0 }
 0x253   :  { %946 = vst [vmem:[#allocation2 + $0x78] sm:$0xff] %v12257_v8  ;;  %947 = vst [vmem:[#allocation2 + $0x80] sm:$0xff] %v12381_v1  ;;  %v12382_v1 = vmax.f32 %v9072_v53, 0.0  ;;  %v12267_v8 = vmax.f32 %v9102_v12, 0.0  ;;  %6979 = vmatprep.subr.mxu0 %v9176_v22 }
 0x254   :  { %948 = vst [vmem:[#allocation2 + $0x88] sm:$0xff] %v12259_v9  ;;  %949 = vst [vmem:[#allocation2 + $0x90] sm:$0xff] %v12260_v39  ;;  %v12269_v9 = vmax.f32 %v9111_v49, 0.0  ;;  %v921_v39 = vmax.f32 %v9132_v62, 0.0  ;;  %6652 = vmatmul.mubr.f32.gmra.mxu0 %v12385_v6  ;;  %v1799_v6 = vld [vmem:[#allocation3 + $0x170] sm:$0xff] }
 0x255   :  { %950 = vst [vmem:[#allocation2 + $0x98] sm:$0xff] %v12382_v1  ;;  %951 = vst [vmem:[#allocation2 + $0xa0] sm:$0xff] %v12383_v23  ;;  %v916_v1 = vmax.f32 %v9117_v34, 0.0  ;;  %v922_v23 = vmax.f32 %v9135_v13, 0.0  ;;  %6654 = vmatprep.mubr.msk.f32.mxu0 %vm8144_vm0, %v9176_v22 }
 0x256   :  { %952 = vst [vmem:[#allocation2 + $0xa8] sm:$0xff] %v12264_v29  ;;  %953 = vst [vmem:[#allocation2 + $0xb0] sm:$0xff] %v12263_v42  ;;  %v919_v42 = vmax.f32 %v9126_v5, 0.0  ;;  %v920_v29 = vmax.f32 %v9129_v56, 0.0 }
 0x257   :  { %954 = vst [vmem:[#allocation2 + $0xb8] sm:$0xff] %v12262_v17  ;;  %955 = vst [vmem:[#allocation2 + $0xc0] sm:$0xff] %v12261_v21  ;;  %v12384_v21 = vmax.f32 %v9099_v61, 0.0  ;;  %v1800_v17 = vld [vmem:[#allocation3 + $0x178] sm:$0xff] }
 0x258   :  { %956 = vst [vmem:[#allocation2 + $0xc8] sm:$0xff] %v12271_v31  ;;  %957 = vst [vmem:[#allocation2 + $0xd0] sm:$0xff] %v12266_v37  ;;  %v924_v37 = vmax.f32 %v9141_v41, 0.0  ;;  %v12273_v31 = vmax.f32 %v9153_v33, 0.0 }
 0x259   :  { %958 = vst [vmem:[#allocation2 + $0xd8] sm:$0xff] %v12265_v51  ;;  %959 = vst [vmem:[#allocation2 + $0xe0] sm:$0xff] %v12384_v21  ;;  %v1049_v21 = vld [vmem:[#allocation2 + $0x1] sm:$0xff]  ;;  %v923_v51 = vmax.f32 %v9138_v15, 0.0 }
 0x25a   :  { %960 = vst [vmem:[#allocation2 + $0xe8] sm:$0xff] %v12267_v8  ;;  %961 = vst [vmem:[#allocation2 + $0xf0] sm:$0xff] %v12268_v32  ;;  %v925_v8 = vmax.f32 %v9144_v11, 0.0  ;;  %v926_v32 = vmax.f32 %v9147_v3, 0.0  ;;  %6467 = vmatmul.mubr.f32.vlgmr.msra.gmra.mxu1 %v1049_v21  ;;  %v1798_v21 = vld [vmem:[#allocation3 + $0x168] sm:$0xff] }
 0x25b   :  { %962 = vst [vmem:[#allocation2 + $0xf8] sm:$0xff] %v12270_v46  ;;  %963 = vst [vmem:[#allocation2 + $0x100] sm:$0xff] %v12269_v9  ;;  %v12386_v9 = vmax.f32 %v9120_v44, 0.0  ;;  %v927_v46 = vmax.f32 %v9150_v10, 0.0  ;;  %6793 = vmatpush3.msra.mxu1 %v1800_v17  ;;  %6469 = vmatprep.mubr.msk.f32.mxu1 %vm8144_vm0, %v9176_v22  ;;  %v1050_v17 = vld [vmem:[#allocation2 + $0x9] sm:$0xff] }
 0x25c   :  { %964 = vst [vmem:[#allocation2 + $0x108] sm:$0xff] %v12272_v50  ;;  %965 = vst [vmem:[#allocation2 + $0x110] sm:$0xff] %v916_v1  ;;  %v12274_v50 = vmax.f32 %v9156_v27, 0.0  ;;  %6794 = vmatprep.subr.mxu1 %v9176_v22 }
 0x25d   :  { %966 = vst [vmem:[#allocation2 + $0x118] sm:$0xff] %v12386_v9  ;;  %967 = vst [vmem:[#allocation2 + $0x120] sm:$0xff] %v12387_v26  ;;  %v12388_v9 = vmax.f32 %v9024_v30, 0.0  ;;  %6795 = vmatpush3.msra.mxu1 %v1799_v6  ;;  %v1797_v26 = vld [vmem:[#allocation3 + $0x160] sm:$0xff]  ;;  %v1796_v30 = vld [vmem:[#allocation3 + $0x158] sm:$0xff] }
 0x25e   :  { %968 = vst [vmem:[#allocation2 + $0x128] sm:$0xff] %v919_v42  ;;  %969 = vst [vmem:[#allocation2 + $0x130] sm:$0xff] %v920_v29  ;;  %6470 = vmatmul.mubr.f32.gmra.mxu1 %v1050_v17  ;;  %6796 = vmatprep.subr.mxu1 %v9176_v22  ;;  %v1052_v6 = vld [vmem:[#allocation2 + $0x19] sm:$0xff]  ;;  %v12390_v17 = vmax.f32 %v9030_v36, 0.0  ;;  %v1793_v36 = vld [vmem:[#allocation3 + $0x140] sm:$0xff] }
 0x25f   :  { %970 = vst [vmem:[#allocation2 + $0x138] sm:$0xff] %v921_v39  ;;  %971 = vst [vmem:[#allocation2 + $0x140] sm:$0xff] %v922_v23  ;;  %6655 = vmatmul.mubr.f32.gmra.mxu0 %v12388_v9  ;;  %6472 = vmatprep.mubr.msk.f32.mxu1 %vm8144_vm0, %v9176_v22  ;;  %v1053_v9 = vld [vmem:[#allocation2 + $0x21] sm:$0xff] }
 0x260   :  { %972 = vst [vmem:[#allocation2 + $0x148] sm:$0xff] %v923_v51  ;;  %973 = vst [vmem:[#allocation2 + $0x150] sm:$0xff] %v924_v37  ;;  %6657 = vmatprep.mubr.msk.f32.mxu0 %vm8144_vm0, %v9176_v22  ;;  %6797 = vmatpush3.msra.mxu1 %v1798_v21  ;;  %v12391_v21 = vmax.f32 %v9033_v25, 0.0  ;;  %v1792_v25 = vld [vmem:[#allocation3 + $0x138] sm:$0xff] }
 0x261   :  { %974 = vst [vmem:[#allocation2 + $0x158] sm:$0xff] %v925_v8  ;;  %975 = vst [vmem:[#allocation2 + $0x160] sm:$0xff] %v926_v32  ;;  %6798 = vmatprep.subr.mxu1 %v9176_v22 }
 0x262   :  { %976 = vst [vmem:[#allocation2 + $0x168] sm:$0xff] %v927_v46  ;;  %977 = vst [vmem:[#allocation2 + $0x170] sm:$0xff] %v12273_v31  ;;  %v1051_v31 = vld [vmem:[#allocation2 + $0x11] sm:$0xff]  ;;  %6799 = vmatpush3.msra.mxu1 %v1797_v26  ;;  %v1054_v26 = vld [vmem:[#allocation2 + $0x29] sm:$0xff] }
 0x263   :  { %978 = vst [vmem:[#allocation2 + $0x178] sm:$0xff] %v12274_v50  ;;  %v12389_v50 = vmax.f32 %v9027_v0, 0.0  ;;  %6473 = vmatmul.mubr.f32.gmra.mxu1 %v1051_v31  ;;  %6800 = vmatprep.subr.mxu1 %v9176_v22  ;;  %v1795_v0 = vld [vmem:[#allocation3 + $0x150] sm:$0xff]  ;;  %v1794_v31 = vld [vmem:[#allocation3 + $0x148] sm:$0xff] }
 0x264   :  { %6475 = vmatprep.mubr.msk.f32.mxu1 %vm8144_vm0, %v9176_v22  ;;  %6801 = vmatpush3.msra.mxu1 %v1796_v30  ;;  %v12392_v30 = vmax.f32 %v9036_v28, 0.0  ;;  %v1790_v28 = vld [vmem:[#allocation3 + $0x128] sm:$0xff] }
 0x265   :  { %6658 = vmatmul.mubr.f32.gmra.mxu0 %v12389_v50  ;;  %v2221_v50 = vld [vmem:[#allocation3 + $0x1d8] sm:$0xff]  ;;  %6802 = vmatprep.subr.mxu1 %v9176_v22  ;;  %v1083_v34 = vld [vmem:[#allocation2 + $0x111] sm:$0xff]  ;;  %v1086_v5 = vld [vmem:[#allocation2 + $0x129] sm:$0xff] }
 0x266   :  { %6660 = vmatprep.mubr.msk.f32.mxu0 %vm8144_vm0, %v9176_v22  ;;  %6803 = vmatpush3.msra.mxu1 %v1795_v0  ;;  %v1055_v0 = vld [vmem:[#allocation2 + $0x31] sm:$0xff]  ;;  %v1088_v62 = vld [vmem:[#allocation2 + $0x139] sm:$0xff] }
 0x267   :  { %6476 = vmatmul.mubr.f32.gmra.mxu1 %v1052_v6  ;;  %6980 = vmatpush3.msra.mxu0 %v2221_v50  ;;  %v2220_v6 = vld [vmem:[#allocation3 + $0x1d0] sm:$0xff]  ;;  %v12393_v50 = vmax.f32 %v9039_v14, 0.0  ;;  %v1789_v14 = vld [vmem:[#allocation3 + $0x120] sm:$0xff] }
 0x268   :  { %6478 = vmatprep.mubr.msk.f32.mxu1 %vm8144_vm0, %v9176_v22  ;;  %6804 = vmatprep.subr.mxu1 %v9176_v22  ;;  %v1087_v56 = vld [vmem:[#allocation2 + $0x131] sm:$0xff]  ;;  %v1089_v13 = vld [vmem:[#allocation2 + $0x141] sm:$0xff]  ;;  %v1090_v15 = vld [vmem:[#allocation2 + $0x149] sm:$0xff] }
 0x269   :  { %6661 = vmatmul.mubr.f32.gmra.mxu0 %v12390_v17  ;;  %6805 = vmatpush3.msra.mxu1 %v1794_v31  ;;  %v1791_v17 = vld [vmem:[#allocation3 + $0x130] sm:$0xff]  ;;  %v1093_v3 = vld [vmem:[#allocation2 + $0x161] sm:$0xff]  ;;  %v1094_v10 = vld [vmem:[#allocation2 + $0x169] sm:$0xff] }
 0x26a   :  { %6663 = vmatprep.mubr.msk.f32.mxu0 %vm8144_vm0, %v9176_v22  ;;  %6806 = vmatprep.subr.mxu1 %v9176_v22  ;;  %v1056_v31 = vld [vmem:[#allocation2 + $0x39] sm:$0xff]  ;;  %v1091_v41 = vld [vmem:[#allocation2 + $0x151] sm:$0xff] }
 0x26b   :  { %6479 = vmatmul.mubr.f32.gmra.mxu1 %v1053_v9  ;;  %6981 = vmatprep.subr.mxu0 %v9176_v22  ;;  %v12394_v9 = vmax.f32 %v9042_v18, 0.0  ;;  %v1787_v18 = vld [vmem:[#allocation3 + $0x110] sm:$0xff] }
 0x26c   :  { %6481 = vmatprep.mubr.msk.f32.mxu1 %vm8144_vm0, %v9176_v22  ;;  %6807 = vmatpush3.msra.mxu1 %v1793_v36  ;;  %v1788_v36 = vld [vmem:[#allocation3 + $0x118] sm:$0xff] }
 0x26d   :  { %6664 = vmatmul.mubr.f32.gmra.mxu0 %v12391_v21  ;;  %6808 = vmatprep.subr.mxu1 %v9176_v22  ;;  %v2219_v21 = vld [vmem:[#allocation3 + $0x1c8] sm:$0xff]  ;;  %v1092_v11 = vld [vmem:[#allocation2 + $0x159] sm:$0xff] }
 0x26e   :  { %6666 = vmatprep.mubr.msk.f32.mxu0 %vm8144_vm0, %v9176_v22  ;;  %6809 = vmatpush3.msra.mxu1 %v1792_v25  ;;  %v1058_v25 = vld [vmem:[#allocation2 + $0x49] sm:$0xff] }
 0x26f   :  { %6482 = vmatmul.mubr.f32.gmra.mxu1 %v1054_v26  ;;  %6982 = vmatpush3.msra.mxu0 %v2220_v6  ;;  %v1057_v26 = vld [vmem:[#allocation2 + $0x41] sm:$0xff]  ;;  %v12396_v6 = vmax.f32 %v9048_v2, 0.0  ;;  %v1060_v2 = vld [vmem:[#allocation2 + $0x59] sm:$0xff] }
 0x270   :  { %6484 = vmatprep.mubr.msk.f32.mxu1 %vm8144_vm0, %v9176_v22  ;;  %6810 = vmatprep.subr.mxu1 %v9176_v22 }
 0x271   :  { %6667 = vmatmul.mubr.f32.gmra.mxu0 %v12392_v30  ;;  %6811 = vmatpush3.msra.mxu1 %v1791_v17  ;;  %v12395_v30 = vmax.f32 %v9045_v40, 0.0  ;;  %v2218_v40 = vld [vmem:[#allocation3 + $0x1c0] sm:$0xff]  ;;  %v1059_v17 = vld [vmem:[#allocation2 + $0x51] sm:$0xff] }
 0x272   :  { %6669 = vmatprep.mubr.msk.f32.mxu0 %vm8144_vm0, %v9176_v22  ;;  %6812 = vmatprep.subr.mxu1 %v9176_v22 }
 0x273   :  { %6485 = vmatmul.mubr.f32.gmra.mxu1 %v1055_v0  ;;  %6983 = vmatprep.subr.mxu0 %v9176_v22  ;;  %v12397_v0 = vmax.f32 %v9051_v55, 0.0  ;;  %v1061_v55 = vld [vmem:[#allocation2 + $0x61] sm:$0xff] }
 0x274   :  { %6487 = vmatprep.mubr.msk.f32.mxu1 %vm8144_vm0, %v9176_v22  ;;  %6813 = vmatpush3.msra.mxu1 %v1790_v28  ;;  %v1786_v28 = vld [vmem:[#allocation3 + $0x108] sm:$0xff] }
 0x275   :  { %6670 = vmatmul.mubr.f32.gmra.mxu0 %v12393_v50  ;;  %6814 = vmatprep.subr.mxu1 %v9176_v22  ;;  %v12398_v50 = vmax.f32 %v9054_v45, 0.0  ;;  %v2217_v45 = vld [vmem:[#allocation3 + $0x1b8] sm:$0xff] }
 0x276   :  { %6672 = vmatprep.mubr.msk.f32.mxu0 %vm8144_vm0, %v9176_v22  ;;  %6815 = vmatpush3.msra.mxu1 %v1789_v14  ;;  %v12400_v14 = vmax.f32 %v9060_v20, 0.0  ;;  %v1785_v20 = vld [vmem:[#allocation3 + $0x100] sm:$0xff] }
 0x277   :  { %6488 = vmatmul.mubr.f32.gmra.mxu1 %v1056_v31  ;;  %6984 = vmatpush3.msra.mxu0 %v2219_v21  ;;  %v12399_v31 = vmax.f32 %v9057_v63, 0.0  ;;  %v2216_v63 = vld [vmem:[#allocation3 + $0x1b0] sm:$0xff] }
 0x278   :  { %6490 = vmatprep.mubr.msk.f32.mxu1 %vm8144_vm0, %v9176_v22  ;;  %6816 = vmatprep.subr.mxu1 %v9176_v22  ;;  %v1063_v21 = vld [vmem:[#allocation2 + $0x71] sm:$0xff] }
 0x279   :  { %6673 = vmatmul.mubr.f32.gmra.mxu0 %v12394_v9  ;;  %6817 = vmatpush3.msra.mxu1 %v1788_v36  ;;  %v1062_v9 = vld [vmem:[#allocation2 + $0x69] sm:$0xff]  ;;  %v12401_v36 = vmax.f32 %v9063_v16, 0.0  ;;  %v12402_v16 = vmax.f32 %v9066_v38, 0.0  ;;  %v2212_v38 = vld [vmem:[#allocation3 + $0x190] sm:$0xff] }
 0x27a   :  { %6675 = vmatprep.mubr.msk.f32.mxu0 %vm8144_vm0, %v9176_v22  ;;  %6818 = vmatprep.subr.mxu1 %v9176_v22 }
 0x27b   :  { %6491 = vmatmul.mubr.f32.gmra.mxu1 %v1057_v26  ;;  %6985 = vmatprep.subr.mxu0 %v9176_v22  ;;  %v2215_v26 = vld [vmem:[#allocation3 + $0x1a8] sm:$0xff] }
 0x27c   :  { %6493 = vmatprep.mubr.msk.f32.mxu1 %vm8144_vm0, %v9176_v22  ;;  %6819 = vmatpush3.msra.mxu1 %v1787_v18  ;;  %v1064_v18 = vld [vmem:[#allocation2 + $0x79] sm:$0xff] }
 0x27d   :  { %6676 = vmatmul.mubr.f32.gmra.mxu0 %v12395_v30  ;;  %6820 = vmatprep.subr.mxu1 %v9176_v22  ;;  %v2214_v30 = vld [vmem:[#allocation3 + $0x1a0] sm:$0xff] }
 0x27e   :  { %6678 = vmatprep.mubr.msk.f32.mxu0 %vm8144_vm0, %v9176_v22  ;;  %6986 = vmatpush3.msra.mxu0 %v2218_v40  ;;  %v12403_v40 = vmax.f32 %v9069_v47, 0.0  ;;  %v2211_v47 = vld [vmem:[#allocation3 + $0x188] sm:$0xff] }
 0x27f   :  { %6494 = vmatmul.mubr.f32.gmra.mxu1 %v1058_v25  ;;  %6987 = vmatprep.subr.mxu0 %v9176_v22  ;;  %v2213_v25 = vld [vmem:[#allocation3 + $0x198] sm:$0xff] }
 0x280   :  { %6496 = vmatprep.mubr.msk.f32.mxu1 %vm8144_vm0, %v9176_v22  ;;  %6821 = vmatpush3.msra.mxu1 %v1786_v28  ;;  %v1068_v28 = vld [vmem:[#allocation2 + $0x99] sm:$0xff] }
 0x281   :  { %6679 = vmatmul.mubr.f32.gmra.mxu0 %v12396_v6  ;;  %6822 = vmatprep.subr.mxu1 %v9176_v22  ;;  %v1065_v6 = vld [vmem:[#allocation2 + $0x81] sm:$0xff] }
 0x282   :  { %6681 = vmatprep.mubr.msk.f32.mxu0 %vm8144_vm0, %v9176_v22  ;;  %6988 = vmatpush3.msra.mxu0 %v2217_v45  ;;  %v12408_v45 = vmax.f32 %v9084_v19, 0.0  ;;  %v1072_v19 = vld [vmem:[#allocation2 + $0xb9] sm:$0xff] }
 0x283   :  { %6497 = vmatmul.mubr.f32.gmra.mxu1 %v1059_v17  ;;  %6989 = vmatprep.subr.mxu0 %v9176_v22  ;;  %v1066_v17 = vld [vmem:[#allocation2 + $0x89] sm:$0xff] }
 0x284   :  { %6499 = vmatprep.mubr.msk.f32.mxu1 %vm8144_vm0, %v9176_v22  ;;  %6990 = vmatpush3.msra.mxu0 %v2216_v63  ;;  %v12411_v63 = vmax.f32 %v9093_v35, 0.0  ;;  %v1075_v35 = vld [vmem:[#allocation2 + $0xd1] sm:$0xff] }
 0x285   :  { %6682 = vmatmul.mubr.f32.gmra.mxu0 %v12397_v0  ;;  %6991 = vmatprep.subr.mxu0 %v9176_v22  ;;  %v12404_v0 = vmax.f32 %v9072_v53, 0.0  ;;  %v2210_v53 = vld [vmem:[#allocation3 + $0x180] sm:$0xff] }
 0x286   :  { %6684 = vmatprep.mubr.msk.f32.mxu0 %vm8144_vm0, %v9176_v22  ;;  %6823 = vmatpush3.msra.mxu1 %v1785_v20  ;;  %v12414_v20 = vmax.f32 %v9102_v12, 0.0  ;;  %v1078_v12 = vld [vmem:[#allocation2 + $0xe9] sm:$0xff] }
 0x287   :  { %6500 = vmatmul.mubr.f32.gmra.mxu1 %v1060_v2  ;;  %6992 = vmatpush3.msra.mxu0 %v2215_v26  ;;  %v1067_v2 = vld [vmem:[#allocation2 + $0x91] sm:$0xff]  ;;  %v12415_v26 = vmax.f32 %v9105_v7, 0.0 }
 0x288   :  { %6502 = vmatprep.mubr.msk.f32.mxu1 %vm8144_vm0, %v9176_v22  ;;  %7150 = vmatprep.subr.mxu1 %v9176_v22  ;;  %v1079_v7 = vld [vmem:[#allocation2 + $0xf1] sm:$0xff] }
 0x289   :  { %6685 = vmatmul.mubr.f32.gmra.mxu0 %v12398_v50  ;;  %6993 = vmatprep.subr.mxu0 %v9176_v22  ;;  %v12405_v50 = vmax.f32 %v9075_v4, 0.0  ;;  %v1069_v4 = vld [vmem:[#allocation2 + $0xa1] sm:$0xff] }
 0x28a   :  { %6687 = vmatprep.mubr.msk.f32.mxu0 %vm8144_vm0, %v9176_v22  ;;  %6994 = vmatpush3.msra.mxu0 %v2214_v30  ;;  %v12416_v30 = vmax.f32 %v9108_v43, 0.0  ;;  %v1080_v43 = vld [vmem:[#allocation2 + $0xf9] sm:$0xff] }
 0x28b   :  { %6503 = vmatmul.mubr.f32.gmra.mxu1 %v1061_v55  ;;  %6995 = vmatprep.subr.mxu0 %v9176_v22  ;;  %v12406_v55 = vmax.f32 %v9078_v59, 0.0  ;;  %v1070_v59 = vld [vmem:[#allocation2 + $0xa9] sm:$0xff] }
 0x28c   :  { %6505 = vmatprep.mubr.msk.f32.mxu1 %vm8144_vm0, %v9176_v22  ;;  %6996 = vmatpush3.msra.mxu0 %v2213_v25  ;;  %v12419_v25 = vmax.f32 %v9120_v44, 0.0  ;;  %v1084_v44 = vld [vmem:[#allocation2 + $0x119] sm:$0xff] }
 0x28d   :  { %6688 = vmatmul.mubr.f32.gmra.mxu0 %v12399_v31  ;;  %6997 = vmatprep.subr.mxu0 %v9176_v22  ;;  %v12407_v31 = vmax.f32 %v9081_v54, 0.0  ;;  %v1071_v54 = vld [vmem:[#allocation2 + $0xb1] sm:$0xff] }
 0x28e   :  { %6690 = vmatprep.mubr.msk.f32.mxu0 %vm8144_vm0, %v9176_v22  ;;  %6998 = vmatpush3.msra.mxu0 %v2212_v38  ;;  %v1097_v38 = vld [vmem:[#allocation2 + $0x181] sm:$0xff] }
 0x28f   :  { %6506 = vmatmul.mubr.f32.gmra.mxu1 %v1062_v9  ;;  %6999 = vmatprep.subr.mxu0 %v9176_v22  ;;  %v12409_v9 = vmax.f32 %v9087_v58, 0.0  ;;  %v1073_v58 = vld [vmem:[#allocation2 + $0xc1] sm:$0xff] }
 0x290   :  { %6508 = vmatprep.mubr.msk.f32.mxu1 %vm8144_vm0, %v9176_v22  ;;  %7000 = vmatpush3.msra.mxu0 %v2211_v47 }
 0x291   :  { %6691 = vmatmul.mubr.f32.gmra.mxu0 %v12400_v14  ;;  %7001 = vmatprep.subr.mxu0 %v9176_v22  ;;  %v12410_v14 = vmax.f32 %v9090_v60, 0.0  ;;  %v1074_v60 = vld [vmem:[#allocation2 + $0xc9] sm:$0xff] }
 0x292   :  { %6693 = vmatprep.mubr.msk.f32.mxu0 %vm8144_vm0, %v9176_v22  ;;  %7002 = vmatpush3.msra.mxu0 %v2210_v53  ;;  %v2650_v53 = vld [vmem:[#allocation3 + $0x278] sm:$0xff] }
 0x293   :  { %6509 = vmatmul.mubr.f32.gmra.mxu1 %v1063_v21  ;;  %7329 = vmatprep.subr.mxu0 %v9176_v22  ;;  %v12412_v21 = vmax.f32 %v9096_v48, 0.0  ;;  %v1076_v48 = vld [vmem:[#allocation2 + $0xd9] sm:$0xff] }
 0x294   :  { %6511 = vmatprep.mubr.msk.f32.mxu1 %vm8144_vm0, %v9176_v22 }
 0x295   :  { %6694 = vmatmul.mubr.f32.gmra.mxu0 %v12401_v36  ;;  %v12413_v36 = vmax.f32 %v9099_v61, 0.0  ;;  %v1077_v61 = vld [vmem:[#allocation2 + $0xe1] sm:$0xff] }
 0x296   :  { %6696 = vmatprep.mubr.msk.f32.mxu0 %vm8144_vm0, %v9176_v22 }
 0x297   :  { %6512 = vmatmul.mubr.f32.gmra.mxu1 %v1064_v18  ;;  %v12417_v18 = vmax.f32 %v9111_v49, 0.0  ;;  %v1081_v49 = vld [vmem:[#allocation2 + $0x101] sm:$0xff] }
 0x298   :  { %6514 = vmatprep.mubr.msk.f32.mxu1 %vm8144_vm0, %v9176_v22 }
 0x299   :  { %6697 = vmatmul.mubr.f32.gmra.mxu0 %v12402_v16  ;;  %v12418_v16 = vmax.f32 %v9114_v57, 0.0  ;;  %v1082_v57 = vld [vmem:[#allocation2 + $0x109] sm:$0xff] }
 0x29a   :  { %6699 = vmatprep.mubr.msk.f32.mxu0 %vm8144_vm0, %v9176_v22 }
 0x29b   :  { %6515 = vmatmul.mubr.f32.gmra.mxu1 %v1065_v6  ;;  %v2161_v6 = vld [vmem:[#allocation2 + $0x16] sm:$0xff] }
 0x29c   :  { %6517 = vmatprep.mubr.msk.f32.mxu1 %vm8144_vm0, %v9176_v22 }
 0x29d   :  { %6700 = vmatmul.mubr.f32.gmra.mxu0 %v12403_v40  ;;  %v3074_v40 = vld [vmem:[#allocation3 + $0x2f0] sm:$0xff] }
 0x29e   :  { %6702 = vmatprep.mubr.msk.f32.mxu0 %vm8144_vm0, %v9176_v22 }
 0x29f   :  { %6518 = vmatmul.mubr.f32.gmra.mxu1 %v1066_v17 }
 0x2a0   :  { %6520 = vmatprep.mubr.msk.f32.mxu1 %vm8144_vm0, %v9176_v22 }
 0x2a1   :  { %6703 = vmatmul.mubr.f32.gmra.mxu0 %v12404_v0 }
 0x2a2   :  { %6705 = vmatprep.mubr.msk.f32.mxu0 %vm8144_vm0, %v9176_v22 }
 0x2a3   :  { %6521 = vmatmul.mubr.f32.gmra.mxu1 %v1067_v2 }
 0x2a4   :  { %6523 = vmatprep.mubr.msk.f32.mxu1 %vm8144_vm0, %v9176_v22 }
 0x2a5   :  { %6706 = vmatmul.mubr.f32.gmra.mxu0 %v12405_v50 }
 0x2a6   :  { %6708 = vmatprep.mubr.msk.f32.mxu0 %vm8144_vm0, %v9176_v22 }
 0x2a7   :  { %6524 = vmatmul.mubr.f32.gmra.mxu1 %v1068_v28  ;;  %v2162_v28 = vld [vmem:[#allocation2 + $0x1e] sm:$0xff] }
 0x2a8   :  { %6526 = vmatprep.mubr.msk.f32.mxu1 %vm8144_vm0, %v9176_v22 }
 0x2a9   :  { %6709 = vmatmul.mubr.f32.gmra.mxu0 %v12406_v55  ;;  %v1735_v55 = vld [vmem:[#allocation2 + $0x2] sm:$0xff] }
 0x2aa   :  { %6711 = vmatprep.mubr.msk.f32.mxu0 %vm8144_vm0, %v9176_v22 }
 0x2ab   :  { %6527 = vmatmul.mubr.f32.gmra.mxu1 %v1069_v4 }
 0x2ac   :  { %6529 = vmatprep.mubr.msk.f32.mxu1 %vm8144_vm0, %v9176_v22 }
 0x2ad   :  { %6712 = vmatmul.mubr.f32.gmra.mxu0 %v12407_v31  ;;  %v3073_v31 = vld [vmem:[#allocation3 + $0x2e8] sm:$0xff] }
 0x2ae   :  { %6714 = vmatprep.mubr.msk.f32.mxu0 %vm8144_vm0, %v9176_v22 }
 0x2af   :  { %6530 = vmatmul.mubr.f32.gmra.mxu1 %v1070_v59 }
 0x2b0   :  { %6532 = vmatprep.mubr.msk.f32.mxu1 %vm8144_vm0, %v9176_v22 }
 0x2b1   :  { %6715 = vmatmul.mubr.f32.gmra.mxu0 %v12408_v45  ;;  %v2649_v45 = vld [vmem:[#allocation3 + $0x270] sm:$0xff] }
 0x2b2   :  { %6717 = vmatprep.mubr.msk.f32.mxu0 %vm8144_vm0, %v9176_v22 }
 0x2b3   :  { %6533 = vmatmul.mubr.f32.gmra.mxu1 %v1071_v54 }
 0x2b4   :  { %6535 = vmatprep.mubr.msk.f32.mxu1 %vm8144_vm0, %v9176_v22 }
 0x2b5   :  { %6718 = vmatmul.mubr.f32.gmra.mxu0 %v12409_v9 }
 0x2b6   :  { %6720 = vmatprep.mubr.msk.f32.mxu0 %vm8144_vm0, %v9176_v22 }
 0x2b7   :  { %6536 = vmatmul.mubr.f32.gmra.mxu1 %v1072_v19 }
 0x2b8   :  { %6538 = vmatprep.mubr.msk.f32.mxu1 %vm8144_vm0, %v9176_v22 }
 0x2b9   :  { %6721 = vmatmul.mubr.f32.gmra.mxu0 %v12410_v14  ;;  %v2163_v14 = vld [vmem:[#allocation2 + $0x26] sm:$0xff] }
 0x2ba   :  { %6723 = vmatprep.mubr.msk.f32.mxu0 %vm8144_vm0, %v9176_v22 }
 0x2bb   :  { %6539 = vmatmul.mubr.f32.gmra.mxu1 %v1073_v58  ;;  %v1736_v58 = vld [vmem:[#allocation2 + $0xa] sm:$0xff] }
 0x2bc   :  { %6541 = vmatprep.mubr.msk.f32.mxu1 %vm8144_vm0, %v9176_v22 }
 0x2bd   :  { %6724 = vmatmul.mubr.f32.gmra.mxu0 %v12411_v63 }
 0x2be   :  { %6726 = vmatprep.mubr.msk.f32.mxu0 %vm8144_vm0, %v9176_v22 }
 0x2bf   :  { %6542 = vmatmul.mubr.f32.gmra.mxu1 %v1074_v60  ;;  %v2648_v60 = vld [vmem:[#allocation3 + $0x268] sm:$0xff] }
 0x2c0   :  { %6544 = vmatprep.mubr.msk.f32.mxu1 %vm8144_vm0, %v9176_v22 }
 0x2c1   :  { %6727 = vmatmul.mubr.f32.gmra.mxu0 %v12412_v21 }
 0x2c2   :  { %6729 = vmatprep.mubr.msk.f32.mxu0 %vm8144_vm0, %v9176_v22 }
 0x2c3   :  { %6545 = vmatmul.mubr.f32.gmra.mxu1 %v1075_v35 }
 0x2c4   :  { %6547 = vmatprep.mubr.msk.f32.mxu1 %vm8144_vm0, %v9176_v22 }
 0x2c5   :  { %6730 = vmatmul.mubr.f32.gmra.mxu0 %v12413_v36 }
 0x2c6   :  { %6732 = vmatprep.mubr.msk.f32.mxu0 %vm8144_vm0, %v9176_v22 }
 0x2c7   :  { %6548 = vmatmul.mubr.f32.gmra.mxu1 %v1076_v48 }
 0x2c8   :  { %6550 = vmatprep.mubr.msk.f32.mxu1 %vm8144_vm0, %v9176_v22 }
 0x2c9   :  { %6733 = vmatmul.mubr.f32.gmra.mxu0 %v12414_v20  ;;  %v2164_v20 = vld [vmem:[#allocation2 + $0x2e] sm:$0xff] }
 0x2ca   :  { %6735 = vmatprep.mubr.msk.f32.mxu0 %vm8144_vm0, %v9176_v22 }
 0x2cb   :  { %6551 = vmatmul.mubr.f32.gmra.mxu1 %v1077_v61  ;;  %v2647_v61 = vld [vmem:[#allocation3 + $0x260] sm:$0xff] }
 0x2cc   :  { %6553 = vmatprep.mubr.msk.f32.mxu1 %vm8144_vm0, %v9176_v22 }
 0x2cd   :  { %6736 = vmatmul.mubr.f32.gmra.mxu0 %v12415_v26  ;;  %v1737_v26 = vld [vmem:[#allocation2 + $0x12] sm:$0xff] }
 0x2ce   :  { %6738 = vmatprep.mubr.msk.f32.mxu0 %vm8144_vm0, %v9176_v22 }
 0x2cf   :  { %6554 = vmatmul.mubr.f32.gmra.mxu1 %v1078_v12 }
 0x2d0   :  { %6556 = vmatprep.mubr.msk.f32.mxu1 %vm8144_vm0, %v9176_v22 }
 0x2d1   :  { %6739 = vmatmul.mubr.f32.gmra.mxu0 %v12416_v30  ;;  %v3072_v30 = vld [vmem:[#allocation3 + $0x2e0] sm:$0xff] }
 0x2d2   :  { %6741 = vmatprep.mubr.msk.f32.mxu0 %vm8144_vm0, %v9176_v22 }
 0x2d3   :  { %6557 = vmatmul.mubr.f32.gmra.mxu1 %v1079_v7 }
 0x2d4   :  { %6559 = vmatprep.mubr.msk.f32.mxu1 %vm8144_vm0, %v9176_v22 }
 0x2d5   :  { %6742 = vmatmul.mubr.f32.gmra.mxu0 %v12417_v18  ;;  %v2646_v18 = vld [vmem:[#allocation3 + $0x258] sm:$0xff] }
 0x2d6   :  { %6744 = vmatprep.mubr.msk.f32.mxu0 %vm8144_vm0, %v9176_v22 }
 0x2d7   :  { %6560 = vmatmul.mubr.f32.gmra.mxu1 %v1080_v43 }
 0x2d8   :  { %6562 = vmatprep.mubr.msk.f32.mxu1 %vm8144_vm0, %v9176_v22 }
 0x2d9   :  { %6745 = vmatmul.mubr.f32.gmra.mxu0 %v12418_v16 }
 0x2da   :  { %6747 = vmatprep.mubr.msk.f32.mxu0 %vm8144_vm0, %v9176_v22 }
 0x2db   :  { %6563 = vmatmul.mubr.f32.gmra.mxu1 %v1081_v49 }
 0x2dc   :  { %6565 = vmatprep.mubr.msk.f32.mxu1 %vm8144_vm0, %v9176_v22 }
 0x2dd   :  { %6748 = vmatmul.mubr.f32.gmra.mxu0 %v916_v1  ;;  %v12420_v1 = vmax.f32 %v9123_v52, 0.0  ;;  %v1085_v52 = vld [vmem:[#allocation2 + $0x121] sm:$0xff] }
 0x2de   :  { %6750 = vmatprep.mubr.msk.f32.mxu0 %vm8144_vm0, %v9176_v22 }
 0x2df   :  { %6566 = vmatmul.mubr.f32.gmra.mxu1 %v1082_v57  ;;  %v2165_v57 = vld [vmem:[#allocation2 + $0x36] sm:$0xff] }
 0x2e0   :  { %6568 = vmatprep.mubr.msk.f32.mxu1 %vm8144_vm0, %v9176_v22 }
 0x2e1   :  { %6751 = vmatmul.mubr.f32.gmra.mxu0 %v12419_v25  ;;  %v1738_v25 = vld [vmem:[#allocation2 + $0x1a] sm:$0xff] }
 0x2e2   :  { %6753 = vmatprep.mubr.msk.f32.mxu0 %vm8144_vm0, %v9176_v22 }
 0x2e3   :  { %6569 = vmatmul.mubr.f32.gmra.mxu1 %v1083_v34 }
 0x2e4   :  { %6571 = vmatprep.mubr.msk.f32.mxu1 %vm8144_vm0, %v9176_v22 }
 0x2e5   :  { %6754 = vmatmul.mubr.f32.gmra.mxu0 %v12420_v1  ;;  %v2645_v1 = vld [vmem:[#allocation3 + $0x250] sm:$0xff] }
 0x2e6   :  { %6756 = vmatprep.mubr.msk.f32.mxu0 %vm8144_vm0, %v9176_v22 }
 0x2e7   :  { %6572 = vmatmul.mubr.f32.gmra.mxu1 %v1084_v44 }
 0x2e8   :  { %6574 = vmatprep.mubr.msk.f32.mxu1 %vm8144_vm0, %v9176_v22 }
 0x2e9   :  { %6757 = vmatmul.mubr.f32.gmra.mxu0 %v919_v42  ;;  %v1095_v42 = vld [vmem:[#allocation2 + $0x171] sm:$0xff] }
 0x2ea   :  { %6759 = vmatprep.mubr.msk.f32.mxu0 %vm8144_vm0, %v9176_v22 }
 0x2eb   :  { %6575 = vmatmul.mubr.f32.gmra.mxu1 %v1085_v52 }
 0x2ec   :  { %6577 = vmatprep.mubr.msk.f32.mxu1 %vm8144_vm0, %v9176_v22 }
 0x2ed   :  { %6760 = vmatmul.mubr.f32.gmra.mxu0 %v920_v29 }
 0x2ee   :  { %6762 = vmatprep.mubr.msk.f32.mxu0 %vm8144_vm0, %v9176_v22 }
 0x2ef   :  { %6578 = vmatmul.mubr.f32.gmra.mxu1 %v1086_v5 }
 0x2f0   :  { %6580 = vmatprep.mubr.msk.f32.mxu1 %vm8144_vm0, %v9176_v22 }
 0x2f1   :  { %6763 = vmatmul.mubr.f32.gmra.mxu0 %v921_v39  ;;  %v12422_v39 = vmax.f32 %v9156_v27, 0.0 }
 0x2f2   :  { %6765 = vmatprep.mubr.msk.f32.mxu0 %vm8144_vm0, %v9176_v22 }
 0x2f3   :  { %6581 = vmatmul.mubr.f32.gmra.mxu1 %v1087_v56 }
 0x2f4   :  { %6583 = vmatprep.mubr.msk.f32.mxu1 %vm8144_vm0, %v9176_v22 }
 0x2f5   :  { %6766 = vmatmul.mubr.f32.gmra.mxu0 %v922_v23 }
 0x2f6   :  { %6768 = vmatprep.mubr.msk.f32.mxu0 %vm8144_vm0, %v9176_v22 }
 0x2f7   :  { %6584 = vmatmul.mubr.f32.gmra.mxu1 %v1088_v62  ;;  %v2166_v62 = vld [vmem:[#allocation2 + $0x3e] sm:$0xff] }
 0x2f8   :  { %6586 = vmatprep.mubr.msk.f32.mxu1 %vm8144_vm0, %v9176_v22 }
 0x2f9   :  { %6769 = vmatmul.mubr.f32.gmra.mxu0 %v923_v51  ;;  %v2160_v51 = vld [vmem:[#allocation2 + $0xe] sm:$0xff] }
 0x2fa   :  { %6771 = vmatprep.mubr.msk.f32.mxu0 %vm8144_vm0, %v9176_v22 }
 0x2fb   :  { %6587 = vmatmul.mubr.f32.gmra.mxu1 %v1089_v13  ;;  %v2644_v13 = vld [vmem:[#allocation3 + $0x248] sm:$0xff] }
 0x2fc   :  { %6589 = vmatprep.mubr.msk.f32.mxu1 %vm8144_vm0, %v9176_v22 }
 0x2fd   :  { %6772 = vmatmul.mubr.f32.gmra.mxu0 %v924_v37  ;;  %v3075_v37 = vld [vmem:[#allocation3 + $0x2f8] sm:$0xff] }
 0x2fe   :  { %6774 = vmatprep.mubr.msk.f32.mxu0 %vm8144_vm0, %v9176_v22 }
 0x2ff   :  { %6590 = vmatmul.mubr.f32.gmra.mxu1 %v1090_v15  ;;  %v1739_v15 = vld [vmem:[#allocation2 + $0x22] sm:$0xff] }
 0x300   :  { %6592 = vmatprep.mubr.msk.f32.mxu1 %vm8144_vm0, %v9176_v22 }
 0x301   :  { %6775 = vmatmul.mubr.f32.gmra.mxu0 %v925_v8  ;;  %v1096_v8 = vld [vmem:[#allocation2 + $0x179] sm:$0xff] }
 0x302   :  { %6777 = vmatprep.mubr.msk.f32.mxu0 %vm8144_vm0, %v9176_v22 }
 0x303   :  { %6593 = vmatmul.mubr.f32.gmra.mxu1 %v1091_v41 }
 0x304   :  { %6595 = vmatprep.mubr.msk.f32.mxu1 %vm8144_vm0, %v9176_v22 }
 0x305   :  { %6778 = vmatmul.mubr.f32.gmra.mxu0 %v926_v32  ;;  %v12421_v32 = vmax.f32 %v9153_v33, 0.0  ;;  %v1032_v33 = vld [vmem:[#allocation2 + $0x180] sm:$0xff] }
 0x306   :  { %6780 = vmatprep.mubr.msk.f32.mxu0 %vm8144_vm0, %v9176_v22 }
 0x307   :  { %6596 = vmatmul.mubr.f32.gmra.mxu1 %v1092_v11  ;;  %v3071_v11 = vld [vmem:[#allocation3 + $0x2d8] sm:$0xff] }
 0x308   :  { %6598 = vmatprep.mubr.msk.f32.mxu1 %vm8144_vm0, %v9176_v22 }
 0x309   :  { %6781 = vmatmul.mubr.f32.gmra.mxu0 %v927_v46 }
 0x30a   :  { %6783 = vmatprep.mubr.msk.f32.mxu0 %vm8144_vm0, %v9176_v22 }
 0x30b   :  { %6599 = vmatmul.mubr.f32.gmra.mxu1 %v1093_v3  ;;  %v1491_v29 = vpop.f32.mrf.mxu0 }
 0x30c   :  { %6601 = vmatprep.mubr.msk.f32.mxu1 %vm8144_vm0, %v9176_v22 }
 0x30d   :  { %6784 = vmatmul.mubr.f32.gmra.mxu0 %v12421_v32  ;;  %v6647_v27 = vpop.f32.mrf.mxu0  ;;  %v9659_v32 = vld [vmem:[#allocation2 + $0x188] sm:$0xff] }
 0x30e   :  { %6786 = vmatprep.mubr.msk.f32.mxu0 %vm8144_vm0, %v9176_v22 }
 0x30f   :  { %6602 = vmatmul.mubr.f32.gmra.mxu1 %v1094_v10  ;;  %v1496_v46 = vpop.f32.mrf.mxu0  ;;  %v2643_v10 = vld [vmem:[#allocation3 + $0x240] sm:$0xff] }
 0x310   :  { %6604 = vmatprep.mubr.msk.f32.mxu1 %vm8144_vm0, %v9176_v22 }
 0x311   :  { %6787 = vmatmul.mubr.f32.gmra.mxu0 %v12422_v39  ;;  %v6650_v23 = vpop.f32.mrf.mxu0 }
 0x312   :  { %6789 = vmatprep.mubr.msk.f32.mxu0 %vm8144_vm0, %v9176_v22 }
 0x313   :  { %6605 = vmatmul.mubr.f32.gmra.mxu1 %v1095_v42 }
 0x314   :  { %6607 = vmatprep.mubr.msk.f32.mxu1 %vm8144_vm0, %v9176_v22  ;;  %v1501_v17 = vpop.f32.mrf.mxu0 }
 0x315   :  { %6790 = vmatmul.mubr.f32.gmra.mxu0 %v1032_v33 }
 0x316   :  { %7003 = vmatprep.mubr.msk.f32.mxu0 %vm8144_vm0, %v9176_v22  ;;  %v6653_v2 = vpop.f32.mrf.mxu0 }
 0x317   :  { %6608 = vmatmul.mubr.f32.gmra.mxu1 %v1096_v8 }
 0x318   :  { %6610 = vmatprep.mubr.msk.f32.mxu1 %vm8144_vm0, %v9176_v22 }
 0x319   :  { %7004 = vmatmul.mubr.f32.vlgmr.msra.gmra.mxu0 %v2160_v51  ;;  %v2642_v51 = vld [vmem:[#allocation3 + $0x238] sm:$0xff] }
 0x31a   :  { %7006 = vmatprep.mubr.msk.f32.mxu0 %vm8144_vm0, %v9176_v22  ;;  %7330 = vmatpush3.msra.mxu0 %v3075_v37  ;;  %v1181_v0 = vpop.f32.mrf.mxu1 }
 0x31b   :  { %7331 = vmatprep.subr.mxu0 %v9176_v22  ;;  %6611 = vmatmul.mubr.f32.gmra.mxu1 %v1097_v38  ;;  %v9622_v47 = vadd.f32 %v1491_v29, %v1181_v0  ;;  %v2167_v29 = vld [vmem:[#allocation2 + $0x46] sm:$0xff]  ;;  %v1741_v38 = vld [vmem:[#allocation2 + $0x32] sm:$0xff] }
 0x31c   :  { %6824 = vmatprep.mubr.msk.f32.mxu1 %vm8144_vm0, %v9176_v22  ;;  %7332 = vmatpush3.msra.mxu0 %v3074_v40  ;;  %v6468_v50 = vpop.f32.mrf.mxu1  ;;  %v2641_v40 = vld [vmem:[#allocation3 + $0x230] sm:$0xff] }
 0x31d   :  { %7007 = vmatmul.mubr.f32.gmra.mxu0 %v2161_v6  ;;  %7333 = vmatprep.subr.mxu0 %v9176_v22  ;;  %v2168_v6 = vld [vmem:[#allocation2 + $0x4e] sm:$0xff]  ;;  %v3070_v0 = vld [vmem:[#allocation3 + $0x2d0] sm:$0xff] }
 0x31e   :  { %7009 = vmatprep.mubr.msk.f32.mxu0 %vm8144_vm0, %v9176_v22  ;;  %v1186_v59 = vpop.f32.mrf.mxu1  ;;  %7334 = vmatpush3.msra.mxu0 %v3073_v31  ;;  %v2640_v50 = vld [vmem:[#allocation3 + $0x228] sm:$0xff]  ;;  %v1742_v31 = vld [vmem:[#allocation2 + $0x3a] sm:$0xff] }
 0x31f   :  { %v1506_v4 = vpop.f32.mrf.mxu0  ;;  %6825 = vmatmul.mubr.f32.vlgmr.msra.gmra.mxu1 %v1735_v55  ;;  %v9629_v54 = vadd.f32 %v1496_v46, %v1186_v59  ;;  %7335 = vmatprep.subr.mxu0 %v9176_v22 }
 0x320   :  { %7151 = vmatpush3.msra.mxu1 %v2650_v53  ;;  %6827 = vmatprep.mubr.msk.f32.mxu1 %vm8144_vm0, %v9176_v22  ;;  %v6471_v19 = vpop.f32.mrf.mxu1 }
 0x321   :  { %7010 = vmatmul.mubr.f32.gmra.mxu0 %v2162_v28  ;;  %v6656_v9 = vpop.f32.mrf.mxu0  ;;  %7152 = vmatprep.subr.mxu1 %v9176_v22 }
 0x322   :  { %7012 = vmatprep.mubr.msk.f32.mxu0 %vm8144_vm0, %v9176_v22  ;;  %7153 = vmatpush3.msra.mxu1 %v2649_v45  ;;  %v2639_v45 = vld [vmem:[#allocation3 + $0x220] sm:$0xff] }
 0x323   :  { %v1191_v21 = vpop.f32.mrf.mxu1  ;;  %6828 = vmatmul.mubr.f32.gmra.mxu1 %v1736_v58  ;;  %7154 = vmatprep.subr.mxu1 %v9176_v22 }
 0x324   :  { %v9636_v35 = vadd.f32 %v1501_v17, %v1191_v21  ;;  %6830 = vmatprep.mubr.msk.f32.mxu1 %vm8144_vm0, %v9176_v22  ;;  %7155 = vmatpush3.msra.mxu1 %v2648_v60  ;;  %v2638_v60 = vld [vmem:[#allocation3 + $0x218] sm:$0xff] }
 0x325   :  { %v1511_v63 = vpop.f32.mrf.mxu0  ;;  %7013 = vmatmul.mubr.f32.gmra.mxu0 %v2163_v14  ;;  %v6474_v48 = vpop.f32.mrf.mxu1  ;;  %7156 = vmatprep.subr.mxu1 %v9176_v22  ;;  %v1743_v21 = vld [vmem:[#allocation2 + $0x42] sm:$0xff] }
 0x326   :  { %7015 = vmatprep.mubr.msk.f32.mxu0 %vm8144_vm0, %v9176_v22  ;;  %7157 = vmatpush3.msra.mxu1 %v2647_v61  ;;  %v3069_v48 = vld [vmem:[#allocation3 + $0x2c8] sm:$0xff] }
 0x327   :  { %v6659_v36 = vpop.f32.mrf.mxu0  ;;  %v1196_v7 = vpop.f32.mrf.mxu1  ;;  %6831 = vmatmul.mubr.f32.gmra.mxu1 %v1737_v26  ;;  %7158 = vmatprep.subr.mxu1 %v9176_v22 }
 0x328   :  { %v9645_v43 = vadd.f32 %v1506_v4, %v1196_v7  ;;  %6833 = vmatprep.mubr.msk.f32.mxu1 %vm8144_vm0, %v9176_v22  ;;  %7336 = vmatpush3.msra.mxu0 %v3072_v30  ;;  %v2169_v4 = vld [vmem:[#allocation2 + $0x56] sm:$0xff]  ;;  %v2171_v7 = vld [vmem:[#allocation2 + $0x66] sm:$0xff] }
 0x329   :  { %v1516_v12 = vpop.f32.mrf.mxu0  ;;  %7016 = vmatmul.mubr.f32.gmra.mxu0 %v2164_v20  ;;  %v6477_v49 = vpop.f32.mrf.mxu1  ;;  %7159 = vmatpush3.msra.mxu1 %v2646_v18  ;;  %v1744_v18 = vld [vmem:[#allocation2 + $0x4a] sm:$0xff] }
 0x32a   :  { %7018 = vmatprep.mubr.msk.f32.mxu0 %vm8144_vm0, %v9176_v22  ;;  %7160 = vmatprep.subr.mxu1 %v9176_v22 }
 0x32b   :  { %v6662_v16 = vpop.f32.mrf.mxu0  ;;  %v1201_v44 = vpop.f32.mrf.mxu1  ;;  %6834 = vmatmul.mubr.f32.gmra.mxu1 %v1738_v25  ;;  %7337 = vmatprep.subr.mxu0 %v9176_v22 }
 0x32c   :  { %v9652_v52 = vadd.f32 %v1511_v63, %v1201_v44  ;;  %6836 = vmatprep.mubr.msk.f32.mxu1 %vm8144_vm0, %v9176_v22  ;;  %7161 = vmatpush3.msra.mxu1 %v2645_v1  ;;  %v2170_v63 = vld [vmem:[#allocation2 + $0x5e] sm:$0xff]  ;;  %v2172_v1 = vld [vmem:[#allocation2 + $0x6e] sm:$0xff] }
 0x32d   :  { %v1521_v34 = vpop.f32.mrf.mxu0  ;;  %7019 = vmatmul.mubr.f32.gmra.mxu0 %v2165_v57  ;;  %v6480_v56 = vpop.f32.mrf.mxu1  ;;  %7162 = vmatprep.subr.mxu1 %v9176_v22  ;;  %v3068_v44 = vld [vmem:[#allocation3 + $0x2c0] sm:$0xff] }
 0x32e   :  { %7021 = vmatprep.mubr.msk.f32.mxu0 %vm8144_vm0, %v9176_v22  ;;  %7163 = vmatpush3.msra.mxu1 %v2644_v13  ;;  %v1740_v22 = vld [vmem:[#allocation2 + $0x2a] sm:$0xff] }
 0x32f   :  { %v6665_v5 = vpop.f32.mrf.mxu0  ;;  %v1206_v3 = vpop.f32.mrf.mxu1  ;;  %6837 = vmatmul.mubr.f32.gmra.mxu1 %v1739_v15  ;;  %7164 = vmatprep.subr.mxu1 %v9659_v32 }
 0x330   :  { %v9663_v39 = vadd.f32 %v1516_v12, %v1206_v3  ;;  %6839 = vmatprep.mubr.msk.f32.mxu1 %vm8144_vm0, %v9659_v32  ;;  %7338 = vmatpush3.msra.mxu0 %v3071_v11  ;;  %v2637_v12 = vld [vmem:[#allocation3 + $0x210] sm:$0xff] }
 0x331   :  { %v1526_v41 = vpop.f32.mrf.mxu0  ;;  %7022 = vmatmul.mubr.f32.gmra.mxu0 %v2166_v62  ;;  %v6483_v42 = vpop.f32.mrf.mxu1  ;;  %7165 = vmatpush3.msra.mxu1 %v2643_v10  ;;  %v1745_v5 = vld [vmem:[#allocation2 + $0x52] sm:$0xff]  ;;  %v1746_v3 = vld [vmem:[#allocation2 + $0x5a] sm:$0xff] }
 0x332   :  { %7024 = vmatprep.mubr.msk.f32.mxu0 %vm8144_vm0, %v9659_v32  ;;  %7166 = vmatprep.subr.mxu1 %v9659_v32  ;;  %v2173_v11 = vld [vmem:[#allocation2 + $0x76] sm:$0xff] }
 0x333   :  { %v6668_v33 = vpop.f32.mrf.mxu0  ;;  %v1211_v37 = vpop.f32.mrf.mxu1  ;;  %6840 = vmatmul.mubr.f32.gmra.mxu1 %v1740_v22  ;;  %7339 = vmatprep.subr.mxu0 %v9659_v32  ;;  %v2636_v22 = vld [vmem:[#allocation3 + $0x208] sm:$0xff] }
 0x334   :  { %v9670_v8 = vadd.f32 %v1521_v34, %v1211_v37  ;;  %6842 = vmatprep.mubr.msk.f32.mxu1 %vm8144_vm0, %v9659_v32  ;;  %7167 = vmatpush3.msra.mxu1 %v2642_v51  ;;  %v2174_v51 = vld [vmem:[#allocation2 + $0x7e] sm:$0xff] }
 0x335   :  { %v1531_v27 = vpop.f32.mrf.mxu0  ;;  %7025 = vmatmul.mubr.f32.gmra.mxu0 %v2167_v29  ;;  %v6486_v23 = vpop.f32.mrf.mxu1  ;;  %7168 = vmatprep.subr.mxu1 %v9659_v32  ;;  %v1747_v37 = vld [vmem:[#allocation2 + $0x62] sm:$0xff] }
 0x336   :  { %7027 = vmatprep.mubr.msk.f32.mxu0 %vm8144_vm0, %v9659_v32  ;;  %7169 = vmatpush3.msra.mxu1 %v2641_v40 }
 0x337   :  { %v6671_v46 = vpop.f32.mrf.mxu0  ;;  %v1216_v2 = vpop.f32.mrf.mxu1  ;;  %6843 = vmatmul.mubr.f32.gmra.mxu1 %v1741_v38  ;;  %7170 = vmatprep.subr.mxu1 %v9659_v32 }
 0x338   :  { %v9679_v53 = vadd.f32 %v1526_v41, %v1216_v2  ;;  %6845 = vmatprep.mubr.msk.f32.mxu1 %vm8144_vm0, %v9659_v32  ;;  %7340 = vmatpush3.msra.mxu0 %v3070_v0  ;;  %v3067_v0 = vld [vmem:[#allocation3 + $0x2b8] sm:$0xff]  ;;  %v1748_v2 = vld [vmem:[#allocation2 + $0x6a] sm:$0xff] }
 0x339   :  { %v1536_v17 = vpop.f32.mrf.mxu0  ;;  %7028 = vmatmul.mubr.f32.gmra.mxu0 %v2168_v6  ;;  %v6489_v55 = vpop.f32.mrf.mxu1  ;;  %7171 = vmatpush3.msra.mxu1 %v2640_v50 }
 0x33a   :  { %7030 = vmatprep.mubr.msk.f32.mxu0 %vm8144_vm0, %v9659_v32  ;;  %7172 = vmatprep.subr.mxu1 %v9659_v32 }
 0x33b   :  { %v6674_v28 = vpop.f32.mrf.mxu0  ;;  %v1221_v9 = vpop.f32.mrf.mxu1  ;;  %6846 = vmatmul.mubr.f32.gmra.mxu1 %v1742_v31  ;;  %7341 = vmatprep.subr.mxu0 %v9659_v32 }
 0x33c   :  { %v9686_v19 = vadd.f32 %v1531_v27, %v1221_v9  ;;  %6848 = vmatprep.mubr.msk.f32.mxu1 %vm8144_vm0, %v9659_v32  ;;  %7173 = vmatpush3.msra.mxu1 %v2639_v45  ;;  %v3066_v45 = vld [vmem:[#allocation3 + $0x2b0] sm:$0xff] }
 0x33d   :  { %v1541_v59 = vpop.f32.mrf.mxu0  ;;  %7031 = vmatmul.mubr.f32.gmra.mxu0 %v2169_v4  ;;  %v6492_v58 = vpop.f32.mrf.mxu1  ;;  %7174 = vmatprep.subr.mxu1 %v9659_v32  ;;  %v1749_v9 = vld [vmem:[#allocation2 + $0x72] sm:$0xff] }
 0x33e   :  { %7033 = vmatprep.mubr.msk.f32.mxu0 %vm8144_vm0, %v9659_v32  ;;  %7175 = vmatpush3.msra.mxu1 %v2638_v60 }
 0x33f   :  { %v6677_v14 = vpop.f32.mrf.mxu0  ;;  %v1226_v20 = vpop.f32.mrf.mxu1  ;;  %6849 = vmatmul.mubr.f32.gmra.mxu1 %v1743_v21  ;;  %7342 = vmatpush3.msra.mxu0 %v3069_v48  ;;  %v2635_v21 = vld [vmem:[#allocation3 + $0x200] sm:$0xff]  ;;  %v2177_v48 = vld [vmem:[#allocation2 + $0x96] sm:$0xff] }
 0x340   :  { %v9695_v61 = vadd.f32 %v1536_v17, %v1226_v20  ;;  %6851 = vmatprep.mubr.msk.f32.mxu1 %vm8144_vm0, %v9659_v32  ;;  %7176 = vmatprep.subr.mxu1 %v9659_v32  ;;  %v2175_v17 = vld [vmem:[#allocation2 + $0x86] sm:$0xff]  ;;  %v3065_v20 = vld [vmem:[#allocation3 + $0x2a8] sm:$0xff] }
 0x341   :  { %v1546_v36 = vpop.f32.mrf.mxu0  ;;  %7034 = vmatmul.mubr.f32.gmra.mxu0 %v2170_v63  ;;  %v6495_v30 = vpop.f32.mrf.mxu1  ;;  %7177 = vmatpush3.msra.mxu1 %v2637_v12 }
 0x342   :  { %7036 = vmatprep.mubr.msk.f32.mxu0 %vm8144_vm0, %v9659_v32  ;;  %7343 = vmatprep.subr.mxu0 %v9659_v32 }
 0x343   :  { %v6680_v26 = vpop.f32.mrf.mxu0  ;;  %v1231_v49 = vpop.f32.mrf.mxu1  ;;  %6852 = vmatmul.mubr.f32.gmra.mxu1 %v1744_v18  ;;  %7178 = vmatprep.subr.mxu1 %v9659_v32 }
 0x344   :  { %v9702_v57 = vadd.f32 %v1541_v59, %v1231_v49  ;;  %6854 = vmatprep.mubr.msk.f32.mxu1 %vm8144_vm0, %v9659_v32  ;;  %7344 = vmatpush3.msra.mxu0 %v3068_v44  ;;  %v2176_v59 = vld [vmem:[#allocation2 + $0x8e] sm:$0xff]  ;;  %v1750_v26 = vld [vmem:[#allocation2 + $0x7a] sm:$0xff] }
 0x345   :  { %v1551_v16 = vpop.f32.mrf.mxu0  ;;  %7037 = vmatmul.mubr.f32.gmra.mxu0 %v2171_v7  ;;  %v6498_v34 = vpop.f32.mrf.mxu1  ;;  %7345 = vmatprep.subr.mxu0 %v9659_v32  ;;  %v2178_v49 = vld [vmem:[#allocation2 + $0x9e] sm:$0xff] }
 0x346   :  { %7039 = vmatprep.mubr.msk.f32.mxu0 %vm8144_vm0, %v9659_v32  ;;  %7179 = vmatpush3.msra.mxu1 %v2636_v22  ;;  %v1751_v34 = vld [vmem:[#allocation2 + $0x82] sm:$0xff] }
 0x347   :  { %v6683_v25 = vpop.f32.mrf.mxu0  ;;  %v1236_v62 = vpop.f32.mrf.mxu1  ;;  %6855 = vmatmul.mubr.f32.gmra.mxu1 %v1745_v5  ;;  %7180 = vmatprep.subr.mxu1 %v9659_v32 }
 0x348   :  { %v9710_v13 = vadd.f32 %v1546_v36, %v1236_v62  ;;  %6857 = vmatprep.mubr.msk.f32.mxu1 %vm8144_vm0, %v9659_v32  ;;  %7346 = vmatpush3.msra.mxu0 %v3067_v0  ;;  %v3064_v25 = vld [vmem:[#allocation3 + $0x2a0] sm:$0xff]  ;;  %v2181_v0 = vld [vmem:[#allocation2 + $0xb6] sm:$0xff] }
 0x349   :  { %v1556_v56 = vpop.f32.mrf.mxu0  ;;  %7040 = vmatmul.mubr.f32.gmra.mxu0 %v2172_v1  ;;  %v6501_v41 = vpop.f32.mrf.mxu1  ;;  %7347 = vmatprep.subr.mxu0 %v9659_v32 }
 0x34a   :  { %7042 = vmatprep.mubr.msk.f32.mxu0 %vm8144_vm0, %v9659_v32  ;;  %7348 = vmatpush3.msra.mxu0 %v3066_v45  ;;  %v3063_v41 = vld [vmem:[#allocation3 + $0x298] sm:$0xff] }
 0x34b   :  { %v6686_v15 = vpop.f32.mrf.mxu0  ;;  %v1241_v33 = vpop.f32.mrf.mxu1  ;;  %6858 = vmatmul.mubr.f32.gmra.mxu1 %v1746_v3  ;;  %7349 = vmatprep.subr.mxu0 %v9659_v32 }
 0x34c   :  { %v9717_v42 = vadd.f32 %v1551_v16, %v1241_v33  ;;  %6860 = vmatprep.mubr.msk.f32.mxu1 %vm8144_vm0, %v9659_v32  ;;  %7181 = vmatpush3.msra.mxu1 %v2635_v21  ;;  %v2179_v15 = vld [vmem:[#allocation2 + $0xa6] sm:$0xff] }
 0x34d   :  { %v1561_v10 = vpop.f32.mrf.mxu0  ;;  %7043 = vmatmul.mubr.f32.gmra.mxu0 %v2173_v11  ;;  %v6504_v27 = vpop.f32.mrf.mxu1  ;;  %7508 = vmatprep.subr.mxu1 %v9659_v32  ;;  %v1752_v11 = vld [vmem:[#allocation2 + $0x8a] sm:$0xff] }
 0x34e   :  { %7045 = vmatprep.mubr.msk.f32.mxu0 %vm8144_vm0, %v9659_v32  ;;  %7350 = vmatpush3.msra.mxu0 %v3065_v20  ;;  %v2180_v27 = vld [vmem:[#allocation2 + $0xae] sm:$0xff] }
 0x34f   :  { %v6689_v29 = vpop.f32.mrf.mxu0  ;;  %v1246_v23 = vpop.f32.mrf.mxu1  ;;  %6861 = vmatmul.mubr.f32.gmra.mxu1 %v1747_v37  ;;  %7351 = vmatprep.subr.mxu0 %v9659_v32  ;;  %v1753_v37 = vld [vmem:[#allocation2 + $0x92] sm:$0xff] }
 0x350   :  { %v9724_v6 = vadd.f32 %v1556_v56, %v1246_v23  ;;  %6863 = vmatprep.mubr.msk.f32.mxu1 %vm8144_vm0, %v9659_v32  ;;  %7352 = vmatpush3.msra.mxu0 %v3064_v25 }
 0x351   :  { %v1566_v46 = vpop.f32.mrf.mxu0  ;;  %7046 = vmatmul.mubr.f32.gmra.mxu0 %v2174_v51  ;;  %v6507_v38 = vpop.f32.mrf.mxu1  ;;  %7353 = vmatprep.subr.mxu0 %v9659_v32  ;;  %v3062_v51 = vld [vmem:[#allocation3 + $0x290] sm:$0xff] }
 0x352   :  { %7048 = vmatprep.mubr.msk.f32.mxu0 %vm8144_vm0, %v9659_v32  ;;  %7354 = vmatpush3.msra.mxu0 %v3063_v41 }
 0x353   :  { %v6692_v40 = vpop.f32.mrf.mxu0  ;;  %v1251_v28 = vpop.f32.mrf.mxu1  ;;  %6864 = vmatmul.mubr.f32.gmra.mxu1 %v1748_v2  ;;  %7355 = vmatprep.subr.mxu0 %v9659_v32  ;;  %v3061_v2 = vld [vmem:[#allocation3 + $0x288] sm:$0xff] }
 0x354   :  { %v9730_v55 = vadd.f32 %v1561_v10, %v1251_v28  ;;  %6866 = vmatprep.mubr.msk.f32.mxu1 %vm8144_vm0, %v9659_v32  ;;  %7356 = vmatpush3.msra.mxu0 %v3062_v51 }
 0x355   :  { %v1571_v50 = vpop.f32.mrf.mxu0  ;;  %7049 = vmatmul.mubr.f32.gmra.mxu0 %v2175_v17  ;;  %v6510_v31 = vpop.f32.mrf.mxu1  ;;  %7357 = vmatprep.subr.mxu0 %v9659_v32 }
 0x356   :  { %7051 = vmatprep.mubr.msk.f32.mxu0 %vm8144_vm0, %v9659_v32  ;;  %7358 = vmatpush3.msra.mxu0 %v3061_v2 }
 0x357   :  { %v6695_v4 = vpop.f32.mrf.mxu0  ;;  %v1256_v58 = vpop.f32.mrf.mxu1  ;;  %6867 = vmatmul.mubr.f32.gmra.mxu1 %v1749_v9  ;;  %v2182_v9 = vld [vmem:[#allocation2 + $0xbe] sm:$0xff]  ;;  %7359 = vmatprep.subr.mxu0 %v9659_v32 }
 0x358   :  { %v9737_v63 = vadd.f32 %v1566_v46, %v1256_v58  ;;  %6869 = vmatprep.mubr.msk.f32.mxu1 %vm8144_vm0, %v9659_v32  ;;  %v1755_v58 = vld [vmem:[#allocation2 + $0xa2] sm:$0xff] }
 0x359   :  { %v1576_v14 = vpop.f32.mrf.mxu0  ;;  %7052 = vmatmul.mubr.f32.gmra.mxu0 %v2176_v59  ;;  %v6513_v36 = vpop.f32.mrf.mxu1 }
 0x35a   :  { %7054 = vmatprep.mubr.msk.f32.mxu0 %vm8144_vm0, %v9659_v32 }
 0x35b   :  { %v6698_v60 = vpop.f32.mrf.mxu0  ;;  %v1261_v30 = vpop.f32.mrf.mxu1  ;;  %6870 = vmatmul.mubr.f32.gmra.mxu1 %v1750_v26  ;;  %v2183_v26 = vld [vmem:[#allocation2 + $0xc6] sm:$0xff] }
 0x35c   :  { %v9745_v7 = vadd.f32 %v1571_v50, %v1261_v30  ;;  %6872 = vmatprep.mubr.msk.f32.mxu1 %vm8144_vm0, %v9659_v32  ;;  %v1754_v50 = vld [vmem:[#allocation2 + $0x9a] sm:$0xff] }
 0x35d   :  { %v1581_v12 = vpop.f32.mrf.mxu0  ;;  %7055 = vmatmul.mubr.f32.gmra.mxu0 %v2177_v48  ;;  %v6516_v16 = vpop.f32.mrf.mxu1 }
 0x35e   :  { %7057 = vmatprep.mubr.msk.f32.mxu0 %vm8144_vm0, %v9659_v32 }
 0x35f   :  { %v6701_v18 = vpop.f32.mrf.mxu0  ;;  %v1266_v44 = vpop.f32.mrf.mxu1  ;;  %6873 = vmatmul.mubr.f32.gmra.mxu1 %v1751_v34  ;;  %v2184_v34 = vld [vmem:[#allocation2 + $0xce] sm:$0xff] }
 0x360   :  { %v9752_v5 = vadd.f32 %v1576_v14, %v1266_v44  ;;  %6875 = vmatprep.mubr.msk.f32.mxu1 %vm8144_vm0, %v9659_v32  ;;  %v3060_v14 = vld [vmem:[#allocation3 + $0x280] sm:$0xff] }
 0x361   :  { %v1586_v1 = vpop.f32.mrf.mxu0  ;;  %7058 = vmatmul.mubr.f32.gmra.mxu0 %v2178_v49  ;;  %v6519_v62 = vpop.f32.mrf.mxu1 }
 0x362   :  { %7060 = vmatprep.mubr.msk.f32.mxu0 %vm8144_vm0, %v9659_v32  ;;  %7360 = vmatpush3.msra.mxu0 %v3060_v14 }
 0x363   :  { %v6704_v56 = vpop.f32.mrf.mxu0  ;;  %v1271_v10 = vpop.f32.mrf.mxu1  ;;  %6876 = vmatmul.mubr.f32.gmra.mxu1 %v1752_v11  ;;  %7687 = vmatprep.subr.mxu0 %v9659_v32  ;;  %v2185_v11 = vld [vmem:[#allocation2 + $0xd6] sm:$0xff] }
 0x364   :  { %v9759_v33 = vadd.f32 %v1581_v12, %v1271_v10  ;;  %6878 = vmatprep.mubr.msk.f32.mxu1 %vm8144_vm0, %v9659_v32  ;;  %v1756_v12 = vld [vmem:[#allocation2 + $0xaa] sm:$0xff] }
 0x365   :  { %v1591_v3 = vpop.f32.mrf.mxu0  ;;  %7061 = vmatmul.mubr.f32.gmra.mxu0 %v2179_v15  ;;  %v6522_v22 = vpop.f32.mrf.mxu1 }
 0x366   :  { %7063 = vmatprep.mubr.msk.f32.mxu0 %vm8144_vm0, %v9659_v32 }
 0x367   :  { %v6707_v29 = vpop.f32.mrf.mxu0  ;;  %v1276_v23 = vpop.f32.mrf.mxu1  ;;  %6879 = vmatmul.mubr.f32.gmra.mxu1 %v1753_v37  ;;  %v2186_v37 = vld [vmem:[#allocation2 + $0xde] sm:$0xff] }
 0x368   :  { %v9766_v40 = vadd.f32 %v1586_v1, %v1276_v23  ;;  %6881 = vmatprep.mubr.msk.f32.mxu1 %vm8144_vm0, %v9659_v32  ;;  %v1757_v1 = vld [vmem:[#allocation2 + $0xb2] sm:$0xff] }
 0x369   :  { %v1596_v46 = vpop.f32.mrf.mxu0  ;;  %7064 = vmatmul.mubr.f32.gmra.mxu0 %v2180_v27  ;;  %v6525_v17 = vpop.f32.mrf.mxu1 }
 0x36a   :  { %7066 = vmatprep.mubr.msk.f32.mxu0 %vm8144_vm0, %v9659_v32 }
 0x36b   :  { %v6710_v38 = vpop.f32.mrf.mxu0  ;;  %v1281_v4 = vpop.f32.mrf.mxu1  ;;  %6882 = vmatmul.mubr.f32.gmra.mxu1 %v1754_v50  ;;  %v2187_v50 = vld [vmem:[#allocation2 + $0xe6] sm:$0xff] }
 0x36c   :  { %v9773_v31 = vadd.f32 %v1591_v3, %v1281_v4  ;;  %6884 = vmatprep.mubr.msk.f32.mxu1 %vm8144_vm0, %v9659_v32  ;;  %v1758_v3 = vld [vmem:[#allocation2 + $0xba] sm:$0xff] }
 0x36d   :  { %v1601_v28 = vpop.f32.mrf.mxu0  ;;  %7067 = vmatmul.mubr.f32.gmra.mxu0 %v2181_v0  ;;  %v6528_v45 = vpop.f32.mrf.mxu1 }
 0x36e   :  { %7069 = vmatprep.mubr.msk.f32.mxu0 %vm8144_vm0, %v9659_v32 }
 0x36f   :  { %v6713_v59 = vpop.f32.mrf.mxu0  ;;  %v1286_v21 = vpop.f32.mrf.mxu1  ;;  %6885 = vmatmul.mubr.f32.gmra.mxu1 %v1755_v58  ;;  %v2188_v58 = vld [vmem:[#allocation2 + $0xee] sm:$0xff] }
 0x370   :  { %v9780_v36 = vadd.f32 %v1596_v46, %v1286_v21  ;;  %6887 = vmatprep.mubr.msk.f32.mxu1 %vm8144_vm0, %v9659_v32  ;;  %v1759_v46 = vld [vmem:[#allocation2 + $0xc2] sm:$0xff] }
 0x371   :  { %v1606_v60 = vpop.f32.mrf.mxu0  ;;  %7070 = vmatmul.mubr.f32.gmra.mxu0 %v2182_v9  ;;  %v6531_v20 = vpop.f32.mrf.mxu1 }
 0x372   :  { %7072 = vmatprep.mubr.msk.f32.mxu0 %vm8144_vm0, %v9659_v32 }
 0x373   :  { %v6716_v48 = vpop.f32.mrf.mxu0  ;;  %v1291_v18 = vpop.f32.mrf.mxu1  ;;  %6888 = vmatmul.mubr.f32.gmra.mxu1 %v1756_v12 }
 0x374   :  { %v9787_v16 = vadd.f32 %v1601_v28, %v1291_v18  ;;  %6890 = vmatprep.mubr.msk.f32.mxu1 %vm8144_vm0, %v9659_v32  ;;  %v1760_v28 = vld [vmem:[#allocation2 + $0xca] sm:$0xff]  ;;  %v1762_v18 = vld [vmem:[#allocation2 + $0xda] sm:$0xff] }
 0x375   :  { %v1611_v30 = vpop.f32.mrf.mxu0  ;;  %7073 = vmatmul.mubr.f32.gmra.mxu0 %v2183_v26  ;;  %v6534_v25 = vpop.f32.mrf.mxu1 }
 0x376   :  { %7075 = vmatprep.mubr.msk.f32.mxu0 %vm8144_vm0, %v9659_v32 }
 0x377   :  { %v6719_v49 = vpop.f32.mrf.mxu0  ;;  %v1296_v56 = vpop.f32.mrf.mxu1  ;;  %6891 = vmatmul.mubr.f32.gmra.mxu1 %v1757_v1 }
 0x378   :  { %v9793_v62 = vadd.f32 %v1606_v60, %v1296_v56  ;;  %6893 = vmatprep.mubr.msk.f32.mxu1 %vm8144_vm0, %v9659_v32  ;;  %v1761_v60 = vld [vmem:[#allocation2 + $0xd2] sm:$0xff]  ;;  %v2190_v56 = vld [vmem:[#allocation2 + $0xfe] sm:$0xff] }
 0x379   :  { %v1616_v44 = vpop.f32.mrf.mxu0  ;;  %7076 = vmatmul.mubr.f32.gmra.mxu0 %v2184_v34  ;;  %v6537_v41 = vpop.f32.mrf.mxu1 }
 0x37a   :  { %7078 = vmatprep.mubr.msk.f32.mxu0 %vm8144_vm0, %v9659_v32 }
 0x37b   :  { %v6722_v15 = vpop.f32.mrf.mxu0  ;;  %v1301_v29 = vpop.f32.mrf.mxu1  ;;  %6894 = vmatmul.mubr.f32.gmra.mxu1 %v1758_v3 }
 0x37c   :  { %v9799_v22 = vadd.f32 %v1611_v30, %v1301_v29  ;;  %6896 = vmatprep.mubr.msk.f32.mxu1 %vm8144_vm0, %v9659_v32  ;;  %v2189_v30 = vld [vmem:[#allocation2 + $0xf6] sm:$0xff]  ;;  %v1763_v15 = vld [vmem:[#allocation2 + $0xe2] sm:$0xff] }
 0x37d   :  { %v1621_v10 = vpop.f32.mrf.mxu0  ;;  %7079 = vmatmul.mubr.f32.gmra.mxu0 %v2185_v11  ;;  %v6540_v51 = vpop.f32.mrf.mxu1 }
 0x37e   :  { %7081 = vmatprep.mubr.msk.f32.mxu0 %vm8144_vm0, %v9659_v32  ;;  %v1764_v51 = vld [vmem:[#allocation2 + $0xea] sm:$0xff] }
 0x37f   :  { %v6725_v27 = vpop.f32.mrf.mxu0  ;;  %v1306_v38 = vpop.f32.mrf.mxu1  ;;  %6897 = vmatmul.mubr.f32.gmra.mxu1 %v1759_v46 }
 0x380   :  { %v9805_v17 = vadd.f32 %v1616_v44, %v1306_v38  ;;  %6899 = vmatprep.mubr.msk.f32.mxu1 %vm8144_vm0, %v9659_v32  ;;  %v2191_v27 = vld [vmem:[#allocation2 + $0x106] sm:$0xff] }
 0x381   :  { %v1626_v23 = vpop.f32.mrf.mxu0  ;;  %7082 = vmatmul.mubr.f32.gmra.mxu0 %v2186_v37  ;;  %v6543_v2 = vpop.f32.mrf.mxu1 }
 0x382   :  { %7084 = vmatprep.mubr.msk.f32.mxu0 %vm8144_vm0, %v9659_v32  ;;  %v2192_v2 = vld [vmem:[#allocation2 + $0x10e] sm:$0xff] }
 0x383   :  { %v6728_v0 = vpop.f32.mrf.mxu0  ;;  %v1311_v59 = vpop.f32.mrf.mxu1  ;;  %6900 = vmatmul.mubr.f32.gmra.mxu1 %v1760_v28 }
 0x384   :  { %v9811_v45 = vadd.f32 %v1621_v10, %v1311_v59  ;;  %6902 = vmatprep.mubr.msk.f32.mxu1 %vm8144_vm0, %v9659_v32 }
 0x385   :  { %v1631_v4 = vpop.f32.mrf.mxu0  ;;  %7085 = vmatmul.mubr.f32.gmra.mxu0 %v2187_v50  ;;  %v6546_v14 = vpop.f32.mrf.mxu1  ;;  %v1765_v50 = vld [vmem:[#allocation2 + $0xf2] sm:$0xff] }
 0x386   :  { %7087 = vmatprep.mubr.msk.f32.mxu0 %vm8144_vm0, %v9659_v32 }
 0x387   :  { %v6731_v9 = vpop.f32.mrf.mxu0  ;;  %v1316_v48 = vpop.f32.mrf.mxu1  ;;  %6903 = vmatmul.mubr.f32.gmra.mxu1 %v1761_v60  ;;  %v1766_v60 = vld [vmem:[#allocation2 + $0xfa] sm:$0xff] }
 0x388   :  { %v9817_v20 = vadd.f32 %v1626_v23, %v1316_v48  ;;  %6905 = vmatprep.mubr.msk.f32.mxu1 %vm8144_vm0, %v9659_v32 }
 0x389   :  { %v1636_v21 = vpop.f32.mrf.mxu0  ;;  %7088 = vmatmul.mubr.f32.gmra.mxu0 %v2188_v58  ;;  %v6549_v12 = vpop.f32.mrf.mxu1  ;;  %v2193_v58 = vld [vmem:[#allocation2 + $0x116] sm:$0xff] }
 0x38a   :  { %7090 = vmatprep.mubr.msk.f32.mxu0 %vm8144_vm0, %v9659_v32 }
 0x38b   :  { %v6734_v26 = vpop.f32.mrf.mxu0  ;;  %v1321_v25 = vpop.f32.mrf.mxu1  ;;  %6906 = vmatmul.mubr.f32.gmra.mxu1 %v1762_v18  ;;  %v2194_v18 = vld [vmem:[#allocation2 + $0x11e] sm:$0xff] }
 0x38c   :  { %v9823_v34 = vadd.f32 %v1631_v4, %v1321_v25  ;;  %6908 = vmatprep.mubr.msk.f32.mxu1 %vm8144_vm0, %v9659_v32 }
 0x38d   :  { %v1641_v49 = vpop.f32.mrf.mxu0  ;;  %7091 = vmatmul.mubr.f32.gmra.mxu0 %v2189_v30  ;;  %v6552_v44 = vpop.f32.mrf.mxu1 }
 0x38e   :  { %7093 = vmatprep.mubr.msk.f32.mxu0 %vm8144_vm0, %v9659_v32 }
 0x38f   :  { %v6737_v1 = vpop.f32.mrf.mxu0  ;;  %v1326_v11 = vpop.f32.mrf.mxu1  ;;  %6909 = vmatmul.mubr.f32.gmra.mxu1 %v1763_v15 }
 0x390   :  { %v9829_v3 = vadd.f32 %v1636_v21, %v1326_v11  ;;  %6911 = vmatprep.mubr.msk.f32.mxu1 %vm8144_vm0, %v9659_v32  ;;  %v1768_v11 = vld [vmem:[#allocation2 + $0x10a] sm:$0xff] }
 0x391   :  { %v1646_v41 = vpop.f32.mrf.mxu0  ;;  %7094 = vmatmul.mubr.f32.gmra.mxu0 %v2190_v56  ;;  %v6555_v29 = vpop.f32.mrf.mxu1 }
 0x392   :  { %7096 = vmatprep.mubr.msk.f32.mxu0 %vm8144_vm0, %v9659_v32 }
 0x393   :  { %v6740_v10 = vpop.f32.mrf.mxu0  ;;  %v1331_v46 = vpop.f32.mrf.mxu1  ;;  %6912 = vmatmul.mubr.f32.gmra.mxu1 %v1764_v51 }
 0x394   :  { %v9835_v23 = vadd.f32 %v1641_v49, %v1331_v46  ;;  %6914 = vmatprep.mubr.msk.f32.mxu1 %vm8144_vm0, %v9659_v32  ;;  %v1767_v49 = vld [vmem:[#allocation2 + $0x102] sm:$0xff]  ;;  %v2196_v46 = vld [vmem:[#allocation2 + $0x12e] sm:$0xff] }
 0x395   :  { %v1651_v37 = vpop.f32.mrf.mxu0  ;;  %7097 = vmatmul.mubr.f32.gmra.mxu0 %v2191_v27  ;;  %v6558_v0 = vpop.f32.mrf.mxu1 }
 0x396   :  { %7099 = vmatprep.mubr.msk.f32.mxu0 %vm8144_vm0, %v9659_v32 }
 0x397   :  { %v6743_v38 = vpop.f32.mrf.mxu0  ;;  %v1336_v4 = vpop.f32.mrf.mxu1  ;;  %6915 = vmatmul.mubr.f32.gmra.mxu1 %v1765_v50 }
 0x398   :  { %v9841_v59 = vadd.f32 %v1646_v41, %v1336_v4  ;;  %6917 = vmatprep.mubr.msk.f32.mxu1 %vm8144_vm0, %v9659_v32  ;;  %v2195_v41 = vld [vmem:[#allocation2 + $0x126] sm:$0xff]  ;;  %v1769_v38 = vld [vmem:[#allocation2 + $0x112] sm:$0xff] }
 0x399   :  { %v1656_v28 = vpop.f32.mrf.mxu0  ;;  %7100 = vmatmul.mubr.f32.gmra.mxu0 %v2192_v2  ;;  %v6561_v14 = vpop.f32.mrf.mxu1 }
 0x39a   :  { %7102 = vmatprep.mubr.msk.f32.mxu0 %vm8144_vm0, %v9659_v32  ;;  %v1770_v14 = vld [vmem:[#allocation2 + $0x11a] sm:$0xff] }
 0x39b   :  { %v6746_v9 = vpop.f32.mrf.mxu0  ;;  %v1341_v48 = vpop.f32.mrf.mxu1  ;;  %6918 = vmatmul.mubr.f32.gmra.mxu1 %v1766_v60 }
 0x39c   :  { %v9847_v26 = vadd.f32 %v1651_v37, %v1341_v48  ;;  %6920 = vmatprep.mubr.msk.f32.mxu1 %vm8144_vm0, %v9659_v32  ;;  %v2197_v9 = vld [vmem:[#allocation2 + $0x136] sm:$0xff] }
 0x39d   :  { %v1661_v21 = vpop.f32.mrf.mxu0  ;;  %7103 = vmatmul.mubr.f32.gmra.mxu0 %v2193_v58  ;;  %v6564_v30 = vpop.f32.mrf.mxu1 }
 0x39e   :  { %7105 = vmatprep.mubr.msk.f32.mxu0 %vm8144_vm0, %v9659_v32  ;;  %v2198_v30 = vld [vmem:[#allocation2 + $0x13e] sm:$0xff] }
 0x39f   :  { %v6749_v12 = vpop.f32.mrf.mxu0  ;;  %v1346_v1 = vpop.f32.mrf.mxu1  ;;  %6921 = vmatmul.mubr.f32.gmra.mxu1 %v1767_v49 }
 0x3a0   :  { %v9853_v44 = vadd.f32 %v1656_v28, %v1346_v1  ;;  %6923 = vmatprep.mubr.msk.f32.mxu1 %vm8144_vm0, %v9659_v32 }
 0x3a1   :  { %v1666_v25 = vpop.f32.mrf.mxu0  ;;  %7106 = vmatmul.mubr.f32.gmra.mxu0 %v2194_v18  ;;  %v6567_v15 = vpop.f32.mrf.mxu1  ;;  %v1771_v18 = vld [vmem:[#allocation2 + $0x122] sm:$0xff] }
 0x3a2   :  { %7108 = vmatprep.mubr.msk.f32.mxu0 %vm8144_vm0, %v9659_v32 }
 0x3a3   :  { %v6752_v56 = vpop.f32.mrf.mxu0  ;;  %v1351_v29 = vpop.f32.mrf.mxu1  ;;  %6924 = vmatmul.mubr.f32.gmra.mxu1 %v1768_v11  ;;  %v1772_v11 = vld [vmem:[#allocation2 + $0x12a] sm:$0xff] }
 0x3a4   :  { %v9859_v27 = vadd.f32 %v1661_v21, %v1351_v29  ;;  %6926 = vmatprep.mubr.msk.f32.mxu1 %vm8144_vm0, %v9659_v32 }
 0x3a5   :  { %v1671_v10 = vpop.f32.mrf.mxu0  ;;  %7109 = vmatmul.mubr.f32.gmra.mxu0 %v2195_v41  ;;  %v6570_v37 = vpop.f32.mrf.mxu1  ;;  %v2199_v41 = vld [vmem:[#allocation2 + $0x146] sm:$0xff] }
 0x3a6   :  { %7111 = vmatprep.mubr.msk.f32.mxu0 %vm8144_vm0, %v9659_v32 }
 0x3a7   :  { %v6755_v51 = vpop.f32.mrf.mxu0  ;;  %v1356_v2 = vpop.f32.mrf.mxu1  ;;  %6927 = vmatmul.mubr.f32.gmra.mxu1 %v1769_v38  ;;  %v2200_v38 = vld [vmem:[#allocation2 + $0x14e] sm:$0xff] }
 0x3a8   :  { %v9865_v50 = vadd.f32 %v1666_v25, %v1356_v2  ;;  %6929 = vmatprep.mubr.msk.f32.mxu1 %vm8144_vm0, %v9659_v32 }
 0x3a9   :  { %v1676_v0 = vpop.f32.mrf.mxu0  ;;  %7112 = vmatmul.mubr.f32.gmra.mxu0 %v2196_v46  ;;  %v6573_v4 = vpop.f32.mrf.mxu1 }
 0x3aa   :  { %7114 = vmatprep.mubr.msk.f32.mxu0 %vm8144_vm0, %v9659_v32 }
 0x3ab   :  { %v6758_v28 = vpop.f32.mrf.mxu0  ;;  %v1361_v60 = vpop.f32.mrf.mxu1  ;;  %6930 = vmatmul.mubr.f32.gmra.mxu1 %v1770_v14 }
 0x3ac   :  { %v9871_v21 = vadd.f32 %v1671_v10, %v1361_v60  ;;  %6932 = vmatprep.mubr.msk.f32.mxu1 %vm8144_vm0, %v9659_v32  ;;  %v1774_v60 = vld [vmem:[#allocation2 + $0x13a] sm:$0xff] }
 0x3ad   :  { %v1681_v58 = vpop.f32.mrf.mxu0  ;;  %7115 = vmatmul.mubr.f32.gmra.mxu0 %v2197_v9  ;;  %v6576_v12 = vpop.f32.mrf.mxu1 }
 0x3ae   :  { %7117 = vmatprep.mubr.msk.f32.mxu0 %vm8144_vm0, %v9659_v32 }
 0x3af   :  { %v6761_v48 = vpop.f32.mrf.mxu0  ;;  %v1366_v25 = vpop.f32.mrf.mxu1  ;;  %6933 = vmatmul.mubr.f32.gmra.mxu1 %v1771_v18 }
 0x3b0   :  { %v9877_v1 = vadd.f32 %v1676_v0, %v1366_v25  ;;  %6935 = vmatprep.mubr.msk.f32.mxu1 %vm8144_vm0, %v9659_v32  ;;  %v1773_v0 = vld [vmem:[#allocation2 + $0x132] sm:$0xff]  ;;  %v2202_v25 = vld [vmem:[#allocation2 + $0x15e] sm:$0xff] }
 0x3b1   :  { %v1686_v49 = vpop.f32.mrf.mxu0  ;;  %7118 = vmatmul.mubr.f32.gmra.mxu0 %v2198_v30  ;;  %v6579_v15 = vpop.f32.mrf.mxu1 }
 0x3b2   :  { %7120 = vmatprep.mubr.msk.f32.mxu0 %vm8144_vm0, %v9659_v32 }
 0x3b3   :  { %v6764_v56 = vpop.f32.mrf.mxu0  ;;  %v1371_v29 = vpop.f32.mrf.mxu1  ;;  %6936 = vmatmul.mubr.f32.gmra.mxu1 %v1772_v11 }
 0x3b4   :  { %v9883_v51 = vadd.f32 %v1681_v58, %v1371_v29  ;;  %6938 = vmatprep.mubr.msk.f32.mxu1 %vm8144_vm0, %v9659_v32  ;;  %v2201_v58 = vld [vmem:[#allocation2 + $0x156] sm:$0xff]  ;;  %v1775_v56 = vld [vmem:[#allocation2 + $0x142] sm:$0xff] }
 0x3b5   :  { %v1691_v10 = vpop.f32.mrf.mxu0  ;;  %7121 = vmatmul.mubr.f32.gmra.mxu0 %v2199_v41  ;;  %v6582_v46 = vpop.f32.mrf.mxu1 }
 0x3b6   :  { %7123 = vmatprep.mubr.msk.f32.mxu0 %vm8144_vm0, %v9659_v32  ;;  %v1776_v46 = vld [vmem:[#allocation2 + $0x14a] sm:$0xff] }
 0x3b7   :  { %v6767_v37 = vpop.f32.mrf.mxu0  ;;  %v1376_v28 = vpop.f32.mrf.mxu1  ;;  %6939 = vmatmul.mubr.f32.gmra.mxu1 %v1773_v0 }
 0x3b8   :  { %v9889_v4 = vadd.f32 %v1686_v49, %v1376_v28  ;;  %6941 = vmatprep.mubr.msk.f32.mxu1 %vm8144_vm0, %v9659_v32  ;;  %v2203_v37 = vld [vmem:[#allocation2 + $0x166] sm:$0xff] }
 0x3b9   :  { %v1696_v2 = vpop.f32.mrf.mxu0  ;;  %7124 = vmatmul.mubr.f32.gmra.mxu0 %v2200_v38  ;;  %v6585_v14 = vpop.f32.mrf.mxu1 }
 0x3ba   :  { %7126 = vmatprep.mubr.msk.f32.mxu0 %vm8144_vm0, %v9659_v32  ;;  %v2204_v14 = vld [vmem:[#allocation2 + $0x16e] sm:$0xff] }
 0x3bb   :  { %v6770_v9 = vpop.f32.mrf.mxu0  ;;  %v1381_v12 = vpop.f32.mrf.mxu1  ;;  %6942 = vmatmul.mubr.f32.gmra.mxu1 %v1774_v60 }
 0x3bc   :  { %v9895_v30 = vadd.f32 %v1691_v10, %v1381_v12  ;;  %6944 = vmatprep.mubr.msk.f32.mxu1 %vm8144_vm0, %v9659_v32 }
 0x3bd   :  { %v1701_v48 = vpop.f32.mrf.mxu0  ;;  %7127 = vmatmul.mubr.f32.gmra.mxu0 %v2201_v58  ;;  %v6588_v49 = vpop.f32.mrf.mxu1  ;;  %v1777_v58 = vld [vmem:[#allocation2 + $0x152] sm:$0xff] }
 0x3be   :  { %7129 = vmatprep.mubr.msk.f32.mxu0 %vm8144_vm0, %v9659_v32 }
 0x3bf   :  { %v6773_v18 = vpop.f32.mrf.mxu0  ;;  %v1386_v41 = vpop.f32.mrf.mxu1  ;;  %6945 = vmatmul.mubr.f32.gmra.mxu1 %v1775_v56  ;;  %v1778_v56 = vld [vmem:[#allocation2 + $0x15a] sm:$0xff] }
 0x3c0   :  { %v9901_v11 = vadd.f32 %v1696_v2, %v1386_v41  ;;  %6947 = vmatprep.mubr.msk.f32.mxu1 %vm8144_vm0, %v9659_v32 }
 0x3c1   :  { %v1706_v15 = vpop.f32.mrf.mxu0  ;;  %7130 = vmatmul.mubr.f32.gmra.mxu0 %v2202_v25  ;;  %v6591_v29 = vpop.f32.mrf.mxu1  ;;  %v2205_v25 = vld [vmem:[#allocation2 + $0x176] sm:$0xff] }
 0x3c2   :  { %7132 = vmatprep.mubr.msk.f32.mxu0 %vm8144_vm0, %v9659_v32 }
 0x3c3   :  { %v6776_v10 = vpop.f32.mrf.mxu0  ;;  %v1391_v0 = vpop.f32.mrf.mxu1  ;;  %6948 = vmatmul.mubr.f32.gmra.mxu1 %v1776_v46  ;;  %v2206_v46 = vld [vmem:[#allocation2 + $0x17e] sm:$0xff] }
 0x3c4   :  { %v9907_v28 = vadd.f32 %v1701_v48, %v1391_v0  ;;  %6950 = vmatprep.mubr.msk.f32.mxu1 %vm8144_vm0, %v9659_v32  ;;  %v1779_v0 = vld [vmem:[#allocation2 + $0x162] sm:$0xff] }
 0x3c5   :  { %v1711_v38 = vpop.f32.mrf.mxu0  ;;  %7133 = vmatmul.mubr.f32.gmra.mxu0 %v2203_v37  ;;  %v6594_v9 = vpop.f32.mrf.mxu1 }
 0x3c6   :  { %7135 = vmatprep.mubr.msk.f32.mxu0 %vm8144_vm0, %v9659_v32 }
 0x3c7   :  { %v6779_v2 = vpop.f32.mrf.mxu0  ;;  %v1396_v12 = vpop.f32.mrf.mxu1  ;;  %6951 = vmatmul.mubr.f32.gmra.mxu1 %v1777_v58 }
 0x3c8   :  { %v9913_v18 = vadd.f32 %v1706_v15, %v1396_v12  ;;  %6953 = vmatprep.mubr.msk.f32.mxu1 %vm8144_vm0, %v9659_v32  ;;  %v2207_v12 = vld [vmem:[#allocation2 + $0x186] sm:$0xff] }
 0x3c9   :  { %v1716_v60 = vpop.f32.mrf.mxu0  ;;  %7136 = vmatmul.mubr.f32.gmra.mxu0 %v2204_v14  ;;  %v6597_v49 = vpop.f32.mrf.mxu1 }
 0x3ca   :  { %7138 = vmatprep.mubr.msk.f32.mxu0 %vm8144_vm0, %v9659_v32 }
 0x3cb   :  { %v6782_v48 = vpop.f32.mrf.mxu0  ;;  %v1401_v10 = vpop.f32.mrf.mxu1  ;;  %6954 = vmatmul.mubr.f32.gmra.mxu1 %v1778_v56  ;;  %v9929_v56 = vld [vmem:[#allocation2 + $0x188] sm:$0xff] }
 0x3cc   :  { %v9919_v29 = vadd.f32 %v1711_v38, %v1401_v10  ;;  %6956 = vmatprep.mubr.msk.f32.mxu1 %vm8144_vm0, %v9659_v32  ;;  %v1780_v48 = vld [vmem:[#allocation2 + $0x16a] sm:$0xff] }
 0x3cd   :  { %v1721_v41 = vpop.f32.mrf.mxu0  ;;  %7139 = vmatmul.mubr.f32.gmra.mxu0 %v2205_v25  ;;  %v6600_v37 = vpop.f32.mrf.mxu1  ;;  %v2208_v10 = vld [vmem:[#allocation2 + $0x18e] sm:$0xff] }
 0x3ce   :  { %7141 = vmatprep.mubr.msk.f32.mxu0 %vm8144_vm0, %v9659_v32  ;;  %v1781_v37 = vld [vmem:[#allocation2 + $0x172] sm:$0xff] }
 0x3cf   :  { %v6785_v15 = vpop.f32.mrf.mxu0  ;;  %v1406_v9 = vpop.f32.mrf.mxu1  ;;  %6957 = vmatmul.mubr.f32.gmra.mxu1 %v1779_v0 }
 0x3d0   :  { %v9925_v14 = vadd.f32 %v1716_v60, %v1406_v9  ;;  %6959 = vmatprep.mubr.msk.f32.mxu1 %vm8144_vm0, %v9659_v32 }
 0x3d1   :  { %v1726_v2 = vpop.f32.mrf.mxu0  ;;  %7142 = vmatmul.mubr.f32.gmra.mxu0 %v2206_v46  ;;  %v6603_v58 = vpop.f32.mrf.mxu1 }
 0x3d2   :  { %7144 = vmatprep.mubr.msk.f32.mxu0 %vm8144_vm0, %v9659_v32  ;;  %v3010_v58 = vld [vmem:[#allocation2 + $0x10] sm:$0xff] }
 0x3d3   :  { %v6788_v38 = vpop.f32.mrf.mxu0  ;;  %v1411_v25 = vpop.f32.mrf.mxu1  ;;  %6960 = vmatmul.mubr.f32.gmra.mxu1 %v1780_v48  ;;  %v1782_v48 = vld [vmem:[#allocation2 + $0x17a] sm:$0xff] }
 0x3d4   :  { %v9933_v15 = vadd.f32 %v1721_v41, %v1411_v25  ;;  %6962 = vmatprep.mubr.msk.f32.mxu1 %vm8144_vm0, %v9929_v56 }
 0x3d5   :  { %v1731_v49 = vpop.f32.mrf.mxu0  ;;  %7145 = vmatmul.mubr.f32.gmra.mxu0 %v2207_v12  ;;  %v6606_v60 = vpop.f32.mrf.mxu1  ;;  %v3925_v12 = vld [vmem:[#allocation3 + $0x3f8] sm:$0xff] }
 0x3d6   :  { %7147 = vmatprep.mubr.msk.f32.mxu0 %vm8144_vm0, %v9929_v56 }
 0x3d7   :  { %v6791_v32 = vpop.f32.mrf.mxu0  ;;  %v1416_v0 = vpop.f32.mrf.mxu1  ;;  %6963 = vmatmul.mubr.f32.gmra.mxu1 %v1781_v37  ;;  %v3011_v37 = vld [vmem:[#allocation2 + $0x18] sm:$0xff] }
 0x3d8   :  { %v9939_v9 = vadd.f32 %v1726_v2, %v1416_v0  ;;  %6965 = vmatprep.mubr.msk.f32.mxu1 %vm8144_vm0, %v9929_v56  ;;  %v3924_v0 = vld [vmem:[#allocation3 + $0x3f0] sm:$0xff] }
 0x3d9   :  { %v2292_v46 = vpop.f32.mrf.mxu0  ;;  %7148 = vmatmul.mubr.f32.gmra.mxu0 %v2208_v10  ;;  %v6609_v38 = vpop.f32.mrf.mxu1 }
 0x3da   :  { %7361 = vmatprep.mubr.msk.f32.mxu0 %vm8144_vm0, %v9929_v56 }
 0x3db   :  { %v7005_v41 = vpop.f32.mrf.mxu0  ;;  %v1421_v32 = vpop.f32.mrf.mxu1  ;;  %6966 = vmatmul.mubr.f32.gmra.mxu1 %v1782_v48 }
 0x3dc   :  { %v9945_v10 = vadd.f32 %v1731_v49, %v1421_v32  ;;  %6968 = vmatprep.mubr.msk.f32.mxu1 %vm8144_vm0, %v9929_v56  ;;  %v1783_v41 = vld [vmem:[#allocation2 + $0x182] sm:$0xff] }
 0x3dd   :  { %v2297_v25 = vpop.f32.mrf.mxu0  ;;  %7362 = vmatmul.mubr.f32.vlgmr.msra.gmra.mxu0 %v3010_v58  ;;  %v6612_v60 = vpop.f32.mrf.mxu1  ;;  %v3500_v32 = vld [vmem:[#allocation3 + $0x378] sm:$0xff] }
 0x3de   :  { %7364 = vmatprep.mubr.msk.f32.mxu0 %vm8144_vm0, %v9929_v56  ;;  %12423 = vst [vmem:[#allocation10_spill] sm:$0xff] %v9945_v10  ;;  %7688 = vmatpush3.msra.mxu0 %v3925_v12 }
 0x3df   :  { %v7008_v2 = vpop.f32.mrf.mxu0  ;;  %7689 = vmatprep.subr.mxu0 %v9929_v56  ;;  %v1867_v58 = vpop.f32.mrf.mxu1  ;;  %6969 = vmatmul.mubr.f32.gmra.mxu1 %v1783_v41  ;;  %v3923_v41 = vld [vmem:[#allocation3 + $0x3e8] sm:$0xff] }
 0x3e0   :  { %v2111_v49 = vadd.f32 %v1867_v58, %v9622_v47  ;;  %7182 = vmatprep.mubr.msk.f32.mxu1 %vm8144_vm0, %v9929_v56  ;;  %7690 = vmatpush3.msra.mxu0 %v3924_v0  ;;  %v3012_v2 = vld [vmem:[#allocation2 + $0x20] sm:$0xff]  ;;  %v3499_v47 = vld [vmem:[#allocation3 + $0x370] sm:$0xff] }
 0x3e1   :  { %v2302_v38 = vpop.f32.mrf.mxu0  ;;  %7365 = vmatmul.mubr.f32.gmra.mxu0 %v3011_v37  ;;  %v6826_v12 = vpop.f32.mrf.mxu1  ;;  %7691 = vmatprep.subr.mxu0 %v9929_v56  ;;  %v2585_v37 = vld [vmem:[#allocation2 + $0xf] sm:$0xff] }
 0x3e2   :  { %7367 = vmatprep.mubr.msk.f32.mxu0 %vm8144_vm0, %v9929_v56  ;;  %v9956_v60 = vadd.f32 %v2292_v46, %v2111_v49  ;;  %v3013_v46 = vld [vmem:[#allocation2 + $0x28] sm:$0xff]  ;;  %7692 = vmatpush3.msra.mxu0 %v3923_v41  ;;  %v2586_v12 = vld [vmem:[#allocation2 + $0x17] sm:$0xff] }
 0x3e3   :  { %v7011_v48 = vpop.f32.mrf.mxu0  ;;  %v1872_v10 = vpop.f32.mrf.mxu1  ;;  %7183 = vmatmul.mubr.f32.vlgmr.msra.gmra.mxu1 %v2585_v37  ;;  %v3498_v37 = vld [vmem:[#allocation3 + $0x368] sm:$0xff]  ;;  %v3497_v41 = vld [vmem:[#allocation3 + $0x360] sm:$0xff]  ;;  %7693 = vmatprep.subr.mxu0 %v9929_v56 }
 0x3e4   :  { %12424 = vst [vmem:[#allocation11_spill] sm:$0xff] %v9956_v60  ;;  %v2112_v58 = vadd.f32 %v1872_v10, %v9629_v54  ;;  %7509 = vmatpush3.msra.mxu1 %v3500_v32  ;;  %7185 = vmatprep.mubr.msk.f32.mxu1 %vm8144_vm0, %v9929_v56  ;;  %v3014_v32 = vld [vmem:[#allocation2 + $0x30] sm:$0xff] }
 0x3e5   :  { %v2307_v24 = vpop.f32.mrf.mxu0  ;;  %7368 = vmatmul.mubr.f32.gmra.mxu0 %v3012_v2  ;;  %v6829_v48 = vpop.f32.mrf.mxu1  ;;  %7510 = vmatprep.subr.mxu1 %v9929_v56 }
 0x3e6   :  { %7370 = vmatprep.mubr.msk.f32.mxu0 %vm8144_vm0, %v9929_v56  ;;  %v9964_v49 = vadd.f32 %v2297_v25, %v2112_v58  ;;  %7511 = vmatpush3.msra.mxu1 %v3499_v47  ;;  %v2587_v58 = vld [vmem:[#allocation2 + $0x1f] sm:$0xff] }
 0x3e7   :  { %v7014_v0 = vpop.f32.mrf.mxu0  ;;  %v1877_v60 = vpop.f32.mrf.mxu1  ;;  %7186 = vmatmul.mubr.f32.gmra.mxu1 %v2586_v12  ;;  %7512 = vmatprep.subr.mxu1 %v9929_v56  ;;  %v3496_v48 = vld [vmem:[#allocation3 + $0x358] sm:$0xff] }
 0x3e8   :  { %v2113_v54 = vadd.f32 %v1877_v60, %v9636_v35  ;;  %7188 = vmatprep.mubr.msk.f32.mxu1 %vm8144_vm0, %v9929_v56  ;;  %7513 = vmatpush3.msra.mxu1 %v3498_v37  ;;  %v3922_v35 = vld [vmem:[#allocation3 + $0x3e0] sm:$0xff]  ;;  %v3015_v37 = vld [vmem:[#allocation2 + $0x38] sm:$0xff] }
 0x3e9   :  { %v2312_v2 = vpop.f32.mrf.mxu0  ;;  %7371 = vmatmul.mubr.f32.gmra.mxu0 %v3013_v46  ;;  %v6832_v25 = vpop.f32.mrf.mxu1  ;;  %7514 = vmatprep.subr.mxu1 %v9929_v56 }
 0x3ea   :  { %7373 = vmatprep.mubr.msk.f32.mxu0 %vm8144_vm0, %v9929_v56  ;;  %v9973_v47 = vadd.f32 %v2302_v38, %v2113_v54  ;;  %7515 = vmatpush3.msra.mxu1 %v3497_v41 }
 0x3eb   :  { %v7017_v10 = vpop.f32.mrf.mxu0  ;;  %v1882_v60 = vpop.f32.mrf.mxu1  ;;  %7189 = vmatmul.mubr.f32.gmra.mxu1 %v2587_v58  ;;  %7516 = vmatprep.subr.mxu1 %v9929_v56 }
 0x3ec   :  { %v2114_v46 = vadd.f32 %v1882_v60, %v9645_v43  ;;  %7191 = vmatprep.mubr.msk.f32.mxu1 %vm8144_vm0, %v9929_v56  ;;  %7694 = vmatpush3.msra.mxu0 %v3922_v35  ;;  %v2588_v10 = vld [vmem:[#allocation2 + $0x27] sm:$0xff]  ;;  %v3494_v60 = vld [vmem:[#allocation3 + $0x348] sm:$0xff] }
 0x3ed   :  { %v2317_v0 = vpop.f32.mrf.mxu0  ;;  %7374 = vmatmul.mubr.f32.gmra.mxu0 %v3014_v32  ;;  %v6835_v38 = vpop.f32.mrf.mxu1  ;;  %7517 = vmatpush3.msra.mxu1 %v3496_v48  ;;  %v3495_v32 = vld [vmem:[#allocation3 + $0x350] sm:$0xff]  ;;  %v3016_v35 = vld [vmem:[#allocation2 + $0x40] sm:$0xff] }
 0x3ee   :  { %7376 = vmatprep.mubr.msk.f32.mxu0 %vm8144_vm0, %v9929_v56  ;;  %v9982_v54 = vadd.f32 %v2307_v24, %v2114_v46  ;;  %7518 = vmatprep.subr.mxu1 %v9929_v56  ;;  %v2589_v46 = vld [vmem:[#allocation2 + $0x2f] sm:$0xff] }
 0x3ef   :  { %v7020_v12 = vpop.f32.mrf.mxu0  ;;  %v1887_v58 = vpop.f32.mrf.mxu1  ;;  %7192 = vmatmul.mubr.f32.gmra.mxu1 %v2588_v10  ;;  %7695 = vmatprep.subr.mxu0 %v9929_v56 }
 0x3f0   :  { %v2115_v43 = vadd.f32 %v1887_v58, %v9652_v52  ;;  %7194 = vmatprep.mubr.msk.f32.mxu1 %vm8144_vm0, %v9929_v56  ;;  %7519 = vmatpush3.msra.mxu1 %v3495_v32  ;;  %v3921_v52 = vld [vmem:[#allocation3 + $0x3d8] sm:$0xff]  ;;  %v3017_v58 = vld [vmem:[#allocation2 + $0x48] sm:$0xff] }
 0x3f1   :  { %v2322_v25 = vpop.f32.mrf.mxu0  ;;  %7377 = vmatmul.mubr.f32.gmra.mxu0 %v3015_v37  ;;  %v6838_v24 = vpop.f32.mrf.mxu1  ;;  %7520 = vmatprep.subr.mxu1 %v9929_v56  ;;  %v3493_v37 = vld [vmem:[#allocation3 + $0x340] sm:$0xff] }
 0x3f2   :  { %7379 = vmatprep.mubr.msk.f32.mxu0 %vm8144_vm0, %v9929_v56  ;;  %v9991_v48 = vadd.f32 %v2312_v2, %v2115_v43  ;;  %7521 = vmatpush3.msra.mxu1 %v3494_v60 }
 0x3f3   :  { %v7023_v41 = vpop.f32.mrf.mxu0  ;;  %v1892_v38 = vpop.f32.mrf.mxu1  ;;  %7195 = vmatmul.mubr.f32.gmra.mxu1 %v2589_v46  ;;  %7522 = vmatprep.subr.mxu1 %v9929_v56 }
 0x3f4   :  { %v2116_v10 = vadd.f32 %v1892_v38, %v9663_v39  ;;  %7197 = vmatprep.mubr.msk.f32.mxu1 %vm8144_vm0, %v9929_v56  ;;  %7696 = vmatpush3.msra.mxu0 %v3921_v52  ;;  %v2590_v41 = vld [vmem:[#allocation2 + $0x37] sm:$0xff] }
 0x3f5   :  { %v2327_v12 = vpop.f32.mrf.mxu0  ;;  %7380 = vmatmul.mubr.f32.gmra.mxu0 %v3016_v35  ;;  %v6841_v2 = vpop.f32.mrf.mxu1  ;;  %7523 = vmatpush3.msra.mxu1 %v3493_v37  ;;  %v3492_v35 = vld [vmem:[#allocation3 + $0x338] sm:$0xff]  ;;  %v3018_v52 = vld [vmem:[#allocation2 + $0x50] sm:$0xff]  ;;  %v3491_v38 = vld [vmem:[#allocation3 + $0x330] sm:$0xff] }
 0x3f6   :  { %7382 = vmatprep.mubr.msk.f32.mxu0 %vm8144_vm0, %v9929_v56  ;;  %v10000_v43 = vadd.f32 %v2317_v0, %v2116_v10  ;;  %7524 = vmatprep.subr.mxu1 %v9929_v56  ;;  %v2591_v10 = vld [vmem:[#allocation2 + $0x3f] sm:$0xff] }
 0x3f7   :  { %v7026_v32 = vpop.f32.mrf.mxu0  ;;  %v1897_v46 = vpop.f32.mrf.mxu1  ;;  %7198 = vmatmul.mubr.f32.gmra.mxu1 %v2590_v41  ;;  %7697 = vmatprep.subr.mxu0 %v9929_v56 }
 0x3f8   :  { %v2117_v39 = vadd.f32 %v1897_v46, %v9670_v8  ;;  %7200 = vmatprep.mubr.msk.f32.mxu1 %vm8144_vm0, %v9929_v56  ;;  %7525 = vmatpush3.msra.mxu1 %v3492_v35  ;;  %v3920_v8 = vld [vmem:[#allocation3 + $0x3d0] sm:$0xff] }
 0x3f9   :  { %v2332_v24 = vpop.f32.mrf.mxu0  ;;  %7383 = vmatmul.mubr.f32.gmra.mxu0 %v3017_v58  ;;  %v6844_v0 = vpop.f32.mrf.mxu1  ;;  %7526 = vmatprep.subr.mxu1 %v9929_v56  ;;  %v3490_v58 = vld [vmem:[#allocation3 + $0x328] sm:$0xff]  ;;  %v3019_v46 = vld [vmem:[#allocation2 + $0x58] sm:$0xff] }
 0x3fa   :  { %7385 = vmatprep.mubr.msk.f32.mxu0 %vm8144_vm0, %v9929_v56  ;;  %v10009_v37 = vadd.f32 %v2322_v25, %v2117_v39  ;;  %7527 = vmatpush3.msra.mxu1 %v3491_v38 }
 0x3fb   :  { %v7029_v60 = vpop.f32.mrf.mxu0  ;;  %v1902_v2 = vpop.f32.mrf.mxu1  ;;  %7201 = vmatmul.mubr.f32.gmra.mxu1 %v2591_v10  ;;  %7528 = vmatprep.subr.mxu1 %v9929_v56 }
 0x3fc   :  { %v2118_v41 = vadd.f32 %v1902_v2, %v9679_v53  ;;  %7203 = vmatprep.mubr.msk.f32.mxu1 %vm8144_vm0, %v9929_v56  ;;  %7698 = vmatpush3.msra.mxu0 %v3920_v8  ;;  %v2592_v60 = vld [vmem:[#allocation2 + $0x47] sm:$0xff] }
 0x3fd   :  { %v2337_v32 = vpop.f32.mrf.mxu0  ;;  %7386 = vmatmul.mubr.f32.gmra.mxu0 %v3018_v52  ;;  %v6847_v25 = vpop.f32.mrf.mxu1  ;;  %7529 = vmatpush3.msra.mxu1 %v3490_v58  ;;  %v3489_v52 = vld [vmem:[#allocation3 + $0x320] sm:$0xff]  ;;  %v3020_v8 = vld [vmem:[#allocation2 + $0x60] sm:$0xff] }
 0x3fe   :  { %7388 = vmatprep.mubr.msk.f32.mxu0 %vm8144_vm0, %v9929_v56  ;;  %v10018_v39 = vadd.f32 %v2327_v12, %v2118_v41  ;;  %7530 = vmatprep.subr.mxu1 %v9929_v56  ;;  %v3488_v2 = vld [vmem:[#allocation3 + $0x318] sm:$0xff]  ;;  %v2593_v41 = vld [vmem:[#allocation2 + $0x4f] sm:$0xff] }
 0x3ff   :  { %v7032_v35 = vpop.f32.mrf.mxu0  ;;  %v1907_v10 = vpop.f32.mrf.mxu1  ;;  %7204 = vmatmul.mubr.f32.gmra.mxu1 %v2592_v60  ;;  %7699 = vmatprep.subr.mxu0 %v9929_v56 }
 0x400   :  { %v2119_v53 = vadd.f32 %v1907_v10, %v9686_v19  ;;  %7206 = vmatprep.mubr.msk.f32.mxu1 %vm8144_vm0, %v9929_v56  ;;  %7531 = vmatpush3.msra.mxu1 %v3489_v52  ;;  %v3919_v19 = vld [vmem:[#allocation3 + $0x3c8] sm:$0xff]  ;;  %v3021_v52 = vld [vmem:[#allocation2 + $0x68] sm:$0xff] }
 0x401   :  { %v2342_v0 = vpop.f32.mrf.mxu0  ;;  %7389 = vmatmul.mubr.f32.gmra.mxu0 %v3019_v46  ;;  %v6850_v12 = vpop.f32.mrf.mxu1  ;;  %7532 = vmatprep.subr.mxu1 %v9929_v56 }
 0x402   :  { %7391 = vmatprep.mubr.msk.f32.mxu0 %vm8144_vm0, %v9929_v56  ;;  %v10027_v58 = vadd.f32 %v2332_v24, %v2119_v53  ;;  %7533 = vmatpush3.msra.mxu1 %v3488_v2  ;;  %v2594_v53 = vld [vmem:[#allocation2 + $0x57] sm:$0xff] }
 0x403   :  { %v7035_v38 = vpop.f32.mrf.mxu0  ;;  %v1912_v25 = vpop.f32.mrf.mxu1  ;;  %7207 = vmatmul.mubr.f32.gmra.mxu1 %v2593_v41  ;;  %7700 = vmatpush3.msra.mxu0 %v3919_v19  ;;  %v3487_v12 = vld [vmem:[#allocation3 + $0x310] sm:$0xff]  ;;  %v3022_v41 = vld [vmem:[#allocation2 + $0x70] sm:$0xff] }
 0x404   :  { %v2120_v46 = vadd.f32 %v1912_v25, %v9695_v61  ;;  %7209 = vmatprep.mubr.msk.f32.mxu1 %vm8144_vm0, %v9929_v56  ;;  %7534 = vmatprep.subr.mxu1 %v9929_v56  ;;  %v2595_v25 = vld [vmem:[#allocation2 + $0x5f] sm:$0xff] }
 0x405   :  { %v2347_v35 = vpop.f32.mrf.mxu0  ;;  %7392 = vmatmul.mubr.f32.gmra.mxu0 %v3020_v8  ;;  %v6853_v24 = vpop.f32.mrf.mxu1  ;;  %7701 = vmatprep.subr.mxu0 %v9929_v56 }
 0x406   :  { %7394 = vmatprep.mubr.msk.f32.mxu0 %vm8144_vm0, %v9929_v56  ;;  %v10036_v10 = vadd.f32 %v2337_v32, %v2120_v46  ;;  %7535 = vmatpush3.msra.mxu1 %v3487_v12  ;;  %v3023_v12 = vld [vmem:[#allocation2 + $0x78] sm:$0xff] }
 0x407   :  { %v7038_v60 = vpop.f32.mrf.mxu0  ;;  %v1917_v8 = vpop.f32.mrf.mxu1  ;;  %7210 = vmatmul.mubr.f32.gmra.mxu1 %v2594_v53  ;;  %7536 = vmatprep.subr.mxu1 %v9929_v56 }
 0x408   :  { %v2121_v61 = vadd.f32 %v1917_v8, %v9702_v57  ;;  %7212 = vmatprep.mubr.msk.f32.mxu1 %vm8144_vm0, %v9929_v56  ;;  %v3918_v60 = vld [vmem:[#allocation3 + $0x3c0] sm:$0xff] }
 0x409   :  { %v2352_v38 = vpop.f32.mrf.mxu0  ;;  %7395 = vmatmul.mubr.f32.gmra.mxu0 %v3021_v52  ;;  %v6856_v32 = vpop.f32.mrf.mxu1  ;;  %v2596_v8 = vld [vmem:[#allocation2 + $0x67] sm:$0xff] }
 0x40a   :  { %7397 = vmatprep.mubr.msk.f32.mxu0 %vm8144_vm0, %v9929_v56  ;;  %v10045_v19 = vadd.f32 %v2342_v0, %v2121_v61  ;;  %7702 = vmatpush3.msra.mxu0 %v3918_v60 }
 0x40b   :  { %v7041_v2 = vpop.f32.mrf.mxu0  ;;  %v1922_v24 = vpop.f32.mrf.mxu1  ;;  %7213 = vmatmul.mubr.f32.gmra.mxu1 %v2595_v25  ;;  %7703 = vmatprep.subr.mxu0 %v9929_v56  ;;  %v3024_v25 = vld [vmem:[#allocation2 + $0x80] sm:$0xff] }
 0x40c   :  { %v2122_v57 = vadd.f32 %v1922_v24, %v9710_v13  ;;  %7215 = vmatprep.mubr.msk.f32.mxu1 %vm8144_vm0, %v9929_v56 }
 0x40d   :  { %v2357_v46 = vpop.f32.mrf.mxu0  ;;  %7398 = vmatmul.mubr.f32.gmra.mxu0 %v3022_v41  ;;  %v6859_v53 = vpop.f32.mrf.mxu1 }
 0x40e   :  { %7400 = vmatprep.mubr.msk.f32.mxu0 %vm8144_vm0, %v9929_v56  ;;  %v10053_v0 = vadd.f32 %v2347_v35, %v2122_v57  ;;  %v2597_v35 = vld [vmem:[#allocation2 + $0x6f] sm:$0xff] }
 0x40f   :  { %v7044_v52 = vpop.f32.mrf.mxu0  ;;  %v1927_v2 = vpop.f32.mrf.mxu1  ;;  %7216 = vmatmul.mubr.f32.gmra.mxu1 %v2596_v8  ;;  %v3486_v57 = vld [vmem:[#allocation3 + $0x308] sm:$0xff]  ;;  %v3025_v8 = vld [vmem:[#allocation2 + $0x88] sm:$0xff] }
 0x410   :  { %v2123_v13 = vadd.f32 %v1927_v2, %v9717_v42  ;;  %7218 = vmatprep.mubr.msk.f32.mxu1 %vm8144_vm0, %v9929_v56  ;;  %7537 = vmatpush3.msra.mxu1 %v3486_v57  ;;  %v2598_v2 = vld [vmem:[#allocation2 + $0x77] sm:$0xff] }
 0x411   :  { %v2362_v61 = vpop.f32.mrf.mxu0  ;;  %7401 = vmatmul.mubr.f32.gmra.mxu0 %v3023_v12  ;;  %v6862_v41 = vpop.f32.mrf.mxu1  ;;  %7538 = vmatprep.subr.mxu1 %v9929_v56  ;;  %v3026_v57 = vld [vmem:[#allocation2 + $0x90] sm:$0xff] }
 0x412   :  { %7403 = vmatprep.mubr.msk.f32.mxu0 %vm8144_vm0, %v9929_v56  ;;  %v10060_v60 = vadd.f32 %v2352_v38, %v2123_v13 }
 0x413   :  { %v7047_v32 = vpop.f32.mrf.mxu0  ;;  %v1932_v52 = vpop.f32.mrf.mxu1  ;;  %7219 = vmatmul.mubr.f32.gmra.mxu1 %v2597_v35 }
 0x414   :  { %v2124_v53 = vadd.f32 %v1932_v52, %v9724_v6  ;;  %7221 = vmatprep.mubr.msk.f32.mxu1 %vm8144_vm0, %v9929_v56  ;;  %v3917_v32 = vld [vmem:[#allocation3 + $0x3b8] sm:$0xff] }
 0x415   :  { %v2367_v24 = vpop.f32.mrf.mxu0  ;;  %7404 = vmatmul.mubr.f32.gmra.mxu0 %v3024_v25  ;;  %v6865_v12 = vpop.f32.mrf.mxu1  ;;  %v2599_v52 = vld [vmem:[#allocation2 + $0x7f] sm:$0xff] }
 0x416   :  { %7406 = vmatprep.mubr.msk.f32.mxu0 %vm8144_vm0, %v9929_v56  ;;  %v10068_v38 = vadd.f32 %v2357_v46, %v2124_v53  ;;  %7704 = vmatpush3.msra.mxu0 %v3917_v32  ;;  %v3027_v32 = vld [vmem:[#allocation2 + $0x98] sm:$0xff] }
 0x417   :  { %v7050_v42 = vpop.f32.mrf.mxu0  ;;  %v1937_v41 = vpop.f32.mrf.mxu1  ;;  %7222 = vmatmul.mubr.f32.gmra.mxu1 %v2598_v2  ;;  %7705 = vmatprep.subr.mxu0 %v9929_v56 }
 0x418   :  { %v2125_v6 = vadd.f32 %v1937_v41, %v9730_v55  ;;  %7224 = vmatprep.mubr.msk.f32.mxu1 %vm8144_vm0, %v9929_v56  ;;  %v3916_v42 = vld [vmem:[#allocation3 + $0x3b0] sm:$0xff]  ;;  %v2600_v41 = vld [vmem:[#allocation2 + $0x87] sm:$0xff] }
 0x419   :  { %v2372_v13 = vpop.f32.mrf.mxu0  ;;  %7407 = vmatmul.mubr.f32.gmra.mxu0 %v3025_v8  ;;  %v6868_v35 = vpop.f32.mrf.mxu1 }
 0x41a   :  { %7409 = vmatprep.mubr.msk.f32.mxu0 %vm8144_vm0, %v9929_v56  ;;  %v10076_v46 = vadd.f32 %v2362_v61, %v2125_v6  ;;  %7706 = vmatpush3.msra.mxu0 %v3916_v42  ;;  %v3915_v35 = vld [vmem:[#allocation3 + $0x3a8] sm:$0xff] }
 0x41b   :  { %v7053_v25 = vpop.f32.mrf.mxu0  ;;  %v1942_v12 = vpop.f32.mrf.mxu1  ;;  %7225 = vmatmul.mubr.f32.gmra.mxu1 %v2599_v52  ;;  %7707 = vmatprep.subr.mxu0 %v9929_v56 }
 0x41c   :  { %v2126_v55 = vadd.f32 %v1942_v12, %v9737_v63  ;;  %7227 = vmatprep.mubr.msk.f32.mxu1 %vm8144_vm0, %v9929_v56  ;;  %v3485_v25 = vld [vmem:[#allocation3 + $0x300] sm:$0xff]  ;;  %7708 = vmatpush3.msra.mxu0 %v3915_v35  ;;  %v3913_v35 = vld [vmem:[#allocation3 + $0x398] sm:$0xff] }
 0x41d   :  { %v2377_v53 = vpop.f32.mrf.mxu0  ;;  %7410 = vmatmul.mubr.f32.gmra.mxu0 %v3026_v57  ;;  %v6871_v2 = vpop.f32.mrf.mxu1  ;;  %7539 = vmatpush3.msra.mxu1 %v3485_v25  ;;  %v3914_v12 = vld [vmem:[#allocation3 + $0x3a0] sm:$0xff] }
 0x41e   :  { %7412 = vmatprep.mubr.msk.f32.mxu0 %vm8144_vm0, %v9929_v56  ;;  %v10084_v61 = vadd.f32 %v2367_v24, %v2126_v55  ;;  %v3028_v24 = vld [vmem:[#allocation2 + $0xa0] sm:$0xff]  ;;  %8045 = vmatprep.subr.mxu1 %v9929_v56 }
 0x41f   :  { %v7056_v8 = vpop.f32.mrf.mxu0  ;;  %v1947_v57 = vpop.f32.mrf.mxu1  ;;  %7228 = vmatmul.mubr.f32.gmra.mxu1 %v2600_v41  ;;  %7709 = vmatprep.subr.mxu0 %v9929_v56 }
 0x420   :  { %v2127_v63 = vadd.f32 %v1947_v57, %v9745_v7  ;;  %7230 = vmatprep.mubr.msk.f32.mxu1 %vm8144_vm0, %v9929_v56  ;;  %v2601_v8 = vld [vmem:[#allocation2 + $0x8f] sm:$0xff]  ;;  %7710 = vmatpush3.msra.mxu0 %v3914_v12 }
 0x421   :  { %v2382_v6 = vpop.f32.mrf.mxu0  ;;  %7413 = vmatmul.mubr.f32.gmra.mxu0 %v3027_v32  ;;  %v6874_v42 = vpop.f32.mrf.mxu1  ;;  %7711 = vmatprep.subr.mxu0 %v9929_v56 }
 0x422   :  { %7415 = vmatprep.mubr.msk.f32.mxu0 %vm8144_vm0, %v9929_v56  ;;  %v10092_v55 = vadd.f32 %v2372_v13, %v2127_v63  ;;  %v3029_v13 = vld [vmem:[#allocation2 + $0xa8] sm:$0xff]  ;;  %v2602_v63 = vld [vmem:[#allocation2 + $0x97] sm:$0xff]  ;;  %7712 = vmatpush3.msra.mxu0 %v3913_v35 }
 0x423   :  { %v7059_v52 = vpop.f32.mrf.mxu0  ;;  %v1952_v32 = vpop.f32.mrf.mxu1  ;;  %7231 = vmatmul.mubr.f32.gmra.mxu1 %v2601_v8  ;;  %v3030_v8 = vld [vmem:[#allocation2 + $0xb0] sm:$0xff]  ;;  %7713 = vmatprep.subr.mxu0 %v9929_v56 }
 0x424   :  { %v2128_v7 = vadd.f32 %v1952_v32, %v9752_v5  ;;  %7233 = vmatprep.mubr.msk.f32.mxu1 %vm8144_vm0, %v9929_v56 }
 0x425   :  { %v2387_v2 = vpop.f32.mrf.mxu0  ;;  %7416 = vmatmul.mubr.f32.gmra.mxu0 %v3028_v24  ;;  %v6877_v25 = vpop.f32.mrf.mxu1 }
 0x426   :  { %7418 = vmatprep.mubr.msk.f32.mxu0 %vm8144_vm0, %v9929_v56  ;;  %v10101_v57 = vadd.f32 %v2377_v53, %v2128_v7  ;;  %v3912_v53 = vld [vmem:[#allocation3 + $0x390] sm:$0xff] }
 0x427   :  { %v7062_v41 = vpop.f32.mrf.mxu0  ;;  %v1957_v42 = vpop.f32.mrf.mxu1  ;;  %7234 = vmatmul.mubr.f32.gmra.mxu1 %v2602_v63  ;;  %v2603_v7 = vld [vmem:[#allocation2 + $0x9f] sm:$0xff]  ;;  %7714 = vmatpush3.msra.mxu0 %v3912_v53 }
 0x428   :  { %v2129_v5 = vadd.f32 %v1957_v42, %v9759_v33  ;;  %7236 = vmatprep.mubr.msk.f32.mxu1 %vm8144_vm0, %v9929_v56  ;;  %v3031_v63 = vld [vmem:[#allocation2 + $0xb8] sm:$0xff]  ;;  %7715 = vmatprep.subr.mxu0 %v9929_v56 }
 0x429   :  { %v2392_v52 = vpop.f32.mrf.mxu0  ;;  %7419 = vmatmul.mubr.f32.gmra.mxu0 %v3029_v13  ;;  %v6880_v12 = vpop.f32.mrf.mxu1 }
 0x42a   :  { %7421 = vmatprep.mubr.msk.f32.mxu0 %vm8144_vm0, %v9929_v56  ;;  %v10109_v32 = vadd.f32 %v2382_v6, %v2129_v5  ;;  %v3911_v6 = vld [vmem:[#allocation3 + $0x388] sm:$0xff]  ;;  %v2604_v5 = vld [vmem:[#allocation2 + $0xa7] sm:$0xff] }
 0x42b   :  { %v7065_v24 = vpop.f32.mrf.mxu0  ;;  %v1962_v25 = vpop.f32.mrf.mxu1  ;;  %7237 = vmatmul.mubr.f32.gmra.mxu1 %v2603_v7  ;;  %7716 = vmatpush3.msra.mxu0 %v3911_v6  ;;  %v3032_v7 = vld [vmem:[#allocation2 + $0xc0] sm:$0xff] }
 0x42c   :  { %v2130_v33 = vadd.f32 %v1962_v25, %v9766_v40  ;;  %7239 = vmatprep.mubr.msk.f32.mxu1 %vm8144_vm0, %v9929_v56  ;;  %7717 = vmatprep.subr.mxu0 %v9929_v56 }
 0x42d   :  { %v2397_v41 = vpop.f32.mrf.mxu0  ;;  %7422 = vmatmul.mubr.f32.gmra.mxu0 %v3030_v8  ;;  %v6883_v35 = vpop.f32.mrf.mxu1 }
 0x42e   :  { %7424 = vmatprep.mubr.msk.f32.mxu0 %vm8144_vm0, %v9929_v56  ;;  %v10117_v42 = vadd.f32 %v2387_v2, %v2130_v33  ;;  %v3910_v2 = vld [vmem:[#allocation3 + $0x380] sm:$0xff] }
 0x42f   :  { %v7068_v13 = vpop.f32.mrf.mxu0  ;;  %v1967_v12 = vpop.f32.mrf.mxu1  ;;  %7240 = vmatmul.mubr.f32.gmra.mxu1 %v2604_v5  ;;  %v2605_v33 = vld [vmem:[#allocation2 + $0xaf] sm:$0xff]  ;;  %7718 = vmatpush3.msra.mxu0 %v3910_v2 }
 0x430   :  { %v2131_v40 = vadd.f32 %v1967_v12, %v9773_v31  ;;  %7242 = vmatprep.mubr.msk.f32.mxu1 %vm8144_vm0, %v9929_v56  ;;  %v3033_v5 = vld [vmem:[#allocation2 + $0xc8] sm:$0xff]  ;;  %7866 = vmatprep.subr.mxu0 %v9929_v56  ;;  %v2606_v12 = vld [vmem:[#allocation2 + $0xb7] sm:$0xff] }
 0x431   :  { %v2402_v24 = vpop.f32.mrf.mxu0  ;;  %7425 = vmatmul.mubr.f32.gmra.mxu0 %v3031_v63  ;;  %v6886_v53 = vpop.f32.mrf.mxu1  ;;  %v3034_v2 = vld [vmem:[#allocation2 + $0xd0] sm:$0xff] }
 0x432   :  { %7427 = vmatprep.mubr.msk.f32.mxu0 %vm8144_vm0, %v9929_v56  ;;  %v10125_v25 = vadd.f32 %v2392_v52, %v2131_v40 }
 0x433   :  { %v7071_v8 = vpop.f32.mrf.mxu0  ;;  %v1972_v35 = vpop.f32.mrf.mxu1  ;;  %7243 = vmatmul.mubr.f32.gmra.mxu1 %v2605_v33 }
 0x434   :  { %v2132_v31 = vadd.f32 %v1972_v35, %v9780_v36  ;;  %7245 = vmatprep.mubr.msk.f32.mxu1 %vm8144_vm0, %v9929_v56 }
 0x435   :  { %v2407_v13 = vpop.f32.mrf.mxu0  ;;  %7428 = vmatmul.mubr.f32.gmra.mxu0 %v3032_v7  ;;  %v6889_v6 = vpop.f32.mrf.mxu1 }
 0x436   :  { %7430 = vmatprep.mubr.msk.f32.mxu0 %vm8144_vm0, %v9929_v56  ;;  %v10133_v52 = vadd.f32 %v2397_v41, %v2132_v31  ;;  %v2607_v41 = vld [vmem:[#allocation2 + $0xbf] sm:$0xff] }
 0x437   :  { %v7074_v63 = vpop.f32.mrf.mxu0  ;;  %v1977_v8 = vpop.f32.mrf.mxu1  ;;  %7246 = vmatmul.mubr.f32.gmra.mxu1 %v2606_v12 }
 0x438   :  { %v2133_v36 = vadd.f32 %v1977_v8, %v9787_v16  ;;  %7248 = vmatprep.mubr.msk.f32.mxu1 %vm8144_vm0, %v9929_v56 }
 0x439   :  { %v2412_v40 = vpop.f32.mrf.mxu0  ;;  %7431 = vmatmul.mubr.f32.gmra.mxu0 %v3033_v5  ;;  %v6892_v7 = vpop.f32.mrf.mxu1  ;;  %v3035_v5 = vld [vmem:[#allocation2 + $0xd8] sm:$0xff] }
 0x43a   :  { %7433 = vmatprep.mubr.msk.f32.mxu0 %vm8144_vm0, %v9929_v56  ;;  %v10140_v33 = vadd.f32 %v2402_v24, %v2133_v36  ;;  %v2608_v24 = vld [vmem:[#allocation2 + $0xc7] sm:$0xff] }
 0x43b   :  { %v7077_v53 = vpop.f32.mrf.mxu0  ;;  %v1982_v31 = vpop.f32.mrf.mxu1  ;;  %7249 = vmatmul.mubr.f32.gmra.mxu1 %v2607_v41 }
 0x43c   :  { %v2134_v63 = vadd.f32 %v1982_v31, %v9793_v62  ;;  %7251 = vmatprep.mubr.msk.f32.mxu1 %vm8144_vm0, %v9929_v56 }
 0x43d   :  { %v2417_v35 = vpop.f32.mrf.mxu0  ;;  %7434 = vmatmul.mubr.f32.gmra.mxu0 %v3034_v2  ;;  %v6895_v6 = vpop.f32.mrf.mxu1  ;;  %v3036_v2 = vld [vmem:[#allocation2 + $0xe0] sm:$0xff] }
 0x43e   :  { %7436 = vmatprep.mubr.msk.f32.mxu0 %vm8144_vm0, %v9929_v56  ;;  %v10147_v12 = vadd.f32 %v2407_v13, %v2134_v63  ;;  %v2609_v13 = vld [vmem:[#allocation2 + $0xcf] sm:$0xff] }
 0x43f   :  { %v7080_v16 = vpop.f32.mrf.mxu0  ;;  %v1987_v36 = vpop.f32.mrf.mxu1  ;;  %7252 = vmatmul.mubr.f32.gmra.mxu1 %v2608_v24 }
 0x440   :  { %v2135_v53 = vadd.f32 %v1987_v36, %v9799_v22  ;;  %7254 = vmatprep.mubr.msk.f32.mxu1 %vm8144_vm0, %v9929_v56 }
 0x441   :  { %v2422_v8 = vpop.f32.mrf.mxu0  ;;  %7437 = vmatmul.mubr.f32.gmra.mxu0 %v3035_v5  ;;  %v6898_v7 = vpop.f32.mrf.mxu1  ;;  %v3037_v5 = vld [vmem:[#allocation2 + $0xe8] sm:$0xff] }
 0x442   :  { %7439 = vmatprep.mubr.msk.f32.mxu0 %vm8144_vm0, %v9929_v56  ;;  %v10154_v41 = vadd.f32 %v2412_v40, %v2135_v53  ;;  %v2610_v40 = vld [vmem:[#allocation2 + $0xd7] sm:$0xff] }
 0x443   :  { %v7083_v62 = vpop.f32.mrf.mxu0  ;;  %v1992_v63 = vpop.f32.mrf.mxu1  ;;  %7255 = vmatmul.mubr.f32.gmra.mxu1 %v2609_v13 }
 0x444   :  { %v2136_v16 = vadd.f32 %v1992_v63, %v9805_v17  ;;  %7257 = vmatprep.mubr.msk.f32.mxu1 %vm8144_vm0, %v9929_v56 }
 0x445   :  { %v2427_v31 = vpop.f32.mrf.mxu0  ;;  %7440 = vmatmul.mubr.f32.gmra.mxu0 %v3036_v2  ;;  %v6901_v6 = vpop.f32.mrf.mxu1  ;;  %v3038_v2 = vld [vmem:[#allocation2 + $0xf0] sm:$0xff] }
 0x446   :  { %7442 = vmatprep.mubr.msk.f32.mxu0 %vm8144_vm0, %v9929_v56  ;;  %v10161_v24 = vadd.f32 %v2417_v35, %v2136_v16  ;;  %v2611_v35 = vld [vmem:[#allocation2 + $0xdf] sm:$0xff] }
 0x447   :  { %v7086_v22 = vpop.f32.mrf.mxu0  ;;  %v1997_v53 = vpop.f32.mrf.mxu1  ;;  %7258 = vmatmul.mubr.f32.gmra.mxu1 %v2610_v40 }
 0x448   :  { %v2137_v62 = vadd.f32 %v1997_v53, %v9811_v45  ;;  %7260 = vmatprep.mubr.msk.f32.mxu1 %vm8144_vm0, %v9929_v56 }
 0x449   :  { %v2432_v36 = vpop.f32.mrf.mxu0  ;;  %7443 = vmatmul.mubr.f32.gmra.mxu0 %v3037_v5  ;;  %v6904_v7 = vpop.f32.mrf.mxu1  ;;  %v3039_v5 = vld [vmem:[#allocation2 + $0xf8] sm:$0xff] }
 0x44a   :  { %7445 = vmatprep.mubr.msk.f32.mxu0 %vm8144_vm0, %v9929_v56  ;;  %v10168_v13 = vadd.f32 %v2422_v8, %v2137_v62  ;;  %v2612_v8 = vld [vmem:[#allocation2 + $0xe7] sm:$0xff] }
 0x44b   :  { %v7089_v17 = vpop.f32.mrf.mxu0  ;;  %v2002_v16 = vpop.f32.mrf.mxu1  ;;  %7261 = vmatmul.mubr.f32.gmra.mxu1 %v2611_v35 }
 0x44c   :  { %v2138_v22 = vadd.f32 %v2002_v16, %v9817_v20  ;;  %7263 = vmatprep.mubr.msk.f32.mxu1 %vm8144_vm0, %v9929_v56 }
 0x44d   :  { %v2437_v63 = vpop.f32.mrf.mxu0  ;;  %7446 = vmatmul.mubr.f32.gmra.mxu0 %v3038_v2  ;;  %v6907_v6 = vpop.f32.mrf.mxu1  ;;  %v3040_v2 = vld [vmem:[#allocation2 + $0x100] sm:$0xff] }
 0x44e   :  { %7448 = vmatprep.mubr.msk.f32.mxu0 %vm8144_vm0, %v9929_v56  ;;  %v10175_v40 = vadd.f32 %v2427_v31, %v2138_v22  ;;  %v2613_v31 = vld [vmem:[#allocation2 + $0xef] sm:$0xff] }
 0x44f   :  { %v7092_v45 = vpop.f32.mrf.mxu0  ;;  %v2007_v62 = vpop.f32.mrf.mxu1  ;;  %7264 = vmatmul.mubr.f32.gmra.mxu1 %v2612_v8 }
 0x450   :  { %v2139_v17 = vadd.f32 %v2007_v62, %v9823_v34  ;;  %7266 = vmatprep.mubr.msk.f32.mxu1 %vm8144_vm0, %v9929_v56 }
 0x451   :  { %v2442_v53 = vpop.f32.mrf.mxu0  ;;  %7449 = vmatmul.mubr.f32.gmra.mxu0 %v3039_v5  ;;  %v6910_v7 = vpop.f32.mrf.mxu1  ;;  %v3041_v5 = vld [vmem:[#allocation2 + $0x108] sm:$0xff] }
 0x452   :  { %7451 = vmatprep.mubr.msk.f32.mxu0 %vm8144_vm0, %v9929_v56  ;;  %v10182_v35 = vadd.f32 %v2432_v36, %v2139_v17  ;;  %v2614_v36 = vld [vmem:[#allocation2 + $0xf7] sm:$0xff] }
 0x453   :  { %v7095_v20 = vpop.f32.mrf.mxu0  ;;  %v2012_v22 = vpop.f32.mrf.mxu1  ;;  %7267 = vmatmul.mubr.f32.gmra.mxu1 %v2613_v31 }
 0x454   :  { %v2140_v45 = vadd.f32 %v2012_v22, %v9829_v3  ;;  %7269 = vmatprep.mubr.msk.f32.mxu1 %vm8144_vm0, %v9929_v56 }
 0x455   :  { %v2447_v16 = vpop.f32.mrf.mxu0  ;;  %7452 = vmatmul.mubr.f32.gmra.mxu0 %v3040_v2  ;;  %v6913_v6 = vpop.f32.mrf.mxu1  ;;  %v3042_v2 = vld [vmem:[#allocation2 + $0x110] sm:$0xff] }
 0x456   :  { %7454 = vmatprep.mubr.msk.f32.mxu0 %vm8144_vm0, %v9929_v56  ;;  %v10189_v8 = vadd.f32 %v2437_v63, %v2140_v45  ;;  %v2615_v63 = vld [vmem:[#allocation2 + $0xff] sm:$0xff] }
 0x457   :  { %v7098_v34 = vpop.f32.mrf.mxu0  ;;  %v2017_v17 = vpop.f32.mrf.mxu1  ;;  %7270 = vmatmul.mubr.f32.gmra.mxu1 %v2614_v36 }
 0x458   :  { %v2141_v20 = vadd.f32 %v2017_v17, %v9835_v23  ;;  %7272 = vmatprep.mubr.msk.f32.mxu1 %vm8144_vm0, %v9929_v56 }
 0x459   :  { %v2452_v62 = vpop.f32.mrf.mxu0  ;;  %7455 = vmatmul.mubr.f32.gmra.mxu0 %v3041_v5  ;;  %v6916_v7 = vpop.f32.mrf.mxu1  ;;  %v3043_v5 = vld [vmem:[#allocation2 + $0x118] sm:$0xff] }
 0x45a   :  { %7457 = vmatprep.mubr.msk.f32.mxu0 %vm8144_vm0, %v9929_v56  ;;  %v10196_v31 = vadd.f32 %v2442_v53, %v2141_v20  ;;  %v2616_v53 = vld [vmem:[#allocation2 + $0x107] sm:$0xff] }
 0x45b   :  { %v7101_v3 = vpop.f32.mrf.mxu0  ;;  %v2022_v45 = vpop.f32.mrf.mxu1  ;;  %7273 = vmatmul.mubr.f32.gmra.mxu1 %v2615_v63  ;;  %v2617_v63 = vld [vmem:[#allocation2 + $0x10f] sm:$0xff] }
 0x45c   :  { %v2142_v34 = vadd.f32 %v2022_v45, %v9841_v59  ;;  %7275 = vmatprep.mubr.msk.f32.mxu1 %vm8144_vm0, %v9929_v56  ;;  %v10205_v3 = vld [vmem:[#allocation2 + $0x188] sm:$0xff] }
 0x45d   :  { %v2457_v22 = vpop.f32.mrf.mxu0  ;;  %7458 = vmatmul.mubr.f32.gmra.mxu0 %v3042_v2  ;;  %v6919_v6 = vpop.f32.mrf.mxu1  ;;  %v3044_v2 = vld [vmem:[#allocation2 + $0x120] sm:$0xff] }
 0x45e   :  { %7460 = vmatprep.mubr.msk.f32.mxu0 %vm8144_vm0, %v9929_v56  ;;  %v10203_v36 = vadd.f32 %v2447_v16, %v2142_v34 }
 0x45f   :  { %v7104_v23 = vpop.f32.mrf.mxu0  ;;  %v2027_v20 = vpop.f32.mrf.mxu1  ;;  %7276 = vmatmul.mubr.f32.gmra.mxu1 %v2616_v53 }
 0x460   :  { %v2143_v59 = vadd.f32 %v2027_v20, %v9847_v26  ;;  %7278 = vmatprep.mubr.msk.f32.mxu1 %vm8144_vm0, %v10205_v3 }
 0x461   :  { %v2462_v17 = vpop.f32.mrf.mxu0  ;;  %7461 = vmatmul.mubr.f32.gmra.mxu0 %v3043_v5  ;;  %v6922_v7 = vpop.f32.mrf.mxu1  ;;  %v3045_v5 = vld [vmem:[#allocation2 + $0x128] sm:$0xff] }
 0x462   :  { %7463 = vmatprep.mubr.msk.f32.mxu0 %vm8144_vm0, %v10205_v3  ;;  %v10212_v16 = vadd.f32 %v2452_v62, %v2143_v59  ;;  %v2618_v62 = vld [vmem:[#allocation2 + $0x117] sm:$0xff] }
 0x463   :  { %v7107_v56 = vpop.f32.mrf.mxu0  ;;  %v2032_v34 = vpop.f32.mrf.mxu1  ;;  %7279 = vmatmul.mubr.f32.gmra.mxu1 %v2617_v63 }
 0x464   :  { %v2144_v23 = vadd.f32 %v2032_v34, %v9853_v44  ;;  %7281 = vmatprep.mubr.msk.f32.mxu1 %vm8144_vm0, %v10205_v3 }
 0x465   :  { %v2467_v45 = vpop.f32.mrf.mxu0  ;;  %7464 = vmatmul.mubr.f32.gmra.mxu0 %v3044_v2  ;;  %v6925_v6 = vpop.f32.mrf.mxu1  ;;  %v3046_v2 = vld [vmem:[#allocation2 + $0x130] sm:$0xff] }
 0x466   :  { %7466 = vmatprep.mubr.msk.f32.mxu0 %vm8144_vm0, %v10205_v3  ;;  %v10219_v53 = vadd.f32 %v2457_v22, %v2144_v23  ;;  %v2619_v22 = vld [vmem:[#allocation2 + $0x11f] sm:$0xff] }
 0x467   :  { %v7110_v26 = vpop.f32.mrf.mxu0  ;;  %v2037_v59 = vpop.f32.mrf.mxu1  ;;  %7282 = vmatmul.mubr.f32.gmra.mxu1 %v2618_v62 }
 0x468   :  { %v2145_v56 = vadd.f32 %v2037_v59, %v9859_v27  ;;  %7284 = vmatprep.mubr.msk.f32.mxu1 %vm8144_vm0, %v10205_v3 }
 0x469   :  { %v2472_v20 = vpop.f32.mrf.mxu0  ;;  %7467 = vmatmul.mubr.f32.gmra.mxu0 %v3045_v5  ;;  %v6928_v7 = vpop.f32.mrf.mxu1  ;;  %v3047_v5 = vld [vmem:[#allocation2 + $0x138] sm:$0xff] }
 0x46a   :  { %7469 = vmatprep.mubr.msk.f32.mxu0 %vm8144_vm0, %v10205_v3  ;;  %v10226_v63 = vadd.f32 %v2462_v17, %v2145_v56  ;;  %v2620_v17 = vld [vmem:[#allocation2 + $0x127] sm:$0xff] }
 0x46b   :  { %v7113_v44 = vpop.f32.mrf.mxu0  ;;  %v2042_v23 = vpop.f32.mrf.mxu1  ;;  %7285 = vmatmul.mubr.f32.gmra.mxu1 %v2619_v22 }
 0x46c   :  { %v2146_v26 = vadd.f32 %v2042_v23, %v9865_v50  ;;  %7287 = vmatprep.mubr.msk.f32.mxu1 %vm8144_vm0, %v10205_v3 }
 0x46d   :  { %v2477_v34 = vpop.f32.mrf.mxu0  ;;  %7470 = vmatmul.mubr.f32.gmra.mxu0 %v3046_v2  ;;  %v6931_v6 = vpop.f32.mrf.mxu1  ;;  %v3048_v2 = vld [vmem:[#allocation2 + $0x140] sm:$0xff] }
 0x46e   :  { %7472 = vmatprep.mubr.msk.f32.mxu0 %vm8144_vm0, %v10205_v3  ;;  %v10233_v62 = vadd.f32 %v2467_v45, %v2146_v26  ;;  %v2621_v45 = vld [vmem:[#allocation2 + $0x12f] sm:$0xff] }
 0x46f   :  { %v7116_v27 = vpop.f32.mrf.mxu0  ;;  %v2047_v56 = vpop.f32.mrf.mxu1  ;;  %7288 = vmatmul.mubr.f32.gmra.mxu1 %v2620_v17 }
 0x470   :  { %v2147_v44 = vadd.f32 %v2047_v56, %v9871_v21  ;;  %7290 = vmatprep.mubr.msk.f32.mxu1 %vm8144_vm0, %v10205_v3 }
 0x471   :  { %v2482_v59 = vpop.f32.mrf.mxu0  ;;  %7473 = vmatmul.mubr.f32.gmra.mxu0 %v3047_v5  ;;  %v6934_v7 = vpop.f32.mrf.mxu1  ;;  %v3049_v5 = vld [vmem:[#allocation2 + $0x148] sm:$0xff] }
 0x472   :  { %7475 = vmatprep.mubr.msk.f32.mxu0 %vm8144_vm0, %v10205_v3  ;;  %v10240_v22 = vadd.f32 %v2472_v20, %v2147_v44  ;;  %v2622_v20 = vld [vmem:[#allocation2 + $0x137] sm:$0xff] }
 0x473   :  { %v7119_v50 = vpop.f32.mrf.mxu0  ;;  %v2052_v26 = vpop.f32.mrf.mxu1  ;;  %7291 = vmatmul.mubr.f32.gmra.mxu1 %v2621_v45 }
 0x474   :  { %v2148_v27 = vadd.f32 %v2052_v26, %v9877_v1  ;;  %7293 = vmatprep.mubr.msk.f32.mxu1 %vm8144_vm0, %v10205_v3 }
 0x475   :  { %v2487_v23 = vpop.f32.mrf.mxu0  ;;  %7476 = vmatmul.mubr.f32.gmra.mxu0 %v3048_v2  ;;  %v6937_v6 = vpop.f32.mrf.mxu1  ;;  %v3050_v2 = vld [vmem:[#allocation2 + $0x150] sm:$0xff] }
 0x476   :  { %7478 = vmatprep.mubr.msk.f32.mxu0 %vm8144_vm0, %v10205_v3  ;;  %v10247_v17 = vadd.f32 %v2477_v34, %v2148_v27  ;;  %v2623_v34 = vld [vmem:[#allocation2 + $0x13f] sm:$0xff] }
 0x477   :  { %v7122_v21 = vpop.f32.mrf.mxu0  ;;  %v2057_v44 = vpop.f32.mrf.mxu1  ;;  %7294 = vmatmul.mubr.f32.gmra.mxu1 %v2622_v20 }
 0x478   :  { %v2149_v50 = vadd.f32 %v2057_v44, %v9883_v51  ;;  %7296 = vmatprep.mubr.msk.f32.mxu1 %vm8144_vm0, %v10205_v3 }
 0x479   :  { %v2492_v56 = vpop.f32.mrf.mxu0  ;;  %7479 = vmatmul.mubr.f32.gmra.mxu0 %v3049_v5  ;;  %v6940_v7 = vpop.f32.mrf.mxu1  ;;  %v3051_v5 = vld [vmem:[#allocation2 + $0x158] sm:$0xff] }
 0x47a   :  { %7481 = vmatprep.mubr.msk.f32.mxu0 %vm8144_vm0, %v10205_v3  ;;  %v10254_v45 = vadd.f32 %v2482_v59, %v2149_v50  ;;  %v2624_v59 = vld [vmem:[#allocation2 + $0x147] sm:$0xff] }
 0x47b   :  { %v7125_v1 = vpop.f32.mrf.mxu0  ;;  %v2062_v27 = vpop.f32.mrf.mxu1  ;;  %7297 = vmatmul.mubr.f32.gmra.mxu1 %v2623_v34 }
 0x47c   :  { %v2150_v21 = vadd.f32 %v2062_v27, %v9889_v4  ;;  %7299 = vmatprep.mubr.msk.f32.mxu1 %vm8144_vm0, %v10205_v3 }
 0x47d   :  { %v2497_v26 = vpop.f32.mrf.mxu0  ;;  %7482 = vmatmul.mubr.f32.gmra.mxu0 %v3050_v2  ;;  %v6943_v6 = vpop.f32.mrf.mxu1  ;;  %v3052_v2 = vld [vmem:[#allocation2 + $0x160] sm:$0xff] }
 0x47e   :  { %7484 = vmatprep.mubr.msk.f32.mxu0 %vm8144_vm0, %v10205_v3  ;;  %v10261_v20 = vadd.f32 %v2487_v23, %v2150_v21  ;;  %v2625_v23 = vld [vmem:[#allocation2 + $0x14f] sm:$0xff] }
 0x47f   :  { %v7128_v51 = vpop.f32.mrf.mxu0  ;;  %v2067_v50 = vpop.f32.mrf.mxu1  ;;  %7300 = vmatmul.mubr.f32.gmra.mxu1 %v2624_v59 }
 0x480   :  { %v2151_v1 = vadd.f32 %v2067_v50, %v9895_v30  ;;  %7302 = vmatprep.mubr.msk.f32.mxu1 %vm8144_vm0, %v10205_v3 }
 0x481   :  { %v2502_v44 = vpop.f32.mrf.mxu0  ;;  %7485 = vmatmul.mubr.f32.gmra.mxu0 %v3051_v5  ;;  %v6946_v7 = vpop.f32.mrf.mxu1  ;;  %v3053_v5 = vld [vmem:[#allocation2 + $0x168] sm:$0xff] }
 0x482   :  { %7487 = vmatprep.mubr.msk.f32.mxu0 %vm8144_vm0, %v10205_v3  ;;  %v10268_v34 = vadd.f32 %v2492_v56, %v2151_v1  ;;  %v2626_v56 = vld [vmem:[#allocation2 + $0x157] sm:$0xff] }
 0x483   :  { %v7131_v4 = vpop.f32.mrf.mxu0  ;;  %v2072_v21 = vpop.f32.mrf.mxu1  ;;  %7303 = vmatmul.mubr.f32.gmra.mxu1 %v2625_v23 }
 0x484   :  { %v2152_v51 = vadd.f32 %v2072_v21, %v9901_v11  ;;  %7305 = vmatprep.mubr.msk.f32.mxu1 %vm8144_vm0, %v10205_v3 }
 0x485   :  { %v2507_v27 = vpop.f32.mrf.mxu0  ;;  %7488 = vmatmul.mubr.f32.gmra.mxu0 %v3052_v2  ;;  %v6949_v6 = vpop.f32.mrf.mxu1  ;;  %v3054_v2 = vld [vmem:[#allocation2 + $0x170] sm:$0xff] }
 0x486   :  { %7490 = vmatprep.mubr.msk.f32.mxu0 %vm8144_vm0, %v10205_v3  ;;  %v10275_v59 = vadd.f32 %v2497_v26, %v2152_v51  ;;  %v2627_v26 = vld [vmem:[#allocation2 + $0x15f] sm:$0xff] }
 0x487   :  { %v7134_v30 = vpop.f32.mrf.mxu0  ;;  %v2077_v1 = vpop.f32.mrf.mxu1  ;;  %7306 = vmatmul.mubr.f32.gmra.mxu1 %v2626_v56 }
 0x488   :  { %v2153_v4 = vadd.f32 %v2077_v1, %v9907_v28  ;;  %7308 = vmatprep.mubr.msk.f32.mxu1 %vm8144_vm0, %v10205_v3 }
 0x489   :  { %v2512_v50 = vpop.f32.mrf.mxu0  ;;  %7491 = vmatmul.mubr.f32.gmra.mxu0 %v3053_v5  ;;  %v6952_v7 = vpop.f32.mrf.mxu1  ;;  %v3055_v5 = vld [vmem:[#allocation2 + $0x178] sm:$0xff] }
 0x48a   :  { %7493 = vmatprep.mubr.msk.f32.mxu0 %vm8144_vm0, %v10205_v3  ;;  %v10282_v23 = vadd.f32 %v2502_v44, %v2153_v4  ;;  %v2628_v44 = vld [vmem:[#allocation2 + $0x167] sm:$0xff] }
 0x48b   :  { %v7137_v11 = vpop.f32.mrf.mxu0  ;;  %v2082_v51 = vpop.f32.mrf.mxu1  ;;  %7309 = vmatmul.mubr.f32.gmra.mxu1 %v2627_v26 }
 0x48c   :  { %v2154_v30 = vadd.f32 %v2082_v51, %v9913_v18  ;;  %7311 = vmatprep.mubr.msk.f32.mxu1 %vm8144_vm0, %v10205_v3 }
 0x48d   :  { %v2517_v21 = vpop.f32.mrf.mxu0  ;;  %7494 = vmatmul.mubr.f32.gmra.mxu0 %v3054_v2  ;;  %v6955_v6 = vpop.f32.mrf.mxu1  ;;  %v3056_v2 = vld [vmem:[#allocation2 + $0x180] sm:$0xff] }
 0x48e   :  { %7496 = vmatprep.mubr.msk.f32.mxu0 %vm8144_vm0, %v10205_v3  ;;  %v10289_v56 = vadd.f32 %v2507_v27, %v2154_v30  ;;  %v2629_v27 = vld [vmem:[#allocation2 + $0x16f] sm:$0xff] }
 0x48f   :  { %v7140_v28 = vpop.f32.mrf.mxu0  ;;  %v2087_v4 = vpop.f32.mrf.mxu1  ;;  %7312 = vmatmul.mubr.f32.gmra.mxu1 %v2628_v44  ;;  %v2630_v44 = vld [vmem:[#allocation2 + $0x177] sm:$0xff] }
 0x490   :  { %v2155_v11 = vadd.f32 %v2087_v4, %v9919_v29  ;;  %7314 = vmatprep.mubr.msk.f32.mxu1 %vm8144_vm0, %v10205_v3 }
 0x491   :  { %v2522_v1 = vpop.f32.mrf.mxu0  ;;  %7497 = vmatmul.mubr.f32.gmra.mxu0 %v3055_v5  ;;  %v6958_v7 = vpop.f32.mrf.mxu1 }
 0x492   :  { %7499 = vmatprep.mubr.msk.f32.mxu0 %vm8144_vm0, %v10205_v3  ;;  %v10296_v26 = vadd.f32 %v2512_v50, %v2155_v11 }
 0x493   :  { %v7143_v18 = vpop.f32.mrf.mxu0  ;;  %v2092_v30 = vpop.f32.mrf.mxu1  ;;  %7315 = vmatmul.mubr.f32.gmra.mxu1 %v2629_v27 }
 0x494   :  { %v2156_v28 = vadd.f32 %v2092_v30, %v9925_v14  ;;  %7317 = vmatprep.mubr.msk.f32.mxu1 %vm8144_vm0, %v10205_v3 }
 0x495   :  { %v2527_v51 = vpop.f32.mrf.mxu0  ;;  %7500 = vmatmul.mubr.f32.gmra.mxu0 %v3056_v2  ;;  %v6961_v6 = vpop.f32.mrf.mxu1 }
 0x496   :  { %7502 = vmatprep.mubr.msk.f32.mxu0 %vm8144_vm0, %v10205_v3  ;;  %v10303_v5 = vadd.f32 %v2517_v21, %v2156_v28  ;;  %v2631_v21 = vld [vmem:[#allocation2 + $0x17f] sm:$0xff] }
 0x497   :  { %v7146_v29 = vpop.f32.mrf.mxu0  ;;  %v2097_v4 = vpop.f32.mrf.mxu1  ;;  %7318 = vmatmul.mubr.f32.gmra.mxu1 %v2630_v44  ;;  %v4350_v6 = vld [vmem:[#allocation3 + $0x478] sm:$0xff] }
 0x498   :  { %v2157_v11 = vadd.f32 %v2097_v4, %v9933_v15  ;;  %7320 = vmatprep.mubr.msk.f32.mxu1 %vm8144_vm0, %v10205_v3  ;;  %v3860_v29 = vld [vmem:[#allocation2 + $0x1d] sm:$0xff]  ;;  %v2632_v44 = vld [vmem:[#allocation2 + $0x187] sm:$0xff] }
 0x499   :  { %v2532_v50 = vpop.f32.mrf.mxu0  ;;  %7503 = vmatmul.mubr.f32.gmra.mxu0 %v10205_v3  ;;  %v6964_v18 = vpop.f32.mrf.mxu1 }
 0x49a   :  { %7505 = vmatprep.mubr.msk.f32.mxu0 %vm8144_vm0, %v10205_v3  ;;  %v10311_v7 = vadd.f32 %v2522_v1, %v2157_v11 }
 0x49b   :  { %v7149_v14 = vpop.f32.mrf.mxu0  ;;  %v2102_v27 = vpop.f32.mrf.mxu1  ;;  %7321 = vmatmul.mubr.f32.gmra.mxu1 %v2631_v21 }
 0x49c   :  { %v2158_v30 = vadd.f32 %v2102_v27, %v9939_v9  ;;  %7323 = vmatprep.mubr.msk.f32.mxu1 %vm8144_vm0, %v10205_v3  ;;  %v12425_v14 = vld [vmem:[#allocation10_spill] sm:$0xff]  ;;  %v2633_v9 = vld [vmem:[#allocation2 + $0x18f] sm:$0xff] }
 0x49d   :  { %v3142_v2 = vpop.f32.mrf.mxu0  ;;  %7506 = vmatmul.mubr.f32.gmra.mxu0 %v10205_v3  ;;  %v6967_v28 = vpop.f32.mrf.mxu1 }
 0x49e   :  { %7719 = vmatprep.mubr.msk.f32.mxu0 %vm8144_vm0, %v10205_v3  ;;  %v10319_v1 = vadd.f32 %v2527_v51, %v2158_v30  ;;  %v4349_v51 = vld [vmem:[#allocation3 + $0x470] sm:$0xff] }
 0x49f   :  { %v7363_v15 = vpop.f32.mrf.mxu0  ;;  %v2107_v11 = vpop.f32.mrf.mxu1  ;;  %7324 = vmatmul.mubr.f32.gmra.mxu1 %v2632_v44  ;;  %v12427_v44 = vld [vmem:[#allocation11_spill] sm:$0xff] }
 0x4a0   :  { %v2159_v18 = vadd.f32 %v2107_v11, %v12425_v14  ;;  %7326 = vmatprep.mubr.msk.f32.mxu1 %vm8144_vm0, %v10205_v3  ;;  %v3861_v15 = vld [vmem:[#allocation2 + $0x25] sm:$0xff] }
 0x4a1   :  { %v3147_v4 = vpop.f32.mrf.mxu0  ;;  %7720 = vmatmul.mubr.f32.vlgmr.msra.gmra.mxu0 %v3860_v29  ;;  %v6970_v27 = vpop.f32.mrf.mxu1 }
 0x4a2   :  { %7722 = vmatprep.mubr.msk.f32.mxu0 %vm8144_vm0, %v10205_v3  ;;  %7867 = vmatpush3.msra.mxu0 %v4350_v6  ;;  %v10327_v30 = vadd.f32 %v2532_v50, %v2159_v18  ;;  %v3862_v27 = vld [vmem:[#allocation2 + $0x2d] sm:$0xff]  ;;  %v3435_v18 = vld [vmem:[#allocation2 + $0x1c] sm:$0xff] }
 0x4a3   :  { %v7366_v21 = vpop.f32.mrf.mxu0  ;;  %7868 = vmatprep.subr.mxu0 %v10205_v3  ;;  %v2717_v29 = vpop.f32.mrf.mxu1  ;;  %7327 = vmatmul.mubr.f32.gmra.mxu1 %v2633_v9  ;;  %v4348_v9 = vld [vmem:[#allocation3 + $0x468] sm:$0xff] }
 0x4a4   :  { %12426 = vst [vmem:[#allocation12_spill] sm:$0xff] %v10327_v30  ;;  %v2961_v11 = vadd.f32 %v2717_v29, %v12427_v44  ;;  %7540 = vmatprep.mubr.msk.f32.mxu1 %vm8144_vm0, %v10205_v3  ;;  %7869 = vmatpush3.msra.mxu0 %v4349_v51 }
 0x4a5   :  { %v3152_v28 = vpop.f32.mrf.mxu0  ;;  %7723 = vmatmul.mubr.f32.gmra.mxu0 %v3861_v15  ;;  %v7184_v21 = vpop.f32.mrf.mxu1  ;;  %7870 = vmatprep.subr.mxu0 %v10205_v3 }
 0x4a6   :  { %7725 = vmatprep.mubr.msk.f32.mxu0 %vm8144_vm0, %v10205_v3  ;;  %v10335_v50 = vadd.f32 %v3142_v2, %v2961_v11  ;;  %v3863_v21 = vld [vmem:[#allocation2 + $0x35] sm:$0xff]  ;;  %7871 = vmatpush3.msra.mxu0 %v4348_v9  ;;  %v3436_v11 = vld [vmem:[#allocation2 + $0x24] sm:$0xff] }
 0x4a7   :  { %v7369_v14 = vpop.f32.mrf.mxu0  ;;  %v2722_v30 = vpop.f32.mrf.mxu1  ;;  %7541 = vmatmul.mubr.f32.vlgmr.msra.gmra.mxu1 %v3435_v18  ;;  %7872 = vmatprep.subr.mxu0 %v10205_v3 }
 0x4a8   :  { %v2962_v29 = vadd.f32 %v2722_v30, %v9964_v49  ;;  %8061 = vmatpush3.msra.mxu1 %v4350_v6  ;;  %7543 = vmatprep.mubr.msk.f32.mxu1 %vm8144_vm0, %v10205_v3 }
 0x4a9   :  { %v3157_v15 = vpop.f32.mrf.mxu0  ;;  %7726 = vmatmul.mubr.f32.gmra.mxu0 %v3862_v27  ;;  %v7187_v14 = vpop.f32.mrf.mxu1  ;;  %8046 = vmatprep.subr.mxu1 %v10205_v3 }
 0x4aa   :  { %7728 = vmatprep.mubr.msk.f32.mxu0 %vm8144_vm0, %v10205_v3  ;;  %v10343_v2 = vadd.f32 %v3147_v4, %v2962_v29  ;;  %8062 = vmatpush3.msra.mxu1 %v4349_v51  ;;  %v3864_v4 = vld [vmem:[#allocation2 + $0x3d] sm:$0xff]  ;;  %v3437_v51 = vld [vmem:[#allocation2 + $0x2c] sm:$0xff] }
 0x4ab   :  { %v7372_v44 = vpop.f32.mrf.mxu0  ;;  %v2727_v18 = vpop.f32.mrf.mxu1  ;;  %7544 = vmatmul.mubr.f32.gmra.mxu1 %v3436_v11  ;;  %8047 = vmatprep.subr.mxu1 %v10205_v3  ;;  %v4347_v14 = vld [vmem:[#allocation3 + $0x460] sm:$0xff] }
 0x4ac   :  { %v2963_v49 = vadd.f32 %v2727_v18, %v9973_v47  ;;  %7546 = vmatprep.mubr.msk.f32.mxu1 %vm8144_vm0, %v10205_v3  ;;  %8063 = vmatpush3.msra.mxu1 %v4348_v9  ;;  %v3865_v11 = vld [vmem:[#allocation2 + $0x45] sm:$0xff] }
 0x4ad   :  { %v3162_v27 = vpop.f32.mrf.mxu0  ;;  %7729 = vmatmul.mubr.f32.gmra.mxu0 %v3863_v21  ;;  %v7190_v30 = vpop.f32.mrf.mxu1  ;;  %8048 = vmatprep.subr.mxu1 %v10205_v3  ;;  %v4346_v18 = vld [vmem:[#allocation3 + $0x458] sm:$0xff] }
 0x4ae   :  { %7731 = vmatprep.mubr.msk.f32.mxu0 %vm8144_vm0, %v10205_v3  ;;  %v10352_v29 = vadd.f32 %v3152_v28, %v2963_v49  ;;  %8064 = vmatpush3.msra.mxu1 %v4347_v14 }
 0x4af   :  { %v7375_v6 = vpop.f32.mrf.mxu0  ;;  %v2732_v47 = vpop.f32.mrf.mxu1  ;;  %7547 = vmatmul.mubr.f32.gmra.mxu1 %v3437_v51  ;;  %8049 = vmatprep.subr.mxu1 %v10205_v3 }
 0x4b0   :  { %v2964_v21 = vadd.f32 %v2732_v47, %v9982_v54  ;;  %7549 = vmatprep.mubr.msk.f32.mxu1 %vm8144_vm0, %v10205_v3  ;;  %7873 = vmatpush3.msra.mxu0 %v4347_v14  ;;  %v3438_v6 = vld [vmem:[#allocation2 + $0x34] sm:$0xff] }
 0x4b1   :  { %v3167_v44 = vpop.f32.mrf.mxu0  ;;  %7732 = vmatmul.mubr.f32.gmra.mxu0 %v3864_v4  ;;  %v7193_v28 = vpop.f32.mrf.mxu1  ;;  %8065 = vmatpush3.msra.mxu1 %v4346_v18  ;;  %v4345_v14 = vld [vmem:[#allocation3 + $0x450] sm:$0xff]  ;;  %v3866_v47 = vld [vmem:[#allocation2 + $0x4d] sm:$0xff] }
 0x4b2   :  { %7734 = vmatprep.mubr.msk.f32.mxu0 %vm8144_vm0, %v10205_v3  ;;  %v10361_v49 = vadd.f32 %v3157_v15, %v2964_v21  ;;  %8050 = vmatprep.subr.mxu1 %v10205_v3 }
 0x4b3   :  { %v7378_v9 = vpop.f32.mrf.mxu0  ;;  %v2737_v4 = vpop.f32.mrf.mxu1  ;;  %7550 = vmatmul.mubr.f32.gmra.mxu1 %v3438_v6  ;;  %7874 = vmatprep.subr.mxu0 %v10205_v3 }
 0x4b4   :  { %v2965_v54 = vadd.f32 %v2737_v4, %v9991_v48  ;;  %7552 = vmatprep.mubr.msk.f32.mxu1 %vm8144_vm0, %v10205_v3  ;;  %8066 = vmatpush3.msra.mxu1 %v4345_v14  ;;  %v3439_v9 = vld [vmem:[#allocation2 + $0x3c] sm:$0xff] }
 0x4b5   :  { %v3172_v30 = vpop.f32.mrf.mxu0  ;;  %7735 = vmatmul.mubr.f32.gmra.mxu0 %v3865_v11  ;;  %v7196_v15 = vpop.f32.mrf.mxu1  ;;  %8051 = vmatprep.subr.mxu1 %v10205_v3  ;;  %v10375_v11 = vld [vmem:[#allocation3 + $0x448] sm:$0xff] }
 0x4b6   :  { %7737 = vmatprep.mubr.msk.f32.mxu0 %vm8144_vm0, %v10205_v3  ;;  %v10370_v21 = vadd.f32 %v3162_v27, %v2965_v54  ;;  %8067 = vmatpush3.msra.mxu1 %v10375_v11  ;;  %v3867_v54 = vld [vmem:[#allocation2 + $0x55] sm:$0xff] }
 0x4b7   :  { %v7381_v51 = vpop.f32.mrf.mxu0  ;;  %v2742_v48 = vpop.f32.mrf.mxu1  ;;  %7553 = vmatmul.mubr.f32.gmra.mxu1 %v3439_v9  ;;  %8052 = vmatprep.subr.mxu1 %v10205_v3 }
 0x4b8   :  { %v2966_v6 = vadd.f32 %v2742_v48, %v10000_v43  ;;  %7555 = vmatprep.mubr.msk.f32.mxu1 %vm8144_vm0, %v10205_v3  ;;  %v10382_v51 = vld [vmem:[#allocation3 + $0x440] sm:$0xff]  ;;  %7875 = vmatpush3.msra.mxu0 %v4346_v18 }
 0x4b9   :  { %v3177_v28 = vpop.f32.mrf.mxu0  ;;  %7738 = vmatmul.mubr.f32.gmra.mxu0 %v3866_v47  ;;  %v7199_v27 = vpop.f32.mrf.mxu1  ;;  %v3440_v47 = vld [vmem:[#allocation2 + $0x44] sm:$0xff]  ;;  %8068 = vmatpush3.msra.mxu1 %v10382_v51 }
 0x4ba   :  { %7740 = vmatprep.mubr.msk.f32.mxu0 %vm8144_vm0, %v10205_v3  ;;  %v10384_v15 = vadd.f32 %v3167_v44, %v2966_v6  ;;  %8053 = vmatprep.subr.mxu1 %v10205_v3  ;;  %v10393_v44 = vld [vmem:[#allocation3 + $0x438] sm:$0xff] }
 0x4bb   :  { %v7384_v4 = vpop.f32.mrf.mxu0  ;;  %v2747_v43 = vpop.f32.mrf.mxu1  ;;  %7556 = vmatmul.mubr.f32.gmra.mxu1 %v3440_v47  ;;  %v3868_v6 = vld [vmem:[#allocation2 + $0x5d] sm:$0xff]  ;;  %7876 = vmatprep.subr.mxu0 %v10205_v3 }
 0x4bc   :  { %12428 = vst [vmem:[#allocation13_spill] sm:$0xff] %v10384_v15  ;;  %v2967_v48 = vadd.f32 %v2747_v43, %v10009_v37  ;;  %7558 = vmatprep.mubr.msk.f32.mxu1 %vm8144_vm0, %v10205_v3  ;;  %8069 = vmatpush3.msra.mxu1 %v10393_v44  ;;  %v10402_v43 = vld [vmem:[#allocation3 + $0x430] sm:$0xff] }
 0x4bd   :  { %v3182_v9 = vpop.f32.mrf.mxu0  ;;  %7741 = vmatmul.mubr.f32.gmra.mxu0 %v3867_v54  ;;  %v7202_v18 = vpop.f32.mrf.mxu1  ;;  %v3441_v54 = vld [vmem:[#allocation2 + $0x4c] sm:$0xff]  ;;  %8054 = vmatprep.subr.mxu1 %v10205_v3 }
 0x4be   :  { %7743 = vmatprep.mubr.msk.f32.mxu0 %vm8144_vm0, %v10205_v3  ;;  %v10397_v27 = vadd.f32 %v3172_v30, %v2967_v48  ;;  %8070 = vmatpush3.msra.mxu1 %v10402_v43  ;;  %v3869_v48 = vld [vmem:[#allocation2 + $0x65] sm:$0xff] }
 0x4bf   :  { %v7387_v4 = vpop.f32.mrf.mxu0  ;;  %v2752_v37 = vpop.f32.mrf.mxu1  ;;  %7559 = vmatmul.mubr.f32.gmra.mxu1 %v3441_v54  ;;  %8055 = vmatprep.subr.mxu1 %v10205_v3 }
 0x4c0   :  { %12429 = vst [vmem:[#allocation14_spill] sm:$0xff] %v10397_v27  ;;  %v2968_v4 = vadd.f32 %v2752_v37, %v10018_v39  ;;  %7561 = vmatprep.mubr.msk.f32.mxu1 %vm8144_vm0, %v10205_v3  ;;  %7877 = vmatpush3.msra.mxu0 %v4345_v14  ;;  %v3442_v27 = vld [vmem:[#allocation2 + $0x54] sm:$0xff]  ;;  %v10420_v14 = vld [vmem:[#allocation3 + $0x420] sm:$0xff] }
 0x4c1   :  { %v3187_v47 = vpop.f32.mrf.mxu0  ;;  %7744 = vmatmul.mubr.f32.gmra.mxu0 %v3868_v6  ;;  %v7205_v30 = vpop.f32.mrf.mxu1  ;;  %v10409_v6 = vld [vmem:[#allocation3 + $0x428] sm:$0xff]  ;;  %7878 = vmatprep.subr.mxu0 %v10205_v3 }
 0x4c2   :  { %7746 = vmatprep.mubr.msk.f32.mxu0 %vm8144_vm0, %v10205_v3  ;;  %v10411_v54 = vadd.f32 %v3177_v28, %v2968_v4  ;;  %8071 = vmatpush3.msra.mxu1 %v10409_v6  ;;  %v3870_v4 = vld [vmem:[#allocation2 + $0x6d] sm:$0xff]  ;;  %v3443_v30 = vld [vmem:[#allocation2 + $0x5c] sm:$0xff] }
 0x4c3   :  { %v7390_v18 = vpop.f32.mrf.mxu0  ;;  %v2757_v39 = vpop.f32.mrf.mxu1  ;;  %7562 = vmatmul.mubr.f32.gmra.mxu1 %v3442_v27  ;;  %8056 = vmatprep.subr.mxu1 %v10205_v3 }
 0x4c4   :  { %v2969_v37 = vadd.f32 %v2757_v39, %v10027_v58  ;;  %7564 = vmatprep.mubr.msk.f32.mxu1 %vm8144_vm0, %v10205_v3  ;;  %8072 = vmatpush3.msra.mxu1 %v10420_v14  ;;  %v10429_v39 = vld [vmem:[#allocation3 + $0x418] sm:$0xff] }
 0x4c5   :  { %v3192_v15 = vpop.f32.mrf.mxu0  ;;  %7747 = vmatmul.mubr.f32.gmra.mxu0 %v3869_v48  ;;  %v7208_v28 = vpop.f32.mrf.mxu1  ;;  %8057 = vmatprep.subr.mxu1 %v10205_v3 }
 0x4c6   :  { %7749 = vmatprep.mubr.msk.f32.mxu0 %vm8144_vm0, %v10205_v3  ;;  %v10424_v27 = vadd.f32 %v3182_v9, %v2969_v37  ;;  %8073 = vmatpush3.msra.mxu1 %v10429_v39  ;;  %v3871_v37 = vld [vmem:[#allocation2 + $0x75] sm:$0xff] }
 0x4c7   :  { %v7393_v18 = vpop.f32.mrf.mxu0  ;;  %v2762_v58 = vpop.f32.mrf.mxu1  ;;  %7565 = vmatmul.mubr.f32.gmra.mxu1 %v3443_v30  ;;  %7879 = vmatpush3.msra.mxu0 %v10375_v11  ;;  %v3444_v30 = vld [vmem:[#allocation2 + $0x64] sm:$0xff] }
 0x4c8   :  { %12430 = vst [vmem:[#allocation10_spill] sm:$0xff] %v10424_v27  ;;  %v2970_v18 = vadd.f32 %v2762_v58, %v10036_v10  ;;  %7567 = vmatprep.mubr.msk.f32.mxu1 %vm8144_vm0, %v10205_v3  ;;  %8058 = vmatprep.subr.mxu1 %v10205_v3  ;;  %v10442_v58 = vld [vmem:[#allocation3 + $0x410] sm:$0xff] }
 0x4c9   :  { %v3197_v48 = vpop.f32.mrf.mxu0  ;;  %7750 = vmatmul.mubr.f32.gmra.mxu0 %v3870_v4  ;;  %v7211_v9 = vpop.f32.mrf.mxu1  ;;  %7880 = vmatprep.subr.mxu0 %v10205_v3 }
 0x4ca   :  { %7752 = vmatprep.mubr.msk.f32.mxu0 %vm8144_vm0, %v10205_v3  ;;  %v10437_v4 = vadd.f32 %v3187_v47, %v2970_v18  ;;  %8074 = vmatpush3.msra.mxu1 %v10442_v58  ;;  %v3872_v18 = vld [vmem:[#allocation2 + $0x7d] sm:$0xff] }
 0x4cb   :  { %v7396_v28 = vpop.f32.mrf.mxu0  ;;  %v2767_v10 = vpop.f32.mrf.mxu1  ;;  %7568 = vmatmul.mubr.f32.gmra.mxu1 %v3444_v30  ;;  %7881 = vmatpush3.msra.mxu0 %v10382_v51 }
 0x4cc   :  { %v2971_v28 = vadd.f32 %v2767_v10, %v10045_v19  ;;  %7570 = vmatprep.mubr.msk.f32.mxu1 %vm8144_vm0, %v10205_v3  ;;  %8059 = vmatprep.subr.mxu1 %v10205_v3 }
 0x4cd   :  { %v3202_v27 = vpop.f32.mrf.mxu0  ;;  %7753 = vmatmul.mubr.f32.gmra.mxu0 %v3871_v37  ;;  %v7214_v47 = vpop.f32.mrf.mxu1  ;;  %v3445_v37 = vld [vmem:[#allocation2 + $0x6c] sm:$0xff]  ;;  %7882 = vmatprep.subr.mxu0 %v10205_v3 }
 0x4ce   :  { %7755 = vmatprep.mubr.msk.f32.mxu0 %vm8144_vm0, %v10205_v3  ;;  %v10450_v9 = vadd.f32 %v3192_v15, %v2971_v28  ;;  %7883 = vmatpush3.msra.mxu0 %v10393_v44  ;;  %v3873_v28 = vld [vmem:[#allocation2 + $0x85] sm:$0xff]  ;;  %v3446_v47 = vld [vmem:[#allocation2 + $0x74] sm:$0xff] }
 0x4cf   :  { %v7399_v11 = vpop.f32.mrf.mxu0  ;;  %v2772_v19 = vpop.f32.mrf.mxu1  ;;  %7571 = vmatmul.mubr.f32.gmra.mxu1 %v3445_v37  ;;  %7884 = vmatprep.subr.mxu0 %v10205_v3 }
 0x4d0   :  { %v2972_v10 = vadd.f32 %v2772_v19, %v10053_v0  ;;  %7573 = vmatprep.mubr.msk.f32.mxu1 %vm8144_vm0, %v10205_v3  ;;  %7885 = vmatpush3.msra.mxu0 %v10402_v43 }
 0x4d1   :  { %v3207_v30 = vpop.f32.mrf.mxu0  ;;  %7756 = vmatmul.mubr.f32.gmra.mxu0 %v3872_v18  ;;  %v7217_v15 = vpop.f32.mrf.mxu1  ;;  %7886 = vmatprep.subr.mxu0 %v10205_v3 }
 0x4d2   :  { %7758 = vmatprep.mubr.msk.f32.mxu0 %vm8144_vm0, %v10205_v3  ;;  %v10460_v11 = vadd.f32 %v3197_v48, %v2972_v10  ;;  %v3447_v10 = vld [vmem:[#allocation2 + $0x7c] sm:$0xff]  ;;  %7887 = vmatpush3.msra.mxu0 %v10409_v6 }
 0x4d3   :  { %v7402_v51 = vpop.f32.mrf.mxu0  ;;  %v2777_v37 = vpop.f32.mrf.mxu1  ;;  %7574 = vmatmul.mubr.f32.gmra.mxu1 %v3446_v47  ;;  %7888 = vmatprep.subr.mxu0 %v10205_v3 }
 0x4d4   :  { %v2973_v0 = vadd.f32 %v2777_v37, %v10060_v60  ;;  %7576 = vmatprep.mubr.msk.f32.mxu1 %vm8144_vm0, %v10205_v3  ;;  %v3874_v51 = vld [vmem:[#allocation2 + $0x8d] sm:$0xff]  ;;  %v3875_v37 = vld [vmem:[#allocation2 + $0x95] sm:$0xff]  ;;  %7889 = vmatpush3.msra.mxu0 %v10420_v14 }
 0x4d5   :  { %v3212_v18 = vpop.f32.mrf.mxu0  ;;  %7759 = vmatmul.mubr.f32.gmra.mxu0 %v3873_v28  ;;  %v7220_v19 = vpop.f32.mrf.mxu1  ;;  %v10473_v60 = vld [vmem:[#allocation3 + $0x408] sm:$0xff]  ;;  %7890 = vmatprep.subr.mxu0 %v10205_v3 }
 0x4d6   :  { %7761 = vmatprep.mubr.msk.f32.mxu0 %vm8144_vm0, %v10205_v3  ;;  %v10469_v48 = vadd.f32 %v3202_v27, %v2973_v0  ;;  %8075 = vmatpush3.msra.mxu1 %v10473_v60 }
 0x4d7   :  { %v7405_v44 = vpop.f32.mrf.mxu0  ;;  %v2782_v28 = vpop.f32.mrf.mxu1  ;;  %7577 = vmatmul.mubr.f32.gmra.mxu1 %v3447_v10  ;;  %8060 = vmatprep.subr.mxu1 %v10205_v3 }
 0x4d8   :  { %v2974_v47 = vadd.f32 %v2782_v28, %v10068_v38  ;;  %7579 = vmatprep.mubr.msk.f32.mxu1 %vm8144_vm0, %v10205_v3  ;;  %v3448_v44 = vld [vmem:[#allocation2 + $0x84] sm:$0xff]  ;;  %7891 = vmatpush3.msra.mxu0 %v10429_v39 }
 0x4d9   :  { %v3217_v15 = vpop.f32.mrf.mxu0  ;;  %7762 = vmatmul.mubr.f32.gmra.mxu0 %v3874_v51  ;;  %v7223_v27 = vpop.f32.mrf.mxu1  ;;  %7892 = vmatprep.subr.mxu0 %v10205_v3 }
 0x4da   :  { %7764 = vmatprep.mubr.msk.f32.mxu0 %vm8144_vm0, %v10205_v3  ;;  %v10481_v0 = vadd.f32 %v3207_v30, %v2974_v47  ;;  %v3876_v30 = vld [vmem:[#allocation2 + $0x9d] sm:$0xff]  ;;  %v3449_v47 = vld [vmem:[#allocation2 + $0x8c] sm:$0xff]  ;;  %7893 = vmatpush3.msra.mxu0 %v10442_v58 }
 0x4db   :  { %v7408_v43 = vpop.f32.mrf.mxu0  ;;  %v2787_v38 = vpop.f32.mrf.mxu1  ;;  %7580 = vmatmul.mubr.f32.gmra.mxu1 %v3448_v44  ;;  %v3877_v44 = vld [vmem:[#allocation2 + $0xa5] sm:$0xff]  ;;  %7894 = vmatprep.subr.mxu0 %v10205_v3 }
 0x4dc   :  { %v2975_v51 = vadd.f32 %v2787_v38, %v10076_v46  ;;  %7582 = vmatprep.mubr.msk.f32.mxu1 %vm8144_vm0, %v10205_v3  ;;  %v3450_v38 = vld [vmem:[#allocation2 + $0x94] sm:$0xff]  ;;  %7895 = vmatpush3.msra.mxu0 %v10473_v60 }
 0x4dd   :  { %v3222_v19 = vpop.f32.mrf.mxu0  ;;  %7765 = vmatmul.mubr.f32.gmra.mxu0 %v3875_v37  ;;  %v7226_v6 = vpop.f32.mrf.mxu1  ;;  %7896 = vmatprep.subr.mxu0 %v10205_v3 }
 0x4de   :  { %7767 = vmatprep.mubr.msk.f32.mxu0 %vm8144_vm0, %v10205_v3  ;;  %v10491_v28 = vadd.f32 %v3212_v18, %v2975_v51 }
 0x4df   :  { %v7411_v10 = vpop.f32.mrf.mxu0  ;;  %v2792_v27 = vpop.f32.mrf.mxu1  ;;  %7583 = vmatmul.mubr.f32.gmra.mxu1 %v3449_v47  ;;  %v3878_v47 = vld [vmem:[#allocation2 + $0xad] sm:$0xff] }
 0x4e0   :  { %v2976_v46 = vadd.f32 %v2792_v27, %v10084_v61  ;;  %7585 = vmatprep.mubr.msk.f32.mxu1 %vm8144_vm0, %v10205_v3  ;;  %v4335_v61 = vld [vmem:[#allocation3 + $0x400] sm:$0xff]  ;;  %v3451_v27 = vld [vmem:[#allocation2 + $0x9c] sm:$0xff] }
 0x4e1   :  { %v3227_v43 = vpop.f32.mrf.mxu0  ;;  %7768 = vmatmul.mubr.f32.gmra.mxu0 %v3876_v30  ;;  %v7229_v37 = vpop.f32.mrf.mxu1  ;;  %8076 = vmatpush3.msra.mxu1 %v4335_v61 }
 0x4e2   :  { %7770 = vmatprep.mubr.msk.f32.mxu0 %vm8144_vm0, %v10205_v3  ;;  %v10500_v18 = vadd.f32 %v3217_v15, %v2976_v46  ;;  %7897 = vmatpush3.msra.mxu0 %v4335_v61  ;;  %v3881_v61 = vld [vmem:[#allocation2 + $0xc5] sm:$0xff] }
 0x4e3   :  { %v7414_v14 = vpop.f32.mrf.mxu0  ;;  %v2797_v10 = vpop.f32.mrf.mxu1  ;;  %7586 = vmatmul.mubr.f32.gmra.mxu1 %v3450_v38  ;;  %v3452_v38 = vld [vmem:[#allocation2 + $0xa4] sm:$0xff] }
 0x4e4   :  { %v2977_v6 = vadd.f32 %v2797_v10, %v10092_v55  ;;  %7588 = vmatprep.mubr.msk.f32.mxu1 %vm8144_vm0, %v10205_v3 }
 0x4e5   :  { %v3232_v51 = vpop.f32.mrf.mxu0  ;;  %7771 = vmatmul.mubr.f32.gmra.mxu0 %v3877_v44  ;;  %v7232_v30 = vpop.f32.mrf.mxu1 }
 0x4e6   :  { %7773 = vmatprep.mubr.msk.f32.mxu0 %vm8144_vm0, %v10205_v3  ;;  %v10508_v15 = vadd.f32 %v3222_v19, %v2977_v6  ;;  %v3879_v19 = vld [vmem:[#allocation2 + $0xb5] sm:$0xff]  ;;  %v3880_v30 = vld [vmem:[#allocation2 + $0xbd] sm:$0xff] }
 0x4e7   :  { %v7417_v39 = vpop.f32.mrf.mxu0  ;;  %v2802_v14 = vpop.f32.mrf.mxu1  ;;  %7589 = vmatmul.mubr.f32.gmra.mxu1 %v3451_v27 }
 0x4e8   :  { %v2978_v55 = vadd.f32 %v2802_v14, %v10101_v57  ;;  %7591 = vmatprep.mubr.msk.f32.mxu1 %vm8144_vm0, %v10205_v3 }
 0x4e9   :  { %v3237_v46 = vpop.f32.mrf.mxu0  ;;  %7774 = vmatmul.mubr.f32.gmra.mxu0 %v3878_v47  ;;  %v7235_v58 = vpop.f32.mrf.mxu1 }
 0x4ea   :  { %7776 = vmatprep.mubr.msk.f32.mxu0 %vm8144_vm0, %v10205_v3  ;;  %v10518_v44 = vadd.f32 %v3227_v43, %v2978_v55  ;;  %v3453_v43 = vld [vmem:[#allocation2 + $0xac] sm:$0xff] }
 0x4eb   :  { %v7420_v37 = vpop.f32.mrf.mxu0  ;;  %v2807_v6 = vpop.f32.mrf.mxu1  ;;  %7592 = vmatmul.mubr.f32.gmra.mxu1 %v3452_v38 }
 0x4ec   :  { %v2979_v57 = vadd.f32 %v2807_v6, %v10109_v32  ;;  %7594 = vmatprep.mubr.msk.f32.mxu1 %vm8144_vm0, %v10205_v3  ;;  %v10534_v6 = vld [vmem:[#allocation2 + $0x188] sm:$0xff] }
 0x4ed   :  { %v3242_v10 = vpop.f32.mrf.mxu0  ;;  %7777 = vmatmul.mubr.f32.gmra.mxu0 %v3879_v19  ;;  %v7238_v39 = vpop.f32.mrf.mxu1 }
 0x4ee   :  { %7779 = vmatprep.mubr.msk.f32.mxu0 %vm8144_vm0, %v10205_v3  ;;  %v10525_v47 = vadd.f32 %v3232_v51, %v2979_v57  ;;  %v3454_v51 = vld [vmem:[#allocation2 + $0xb4] sm:$0xff]  ;;  %v3455_v39 = vld [vmem:[#allocation2 + $0xbc] sm:$0xff] }
 0x4ef   :  { %v7423_v60 = vpop.f32.mrf.mxu0  ;;  %v2812_v14 = vpop.f32.mrf.mxu1  ;;  %7595 = vmatmul.mubr.f32.gmra.mxu1 %v3453_v43 }
 0x4f0   :  { %v2980_v55 = vadd.f32 %v2812_v14, %v10117_v42  ;;  %7597 = vmatprep.mubr.msk.f32.mxu1 %vm8144_vm0, %v10205_v3  ;;  %v3882_v60 = vld [vmem:[#allocation2 + $0xcd] sm:$0xff] }
 0x4f1   :  { %v3247_v27 = vpop.f32.mrf.mxu0  ;;  %7780 = vmatmul.mubr.f32.gmra.mxu0 %v3880_v30  ;;  %v7241_v37 = vpop.f32.mrf.mxu1 }
 0x4f2   :  { %7782 = vmatprep.mubr.msk.f32.mxu0 %vm8144_vm0, %v10205_v3  ;;  %v10532_v58 = vadd.f32 %v3237_v46, %v2980_v55 }
 0x4f3   :  { %v7426_v32 = vpop.f32.mrf.mxu0  ;;  %v2817_v38 = vpop.f32.mrf.mxu1  ;;  %7598 = vmatmul.mubr.f32.gmra.mxu1 %v3454_v51 }
 0x4f4   :  { %v2981_v42 = vadd.f32 %v2817_v38, %v10125_v25  ;;  %7600 = vmatprep.mubr.msk.f32.mxu1 %vm8144_vm0, %v10534_v6  ;;  %v3883_v32 = vld [vmem:[#allocation2 + $0xd5] sm:$0xff] }
 0x4f5   :  { %v3252_v19 = vpop.f32.mrf.mxu0  ;;  %7783 = vmatmul.mubr.f32.gmra.mxu0 %v3881_v61  ;;  %v7244_v57 = vpop.f32.mrf.mxu1 }
 0x4f6   :  { %7785 = vmatprep.mubr.msk.f32.mxu0 %vm8144_vm0, %v10534_v6  ;;  %v10541_v46 = vadd.f32 %v3242_v10, %v2981_v42  ;;  %v3456_v10 = vld [vmem:[#allocation2 + $0xc4] sm:$0xff] }
 0x4f7   :  { %v7429_v3 = vpop.f32.mrf.mxu0  ;;  %v2822_v43 = vpop.f32.mrf.mxu1  ;;  %7601 = vmatmul.mubr.f32.gmra.mxu1 %v3455_v39 }
 0x4f8   :  { %v2982_v14 = vadd.f32 %v2822_v43, %v10133_v52  ;;  %7603 = vmatprep.mubr.msk.f32.mxu1 %vm8144_vm0, %v10534_v6  ;;  %v3884_v3 = vld [vmem:[#allocation2 + $0xdd] sm:$0xff] }
 0x4f9   :  { %v3257_v30 = vpop.f32.mrf.mxu0  ;;  %7786 = vmatmul.mubr.f32.gmra.mxu0 %v3882_v60  ;;  %v7247_v55 = vpop.f32.mrf.mxu1 }
 0x4fa   :  { %7788 = vmatprep.mubr.msk.f32.mxu0 %vm8144_vm0, %v10534_v6  ;;  %v10548_v37 = vadd.f32 %v3247_v27, %v2982_v14  ;;  %v3457_v27 = vld [vmem:[#allocation2 + $0xcc] sm:$0xff] }
 0x4fb   :  { %v7432_v25 = vpop.f32.mrf.mxu0  ;;  %v2827_v51 = vpop.f32.mrf.mxu1  ;;  %7604 = vmatmul.mubr.f32.gmra.mxu1 %v3456_v10 }
 0x4fc   :  { %v2983_v38 = vadd.f32 %v2827_v51, %v10140_v33  ;;  %7606 = vmatprep.mubr.msk.f32.mxu1 %vm8144_vm0, %v10534_v6  ;;  %v3885_v25 = vld [vmem:[#allocation2 + $0xe5] sm:$0xff] }
 0x4fd   :  { %v3262_v61 = vpop.f32.mrf.mxu0  ;;  %7789 = vmatmul.mubr.f32.gmra.mxu0 %v3883_v32  ;;  %v7250_v42 = vpop.f32.mrf.mxu1 }
 0x4fe   :  { %7791 = vmatprep.mubr.msk.f32.mxu0 %vm8144_vm0, %v10534_v6  ;;  %v10555_v57 = vadd.f32 %v3252_v19, %v2983_v38  ;;  %v3458_v19 = vld [vmem:[#allocation2 + $0xd4] sm:$0xff] }
 0x4ff   :  { %v7435_v52 = vpop.f32.mrf.mxu0  ;;  %v2832_v39 = vpop.f32.mrf.mxu1  ;;  %7607 = vmatmul.mubr.f32.gmra.mxu1 %v3457_v27 }
 0x500   :  { %v2984_v43 = vadd.f32 %v2832_v39, %v10147_v12  ;;  %7609 = vmatprep.mubr.msk.f32.mxu1 %vm8144_vm0, %v10534_v6  ;;  %v3886_v52 = vld [vmem:[#allocation2 + $0xed] sm:$0xff] }
 0x501   :  { %v3267_v60 = vpop.f32.mrf.mxu0  ;;  %7792 = vmatmul.mubr.f32.gmra.mxu0 %v3884_v3  ;;  %v7253_v14 = vpop.f32.mrf.mxu1 }
 0x502   :  { %7794 = vmatprep.mubr.msk.f32.mxu0 %vm8144_vm0, %v10534_v6  ;;  %v10562_v55 = vadd.f32 %v3257_v30, %v2984_v43  ;;  %v3459_v30 = vld [vmem:[#allocation2 + $0xdc] sm:$0xff] }
 0x503   :  { %v7438_v33 = vpop.f32.mrf.mxu0  ;;  %v2837_v10 = vpop.f32.mrf.mxu1  ;;  %7610 = vmatmul.mubr.f32.gmra.mxu1 %v3458_v19 }
 0x504   :  { %v2985_v51 = vadd.f32 %v2837_v10, %v10154_v41  ;;  %7612 = vmatprep.mubr.msk.f32.mxu1 %vm8144_vm0, %v10534_v6  ;;  %v3887_v33 = vld [vmem:[#allocation2 + $0xf5] sm:$0xff] }
 0x505   :  { %v3272_v32 = vpop.f32.mrf.mxu0  ;;  %7795 = vmatmul.mubr.f32.gmra.mxu0 %v3885_v25  ;;  %v7256_v38 = vpop.f32.mrf.mxu1 }
 0x506   :  { %7797 = vmatprep.mubr.msk.f32.mxu0 %vm8144_vm0, %v10534_v6  ;;  %v10569_v42 = vadd.f32 %v3262_v61, %v2985_v51  ;;  %v3460_v61 = vld [vmem:[#allocation2 + $0xe4] sm:$0xff] }
 0x507   :  { %v7441_v12 = vpop.f32.mrf.mxu0  ;;  %v2842_v27 = vpop.f32.mrf.mxu1  ;;  %7613 = vmatmul.mubr.f32.gmra.mxu1 %v3459_v30 }
 0x508   :  { %v2986_v39 = vadd.f32 %v2842_v27, %v10161_v24  ;;  %7615 = vmatprep.mubr.msk.f32.mxu1 %vm8144_vm0, %v10534_v6  ;;  %v3888_v12 = vld [vmem:[#allocation2 + $0xfd] sm:$0xff] }
 0x509   :  { %v3277_v3 = vpop.f32.mrf.mxu0  ;;  %7798 = vmatmul.mubr.f32.gmra.mxu0 %v3886_v52  ;;  %v7259_v43 = vpop.f32.mrf.mxu1 }
 0x50a   :  { %7800 = vmatprep.mubr.msk.f32.mxu0 %vm8144_vm0, %v10534_v6  ;;  %v10576_v14 = vadd.f32 %v3267_v60, %v2986_v39  ;;  %v3461_v60 = vld [vmem:[#allocation2 + $0xec] sm:$0xff] }
 0x50b   :  { %v7444_v41 = vpop.f32.mrf.mxu0  ;;  %v2847_v19 = vpop.f32.mrf.mxu1  ;;  %7616 = vmatmul.mubr.f32.gmra.mxu1 %v3460_v61 }
 0x50c   :  { %v2987_v10 = vadd.f32 %v2847_v19, %v10168_v13  ;;  %7618 = vmatprep.mubr.msk.f32.mxu1 %vm8144_vm0, %v10534_v6  ;;  %v3889_v41 = vld [vmem:[#allocation2 + $0x105] sm:$0xff] }
 0x50d   :  { %v3282_v25 = vpop.f32.mrf.mxu0  ;;  %7801 = vmatmul.mubr.f32.gmra.mxu0 %v3887_v33  ;;  %v7262_v51 = vpop.f32.mrf.mxu1 }
 0x50e   :  { %7803 = vmatprep.mubr.msk.f32.mxu0 %vm8144_vm0, %v10534_v6  ;;  %v10583_v38 = vadd.f32 %v3272_v32, %v2987_v10  ;;  %v3462_v32 = vld [vmem:[#allocation2 + $0xf4] sm:$0xff] }
 0x50f   :  { %v7447_v24 = vpop.f32.mrf.mxu0  ;;  %v2852_v30 = vpop.f32.mrf.mxu1  ;;  %7619 = vmatmul.mubr.f32.gmra.mxu1 %v3461_v60 }
 0x510   :  { %v2988_v27 = vadd.f32 %v2852_v30, %v10175_v40  ;;  %7621 = vmatprep.mubr.msk.f32.mxu1 %vm8144_vm0, %v10534_v6  ;;  %v3890_v24 = vld [vmem:[#allocation2 + $0x10d] sm:$0xff] }
 0x511   :  { %v3287_v52 = vpop.f32.mrf.mxu0  ;;  %7804 = vmatmul.mubr.f32.gmra.mxu0 %v3888_v12  ;;  %v7265_v39 = vpop.f32.mrf.mxu1 }
 0x512   :  { %7806 = vmatprep.mubr.msk.f32.mxu0 %vm8144_vm0, %v10534_v6  ;;  %v10590_v43 = vadd.f32 %v3277_v3, %v2988_v27  ;;  %v3463_v3 = vld [vmem:[#allocation2 + $0xfc] sm:$0xff] }
 0x513   :  { %v7450_v13 = vpop.f32.mrf.mxu0  ;;  %v2857_v61 = vpop.f32.mrf.mxu1  ;;  %7622 = vmatmul.mubr.f32.gmra.mxu1 %v3462_v32 }
 0x514   :  { %v2989_v19 = vadd.f32 %v2857_v61, %v10182_v35  ;;  %7624 = vmatprep.mubr.msk.f32.mxu1 %vm8144_vm0, %v10534_v6  ;;  %v3891_v13 = vld [vmem:[#allocation2 + $0x115] sm:$0xff] }
 0x515   :  { %v3292_v33 = vpop.f32.mrf.mxu0  ;;  %7807 = vmatmul.mubr.f32.gmra.mxu0 %v3889_v41  ;;  %v7268_v10 = vpop.f32.mrf.mxu1 }
 0x516   :  { %7809 = vmatprep.mubr.msk.f32.mxu0 %vm8144_vm0, %v10534_v6  ;;  %v10597_v51 = vadd.f32 %v3282_v25, %v2989_v19  ;;  %v3464_v25 = vld [vmem:[#allocation2 + $0x104] sm:$0xff] }
 0x517   :  { %v7453_v40 = vpop.f32.mrf.mxu0  ;;  %v2862_v60 = vpop.f32.mrf.mxu1  ;;  %7625 = vmatmul.mubr.f32.gmra.mxu1 %v3463_v3 }
 0x518   :  { %v2990_v30 = vadd.f32 %v2862_v60, %v10189_v8  ;;  %7627 = vmatprep.mubr.msk.f32.mxu1 %vm8144_vm0, %v10534_v6  ;;  %v3892_v40 = vld [vmem:[#allocation2 + $0x11d] sm:$0xff] }
 0x519   :  { %v3297_v12 = vpop.f32.mrf.mxu0  ;;  %7810 = vmatmul.mubr.f32.gmra.mxu0 %v3890_v24  ;;  %v7271_v27 = vpop.f32.mrf.mxu1 }
 0x51a   :  { %7812 = vmatprep.mubr.msk.f32.mxu0 %vm8144_vm0, %v10534_v6  ;;  %v10604_v39 = vadd.f32 %v3287_v52, %v2990_v30  ;;  %v3465_v52 = vld [vmem:[#allocation2 + $0x10c] sm:$0xff] }
 0x51b   :  { %v7456_v35 = vpop.f32.mrf.mxu0  ;;  %v2867_v32 = vpop.f32.mrf.mxu1  ;;  %7628 = vmatmul.mubr.f32.gmra.mxu1 %v3464_v25  ;;  %v4710_v25 = vld [vmem:[%s12235_s7] sm:$0xff] }
 0x51c   :  { %v2991_v61 = vadd.f32 %v2867_v32, %v10196_v31  ;;  %7630 = vmatprep.mubr.msk.f32.mxu1 %vm8144_vm0, %v10534_v6  ;;  %v3893_v35 = vld [vmem:[#allocation2 + $0x125] sm:$0xff]  ;;  %vm4759_vm3 = vcmp.gt.f32.partialorder %v4710_v25, 0.5  ;;  %v3895_v25 = vld [vmem:[#allocation2 + $0x135] sm:$0xff] }
 0x51d   :  { %v3302_v41 = vpop.f32.mrf.mxu0  ;;  %7813 = vmatmul.mubr.f32.gmra.mxu0 %v3891_v13  ;;  %v7274_v19 = vpop.f32.mrf.mxu1 }
 0x51e   :  { %7815 = vmatprep.mubr.msk.f32.mxu0 %vm8144_vm0, %v10534_v6  ;;  %v10611_v10 = vadd.f32 %v3292_v33, %v2991_v61  ;;  %v3466_v33 = vld [vmem:[#allocation2 + $0x114] sm:$0xff]  ;;  %v8145_v61 = vmov 0  }
 0x51f   :  { %v7459_v8 = vpop.f32.mrf.mxu0  ;;  %v2872_v3 = vpop.f32.mrf.mxu1  ;;  %7631 = vmatmul.mubr.f32.gmra.mxu1 %v3465_v52  ;;  %8084 = vset.pattern.permute.xlu0 %v8145_v61 }
 0x520   :  { %v2992_v60 = vadd.f32 %v2872_v3, %v10203_v36  ;;  %7633 = vmatprep.mubr.msk.f32.mxu1 %vm8144_vm0, %v10534_v6  ;;  %v4808_v8 = vsel %vm4759_vm3, 1, %v8145_v61  ;;  %8085 = vset.pattern.permute.xlu1 %v8145_v61  ;;  %v3467_v3 = vld [vmem:[#allocation2 + $0x11c] sm:$0xff] }
 0x521   :  { %v3307_v24 = vpop.f32.mrf.mxu0  ;;  %7816 = vmatmul.mubr.f32.gmra.mxu0 %v3892_v40  ;;  %v7277_v30 = vpop.f32.mrf.mxu1  ;;  %v3894_v40 = vld [vmem:[#allocation2 + $0x12d] sm:$0xff]  ;;  %4858 = vperm.xlu0 %8084, %v4808_v8  }
 0x522   :  { %7818 = vmatprep.mubr.msk.f32.mxu0 %vm8144_vm0, %v10534_v6  ;;  %v10618_v27 = vadd.f32 %v3297_v12, %v2992_v60  ;;  %v4712_v8 = vld [vmem:[%s12235_s7 + $0x10] sm:$0xff] }
 0x523   :  { %v7462_v31 = vpop.f32.mrf.mxu0  ;;  %v2877_v32 = vpop.f32.mrf.mxu1  ;;  %7634 = vmatmul.mubr.f32.gmra.mxu1 %v3466_v33  ;;  %vm4761_vm5 = vcmp.gt.f32.partialorder %v4712_v8, 0.5 }
 0x524   :  { %v2993_v36 = vadd.f32 %v2877_v32, %v10212_v16  ;;  %7636 = vmatprep.mubr.msk.f32.mxu1 %vm8144_vm0, %v10534_v6  ;;  %v4711_v16 = vld [vmem:[%s12235_s7 + $0x8] sm:$0xff] }
 0x525   :  { %v3312_v13 = vpop.f32.mrf.mxu0  ;;  %7819 = vmatmul.mubr.f32.gmra.mxu0 %v3893_v35  ;;  %v7280_v19 = vpop.f32.mrf.mxu1  ;;  %vm4760_vm4 = vcmp.gt.f32.partialorder %v4711_v16, 0.5 }
 0x526   :  { %7821 = vmatprep.mubr.msk.f32.mxu0 %vm8144_vm0, %v10534_v6  ;;  %v10631_v52 = vadd.f32 %v3302_v41, %v2993_v36  ;;  %v4809_v35 = vsel %vm4760_vm4, 1, %v8145_v61  ;;  %v3468_v36 = vld [vmem:[#allocation2 + $0x124] sm:$0xff] }
 0x527   :  { %v7465_v12 = vpop.f32.mrf.mxu0  ;;  %v2882_v31 = vpop.f32.mrf.mxu1  ;;  %7637 = vmatmul.mubr.f32.gmra.mxu1 %v3467_v3  ;;  %4861 = vperm.xlu0 %8084, %v4809_v35   ;;  %v4810_v3 = vsel %vm4761_vm5, 1, %v8145_v61  ;;  %v3469_v35 = vld [vmem:[#allocation2 + $0x12c] sm:$0xff] }
 0x528   :  { %v2994_v30 = vadd.f32 %v2882_v31, %v10219_v53  ;;  %7639 = vmatprep.mubr.msk.f32.mxu1 %vm8144_vm0, %v10534_v6  ;;  %v4714_v53 = vld [vmem:[%s12235_s7 + $0x20] sm:$0xff]  ;;  %4864 = vperm.xlu1 %8085, %v4810_v3  }
 0x529   :  { %v3317_v60 = vpop.f32.mrf.mxu0  ;;  %7822 = vmatmul.mubr.f32.gmra.mxu0 %v3894_v40  ;;  %v7283_v33 = vpop.f32.mrf.mxu1  ;;  %vm4763_vm6 = vcmp.gt.f32.partialorder %v4714_v53, 0.5 }
 0x52a   :  { %7824 = vmatprep.mubr.msk.f32.mxu0 %vm8144_vm0, %v10534_v6  ;;  %v10642_v32 = vadd.f32 %v3307_v24, %v2994_v30  ;;  %v4812_v16 = vsel %vm4763_vm6, 1, %v8145_v61  ;;  %v3896_v30 = vld [vmem:[#allocation2 + $0x13d] sm:$0xff] }
 0x52b   :  { %v7468_v41 = vpop.f32.mrf.mxu0  ;;  %v2887_v19 = vpop.f32.mrf.mxu1  ;;  %7640 = vmatmul.mubr.f32.gmra.mxu1 %v3468_v36  ;;  %4870 = vperm.xlu0 %8084, %v4812_v16   ;;  %v3470_v16 = vld [vmem:[#allocation2 + $0x134] sm:$0xff] }
 0x52c   :  { %v2995_v24 = vadd.f32 %v2887_v19, %v10226_v63  ;;  %7642 = vmatprep.mubr.msk.f32.mxu1 %vm8144_vm0, %v10534_v6  ;;  %v4713_v63 = vld [vmem:[%s12235_s7 + $0x18] sm:$0xff] }
 0x52d   :  { %v3322_v12 = vpop.f32.mrf.mxu0  ;;  %7825 = vmatmul.mubr.f32.gmra.mxu0 %v3895_v25  ;;  %v7286_v31 = vpop.f32.mrf.mxu1  ;;  %v4716_v25 = vld [vmem:[%s12235_s7 + $0x30] sm:$0xff]  ;;  %vm4762_vm7 = vcmp.gt.f32.partialorder %v4713_v63, 0.5 }
 0x52e   :  { %7827 = vmatprep.mubr.msk.f32.mxu0 %vm8144_vm0, %v10534_v6  ;;  %v10657_v41 = vadd.f32 %v3312_v13, %v2995_v24  ;;  %vm4765_vm8 = vcmp.gt.f32.partialorder %v4716_v25, 0.5  ;;  %v4811_v53 = vsel %vm4762_vm7, 1, %v8145_v61 }
 0x52f   :  { %v7471_v40 = vpop.f32.mrf.mxu0  ;;  %v2892_v36 = vpop.f32.mrf.mxu1  ;;  %7643 = vmatmul.mubr.f32.gmra.mxu1 %v3469_v35  ;;  %v4814_v19 = vsel %vm4765_vm8, 1, %v8145_v61  ;;  %4867 = vperm.xlu1 %8085, %v4811_v53  }
 0x530   :  { %v2996_v13 = vadd.f32 %v2892_v36, %v10233_v62  ;;  %7645 = vmatprep.mubr.msk.f32.mxu1 %vm8144_vm0, %v10534_v6  ;;  %v3897_v40 = vld [vmem:[#allocation2 + $0x145] sm:$0xff]  ;;  %4876 = vperm.xlu0 %8084, %v4814_v19   ;;  %v3471_v19 = vld [vmem:[#allocation2 + $0x13c] sm:$0xff] }
 0x531   :  { %v3327_v33 = vpop.f32.mrf.mxu0  ;;  %7828 = vmatmul.mubr.f32.gmra.mxu0 %v3896_v30  ;;  %v7289_v24 = vpop.f32.mrf.mxu1  ;;  %v4715_v62 = vld [vmem:[%s12235_s7 + $0x28] sm:$0xff]  ;;  %v4718_v30 = vld [vmem:[%s12235_s7 + $0x40] sm:$0xff] }
 0x532   :  { %7830 = vmatprep.mubr.msk.f32.mxu0 %vm8144_vm0, %v10534_v6  ;;  %v10672_v3 = vadd.f32 %v3317_v60, %v2996_v13  ;;  %vm4764_vm9 = vcmp.gt.f32.partialorder %v4715_v62, 0.5  ;;  %vm4767_vm10 = vcmp.gt.f32.partialorder %v4718_v30, 0.5 }
 0x533   :  { %v7474_v8 = vpop.f32.mrf.mxu0  ;;  %v2897_v35 = vpop.f32.mrf.mxu1  ;;  %7646 = vmatmul.mubr.f32.gmra.mxu1 %v3470_v16  ;;  %v4813_v25 = vsel %vm4764_vm9, 1, %v8145_v61  ;;  %v4816_v36 = vsel %vm4767_vm10, 1, %v8145_v61 }
 0x534   :  { %v2997_v60 = vadd.f32 %v2897_v35, %v10240_v22  ;;  %7648 = vmatprep.mubr.msk.f32.mxu1 %vm8144_vm0, %v10534_v6  ;;  %v3898_v8 = vld [vmem:[#allocation2 + $0x14d] sm:$0xff]  ;;  %4873 = vperm.xlu1 %8085, %v4813_v25   ;;  %v4717_v22 = vld [vmem:[%s12235_s7 + $0x38] sm:$0xff] }
 0x535   :  { %v3332_v31 = vpop.f32.mrf.mxu0  ;;  %7831 = vmatmul.mubr.f32.gmra.mxu0 %v3897_v40  ;;  %v7292_v13 = vpop.f32.mrf.mxu1  ;;  %4882 = vperm.xlu0 %8084, %v4816_v36   ;;  %v4720_v40 = vld [vmem:[%s12235_s7 + $0x50] sm:$0xff]  ;;  %vm4766_vm11 = vcmp.gt.f32.partialorder %v4717_v22, 0.5  ;;  %v3472_v36 = vld [vmem:[#allocation2 + $0x144] sm:$0xff] }
 0x536   :  { %7833 = vmatprep.mubr.msk.f32.mxu0 %vm8144_vm0, %v10534_v6  ;;  %v10687_v53 = vadd.f32 %v3322_v12, %v2997_v60  ;;  %vm4769_vm12 = vcmp.gt.f32.partialorder %v4720_v40, 0.5  ;;  %v4815_v30 = vsel %vm4766_vm11, 1, %v8145_v61 }
 0x537   :  { %v7477_v63 = vpop.f32.mrf.mxu0  ;;  %v2902_v16 = vpop.f32.mrf.mxu1  ;;  %7649 = vmatmul.mubr.f32.gmra.mxu1 %v3471_v19  ;;  %v4818_v35 = vsel %vm4769_vm12, 1, %v8145_v61 }
 0x538   :  { %v2998_v12 = vadd.f32 %v2902_v16, %v10247_v17  ;;  %7651 = vmatprep.mubr.msk.f32.mxu1 %vm8144_vm0, %v10534_v6  ;;  %v3899_v63 = vld [vmem:[#allocation2 + $0x155] sm:$0xff]  ;;  %4879 = vperm.xlu1 %8085, %v4815_v30   ;;  %v4719_v17 = vld [vmem:[%s12235_s7 + $0x48] sm:$0xff] }
 0x539   :  { %v3337_v24 = vpop.f32.mrf.mxu0  ;;  %7834 = vmatmul.mubr.f32.gmra.mxu0 %v3898_v8  ;;  %v7295_v60 = vpop.f32.mrf.mxu1  ;;  %4888 = vperm.xlu0 %8084, %v4818_v35   ;;  %v4722_v8 = vld [vmem:[%s12235_s7 + $0x60] sm:$0xff]  ;;  %vm4768_vm13 = vcmp.gt.f32.partialorder %v4719_v17, 0.5  ;;  %v3473_v35 = vld [vmem:[#allocation2 + $0x14c] sm:$0xff] }
 0x53a   :  { %7836 = vmatprep.mubr.msk.f32.mxu0 %vm8144_vm0, %v10534_v6  ;;  %v10702_v25 = vadd.f32 %v3327_v33, %v2998_v12  ;;  %vm4771_vm14 = vcmp.gt.f32.partialorder %v4722_v8, 0.5  ;;  %v4817_v40 = vsel %vm4768_vm13, 1, %v8145_v61 }
 0x53b   :  { %v7480_v62 = vpop.f32.mrf.mxu0  ;;  %v2907_v19 = vpop.f32.mrf.mxu1  ;;  %7652 = vmatmul.mubr.f32.gmra.mxu1 %v3472_v36  ;;  %v4820_v16 = vsel %vm4771_vm14, 1, %v8145_v61 }
 0x53c   :  { %v2999_v33 = vadd.f32 %v2907_v19, %v10254_v45  ;;  %7654 = vmatprep.mubr.msk.f32.mxu1 %vm8144_vm0, %v10534_v6  ;;  %v3900_v62 = vld [vmem:[#allocation2 + $0x15d] sm:$0xff]  ;;  %4885 = vperm.xlu1 %8085, %v4817_v40  }
 0x53d   :  { %v3342_v13 = vpop.f32.mrf.mxu0  ;;  %7837 = vmatmul.mubr.f32.gmra.mxu0 %v3899_v63  ;;  %v7298_v12 = vpop.f32.mrf.mxu1  ;;  %4894 = vperm.xlu0 %8084, %v4820_v16   ;;  %v4721_v45 = vld [vmem:[%s12235_s7 + $0x58] sm:$0xff]  ;;  %v4724_v63 = vld [vmem:[%s12235_s7 + $0x70] sm:$0xff] }
 0x53e   :  { %7839 = vmatprep.mubr.msk.f32.mxu0 %vm8144_vm0, %v10534_v6  ;;  %v10717_v30 = vadd.f32 %v3332_v31, %v2999_v33  ;;  %vm4770_vm15 = vcmp.gt.f32.partialorder %v4721_v45, 0.5  ;;  %vm4773_vm1 = vcmp.gt.f32.partialorder %v4724_v63, 0.5  ;;  %v3474_v16 = vld [vmem:[#allocation2 + $0x154] sm:$0xff] }
 0x53f   :  { %v7483_v22 = vpop.f32.mrf.mxu0  ;;  %v2912_v36 = vpop.f32.mrf.mxu1  ;;  %7655 = vmatmul.mubr.f32.gmra.mxu1 %v3473_v35  ;;  %v4819_v8 = vsel %vm4770_vm15, 1, %v8145_v61  ;;  %v4822_v19 = vsel %vm4773_vm1, 1, %v8145_v61 }
 0x540   :  { %v3000_v31 = vadd.f32 %v2912_v36, %v10261_v20  ;;  %7657 = vmatprep.mubr.msk.f32.mxu1 %vm8144_vm0, %v10534_v6  ;;  %v3901_v22 = vld [vmem:[#allocation2 + $0x165] sm:$0xff]  ;;  %4891 = vperm.xlu1 %8085, %v4819_v8  }
 0x541   :  { %v3347_v60 = vpop.f32.mrf.mxu0  ;;  %7840 = vmatmul.mubr.f32.gmra.mxu0 %v3900_v62  ;;  %v7301_v33 = vpop.f32.mrf.mxu1  ;;  %4900 = vperm.xlu0 %8084, %v4822_v19   ;;  %v4723_v20 = vld [vmem:[%s12235_s7 + $0x68] sm:$0xff]  ;;  %v4726_v62 = vld [vmem:[%s12235_s7 + $0x80] sm:$0xff] }
 0x542   :  { %7842 = vmatprep.mubr.msk.f32.mxu0 %vm8144_vm0, %v10534_v6  ;;  %v10732_v40 = vadd.f32 %v3337_v24, %v3000_v31  ;;  %vm4772_vm2 = vcmp.gt.f32.partialorder %v4723_v20, 0.5  ;;  %vm4775_vm3 = vcmp.gt.f32.partialorder %v4726_v62, 0.5  ;;  %v3475_v19 = vld [vmem:[#allocation2 + $0x15c] sm:$0xff] }
 0x543   :  { %v7486_v17 = vpop.f32.mrf.mxu0  ;;  %v2917_v35 = vpop.f32.mrf.mxu1  ;;  %7658 = vmatmul.mubr.f32.gmra.mxu1 %v3474_v16  ;;  %v4821_v63 = vsel %vm4772_vm2, 1, %v8145_v61  ;;  %v4824_v36 = vsel %vm4775_vm3, 1, %v8145_v61 }
 0x544   :  { %v3001_v24 = vadd.f32 %v2917_v35, %v10268_v34  ;;  %7660 = vmatprep.mubr.msk.f32.mxu1 %vm8144_vm0, %v10534_v6  ;;  %v3902_v17 = vld [vmem:[#allocation2 + $0x16d] sm:$0xff]  ;;  %4897 = vperm.xlu1 %8085, %v4821_v63   ;;  %v4725_v34 = vld [vmem:[%s12235_s7 + $0x78] sm:$0xff] }
 0x545   :  { %v3352_v12 = vpop.f32.mrf.mxu0  ;;  %7843 = vmatmul.mubr.f32.gmra.mxu0 %v3901_v22  ;;  %v7304_v31 = vpop.f32.mrf.mxu1  ;;  %4906 = vperm.xlu0 %8084, %v4824_v36   ;;  %v4728_v22 = vld [vmem:[%s12235_s7 + $0x90] sm:$0xff]  ;;  %vm4774_vm4 = vcmp.gt.f32.partialorder %v4725_v34, 0.5  ;;  %v3476_v36 = vld [vmem:[#allocation2 + $0x164] sm:$0xff] }
 0x546   :  { %7845 = vmatprep.mubr.msk.f32.mxu0 %vm8144_vm0, %v10534_v6  ;;  %v10747_v8 = vadd.f32 %v3342_v13, %v3001_v24  ;;  %vm4777_vm5 = vcmp.gt.f32.partialorder %v4728_v22, 0.5  ;;  %v4823_v62 = vsel %vm4774_vm4, 1, %v8145_v61 }
 0x547   :  { %v7489_v45 = vpop.f32.mrf.mxu0  ;;  %v2922_v16 = vpop.f32.mrf.mxu1  ;;  %7661 = vmatmul.mubr.f32.gmra.mxu1 %v3475_v19  ;;  %v4826_v35 = vsel %vm4777_vm5, 1, %v8145_v61 }
 0x548   :  { %v3002_v13 = vadd.f32 %v2922_v16, %v10275_v59  ;;  %7663 = vmatprep.mubr.msk.f32.mxu1 %vm8144_vm0, %v10534_v6  ;;  %v3903_v45 = vld [vmem:[#allocation2 + $0x175] sm:$0xff]  ;;  %4903 = vperm.xlu1 %8085, %v4823_v62   ;;  %v4727_v59 = vld [vmem:[%s12235_s7 + $0x88] sm:$0xff] }
 0x549   :  { %v3357_v33 = vpop.f32.mrf.mxu0  ;;  %7846 = vmatmul.mubr.f32.gmra.mxu0 %v3902_v17  ;;  %v7307_v24 = vpop.f32.mrf.mxu1  ;;  %4912 = vperm.xlu0 %8084, %v4826_v35   ;;  %v4730_v17 = vld [vmem:[%s12235_s7 + $0xa0] sm:$0xff]  ;;  %vm4776_vm6 = vcmp.gt.f32.partialorder %v4727_v59, 0.5  ;;  %v3477_v35 = vld [vmem:[#allocation2 + $0x16c] sm:$0xff] }
 0x54a   :  { %7848 = vmatprep.mubr.msk.f32.mxu0 %vm8144_vm0, %v10534_v6  ;;  %v10762_v63 = vadd.f32 %v3347_v60, %v3002_v13  ;;  %vm4779_vm7 = vcmp.gt.f32.partialorder %v4730_v17, 0.5  ;;  %v4825_v22 = vsel %vm4776_vm6, 1, %v8145_v61 }
 0x54b   :  { %v7492_v20 = vpop.f32.mrf.mxu0  ;;  %v2927_v19 = vpop.f32.mrf.mxu1  ;;  %7664 = vmatmul.mubr.f32.gmra.mxu1 %v3476_v36  ;;  %v4828_v16 = vsel %vm4779_vm7, 1, %v8145_v61 }
 0x54c   :  { %v3003_v60 = vadd.f32 %v2927_v19, %v10282_v23  ;;  %7666 = vmatprep.mubr.msk.f32.mxu1 %vm8144_vm0, %v10534_v6  ;;  %v3904_v20 = vld [vmem:[#allocation2 + $0x17d] sm:$0xff]  ;;  %4909 = vperm.xlu1 %8085, %v4825_v22  }
 0x54d   :  { %v3362_v31 = vpop.f32.mrf.mxu0  ;;  %7849 = vmatmul.mubr.f32.gmra.mxu0 %v3903_v45  ;;  %v7310_v13 = vpop.f32.mrf.mxu1  ;;  %4918 = vperm.xlu0 %8084, %v4828_v16   ;;  %v4729_v23 = vld [vmem:[%s12235_s7 + $0x98] sm:$0xff]  ;;  %v4732_v45 = vld [vmem:[%s12235_s7 + $0xb0] sm:$0xff] }
 0x54e   :  { %7851 = vmatprep.mubr.msk.f32.mxu0 %vm8144_vm0, %v10534_v6  ;;  %v10777_v62 = vadd.f32 %v3352_v12, %v3003_v60  ;;  %vm4778_vm8 = vcmp.gt.f32.partialorder %v4729_v23, 0.5  ;;  %vm4781_vm9 = vcmp.gt.f32.partialorder %v4732_v45, 0.5  ;;  %v3478_v16 = vld [vmem:[#allocation2 + $0x174] sm:$0xff] }
 0x54f   :  { %v7495_v34 = vpop.f32.mrf.mxu0  ;;  %v2932_v36 = vpop.f32.mrf.mxu1  ;;  %7667 = vmatmul.mubr.f32.gmra.mxu1 %v3477_v35  ;;  %v4827_v17 = vsel %vm4778_vm8, 1, %v8145_v61  ;;  %v4830_v19 = vsel %vm4781_vm9, 1, %v8145_v61  ;;  %v3906_v23 = vld [vmem:[#allocation2 + $0x18d] sm:$0xff] }
 0x550   :  { %v3004_v12 = vadd.f32 %v2932_v36, %v10289_v56  ;;  %7669 = vmatprep.mubr.msk.f32.mxu1 %vm8144_vm0, %v10534_v6  ;;  %v3905_v34 = vld [vmem:[#allocation2 + $0x185] sm:$0xff]  ;;  %4915 = vperm.xlu1 %8085, %v4827_v17  }
 0x551   :  { %v3367_v24 = vpop.f32.mrf.mxu0  ;;  %7852 = vmatmul.mubr.f32.gmra.mxu0 %v3904_v20  ;;  %v7313_v60 = vpop.f32.mrf.mxu1  ;;  %4924 = vperm.xlu0 %8084, %v4830_v19   ;;  %v4731_v56 = vld [vmem:[%s12235_s7 + $0xa8] sm:$0xff]  ;;  %v4734_v20 = vld [vmem:[%s12235_s7 + $0xc0] sm:$0xff] }
 0x552   :  { %7854 = vmatprep.mubr.msk.f32.mxu0 %vm8144_vm0, %v10534_v6  ;;  %v10792_v22 = vadd.f32 %v3357_v33, %v3004_v12  ;;  %vm4780_vm10 = vcmp.gt.f32.partialorder %v4731_v56, 0.5  ;;  %vm4783_vm11 = vcmp.gt.f32.partialorder %v4734_v20, 0.5  ;;  %v3479_v19 = vld [vmem:[#allocation2 + $0x17c] sm:$0xff] }
 0x553   :  { %v7498_v59 = vpop.f32.mrf.mxu0  ;;  %v2937_v35 = vpop.f32.mrf.mxu1  ;;  %7670 = vmatmul.mubr.f32.gmra.mxu1 %v3478_v16  ;;  %v4829_v36 = vsel %vm4780_vm10, 1, %v8145_v61  ;;  %v4832_v12 = vsel %vm4783_vm11, 1, %v8145_v61  ;;  %v3907_v56 = vld [vmem:[#allocation2 + $0x195] sm:$0xff] }
 0x554   :  { %v3005_v33 = vadd.f32 %v2937_v35, %v10296_v26  ;;  %7672 = vmatprep.mubr.msk.f32.mxu1 %vm8144_vm0, %v10534_v6  ;;  %4921 = vperm.xlu1 %8085, %v4829_v36   ;;  %v4733_v26 = vld [vmem:[%s12235_s7 + $0xb8] sm:$0xff]  ;;  %v3480_v36 = vld [vmem:[#allocation2 + $0x184] sm:$0xff] }
 0x555   :  { %v3372_v13 = vpop.f32.mrf.mxu0  ;;  %7855 = vmatmul.mubr.f32.gmra.mxu0 %v3905_v34  ;;  %v7316_v59 = vpop.f32.mrf.mxu1  ;;  %4930 = vperm.xlu0 %8084, %v4832_v12   ;;  %v4736_v34 = vld [vmem:[%s12235_s7 + $0xd0] sm:$0xff]  ;;  %vm4782_vm12 = vcmp.gt.f32.partialorder %v4733_v26, 0.5  ;;  %v3908_v26 = vld [vmem:[#allocation2 + $0x19d] sm:$0xff] }
 0x556   :  { %7857 = vmatprep.mubr.msk.f32.mxu0 %vm8144_vm0, %v10534_v6  ;;  %v10807_v17 = vadd.f32 %v3362_v31, %v3005_v33  ;;  %vm4785_vm13 = vcmp.gt.f32.partialorder %v4736_v34, 0.5  ;;  %v4831_v35 = vsel %vm4782_vm12, 1, %v8145_v61  ;;  %v4738_v59 = vld [vmem:[%s12235_s7 + $0xe0] sm:$0xff]  ;;  %v3481_v34 = vld [vmem:[#allocation2 + $0x18c] sm:$0xff] }
 0x557   :  { %v7501_v45 = vpop.f32.mrf.mxu0  ;;  %v2942_v16 = vpop.f32.mrf.mxu1  ;;  %7673 = vmatmul.mubr.f32.gmra.mxu1 %v3479_v19  ;;  %vm4787_vm15 = vcmp.gt.f32.partialorder %v4738_v59, 0.5 }
 0x558   :  { %v3006_v31 = vadd.f32 %v2942_v16, %v10303_v5  ;;  %7675 = vmatprep.mubr.msk.f32.mxu1 %vm8144_vm0, %v10534_v6  ;;  %4927 = vperm.xlu1 %8085, %v4831_v35   ;;  %v4735_v5 = vld [vmem:[%s12235_s7 + $0xc8] sm:$0xff] }
 0x559   :  { %v3377_v60 = vpop.f32.mrf.mxu0  ;;  %7858 = vmatmul.mubr.f32.gmra.mxu0 %v3906_v23  ;;  %v4834_v23 = vsel %vm4785_vm13, 1, %v8145_v61  ;;  %v7319_v33 = vpop.f32.mrf.mxu1  ;;  %vm4784_vm14 = vcmp.gt.f32.partialorder %v4735_v5, 0.5  ;;  %v3482_v5 = vld [vmem:[#allocation2 + $0x194] sm:$0xff] }
 0x55a   :  { %7860 = vmatprep.mubr.msk.f32.mxu0 %vm8144_vm0, %v10534_v6  ;;  %4936 = vperm.xlu0 %8084, %v4834_v23   ;;  %v10822_v45 = vadd.f32 %v3367_v24, %v3006_v31  ;;  %v4836_v31 = vsel %vm4787_vm15, 1, %v8145_v61  ;;  %v4740_v33 = vld [vmem:[%s12235_s7 + $0xf0] sm:$0xff] }
 0x55b   :  { %v7504_v20 = vpop.f32.mrf.mxu0  ;;  %v2947_v19 = vpop.f32.mrf.mxu1  ;;  %7676 = vmatmul.mubr.f32.gmra.mxu1 %v3480_v36  ;;  %vm4789_vm2 = vcmp.gt.f32.partialorder %v4740_v33, 0.5  ;;  %v3483_v33 = vld [vmem:[#allocation2 + $0x19c] sm:$0xff] }
 0x55c   :  { %v3007_v24 = vadd.f32 %v2947_v19, %v10311_v7  ;;  %7678 = vmatprep.mubr.msk.f32.mxu1 %vm8144_vm0, %v10534_v6  ;;  %v4737_v7 = vld [vmem:[%s12235_s7 + $0xd8] sm:$0xff] }
 0x55d   :  { %v3382_v12 = vpop.f32.mrf.mxu0  ;;  %7861 = vmatmul.mubr.f32.gmra.mxu0 %v3907_v56  ;;  %v4833_v56 = vsel %vm4784_vm14, 1, %v8145_v61  ;;  %v7322_v20 = vpop.f32.mrf.mxu1  ;;  %vm4786_vm1 = vcmp.gt.f32.partialorder %v4737_v7, 0.5  ;;  %v12431_v7 = vld [vmem:[#allocation12_spill] sm:$0xff] }
 0x55e   :  { %7863 = vmatprep.mubr.msk.f32.mxu0 %vm8144_vm0, %v10534_v6  ;;  %4933 = vperm.xlu1 %8085, %v4833_v56   ;;  %v10837_v35 = vadd.f32 %v3372_v13, %v3007_v24  ;;  %v4835_v19 = vsel %vm4786_vm1, 1, %v8145_v61 }
 0x55f   :  { %v7507_v16 = vpop.f32.mrf.mxu0  ;;  %4942 = vperm.xlu0 %8084, %v4836_v31   ;;  %v2952_v36 = vpop.f32.mrf.mxu1  ;;  %7679 = vmatmul.mubr.f32.gmra.mxu1 %v3481_v34  ;;  %v4742_v31 = vld [vmem:[%s12235_s7 + $0x100] sm:$0xff] }
 0x560   :  { %v3008_v13 = vadd.f32 %v2952_v36, %v10319_v1  ;;  %7681 = vmatprep.mubr.msk.f32.mxu1 %vm8144_vm0, %v10534_v6  ;;  %v4285_v16 = vld [vmem:[#allocation2 + $0x1e] sm:$0xff]  ;;  %v4739_v1 = vld [vmem:[%s12235_s7 + $0xe8] sm:$0xff]  ;;  %vm4791_vm4 = vcmp.gt.f32.partialorder %v4742_v31, 0.5 }
 0x561   :  { %v3992_v23 = vpop.f32.mrf.mxu0  ;;  %7864 = vmatmul.mubr.f32.gmra.mxu0 %v3908_v26  ;;  %v4838_v26 = vsel %vm4789_vm2, 1, %v8145_v61  ;;  %v7325_v24 = vpop.f32.mrf.mxu1  ;;  %vm4788_vm3 = vcmp.gt.f32.partialorder %v4739_v1, 0.5  ;;  %v4744_v1 = vld [vmem:[%s12235_s7 + $0x110] sm:$0xff] }
 0x562   :  { %7898 = vmatprep.mubr.msk.f32.mxu0 %vm8144_vm0, %v10534_v6  ;;  %4939 = vperm.xlu1 %8085, %v4835_v19   ;;  %v10852_v34 = vadd.f32 %v3377_v60, %v3008_v13  ;;  %v4837_v13 = vsel %vm4788_vm3, 1, %v8145_v61  ;;  %vm4793_vm6 = vcmp.gt.f32.partialorder %v4744_v1, 0.5 }
 0x563   :  { %v7721_v59 = vpop.f32.mrf.mxu0  ;;  %4948 = vperm.xlu0 %8084, %v4838_v26   ;;  %v2957_v20 = vpop.f32.mrf.mxu1  ;;  %7682 = vmatmul.mubr.f32.gmra.mxu1 %v3482_v5  ;;  %v4286_v26 = vld [vmem:[#allocation2 + $0x26] sm:$0xff] }
 0x564   :  { %v3009_v60 = vadd.f32 %v2957_v20, %v12431_v7  ;;  %7684 = vmatprep.mubr.msk.f32.mxu1 %vm8144_vm0, %v10534_v6  ;;  %v4840_v59 = vsel %vm4791_vm4, 1, %v8145_v61 }
 0x565   :  { %v3997_v56 = vpop.f32.mrf.mxu0  ;;  %7899 = vmatmul.mubr.f32.vlgmr.msra.gmra.mxu0 %v4285_v16  ;;  %v7328_v19 = vpop.f32.mrf.mxu1  ;;  %v4741_v16 = vld [vmem:[%s12235_s7 + $0xf8] sm:$0xff] }
 0x566   :  { %7901 = vmatprep.mubr.msk.f32.mxu0 %vm8144_vm0, %v10534_v6  ;;  %4945 = vperm.xlu1 %8085, %v4837_v13   ;;  %v10867_v5 = vadd.f32 %v3382_v12, %v3009_v60  ;;  %vm4790_vm5 = vcmp.gt.f32.partialorder %v4741_v16, 0.5  ;;  %v4842_v60 = vsel %vm4793_vm6, 1, %v8145_v61  ;;  %v4287_v13 = vld [vmem:[#allocation2 + $0x2e] sm:$0xff] }
 0x567   :  { %v7724_v36 = vpop.f32.mrf.mxu0  ;;  %4954 = vperm.xlu0 %8084, %v4840_v59   ;;  %v3567_v31 = vpop.f32.mrf.mxu1  ;;  %7685 = vmatmul.mubr.f32.gmra.mxu1 %v3483_v33  ;;  %v4839_v7 = vsel %vm4790_vm5, 1, %v8145_v61  ;;  %v4288_v59 = vld [vmem:[#allocation2 + $0x36] sm:$0xff] }
 0x568   :  { %v3811_v12 = vadd.f32 %v3567_v31, %v10335_v50  ;;  %7907 = vmatprep.mubr.msk.f32.mxu1 %vm8144_vm0, %v10534_v6  ;;  %v4743_v50 = vld [vmem:[%s12235_s7 + $0x108] sm:$0xff] }
 0x569   :  { %v4002_v24 = vpop.f32.mrf.mxu0  ;;  %7902 = vmatmul.mubr.f32.gmra.mxu0 %v4286_v26  ;;  %v7542_v36 = vpop.f32.mrf.mxu1  ;;  %v4746_v26 = vld [vmem:[%s12235_s7 + $0x120] sm:$0xff]  ;;  %vm4792_vm7 = vcmp.gt.f32.partialorder %v4743_v50, 0.5  ;;  %v10904_v50 = vld [vmem:[#allocation2 + $0x188] sm:$0xff] }
 0x56a   :  { %7904 = vmatprep.mubr.msk.f32.mxu0 %vm8144_vm0, %v10534_v6  ;;  %4951 = vperm.xlu1 %8085, %v4839_v7   ;;  %v10882_v33 = vadd.f32 %v3992_v23, %v3811_v12  ;;  %vm4795_vm8 = vcmp.gt.f32.partialorder %v4746_v26, 0.5  ;;  %v4841_v31 = vsel %vm4792_vm7, 1, %v8145_v61 }
 0x56b   :  { %v7727_v20 = vpop.f32.mrf.mxu0  ;;  %4960 = vperm.xlu0 %8084, %v4842_v60   ;;  %v3572_v16 = vpop.f32.mrf.mxu1  ;;  %7908 = vmatmul.mubr.f32.vlgmr.msra.gmra.mxu1 %v4288_v59  ;;  %v4844_v12 = vsel %vm4795_vm8, 1, %v8145_v61  ;;  %v4289_v60 = vld [vmem:[#allocation2 + $0x3e] sm:$0xff] }
 0x56c   :  { %v3812_v1 = vadd.f32 %v3572_v16, %v10343_v2  ;;  %7910 = vmatprep.mubr.msk.f32.mxu1 %vm8144_vm0, %v10534_v6  ;;  %v4748_v2 = vld [vmem:[%s12235_s7 + $0x130] sm:$0xff] }
 0x56d   :  { %v4007_v19 = vpop.f32.mrf.mxu0  ;;  %7905 = vmatmul.mubr.f32.gmra.mxu0 %v4287_v13  ;;  %v7545_v20 = vpop.f32.mrf.mxu1  ;;  %v4745_v13 = vld [vmem:[%s12235_s7 + $0x118] sm:$0xff]  ;;  %vm4797_vm10 = vcmp.gt.f32.partialorder %v4748_v2, 0.5 }
 0x56e   :  { %4957 = vperm.xlu1 %8085, %v4841_v31   ;;  %v10895_v7 = vadd.f32 %v3997_v56, %v3812_v1  ;;  %vm4794_vm9 = vcmp.gt.f32.partialorder %v4745_v13, 0.5  ;;  %v4846_v16 = vsel %vm4797_vm10, 1, %v8145_v61  ;;  %v4290_v31 = vld [vmem:[#allocation2 + $0x46] sm:$0xff] }
 0x56f   :  { %v7730_v23 = vpop.f32.mrf.mxu0  ;;  %4966 = vperm.xlu0 %8084, %v4844_v12   ;;  %v3577_v6 = vpop.f32.mrf.mxu1  ;;  %7911 = vmatmul.mubr.f32.gmra.mxu1 %v4289_v60  ;;  %v4843_v26 = vsel %vm4794_vm9, 1, %v8145_v61  ;;  %v4750_v20 = vld [vmem:[%s12235_s7 + $0x140] sm:$0xff] }
 0x570   :  { %v3813_v59 = vadd.f32 %v3577_v6, %v10352_v29  ;;  %7913 = vmatprep.mubr.msk.f32.mxu1 %vm8144_vm0, %v10904_v50  ;;  %v4747_v29 = vld [vmem:[%s12235_s7 + $0x128] sm:$0xff]  ;;  %vm4799_vm12 = vcmp.gt.f32.partialorder %v4750_v20, 0.5 }
 0x571   :  { %v4012_v36 = vpop.f32.mrf.mxu0  ;;  %v7548_v1 = vpop.f32.mrf.mxu1  ;;  %vm4796_vm11 = vcmp.gt.f32.partialorder %v4747_v29, 0.5  ;;  %v4848_v6 = vsel %vm4799_vm12, 1, %v8145_v61 }
 0x572   :  { %4963 = vperm.xlu1 %8085, %v4843_v26   ;;  %v10910_v23 = vadd.f32 %v4002_v24, %v3813_v59  ;;  %v4845_v2 = vsel %vm4796_vm11, 1, %v8145_v61  ;;  %v4291_v26 = vld [vmem:[#allocation2 + $0x4e] sm:$0xff]  ;;  %v4749_v1 = vld [vmem:[%s12235_s7 + $0x138] sm:$0xff] }
 0x573   :  { %v7733_v56 = vpop.f32.mrf.mxu0  ;;  %4972 = vperm.xlu0 %8084, %v4846_v16   ;;  %v3582_v60 = vpop.f32.mrf.mxu1  ;;  %7914 = vmatmul.mubr.f32.gmra.mxu1 %v4290_v31  ;;  %vm4798_vm13 = vcmp.gt.f32.partialorder %v4749_v1, 0.5  ;;  %v12432_v1 = vld [vmem:[#allocation13_spill] sm:$0xff] }
 0x574   :  { %v3814_v13 = vadd.f32 %v3582_v60, %v10361_v49  ;;  %7916 = vmatprep.mubr.msk.f32.mxu1 %vm8144_vm0, %v10904_v50  ;;  %v4752_v49 = vld [vmem:[%s12235_s7 + $0x150] sm:$0xff]  ;;  %v4847_v20 = vsel %vm4798_vm13, 1, %v8145_v61 }
 0x575   :  { %v4017_v12 = vpop.f32.mrf.mxu0  ;;  %v7551_v59 = vpop.f32.mrf.mxu1  ;;  %vm4801_vm14 = vcmp.gt.f32.partialorder %v4752_v49, 0.5 }
 0x576   :  { %4969 = vperm.xlu1 %8085, %v4845_v2   ;;  %v10923_v56 = vadd.f32 %v4007_v19, %v3814_v13  ;;  %v4850_v60 = vsel %vm4801_vm14, 1, %v8145_v61  ;;  %v4292_v2 = vld [vmem:[#allocation2 + $0x56] sm:$0xff]  ;;  %v4751_v59 = vld [vmem:[%s12235_s7 + $0x148] sm:$0xff] }
 0x577   :  { %v7736_v24 = vpop.f32.mrf.mxu0  ;;  %4978 = vperm.xlu0 %8084, %v4848_v6   ;;  %v3587_v31 = vpop.f32.mrf.mxu1  ;;  %7917 = vmatmul.mubr.f32.gmra.mxu1 %v4291_v26  ;;  %vm4800_vm15 = vcmp.gt.f32.partialorder %v4751_v59, 0.5  ;;  %v4756_v59 = vld [vmem:[%s12235_s7 + $0x170] sm:$0xff] }
 0x578   :  { %v3815_v29 = vadd.f32 %v3587_v31, %v10370_v21  ;;  %7919 = vmatprep.mubr.msk.f32.mxu1 %vm8144_vm0, %v10904_v50  ;;  %v4754_v21 = vld [vmem:[%s12235_s7 + $0x160] sm:$0xff]  ;;  %v4849_v31 = vsel %vm4800_vm15, 1, %v8145_v61  ;;  %vm4805_vm3 = vcmp.gt.f32.partialorder %v4756_v59, 0.5 }
 0x579   :  { %v4022_v16 = vpop.f32.mrf.mxu0  ;;  %v7554_v13 = vpop.f32.mrf.mxu1  ;;  %vm4803_vm1 = vcmp.gt.f32.partialorder %v4754_v21, 0.5 }
 0x57a   :  { %4975 = vperm.xlu1 %8085, %v4847_v20   ;;  %v10936_v24 = vadd.f32 %v4012_v36, %v3815_v29  ;;  %v4852_v29 = vsel %vm4803_vm1, 1, %v8145_v61 }
 0x57b   :  { %v7739_v19 = vpop.f32.mrf.mxu0  ;;  %4984 = vperm.xlu0 %8084, %v4850_v60   ;;  %v3592_v26 = vpop.f32.mrf.mxu1  ;;  %7920 = vmatmul.mubr.f32.gmra.mxu1 %v4292_v2  ;;  %v4293_v60 = vld [vmem:[#allocation2 + $0x5e] sm:$0xff] }
 0x57c   :  { %v3816_v49 = vadd.f32 %v3592_v26, %v12432_v1  ;;  %7922 = vmatprep.mubr.msk.f32.mxu1 %vm8144_vm0, %v10904_v50  ;;  %v4753_v2 = vld [vmem:[%s12235_s7 + $0x158] sm:$0xff] }
 0x57d   :  { %v4027_v6 = vpop.f32.mrf.mxu0  ;;  %v7557_v19 = vpop.f32.mrf.mxu1  ;;  %vm4802_vm2 = vcmp.gt.f32.partialorder %v4753_v2, 0.5  ;;  %v12434_v26 = vld [vmem:[#allocation14_spill] sm:$0xff]  ;;  %v4758_v2 = vld [vmem:[%s12235_s7 + $0x180] sm:$0xff] }
 0x57e   :  { %4981 = vperm.xlu1 %8085, %v4849_v31   ;;  %v10949_v20 = vadd.f32 %v4017_v12, %v3816_v49  ;;  %v4851_v49 = vsel %vm4802_vm2, 1, %v8145_v61  ;;  %v4294_v19 = vld [vmem:[#allocation2 + $0x66] sm:$0xff]  ;;  %vm4807_vm5 = vcmp.gt.f32.partialorder %v4758_v2, 0.5 }
 0x57f   :  { %v7742_v36 = vpop.f32.mrf.mxu0  ;;  %4990 = vperm.xlu0 %8084, %v4852_v29   ;;  %v3597_v21 = vpop.f32.mrf.mxu1  ;;  %7923 = vmatmul.mubr.f32.gmra.mxu1 %v4293_v60  ;;  %v4755_v60 = vld [vmem:[%s12235_s7 + $0x168] sm:$0xff] }
 0x580   :  { %12433 = vst [vmem:[#allocation11_spill] sm:$0xff] %v10949_v20  ;;  %v3817_v1 = vadd.f32 %v3597_v21, %v12434_v26  ;;  %7925 = vmatprep.mubr.msk.f32.mxu1 %vm8144_vm0, %v10904_v50  ;;  %v4854_v36 = vsel %vm4805_vm3, 1, %v8145_v61  ;;  %vm4804_vm4 = vcmp.gt.f32.partialorder %v4755_v60, 0.5  ;;  %v12436_v60 = vld [vmem:[#allocation10_spill] sm:$0xff] }
 0x581   :  { %v4032_v13 = vpop.f32.mrf.mxu0  ;;  %v7560_v31 = vpop.f32.mrf.mxu1  ;;  %v4853_v26 = vsel %vm4804_vm4, 1, %v8145_v61 }
 0x582   :  { %4987 = vperm.xlu1 %8085, %v4851_v49   ;;  %v10962_v29 = vadd.f32 %v4022_v16, %v3817_v1  ;;  %v4856_v1 = vsel %vm4807_vm5, 1, %v8145_v61 }
 0x583   :  { %v7745_v12 = vpop.f32.mrf.mxu0  ;;  %4996 = vperm.xlu0 %8084, %v4854_v36   ;;  %v3602_v59 = vpop.f32.mrf.mxu1  ;;  %7926 = vmatmul.mubr.f32.gmra.mxu1 %v4294_v19  ;;  %v4295_v36 = vld [vmem:[#allocation2 + $0x6e] sm:$0xff]  ;;  %v4757_v19 = vld [vmem:[%s12235_s7 + $0x178] sm:$0xff] }
 0x584   :  { %v3818_v21 = vadd.f32 %v3602_v59, %v10411_v54  ;;  %7928 = vmatprep.mubr.msk.f32.mxu1 %vm8144_vm0, %v10904_v50  ;;  %vm4806_vm6 = vcmp.gt.f32.partialorder %v4757_v19, 0.5 }
 0x585   :  { %v4037_v20 = vpop.f32.mrf.mxu0  ;;  %v7563_v12 = vpop.f32.mrf.mxu1 }
 0x586   :  { %4993 = vperm.xlu1 %8085, %v4853_v26   ;;  %v10975_v49 = vadd.f32 %v4027_v6, %v3818_v21  ;;  %v4296_v21 = vld [vmem:[#allocation2 + $0x76] sm:$0xff] }
 0x587   :  { %v7748_v16 = vpop.f32.mrf.mxu0  ;;  %5002 = vperm.xlu0 %8084, %v4856_v1   ;;  %v3607_v54 = vpop.f32.mrf.mxu1  ;;  %7929 = vmatmul.mubr.f32.gmra.mxu1 %v4295_v36 }
 0x588   :  { %12435 = vst [vmem:[#allocation12_spill] sm:$0xff] %v10975_v49  ;;  %v3819_v2 = vadd.f32 %v3607_v54, %v12436_v60  ;;  %7931 = vmatprep.mubr.msk.f32.mxu1 %vm8144_vm0, %v10904_v50  ;;  %v4855_v16 = vsel %vm4806_vm6, 1, %v8145_v61  ;;  %v4297_v60 = vld [vmem:[#allocation2 + $0x7e] sm:$0xff] }
 0x589   :  { %v4042_v31 = vpop.f32.mrf.mxu0  ;;  %v7566_v26 = vpop.f32.mrf.mxu1 }
 0x58a   :  { %4999 = vperm.xlu1 %8085, %v4855_v16   ;;  %v10984_v6 = vadd.f32 %v4032_v13, %v3819_v2 }
 0x58b   :  { %v7751_v59 = vpop.f32.mrf.mxu0  ;;  %v3612_v12 = vpop.f32.mrf.mxu1  ;;  %7932 = vmatmul.mubr.f32.gmra.mxu1 %v4296_v21 }
 0x58c   :  { %v3820_v49 = vadd.f32 %v3612_v12, %v10437_v4  ;;  %7934 = vmatprep.mubr.msk.f32.mxu1 %vm8144_vm0, %v10904_v50  ;;  %v4298_v4 = vld [vmem:[#allocation2 + $0x86] sm:$0xff] }
 0x58d   :  { %v4047_v1 = vpop.f32.mrf.mxu0  ;;  %v7569_v19 = vpop.f32.mrf.mxu1 }
 0x58e   :  { %v10989_v54 = vadd.f32 %v4037_v20, %v3820_v49 }
 0x58f   :  { %v7754_v36 = vpop.f32.mrf.mxu0  ;;  %v3617_v61 = vpop.f32.mrf.mxu1  ;;  %7935 = vmatmul.mubr.f32.gmra.mxu1 %v4297_v60 }
 0x590   :  { %v3821_v13 = vadd.f32 %v3617_v61, %v10450_v9  ;;  %7937 = vmatprep.mubr.msk.f32.mxu1 %vm8144_vm0, %v10904_v50  ;;  %v4299_v9 = vld [vmem:[#allocation2 + $0x8e] sm:$0xff] }
 0x591   :  { %v4052_v59 = vpop.f32.mrf.mxu0  ;;  %v7572_v16 = vpop.f32.mrf.mxu1 }
 0x592   :  { %v10994_v26 = vadd.f32 %v4042_v31, %v3821_v13 }
 0x593   :  { %v7757_v2 = vpop.f32.mrf.mxu0  ;;  %v3622_v12 = vpop.f32.mrf.mxu1  ;;  %7938 = vmatmul.mubr.f32.gmra.mxu1 %v4298_v4 }
 0x594   :  { %v3822_v20 = vadd.f32 %v3622_v12, %v10460_v11  ;;  %7940 = vmatprep.mubr.msk.f32.mxu1 %vm8144_vm0, %v10904_v50  ;;  %v4300_v11 = vld [vmem:[#allocation2 + $0x96] sm:$0xff] }
 0x595   :  { %v4057_v21 = vpop.f32.mrf.mxu0  ;;  %v7575_v36 = vpop.f32.mrf.mxu1 }
 0x596   :  { %v10999_v19 = vadd.f32 %v4047_v1, %v3822_v20 }
 0x597   :  { %v7760_v49 = vpop.f32.mrf.mxu0  ;;  %v3627_v61 = vpop.f32.mrf.mxu1  ;;  %7941 = vmatmul.mubr.f32.gmra.mxu1 %v4299_v9 }
 0x598   :  { %v3823_v31 = vadd.f32 %v3627_v61, %v10469_v48  ;;  %7943 = vmatprep.mubr.msk.f32.mxu1 %vm8144_vm0, %v10904_v50  ;;  %v4301_v48 = vld [vmem:[#allocation2 + $0x9e] sm:$0xff] }
 0x599   :  { %v4062_v60 = vpop.f32.mrf.mxu0  ;;  %v7578_v2 = vpop.f32.mrf.mxu1 }
 0x59a   :  { %v11004_v16 = vadd.f32 %v4052_v59, %v3823_v31 }
 0x59b   :  { %v7763_v13 = vpop.f32.mrf.mxu0  ;;  %v3632_v12 = vpop.f32.mrf.mxu1  ;;  %7944 = vmatmul.mubr.f32.gmra.mxu1 %v4300_v11 }
 0x59c   :  { %v3824_v1 = vadd.f32 %v3632_v12, %v10481_v0  ;;  %7946 = vmatprep.mubr.msk.f32.mxu1 %vm8144_vm0, %v10904_v50  ;;  %v4302_v0 = vld [vmem:[#allocation2 + $0xa6] sm:$0xff] }
 0x59d   :  { %v4067_v4 = vpop.f32.mrf.mxu0  ;;  %v7581_v49 = vpop.f32.mrf.mxu1 }
 0x59e   :  { %v11009_v36 = vadd.f32 %v4057_v21, %v3824_v1 }
 0x59f   :  { %v7766_v20 = vpop.f32.mrf.mxu0  ;;  %v3637_v61 = vpop.f32.mrf.mxu1  ;;  %7947 = vmatmul.mubr.f32.gmra.mxu1 %v4301_v48 }
 0x5a0   :  { %v3825_v59 = vadd.f32 %v3637_v61, %v10491_v28  ;;  %7949 = vmatprep.mubr.msk.f32.mxu1 %vm8144_vm0, %v10904_v50  ;;  %v4303_v28 = vld [vmem:[#allocation2 + $0xae] sm:$0xff] }
 0x5a1   :  { %v4072_v9 = vpop.f32.mrf.mxu0  ;;  %v7584_v13 = vpop.f32.mrf.mxu1 }
 0x5a2   :  { %v11014_v2 = vadd.f32 %v4062_v60, %v3825_v59 }
 0x5a3   :  { %v7769_v31 = vpop.f32.mrf.mxu0  ;;  %v3642_v12 = vpop.f32.mrf.mxu1  ;;  %7950 = vmatmul.mubr.f32.gmra.mxu1 %v4302_v0 }
 0x5a4   :  { %v3826_v21 = vadd.f32 %v3642_v12, %v10500_v18  ;;  %7952 = vmatprep.mubr.msk.f32.mxu1 %vm8144_vm0, %v10904_v50  ;;  %v4304_v18 = vld [vmem:[#allocation2 + $0xb6] sm:$0xff] }
 0x5a5   :  { %v4077_v11 = vpop.f32.mrf.mxu0  ;;  %v7587_v20 = vpop.f32.mrf.mxu1 }
 0x5a6   :  { %v11019_v49 = vadd.f32 %v4067_v4, %v3826_v21 }
 0x5a7   :  { %v7772_v1 = vpop.f32.mrf.mxu0  ;;  %v3647_v61 = vpop.f32.mrf.mxu1  ;;  %7953 = vmatmul.mubr.f32.gmra.mxu1 %v4303_v28 }
 0x5a8   :  { %v3827_v60 = vadd.f32 %v3647_v61, %v10508_v15  ;;  %7955 = vmatprep.mubr.msk.f32.mxu1 %vm8144_vm0, %v10904_v50  ;;  %v4305_v15 = vld [vmem:[#allocation2 + $0xbe] sm:$0xff] }
 0x5a9   :  { %v4082_v48 = vpop.f32.mrf.mxu0  ;;  %v7590_v31 = vpop.f32.mrf.mxu1 }
 0x5aa   :  { %v11024_v13 = vadd.f32 %v4072_v9, %v3827_v60 }
 0x5ab   :  { %v7775_v59 = vpop.f32.mrf.mxu0  ;;  %v3652_v12 = vpop.f32.mrf.mxu1  ;;  %7956 = vmatmul.mubr.f32.gmra.mxu1 %v4304_v18 }
 0x5ac   :  { %v3828_v4 = vadd.f32 %v3652_v12, %v10518_v44  ;;  %7958 = vmatprep.mubr.msk.f32.mxu1 %vm8144_vm0, %v10904_v50  ;;  %v4306_v44 = vld [vmem:[#allocation2 + $0xc6] sm:$0xff] }
 0x5ad   :  { %v4087_v0 = vpop.f32.mrf.mxu0  ;;  %v7593_v1 = vpop.f32.mrf.mxu1 }
 0x5ae   :  { %v11029_v20 = vadd.f32 %v4077_v11, %v3828_v4 }
 0x5af   :  { %v7778_v21 = vpop.f32.mrf.mxu0  ;;  %v3657_v61 = vpop.f32.mrf.mxu1  ;;  %7959 = vmatmul.mubr.f32.gmra.mxu1 %v4305_v15 }
 0x5b0   :  { %v3829_v9 = vadd.f32 %v3657_v61, %v10525_v47  ;;  %7961 = vmatprep.mubr.msk.f32.mxu1 %vm8144_vm0, %v10904_v50  ;;  %v4307_v47 = vld [vmem:[#allocation2 + $0xce] sm:$0xff] }
 0x5b1   :  { %v4092_v28 = vpop.f32.mrf.mxu0  ;;  %v7596_v59 = vpop.f32.mrf.mxu1 }
 0x5b2   :  { %v11034_v31 = vadd.f32 %v4082_v48, %v3829_v9 }
 0x5b3   :  { %v7781_v60 = vpop.f32.mrf.mxu0  ;;  %v3662_v12 = vpop.f32.mrf.mxu1  ;;  %7962 = vmatmul.mubr.f32.gmra.mxu1 %v4306_v44 }
 0x5b4   :  { %v3830_v11 = vadd.f32 %v3662_v12, %v10532_v58  ;;  %7964 = vmatprep.mubr.msk.f32.mxu1 %vm8144_vm0, %v10904_v50  ;;  %v4308_v58 = vld [vmem:[#allocation2 + $0xd6] sm:$0xff] }
 0x5b5   :  { %v4097_v18 = vpop.f32.mrf.mxu0  ;;  %v7599_v21 = vpop.f32.mrf.mxu1 }
 0x5b6   :  { %v11039_v1 = vadd.f32 %v4087_v0, %v3830_v11 }
 0x5b7   :  { %v7784_v4 = vpop.f32.mrf.mxu0  ;;  %v3667_v61 = vpop.f32.mrf.mxu1  ;;  %7965 = vmatmul.mubr.f32.gmra.mxu1 %v4307_v47 }
 0x5b8   :  { %v3831_v48 = vadd.f32 %v3667_v61, %v10541_v46  ;;  %7967 = vmatprep.mubr.msk.f32.mxu1 %vm8144_vm0, %v10904_v50  ;;  %v4309_v46 = vld [vmem:[#allocation2 + $0xde] sm:$0xff] }
 0x5b9   :  { %v4102_v15 = vpop.f32.mrf.mxu0  ;;  %v7602_v60 = vpop.f32.mrf.mxu1 }
 0x5ba   :  { %v11044_v59 = vadd.f32 %v4092_v28, %v3831_v48 }
 0x5bb   :  { %v7787_v9 = vpop.f32.mrf.mxu0  ;;  %v3672_v12 = vpop.f32.mrf.mxu1  ;;  %7968 = vmatmul.mubr.f32.gmra.mxu1 %v4308_v58 }
 0x5bc   :  { %v3832_v0 = vadd.f32 %v3672_v12, %v10548_v37  ;;  %7970 = vmatprep.mubr.msk.f32.mxu1 %vm8144_vm0, %v10904_v50  ;;  %v4310_v37 = vld [vmem:[#allocation2 + $0xe6] sm:$0xff] }
 0x5bd   :  { %v4107_v44 = vpop.f32.mrf.mxu0  ;;  %v7605_v4 = vpop.f32.mrf.mxu1 }
 0x5be   :  { %v11049_v21 = vadd.f32 %v4097_v18, %v3832_v0 }
 0x5bf   :  { %v7790_v11 = vpop.f32.mrf.mxu0  ;;  %v3677_v61 = vpop.f32.mrf.mxu1  ;;  %7971 = vmatmul.mubr.f32.gmra.mxu1 %v4309_v46 }
 0x5c0   :  { %v3833_v28 = vadd.f32 %v3677_v61, %v10555_v57  ;;  %7973 = vmatprep.mubr.msk.f32.mxu1 %vm8144_vm0, %v10904_v50  ;;  %v4311_v57 = vld [vmem:[#allocation2 + $0xee] sm:$0xff] }
 0x5c1   :  { %v4112_v47 = vpop.f32.mrf.mxu0  ;;  %v7608_v9 = vpop.f32.mrf.mxu1 }
 0x5c2   :  { %v11054_v60 = vadd.f32 %v4102_v15, %v3833_v28 }
 0x5c3   :  { %v7793_v48 = vpop.f32.mrf.mxu0  ;;  %v3682_v12 = vpop.f32.mrf.mxu1  ;;  %7974 = vmatmul.mubr.f32.gmra.mxu1 %v4310_v37 }
 0x5c4   :  { %v3834_v18 = vadd.f32 %v3682_v12, %v10562_v55  ;;  %7976 = vmatprep.mubr.msk.f32.mxu1 %vm8144_vm0, %v10904_v50  ;;  %v4312_v55 = vld [vmem:[#allocation2 + $0xf6] sm:$0xff] }
 0x5c5   :  { %v4117_v58 = vpop.f32.mrf.mxu0  ;;  %v7611_v11 = vpop.f32.mrf.mxu1 }
 0x5c6   :  { %v11059_v4 = vadd.f32 %v4107_v44, %v3834_v18 }
 0x5c7   :  { %v7796_v0 = vpop.f32.mrf.mxu0  ;;  %v3687_v61 = vpop.f32.mrf.mxu1  ;;  %7977 = vmatmul.mubr.f32.gmra.mxu1 %v4311_v57 }
 0x5c8   :  { %v3835_v15 = vadd.f32 %v3687_v61, %v10569_v42  ;;  %7979 = vmatprep.mubr.msk.f32.mxu1 %vm8144_vm0, %v10904_v50  ;;  %v4313_v42 = vld [vmem:[#allocation2 + $0xfe] sm:$0xff] }
 0x5c9   :  { %v4122_v46 = vpop.f32.mrf.mxu0  ;;  %v7614_v48 = vpop.f32.mrf.mxu1 }
 0x5ca   :  { %v11064_v9 = vadd.f32 %v4112_v47, %v3835_v15 }
 0x5cb   :  { %v7799_v28 = vpop.f32.mrf.mxu0  ;;  %v3692_v12 = vpop.f32.mrf.mxu1  ;;  %7980 = vmatmul.mubr.f32.gmra.mxu1 %v4312_v55 }
 0x5cc   :  { %v3836_v44 = vadd.f32 %v3692_v12, %v10576_v14  ;;  %7982 = vmatprep.mubr.msk.f32.mxu1 %vm8144_vm0, %v10904_v50  ;;  %v4314_v14 = vld [vmem:[#allocation2 + $0x106] sm:$0xff] }
 0x5cd   :  { %v4127_v37 = vpop.f32.mrf.mxu0  ;;  %v7617_v0 = vpop.f32.mrf.mxu1 }
 0x5ce   :  { %v11069_v11 = vadd.f32 %v4117_v58, %v3836_v44 }
 0x5cf   :  { %v7802_v18 = vpop.f32.mrf.mxu0  ;;  %v3697_v61 = vpop.f32.mrf.mxu1  ;;  %7983 = vmatmul.mubr.f32.gmra.mxu1 %v4313_v42 }
 0x5d0   :  { %v3837_v47 = vadd.f32 %v3697_v61, %v10583_v38  ;;  %7985 = vmatprep.mubr.msk.f32.mxu1 %vm8144_vm0, %v10904_v50  ;;  %v4315_v38 = vld [vmem:[#allocation2 + $0x10e] sm:$0xff] }
 0x5d1   :  { %v4132_v57 = vpop.f32.mrf.mxu0  ;;  %v7620_v28 = vpop.f32.mrf.mxu1 }
 0x5d2   :  { %v11074_v48 = vadd.f32 %v4122_v46, %v3837_v47 }
 0x5d3   :  { %v7805_v15 = vpop.f32.mrf.mxu0  ;;  %v3702_v12 = vpop.f32.mrf.mxu1  ;;  %7986 = vmatmul.mubr.f32.gmra.mxu1 %v4314_v14 }
 0x5d4   :  { %v3838_v58 = vadd.f32 %v3702_v12, %v10590_v43  ;;  %7988 = vmatprep.mubr.msk.f32.mxu1 %vm8144_vm0, %v10904_v50  ;;  %v4316_v43 = vld [vmem:[#allocation2 + $0x116] sm:$0xff] }
 0x5d5   :  { %v4137_v55 = vpop.f32.mrf.mxu0  ;;  %v7623_v18 = vpop.f32.mrf.mxu1 }
 0x5d6   :  { %v11079_v0 = vadd.f32 %v4127_v37, %v3838_v58 }
 0x5d7   :  { %v7808_v44 = vpop.f32.mrf.mxu0  ;;  %v3707_v61 = vpop.f32.mrf.mxu1  ;;  %7989 = vmatmul.mubr.f32.gmra.mxu1 %v4315_v38 }
 0x5d8   :  { %v3839_v46 = vadd.f32 %v3707_v61, %v10597_v51  ;;  %7991 = vmatprep.mubr.msk.f32.mxu1 %vm8144_vm0, %v10904_v50  ;;  %v4317_v51 = vld [vmem:[#allocation2 + $0x11e] sm:$0xff] }
 0x5d9   :  { %v4142_v42 = vpop.f32.mrf.mxu0  ;;  %v7626_v15 = vpop.f32.mrf.mxu1 }
 0x5da   :  { %v11084_v28 = vadd.f32 %v4132_v57, %v3839_v46 }
 0x5db   :  { %v7811_v47 = vpop.f32.mrf.mxu0  ;;  %v3712_v12 = vpop.f32.mrf.mxu1  ;;  %7992 = vmatmul.mubr.f32.gmra.mxu1 %v4316_v43 }
 0x5dc   :  { %v3840_v37 = vadd.f32 %v3712_v12, %v10604_v39  ;;  %7994 = vmatprep.mubr.msk.f32.mxu1 %vm8144_vm0, %v10904_v50  ;;  %v4318_v39 = vld [vmem:[#allocation2 + $0x126] sm:$0xff] }
 0x5dd   :  { %v4147_v14 = vpop.f32.mrf.mxu0  ;;  %v7629_v44 = vpop.f32.mrf.mxu1 }
 0x5de   :  { %v11089_v18 = vadd.f32 %v4137_v55, %v3840_v37 }
 0x5df   :  { %v7814_v58 = vpop.f32.mrf.mxu0  ;;  %v3717_v61 = vpop.f32.mrf.mxu1  ;;  %7995 = vmatmul.mubr.f32.gmra.mxu1 %v4317_v51 }
 0x5e0   :  { %v3841_v57 = vadd.f32 %v3717_v61, %v10611_v10  ;;  %7997 = vmatprep.mubr.msk.f32.mxu1 %vm8144_vm0, %v10904_v50  ;;  %v4319_v10 = vld [vmem:[#allocation2 + $0x12e] sm:$0xff] }
 0x5e1   :  { %v4152_v38 = vpop.f32.mrf.mxu0  ;;  %v7632_v47 = vpop.f32.mrf.mxu1 }
 0x5e2   :  { %v11094_v15 = vadd.f32 %v4142_v42, %v3841_v57 }
 0x5e3   :  { %v7817_v46 = vpop.f32.mrf.mxu0  ;;  %v3722_v12 = vpop.f32.mrf.mxu1  ;;  %7998 = vmatmul.mubr.f32.gmra.mxu1 %v4318_v39 }
 0x5e4   :  { %v3842_v55 = vadd.f32 %v3722_v12, %v10618_v27  ;;  %8000 = vmatprep.mubr.msk.f32.mxu1 %vm8144_vm0, %v10904_v50  ;;  %v4320_v27 = vld [vmem:[#allocation2 + $0x136] sm:$0xff] }
 0x5e5   :  { %v4157_v43 = vpop.f32.mrf.mxu0  ;;  %v7635_v58 = vpop.f32.mrf.mxu1 }
 0x5e6   :  { %v11099_v44 = vadd.f32 %v4147_v14, %v3842_v55 }
 0x5e7   :  { %v7820_v37 = vpop.f32.mrf.mxu0  ;;  %v3727_v61 = vpop.f32.mrf.mxu1  ;;  %8001 = vmatmul.mubr.f32.gmra.mxu1 %v4319_v10 }
 0x5e8   :  { %v3843_v42 = vadd.f32 %v3727_v61, %v10631_v52  ;;  %8003 = vmatprep.mubr.msk.f32.mxu1 %vm8144_vm0, %v10904_v50  ;;  %v4321_v52 = vld [vmem:[#allocation2 + $0x13e] sm:$0xff] }
 0x5e9   :  { %v4162_v51 = vpop.f32.mrf.mxu0  ;;  %v7638_v46 = vpop.f32.mrf.mxu1 }
 0x5ea   :  { %v11104_v47 = vadd.f32 %v4152_v38, %v3843_v42 }
 0x5eb   :  { %v7823_v57 = vpop.f32.mrf.mxu0  ;;  %v3732_v12 = vpop.f32.mrf.mxu1  ;;  %8004 = vmatmul.mubr.f32.gmra.mxu1 %v4320_v27 }
 0x5ec   :  { %v3844_v14 = vadd.f32 %v3732_v12, %v10642_v32  ;;  %8006 = vmatprep.mubr.msk.f32.mxu1 %vm8144_vm0, %v10904_v50  ;;  %v4322_v32 = vld [vmem:[#allocation2 + $0x146] sm:$0xff] }
 0x5ed   :  { %v4167_v39 = vpop.f32.mrf.mxu0  ;;  %v7641_v37 = vpop.f32.mrf.mxu1 }
 0x5ee   :  { %v11109_v58 = vadd.f32 %v4157_v43, %v3844_v14 }
 0x5ef   :  { %v7826_v55 = vpop.f32.mrf.mxu0  ;;  %v3737_v61 = vpop.f32.mrf.mxu1  ;;  %8007 = vmatmul.mubr.f32.gmra.mxu1 %v4321_v52 }
 0x5f0   :  { %v3845_v38 = vadd.f32 %v3737_v61, %v10657_v41  ;;  %8009 = vmatprep.mubr.msk.f32.mxu1 %vm8144_vm0, %v10904_v50  ;;  %v4323_v41 = vld [vmem:[#allocation2 + $0x14e] sm:$0xff] }
 0x5f1   :  { %v4172_v10 = vpop.f32.mrf.mxu0  ;;  %v7644_v57 = vpop.f32.mrf.mxu1 }
 0x5f2   :  { %v11114_v46 = vadd.f32 %v4162_v51, %v3845_v38 }
 0x5f3   :  { %v7829_v42 = vpop.f32.mrf.mxu0  ;;  %v3742_v12 = vpop.f32.mrf.mxu1  ;;  %8010 = vmatmul.mubr.f32.gmra.mxu1 %v4322_v32 }
 0x5f4   :  { %v3846_v43 = vadd.f32 %v3742_v12, %v10672_v3  ;;  %8012 = vmatprep.mubr.msk.f32.mxu1 %vm8144_vm0, %v10904_v50  ;;  %v4324_v3 = vld [vmem:[#allocation2 + $0x156] sm:$0xff] }
 0x5f5   :  { %v4177_v27 = vpop.f32.mrf.mxu0  ;;  %v7647_v55 = vpop.f32.mrf.mxu1 }
 0x5f6   :  { %v11119_v37 = vadd.f32 %v4167_v39, %v3846_v43 }
 0x5f7   :  { %v7832_v14 = vpop.f32.mrf.mxu0  ;;  %v3747_v61 = vpop.f32.mrf.mxu1  ;;  %8013 = vmatmul.mubr.f32.gmra.mxu1 %v4323_v41 }
 0x5f8   :  { %v3847_v51 = vadd.f32 %v3747_v61, %v10687_v53  ;;  %8015 = vmatprep.mubr.msk.f32.mxu1 %vm8144_vm0, %v10904_v50  ;;  %v4325_v53 = vld [vmem:[#allocation2 + $0x15e] sm:$0xff] }
 0x5f9   :  { %v4182_v52 = vpop.f32.mrf.mxu0  ;;  %v7650_v42 = vpop.f32.mrf.mxu1 }
 0x5fa   :  { %v11124_v57 = vadd.f32 %v4172_v10, %v3847_v51 }
 0x5fb   :  { %v7835_v38 = vpop.f32.mrf.mxu0  ;;  %v3752_v12 = vpop.f32.mrf.mxu1  ;;  %8016 = vmatmul.mubr.f32.gmra.mxu1 %v4324_v3 }
 0x5fc   :  { %v3848_v39 = vadd.f32 %v3752_v12, %v10702_v25  ;;  %8018 = vmatprep.mubr.msk.f32.mxu1 %vm8144_vm0, %v10904_v50  ;;  %v4326_v25 = vld [vmem:[#allocation2 + $0x166] sm:$0xff] }
 0x5fd   :  { %v4187_v32 = vpop.f32.mrf.mxu0  ;;  %v7653_v14 = vpop.f32.mrf.mxu1 }
 0x5fe   :  { %v11129_v55 = vadd.f32 %v4177_v27, %v3848_v39 }
 0x5ff   :  { %v7838_v43 = vpop.f32.mrf.mxu0  ;;  %v3757_v61 = vpop.f32.mrf.mxu1  ;;  %8019 = vmatmul.mubr.f32.gmra.mxu1 %v4325_v53 }
 0x600   :  { %v3849_v10 = vadd.f32 %v3757_v61, %v10717_v30  ;;  %8021 = vmatprep.mubr.msk.f32.mxu1 %vm8144_vm0, %v10904_v50  ;;  %v4327_v30 = vld [vmem:[#allocation2 + $0x16e] sm:$0xff] }
 0x601   :  { %v4192_v41 = vpop.f32.mrf.mxu0  ;;  %v7656_v38 = vpop.f32.mrf.mxu1 }
 0x602   :  { %v11134_v42 = vadd.f32 %v4182_v52, %v3849_v10 }
 0x603   :  { %v7841_v51 = vpop.f32.mrf.mxu0  ;;  %v3762_v12 = vpop.f32.mrf.mxu1  ;;  %8022 = vmatmul.mubr.f32.gmra.mxu1 %v4326_v25 }
 0x604   :  { %v3850_v27 = vadd.f32 %v3762_v12, %v10732_v40  ;;  %8024 = vmatprep.mubr.msk.f32.mxu1 %vm8144_vm0, %v10904_v50  ;;  %v4328_v40 = vld [vmem:[#allocation2 + $0x176] sm:$0xff] }
 0x605   :  { %v4197_v3 = vpop.f32.mrf.mxu0  ;;  %v7659_v43 = vpop.f32.mrf.mxu1 }
 0x606   :  { %v11139_v14 = vadd.f32 %v4187_v32, %v3850_v27 }
 0x607   :  { %v7844_v39 = vpop.f32.mrf.mxu0  ;;  %v3767_v61 = vpop.f32.mrf.mxu1  ;;  %8025 = vmatmul.mubr.f32.gmra.mxu1 %v4327_v30 }
 0x608   :  { %v3851_v52 = vadd.f32 %v3767_v61, %v10747_v8  ;;  %8027 = vmatprep.mubr.msk.f32.mxu1 %vm8144_vm0, %v10904_v50  ;;  %v4329_v8 = vld [vmem:[#allocation2 + $0x17e] sm:$0xff] }
 0x609   :  { %v4202_v53 = vpop.f32.mrf.mxu0  ;;  %v7662_v51 = vpop.f32.mrf.mxu1 }
 0x60a   :  { %v11144_v38 = vadd.f32 %v4192_v41, %v3851_v52 }
 0x60b   :  { %v7847_v10 = vpop.f32.mrf.mxu0  ;;  %v3772_v12 = vpop.f32.mrf.mxu1  ;;  %8028 = vmatmul.mubr.f32.gmra.mxu1 %v4328_v40 }
 0x60c   :  { %v3852_v32 = vadd.f32 %v3772_v12, %v10762_v63  ;;  %8030 = vmatprep.mubr.msk.f32.mxu1 %vm8144_vm0, %v10904_v50  ;;  %v4330_v63 = vld [vmem:[#allocation2 + $0x186] sm:$0xff] }
 0x60d   :  { %v4207_v25 = vpop.f32.mrf.mxu0  ;;  %v7665_v39 = vpop.f32.mrf.mxu1 }
 0x60e   :  { %v11149_v43 = vadd.f32 %v4197_v3, %v3852_v32  ;;  %v4331_v32 = vld [vmem:[#allocation2 + $0x18e] sm:$0xff] }
 0x60f   :  { %v7850_v27 = vpop.f32.mrf.mxu0  ;;  %v3777_v61 = vpop.f32.mrf.mxu1  ;;  %8031 = vmatmul.mubr.f32.gmra.mxu1 %v4329_v8 }
 0x610   :  { %12437 = vst [vmem:[#allocation13_spill] sm:$0xff] %v11149_v43  ;;  %v3853_v41 = vadd.f32 %v3777_v61, %v10777_v62  ;;  %8033 = vmatprep.mubr.msk.f32.mxu1 %vm8144_vm0, %v10904_v50 }
 0x611   :  { %v4212_v30 = vpop.f32.mrf.mxu0  ;;  %v7668_v10 = vpop.f32.mrf.mxu1 }
 0x612   :  { %v11154_v51 = vadd.f32 %v4202_v53, %v3853_v41  ;;  %v4332_v41 = vld [vmem:[#allocation2 + $0x196] sm:$0xff] }
 0x613   :  { %v7853_v52 = vpop.f32.mrf.mxu0  ;;  %v3782_v12 = vpop.f32.mrf.mxu1  ;;  %8034 = vmatmul.mubr.f32.gmra.mxu1 %v4330_v63 }
 0x614   :  { %12438 = vst [vmem:[#allocation14_spill] sm:$0xff] %v11154_v51  ;;  %v3854_v3 = vadd.f32 %v3782_v12, %v10792_v22  ;;  %8036 = vmatprep.mubr.msk.f32.mxu1 %vm8144_vm0, %v10904_v50 }
 0x615   :  { %v4217_v40 = vpop.f32.mrf.mxu0  ;;  %v7671_v39 = vpop.f32.mrf.mxu1 }
 0x616   :  { %v11159_v62 = vadd.f32 %v4207_v25, %v3854_v3  ;;  %v4333_v25 = vld [vmem:[#allocation2 + $0x19e] sm:$0xff] }
 0x617   :  { %v7856_v27 = vpop.f32.mrf.mxu0  ;;  %v3787_v61 = vpop.f32.mrf.mxu1  ;;  %8037 = vmatmul.mubr.f32.gmra.mxu1 %v4331_v32 }
 0x618   :  { %12439 = vst [vmem:[#allocation10_spill] sm:$0xff] %v11159_v62  ;;  %v3855_v53 = vadd.f32 %v3787_v61, %v10807_v17  ;;  %8039 = vmatprep.mubr.msk.f32.mxu1 %vm8144_vm0, %v10904_v50 }
 0x619   :  { %v4222_v8 = vpop.f32.mrf.mxu0  ;;  %v7674_v10 = vpop.f32.mrf.mxu1 }
 0x61a   :  { %v11164_v22 = vadd.f32 %v4212_v30, %v3855_v53 }
 0x61b   :  { %v7859_v52 = vpop.f32.mrf.mxu0  ;;  %v3792_v12 = vpop.f32.mrf.mxu1  ;;  %8040 = vmatmul.mubr.f32.gmra.mxu1 %v4332_v41 }
 0x61c   :  { %12440 = vst [vmem:[#allocation15_spill] sm:$0xff] %v11164_v22  ;;  %v3856_v27 = vadd.f32 %v3792_v12, %v10822_v45  ;;  %8042 = vmatprep.mubr.msk.f32.mxu1 %vm8144_vm0, %v10904_v50 }
 0x61d   :  { %v4227_v63 = vpop.f32.mrf.mxu0  ;;  %v7677_v32 = vpop.f32.mrf.mxu1 }
 0x61e   :  { %v11169_v17 = vadd.f32 %v4217_v40, %v3856_v27 }
 0x61f   :  { %v7862_v3 = vpop.f32.mrf.mxu0  ;;  %v3797_v61 = vpop.f32.mrf.mxu1  ;;  %8043 = vmatmul.mubr.f32.gmra.mxu1 %v4333_v25 }
 0x620   :  { %12441 = vst [vmem:[#allocation16_spill] sm:$0xff] %v11169_v17  ;;  %v3857_v52 = vadd.f32 %v3797_v61, %v10837_v35 }
 0x621   :  { %v4232_v39 = vpop.f32.mrf.mxu0  ;;  %v7680_v53 = vpop.f32.mrf.mxu1 }
 0x622   :  { %v11172_v10 = vadd.f32 %v4222_v8, %v3857_v52 }
 0x623   :  { %v7865_v30 = vpop.f32.mrf.mxu0  ;;  %v3802_v22 = vpop.f32.mrf.mxu1 }
 0x624   :  { %12442 = vst [vmem:[#allocation17_spill] sm:$0xff] %v11172_v10  ;;  %v3858_v50 = vadd.f32 %v3802_v22, %v10852_v34 }
 0x625   :  { %v4417_v41 = vpop.f32.mrf.mxu0  ;;  %v7683_v3 = vpop.f32.mrf.mxu1 }
 0x626   :  { %v11175_v45 = vadd.f32 %v4417_v41, %v10882_v33  ;;  %v11178_v40 = vadd.f32 %v4227_v63, %v3858_v50 }
 0x627   :  { %v7900_v12 = vpop.f32.mrf.mxu0  ;;  %v3807_v32 = vpop.f32.mrf.mxu1 }
 0x628   :  { %12443 = vst [vmem:[#allocation18_spill] sm:$0xff] %v11178_v40  ;;  %v3859_v35 = vadd.f32 %v3807_v32, %v10867_v5  ;;  %v12446_v12 = vld [vmem:[#allocation11_spill] sm:$0xff] }
 0x629   :  { %v4422_v27 = vpop.f32.mrf.mxu0  ;;  %v7686_v61 = vpop.f32.mrf.mxu1 }
 0x62a   :  { %v11181_v25 = vadd.f32 %v4422_v27, %v10895_v7  ;;  %v11184_v52 = vadd.f32 %v4232_v39, %v3859_v35 }
 0x62b   :  { %v7903_v8 = vpop.f32.mrf.mxu0  ;;  %v4432_v33 = vpop.f32.mrf.mxu1 }
 0x62c   :  { %12444 = vst [vmem:[#allocation19_spill] sm:$0xff] %v11181_v25  ;;  %12445 = vst [vmem:[#allocation20_spill] sm:$0xff] %v11184_v52  ;;  %v11190_v34 = vadd.f32 %v4432_v33, %v10923_v56  ;;  %v12447_v56 = vld [vmem:[#allocation12_spill] sm:$0xff] }
 0x62d   :  { %v4427_v30 = vpop.f32.mrf.mxu0  ;;  %v7909_v63 = vpop.f32.mrf.mxu1 }
 0x62e   :  { %v11187_v53 = vadd.f32 %v4427_v30, %v10910_v23 }
 0x62f   :  { %v7906_v22 = vpop.f32.mrf.mxu0  ;;  %v4437_v41 = vpop.f32.mrf.mxu1 }
 0x630   :  { %v11193_v7 = vadd.f32 %v4437_v41, %v10936_v24 }
 0x631   :  { %v7912_v50 = vpop.f32.mrf.mxu1 }
 0x633   :  { %v4442_v5 = vpop.f32.mrf.mxu1 }
 0x634   :  { %v11196_v3 = vadd.f32 %v4442_v5, %v12446_v12  ;;  %v11210_v5 = vpop.permute.xlu0 %4858 }
 0x635   :  { %v7915_v39 = vpop.f32.mrf.mxu1  ;;  %12448 = vst [vmem:[#allocation11_spill] sm:$0xff] %v11210_v5  ;;  %vm5004_vm7 = vcmp.eq.s32.totalorder %v11210_v5, 1 }
 0x636   :  { %v11215_v39 = vpop.permute.xlu1 %4864 }
 0x637   :  { %v4447_v27 = vpop.f32.mrf.mxu1  ;;  %12449 = vst [vmem:[#allocation12_spill] sm:$0xff] %v11215_v39  ;;  %vm5006_vm8 = vcmp.eq.s32.totalorder %v11215_v39, 1 }
 0x638   :  { %v11199_v32 = vadd.f32 %v4447_v27, %v10962_v29 }
 0x639   :  { %v7918_v23 = vpop.f32.mrf.mxu1 }
 0x63b   :  { %v4452_v35 = vpop.f32.mrf.mxu1 }
 0x63c   :  { %v11202_v8 = vadd.f32 %v4452_v35, %v12447_v56  ;;  %v11220_v35 = vpop.permute.xlu0 %4861 }
 0x63d   :  { %v7921_v61 = vpop.f32.mrf.mxu1  ;;  %12450 = vst [vmem:[#allocation21_spill] sm:$0xff] %v11220_v35  ;;  %vm5005_vm0 = vcmp.eq.s32.totalorder %v11220_v35, 1 }
 0x63f   :  { %v4457_v30 = vpop.f32.mrf.mxu1 }
 0x640   :  { %v11205_v24 = vadd.f32 %v4457_v30, %v10984_v6 }
 0x641   :  { %v7924_v33 = vpop.f32.mrf.mxu1 }
 0x643   :  { %v4462_v22 = vpop.f32.mrf.mxu1 }
 0x644   :  { %v11208_v63 = vadd.f32 %v4462_v22, %v10989_v54  ;;  %v11222_v54 = vpop.permute.xlu1 %4867 }
 0x645   :  { %v7927_v41 = vpop.f32.mrf.mxu1  ;;  %vm5007_vm9 = vcmp.eq.s32.totalorder %v11222_v54, 1 }
 0x647   :  { %v4467_v50 = vpop.f32.mrf.mxu1 }
 0x648   :  { %v11213_v29 = vadd.f32 %v4467_v50, %v10994_v26  ;;  %v11227_v26 = vpop.permute.xlu0 %4870  ;;  %v11232_v50 = vpop.permute.xlu1 %4873 }
 0x649   :  { %v7930_v12 = vpop.f32.mrf.mxu1  ;;  %12451 = vst [vmem:[#allocation22_spill] sm:$0xff] %v11227_v26  ;;  %12452 = vst [vmem:[#allocation23_spill] sm:$0xff] %v11232_v50  ;;  %vm5008_vm10 = vcmp.eq.s32.totalorder %v11227_v26, 1  ;;  %vm5009_vm11 = vcmp.eq.s32.totalorder %v11232_v50, 1 }
 0x64b   :  { %v4472_v27 = vpop.f32.mrf.mxu1 }
 0x64c   :  { %v11218_v23 = vadd.f32 %v4472_v27, %v10999_v19 }
 0x64d   :  { %v7933_v6 = vpop.f32.mrf.mxu1 }
 0x64e   :  { %v11237_v6 = vpop.permute.xlu0 %4876 }
 0x64f   :  { %v4477_v56 = vpop.f32.mrf.mxu1  ;;  %12453 = vst [vmem:[#allocation24_spill] sm:$0xff] %v11237_v6  ;;  %vm5010_vm12 = vcmp.eq.s32.totalorder %v11237_v6, 1 }
 0x650   :  { %v11225_v61 = vadd.f32 %v4477_v56, %v11004_v16  ;;  %v11239_v16 = vpop.permute.xlu1 %4879 }
 0x651   :  { %v7936_v30 = vpop.f32.mrf.mxu1  ;;  %12454 = vst [vmem:[#allocation25_spill] sm:$0xff] %v11239_v16  ;;  %vm5011_vm13 = vcmp.eq.s32.totalorder %v11239_v16, 1 }
 0x652   :  { %v5060_v50 = vsel %vm5011_vm13, %v11202_v8, 0.0 }
 0x653   :  { %v4482_v33 = vpop.f32.mrf.mxu1 }
 0x654   :  { %v11230_v22 = vadd.f32 %v4482_v33, %v11009_v36  ;;  %v11244_v36 = vpop.permute.xlu0 %4882  ;;  %v11249_v10 = vpop.permute.xlu1 %4885 }
 0x655   :  { %v7939_v41 = vpop.f32.mrf.mxu1  ;;  %12455 = vst [vmem:[#allocation26_spill] sm:$0xff] %v11244_v36  ;;  %vm5012_vm14 = vcmp.eq.s32.totalorder %v11244_v36, 1  ;;  %vm5013_vm15 = vcmp.eq.s32.totalorder %v11249_v10, 1 }
 0x656   :  { %v5061_v6 = vsel %vm5012_vm14, %v11205_v24, 0.0 }
 0x657   :  { %v4487_v19 = vpop.f32.mrf.mxu1 }
 0x658   :  { %v11235_v12 = vadd.f32 %v4487_v19, %v11014_v2  ;;  %v11254_v17 = vpop.permute.xlu0 %4888 }
 0x659   :  { %v7942_v27 = vpop.f32.mrf.mxu1  ;;  %12456 = vst [vmem:[#allocation27_spill] sm:$0xff] %v11254_v17  ;;  %vm5014_vm1 = vcmp.eq.s32.totalorder %v11254_v17, 1 }
 0x65a   :  { %v5063_v36 = vsel %vm5014_vm1, %v11213_v29, 0.0 }
 0x65b   :  { %v4492_v52 = vpop.f32.mrf.mxu1 }
 0x65c   :  { %v11242_v56 = vadd.f32 %v4492_v52, %v11019_v49  ;;  %v11256_v49 = vpop.permute.xlu1 %4891 }
 0x65d   :  { %v7945_v30 = vpop.f32.mrf.mxu1  ;;  %12457 = vst [vmem:[#allocation28_spill] sm:$0xff] %v11256_v49  ;;  %vm5015_vm2 = vcmp.eq.s32.totalorder %v11256_v49, 1 }
 0x65f   :  { %v4497_v40 = vpop.f32.mrf.mxu1 }
 0x660   :  { %v11247_v33 = vadd.f32 %v4497_v40, %v11024_v13  ;;  %v11262_v40 = vpop.permute.xlu0 %4894 }
 0x661   :  { %v7948_v41 = vpop.f32.mrf.mxu1  ;;  %vm12287_vm3 = vcmp.eq.s32.totalorder %v11262_v40, 1 }
 0x662   :  { %v5065_v17 = vsel %vm12287_vm3, %v11225_v61, 0.0 }
 0x663   :  { %v4502_v2 = vpop.f32.mrf.mxu1 }
 0x664   :  { %v11252_v19 = vadd.f32 %v4502_v2, %v11029_v20  ;;  %v5054_v2 = vsel %vm5005_vm0, %v11181_v25, 0.0  ;;  %v11283_v51 = vpop.permute.xlu0 %4900 }
 0x665   :  { %v7951_v27 = vpop.f32.mrf.mxu1  ;;  %12459 = vst [vmem:[#allocation30_spill] sm:$0xff] %v11283_v51  ;;  %vm12291_vm5 = vcmp.eq.s32.totalorder %v11283_v51, 1 }
 0x666   :  { %v5053_v27 = vsel %vm5004_vm7, %v11175_v45, 0.0 }
 0x667   :  { %v4507_v62 = vpop.f32.mrf.mxu1 }
 0x668   :  { %v11259_v52 = vadd.f32 %v4507_v62, %v11034_v31  ;;  %v11272_v31 = vpop.permute.xlu1 %4897 }
 0x669   :  { %v7954_v30 = vpop.f32.mrf.mxu1  ;;  %12458 = vst [vmem:[#allocation29_spill] sm:$0xff] %v11272_v31  ;;  %vm12288_vm4 = vcmp.eq.s32.totalorder %v11272_v31, 1 }
 0x66b   :  { %v4512_v13 = vpop.f32.mrf.mxu1 }
 0x66c   :  { %v11265_v41 = vadd.f32 %v4512_v13, %v11039_v1  ;;  %v5055_v1 = vsel %vm5006_vm8, %v11187_v53, 0.0  ;;  %v5102_v13 = vadd.f32 %v5054_v2, %v5053_v27  ;;  %v11286_v43 = vpop.permute.xlu1 %4903  ;;  %v5057_v27 = vsel %vm5008_vm10, %v11193_v7, 0.0 }
 0x66d   :  { %v7957_v20 = vpop.f32.mrf.mxu1  ;;  %vm12292_vm6 = vcmp.eq.s32.totalorder %v11286_v43, 1 }
 0x66e   :  { %v5103_v35 = vadd.f32 %v5102_v13, %v5055_v1  ;;  %v11299_v1 = vpop.permute.xlu0 %4906 }
 0x66f   :  { %v4517_v62 = vpop.f32.mrf.mxu1  ;;  %12460 = vst [vmem:[#allocation31_spill] sm:$0xff] %v11299_v1  ;;  %vm12294_vm3 = vcmp.eq.s32.totalorder %v11299_v1, 1 }
 0x670   :  { %v11281_v30 = vadd.f32 %v4517_v62, %v11044_v59  ;;  %v5056_v59 = vsel %vm5007_vm9, %v11190_v34, 0.0  ;;  %v11308_v13 = vpop.permute.xlu1 %4909  ;;  %v5069_v51 = vsel %vm12294_vm3, %v11247_v33, 0.0 }
 0x671   :  { %v7960_v20 = vpop.f32.mrf.mxu1  ;;  %v5104_v2 = vadd.f32 %v5103_v35, %v5056_v59  ;;  %12461 = vst [vmem:[#allocation32_spill] sm:$0xff] %v11308_v13  ;;  %v5059_v59 = vsel %vm5010_vm12, %v11199_v32, 0.0 }
 0x672   :  { %v11321_v26 = vpop.permute.xlu0 %4912 }
 0x673   :  { %v4522_v25 = vpop.f32.mrf.mxu1  ;;  %v5105_v35 = vadd.f32 %v5104_v2, %v5057_v27 }
 0x674   :  { %v11289_v5 = vadd.f32 %v4522_v25, %v11049_v21 }
 0x675   :  { %v7963_v39 = vpop.f32.mrf.mxu1 }
 0x676   :  { %v5058_v39 = vsel %vm5009_vm11, %v11196_v3, 0.0  ;;  %v11337_v16 = vpop.permute.xlu0 %4918 }
 0x677   :  { %v4527_v62 = vpop.f32.mrf.mxu1  ;;  %12463 = vst [vmem:[#allocation34_spill] sm:$0xff] %v11337_v16  ;;  %vm5024_vm3 = vcmp.eq.s32.totalorder %v11337_v16, 1 }
 0x678   :  { %v11302_v21 = vadd.f32 %v4527_v62, %v11054_v60  ;;  %v5106_v62 = vadd.f32 %v5105_v35, %v5058_v39 }
 0x679   :  { %v7966_v25 = vpop.f32.mrf.mxu1 }
 0x67a   :  { %v5107_v2 = vadd.f32 %v5106_v62, %v5059_v59 }
 0x67b   :  { %v4532_v20 = vpop.f32.mrf.mxu1 }
 0x67c   :  { %v11315_v60 = vadd.f32 %v4532_v20, %v11059_v4  ;;  %v11327_v4 = vpop.permute.xlu1 %4915  ;;  %v5108_v39 = vadd.f32 %v5107_v2, %v5060_v50 }
 0x67d   :  { %v7969_v25 = vpop.f32.mrf.mxu1  ;;  %12462 = vst [vmem:[#allocation33_spill] sm:$0xff] %v11327_v4 }
 0x67e   :  { %v5062_v25 = vsel %vm5013_vm15, %v11208_v63, 0.0  ;;  %v5109_v59 = vadd.f32 %v5108_v39, %v5061_v6 }
 0x67f   :  { %v4537_v27 = vpop.f32.mrf.mxu1 }
 0x680   :  { %v11330_v20 = vadd.f32 %v4537_v27, %v11064_v9  ;;  %v5110_v50 = vadd.f32 %v5109_v59, %v5062_v25  ;;  %v5064_v27 = vsel %vm5015_vm2, %v11218_v23, 0.0 }
 0x681   :  { %v7972_v35 = vpop.f32.mrf.mxu1 }
 0x682   :  { %v11349_v35 = vpop.permute.xlu1 %4921  ;;  %v5111_v6 = vadd.f32 %v5110_v50, %v5063_v36 }
 0x683   :  { %v4542_v62 = vpop.f32.mrf.mxu1 }
 0x684   :  { %v11343_v9 = vadd.f32 %v4542_v62, %v11069_v11  ;;  %v5112_v25 = vadd.f32 %v5111_v6, %v5064_v27  ;;  %v11359_v62 = vpop.permute.xlu0 %4924 }
 0x685   :  { %v7975_v2 = vpop.f32.mrf.mxu1  ;;  %12465 = vst [vmem:[#allocation36_spill] sm:$0xff] %v11359_v62 }
 0x686   :  { %v5066_v2 = vsel %vm12288_vm4, %v11230_v22, 0.0  ;;  %v5113_v36 = vadd.f32 %v5112_v25, %v5065_v17  ;;  %v11365_v49 = vpop.permute.xlu1 %4927  ;;  %vm12295_vm4 = vcmp.eq.s32.totalorder %v11308_v13, 1 }
 0x687   :  { %v4547_v39 = vpop.f32.mrf.mxu1  ;;  %12466 = vst [vmem:[#allocation37_spill] sm:$0xff] %v11365_v49 }
 0x688   :  { %v11356_v11 = vadd.f32 %v4547_v39, %v11074_v48  ;;  %v5067_v48 = vsel %vm12291_vm5, %v11235_v12, 0.0  ;;  %v5114_v27 = vadd.f32 %v5113_v36, %v5066_v2  ;;  %v11378_v31 = vpop.permute.xlu0 %4930  ;;  %vm12297_vm5 = vcmp.eq.s32.totalorder %v11321_v26, 1 }
 0x689   :  { %v7978_v59 = vpop.f32.mrf.mxu1  ;;  %12467 = vst [vmem:[#allocation38_spill] sm:$0xff] %v11378_v31  ;;  %v5071_v1 = vsel %vm12297_vm5, %v11259_v52, 0.0  ;;  %vm12303_vm5 = vcmp.eq.s32.totalorder %v11359_v62, 1 }
 0x68a   :  { %12464 = vst [vmem:[#allocation35_spill] sm:$0xff] %v11356_v11  ;;  %v5068_v59 = vsel %vm12292_vm6, %v11242_v56, 0.0  ;;  %v5115_v17 = vadd.f32 %v5114_v27, %v5067_v48  ;;  %v5070_v48 = vsel %vm12295_vm4, %v11252_v19, 0.0  ;;  %vm12298_vm6 = vcmp.eq.s32.totalorder %v11327_v4, 1 }
 0x68b   :  { %v4552_v50 = vpop.f32.mrf.mxu1  ;;  %vm12301_vm4 = vcmp.eq.s32.totalorder %v11349_v35, 1  ;;  %v5075_v16 = vsel %vm12303_vm5, %v11302_v21, 0.0 }
 0x68c   :  { %v11371_v39 = vadd.f32 %v4552_v50, %v11079_v0  ;;  %v5116_v2 = vadd.f32 %v5115_v17, %v5068_v59  ;;  %v11387_v50 = vpop.permute.xlu1 %4933 }
 0x68d   :  { %v7981_v6 = vpop.f32.mrf.mxu1  ;;  %12468 = vst [vmem:[#allocation39_spill] sm:$0xff] %v11387_v50  ;;  %vm12307_vm5 = vcmp.eq.s32.totalorder %v11387_v50, 1 }
 0x68e   :  { %v5117_v27 = vadd.f32 %v5116_v2, %v5069_v51 }
 0x68f   :  { %v4557_v25 = vpop.f32.mrf.mxu1 }
 0x690   :  { %v11384_v0 = vadd.f32 %v4557_v25, %v11084_v28  ;;  %v5118_v59 = vadd.f32 %v5117_v27, %v5070_v48  ;;  %v11400_v25 = vpop.permute.xlu0 %4936  ;;  %v11406_v13 = vpop.permute.xlu1 %4939 }
 0x691   :  { %v7984_v36 = vpop.f32.mrf.mxu1  ;;  %12469 = vst [vmem:[#allocation40_spill] sm:$0xff] %v11400_v25  ;;  %12470 = vst [vmem:[#allocation41_spill] sm:$0xff] %v11406_v13 }
 0x692   :  { %v5072_v36 = vsel %vm12298_vm6, %v11265_v41, 0.0  ;;  %v5119_v51 = vadd.f32 %v5118_v59, %v5071_v1  ;;  %vm12304_vm6 = vcmp.eq.s32.totalorder %v11365_v49, 1 }
 0x693   :  { %v4562_v6 = vpop.f32.mrf.mxu1 }
 0x694   :  { %v11397_v28 = vadd.f32 %v4562_v6, %v11089_v18  ;;  %v5073_v18 = vsel %vm5024_vm3, %v11281_v30, 0.0  ;;  %v5120_v48 = vadd.f32 %v5119_v51, %v5072_v36  ;;  %v11419_v4 = vpop.permute.xlu0 %4942  ;;  %v11427_v51 = vpop.permute.xlu1 %4945 }
 0x695   :  { %v7987_v17 = vpop.f32.mrf.mxu1  ;;  %12471 = vst [vmem:[#allocation42_spill] sm:$0xff] %v11419_v4  ;;  %12472 = vst [vmem:[#allocation43_spill] sm:$0xff] %v11427_v51 }
 0x696   :  { %v5074_v17 = vsel %vm12301_vm4, %v11289_v5, 0.0  ;;  %v5121_v1 = vadd.f32 %v5120_v48, %v5073_v18  ;;  %vm12306_vm4 = vcmp.eq.s32.totalorder %v11378_v31, 1 }
 0x697   :  { %v4567_v2 = vpop.f32.mrf.mxu1  ;;  %v5077_v62 = vsel %vm12306_vm4, %v11330_v20, 0.0  ;;  %vm12313_vm4 = vcmp.eq.s32.totalorder %v11406_v13, 1 }
 0x698   :  { %v11412_v6 = vadd.f32 %v4567_v2, %v11094_v15  ;;  %v5122_v2 = vadd.f32 %v5121_v1, %v5074_v17  ;;  %v11437_v17 = vpop.permute.xlu0 %4948  ;;  %v5078_v1 = vsel %vm12307_vm5, %v11343_v9, 0.0  ;;  %vm12315_vm5 = vcmp.eq.s32.totalorder %v11419_v4, 1 }
 0x699   :  { %v7990_v27 = vpop.f32.mrf.mxu1  ;;  %12473 = vst [vmem:[#allocation44_spill] sm:$0xff] %v11437_v17 }
 0x69a   :  { %v5076_v27 = vsel %vm12304_vm6, %v11315_v60, 0.0  ;;  %v5123_v18 = vadd.f32 %v5122_v2, %v5075_v16  ;;  %vm12310_vm6 = vcmp.eq.s32.totalorder %v11400_v25, 1  ;;  %v11443_v16 = vpop.permute.xlu1 %4951 }
 0x69b   :  { %v4572_v59 = vpop.f32.mrf.mxu1  ;;  %12474 = vst [vmem:[#allocation45_spill] sm:$0xff] %v11443_v16  ;;  %v5079_v2 = vsel %vm12310_vm6, %v11356_v11, 0.0  ;;  %vm12317_vm6 = vcmp.eq.s32.totalorder %v11427_v51, 1 }
 0x69c   :  { %v11425_v15 = vadd.f32 %v4572_v59, %v11099_v44  ;;  %v5124_v44 = vadd.f32 %v5123_v18, %v5076_v27 }
 0x69d   :  { %v7993_v36 = vpop.f32.mrf.mxu1 }
 0x69e   :  { %v5125_v36 = vadd.f32 %v5124_v44, %v5077_v62  ;;  %v11453_v62 = vpop.permute.xlu0 %4954  ;;  %v5081_v44 = vsel %vm12315_vm5, %v11384_v0, 0.0  ;;  %vm12321_vm5 = vcmp.eq.s32.totalorder %v11443_v16, 1 }
 0x69f   :  { %v4577_v48 = vpop.f32.mrf.mxu1  ;;  %12475 = vst [vmem:[#allocation46_spill] sm:$0xff] %v11453_v62  ;;  %v5084_v51 = vsel %vm12321_vm5, %v11425_v15, 0.0 }
 0x6a0   :  { %v5126_v27 = vadd.f32 %v5125_v36, %v5078_v1  ;;  %v11459_v1 = vpop.permute.xlu1 %4957  ;;  %v5082_v36 = vsel %vm12317_vm6, %v11397_v28, 0.0  ;;  %v11469_v4 = vadd.f32 %v4577_v48, %v11104_v47  ;;  %vm12322_vm6 = vcmp.eq.s32.totalorder %v11453_v62, 1 }
 0x6a1   :  { %v7996_v59 = vpop.f32.mrf.mxu1  ;;  %12476 = vst [vmem:[#allocation47_spill] sm:$0xff] %v11459_v1 }
 0x6a2   :  { %v5080_v59 = vsel %vm12313_vm4, %v11371_v39, 0.0  ;;  %v5127_v50 = vadd.f32 %v5126_v27, %v5079_v2  ;;  %vm12320_vm4 = vcmp.eq.s32.totalorder %v11437_v17, 1  ;;  %v5085_v47 = vsel %vm12322_vm6, %v11469_v4, 0.0 }
 0x6a3   :  { %v4582_v49 = vpop.f32.mrf.mxu1 }
 0x6a4   :  { %v5128_v25 = vadd.f32 %v5127_v50, %v5080_v59  ;;  %v11472_v59 = vpop.permute.xlu0 %4960  ;;  %v11481_v13 = vpop.permute.xlu1 %4963 }
 0x6a5   :  { %v7999_v18 = vpop.f32.mrf.mxu1  ;;  %12477 = vst [vmem:[#allocation48_spill] sm:$0xff] %v11472_v59  ;;  %12479 = vst [vmem:[#allocation50_spill] sm:$0xff] %v11481_v13  ;;  %vm12324_vm5 = vcmp.eq.s32.totalorder %v11472_v59, 1  ;;  %vm12325_vm6 = vcmp.eq.s32.totalorder %v11481_v13, 1 }
 0x6a6   :  { %v5129_v2 = vadd.f32 %v5128_v25, %v5081_v44  ;;  %v5083_v18 = vsel %vm12320_vm4, %v11412_v6, 0.0  ;;  %v11478_v25 = vadd.f32 %v4582_v49, %v11109_v58  ;;  %vm12323_vm4 = vcmp.eq.s32.totalorder %v11459_v1, 1 }
 0x6a7   :  { %v4587_v31 = vpop.f32.mrf.mxu1 }
 0x6a8   :  { %12478 = vst [vmem:[#allocation49_spill] sm:$0xff] %v11478_v25  ;;  %v11487_v48 = vadd.f32 %v4587_v31, %v11114_v46  ;;  %v5086_v58 = vsel %vm12323_vm4, %v11478_v25, 0.0 }
 0x6a9   :  { %v8002_v11 = vpop.f32.mrf.mxu1 }
 0x6aa   :  { %v5130_v11 = vadd.f32 %v5129_v2, %v5082_v36  ;;  %12480 = vst [vmem:[#allocation51_spill] sm:$0xff] %v11487_v48  ;;  %v5087_v46 = vsel %vm12324_vm5, %v11487_v48, 0.0 }
 0x6ab   :  { %v4592_v27 = vpop.f32.mrf.mxu1 }
 0x6ac   :  { %v5131_v44 = vadd.f32 %v5130_v11, %v5083_v18  ;;  %v11494_v49 = vadd.f32 %v4592_v27, %v11119_v37 }
 0x6ad   :  { %v8005_v50 = vpop.f32.mrf.mxu1 }
 0x6ae   :  { %v5132_v36 = vadd.f32 %v5131_v44, %v5084_v51  ;;  %12481 = vst [vmem:[#allocation52_spill] sm:$0xff] %v11494_v49  ;;  %v11497_v50 = vpop.permute.xlu0 %4966  ;;  %v5088_v37 = vsel %vm12325_vm6, %v11494_v49, 0.0 }
 0x6af   :  { %v4597_v17 = vpop.f32.mrf.mxu1  ;;  %12482 = vst [vmem:[#allocation53_spill] sm:$0xff] %v11497_v50  ;;  %vm12326_vm4 = vcmp.eq.s32.totalorder %v11497_v50, 1 }
 0x6b0   :  { %v5133_v18 = vadd.f32 %v5132_v36, %v5085_v47  ;;  %v11503_v31 = vadd.f32 %v4597_v17, %v11124_v57 }
 0x6b1   :  { %v8008_v2 = vpop.f32.mrf.mxu1 }
 0x6b2   :  { %12483 = vst [vmem:[#allocation54_spill] sm:$0xff] %v11503_v31  ;;  %v5134_v51 = vadd.f32 %v5133_v18, %v5086_v58  ;;  %v11506_v2 = vpop.permute.xlu1 %4969  ;;  %v5089_v57 = vsel %vm12326_vm4, %v11503_v31, 0.0  ;;  %v12504_v31 = vld [vmem:[#allocation20_spill] sm:$0xff] }
 0x6b3   :  { %v4602_v11 = vpop.f32.mrf.mxu1  ;;  %12484 = vst [vmem:[#allocation55_spill] sm:$0xff] %v11506_v2  ;;  %vm12352_vm5 = vcmp.eq.s32.totalorder %v11506_v2, 1 }
 0x6b4   :  { %v11512_v27 = vadd.f32 %v4602_v11, %v11129_v55  ;;  %v5135_v47 = vadd.f32 %v5134_v51, %v5087_v46 }
 0x6b5   :  { %v8011_v44 = vpop.f32.mrf.mxu1 }
 0x6b6   :  { %12485 = vst [vmem:[#allocation56_spill] sm:$0xff] %v11512_v27  ;;  %v5136_v58 = vadd.f32 %v5135_v47, %v5088_v37  ;;  %v11522_v44 = vpop.permute.xlu0 %4972  ;;  %v5090_v55 = vsel %vm12352_vm5, %v11512_v27, 0.0  ;;  %v11528_v51 = vpop.permute.xlu1 %4975 }
 0x6b7   :  { %v4607_v36 = vpop.f32.mrf.mxu1  ;;  %12487 = vst [vmem:[#allocation58_spill] sm:$0xff] %v11522_v44  ;;  %vm12329_vm6 = vcmp.eq.s32.totalorder %v11522_v44, 1  ;;  %12488 = vst [vmem:[#allocation59_spill] sm:$0xff] %v11528_v51  ;;  %vm12332_vm4 = vcmp.eq.s32.totalorder %v11528_v51, 1  ;;  %v12491_v51 = vld [vmem:[#allocation13_spill] sm:$0xff] }
 0x6b8   :  { %v11519_v17 = vadd.f32 %v4607_v36, %v11134_v42  ;;  %v5137_v11 = vadd.f32 %v5136_v58, %v5089_v57 }
 0x6b9   :  { %v8014_v18 = vpop.f32.mrf.mxu1 }
 0x6ba   :  { %12486 = vst [vmem:[#allocation57_spill] sm:$0xff] %v11519_v17  ;;  %v5091_v42 = vsel %vm12329_vm6, %v11519_v17, 0.0  ;;  %v5138_v37 = vadd.f32 %v5137_v11, %v5090_v55  ;;  %v11540_v58 = vpop.permute.xlu0 %4978 }
 0x6bb   :  { %v4612_v46 = vpop.f32.mrf.mxu1  ;;  %12489 = vst [vmem:[#allocation60_spill] sm:$0xff] %v11540_v58  ;;  %vm12334_vm6 = vcmp.eq.s32.totalorder %v11540_v58, 1 }
 0x6bc   :  { %v11534_v36 = vadd.f32 %v4612_v46, %v11139_v14  ;;  %v5139_v2 = vadd.f32 %v5138_v37, %v5091_v42 }
 0x6bd   :  { %v8017_v47 = vpop.f32.mrf.mxu1 }
 0x6be   :  { %v5092_v18 = vsel %vm12332_vm4, %v11534_v36, 0.0  ;;  %v11549_v47 = vpop.permute.xlu1 %4981 }
 0x6bf   :  { %v4617_v57 = vpop.f32.mrf.mxu1  ;;  %v5140_v44 = vadd.f32 %v5139_v2, %v5092_v18  ;;  %12490 = vst [vmem:[#allocation61_spill] sm:$0xff] %v11549_v47  ;;  %vm12337_vm4 = vcmp.eq.s32.totalorder %v11549_v47, 1 }
 0x6c0   :  { %v11543_v50 = vadd.f32 %v4617_v57, %v11144_v38  ;;  %v11558_v57 = vpop.permute.xlu0 %4984 }
 0x6c1   :  { %v8020_v14 = vpop.f32.mrf.mxu1  ;;  %12492 = vst [vmem:[#allocation13_spill] sm:$0xff] %v11558_v57 }
 0x6c2   :  { %v5093_v55 = vsel %vm12334_vm6, %v11543_v50, 0.0  ;;  %v12493_v14 = vld [vmem:[#allocation14_spill] sm:$0xff]  ;;  %vm12340_vm6 = vcmp.eq.s32.totalorder %v11558_v57, 1  ;;  %v11564_v13 = vpop.permute.xlu1 %4987 }
 0x6c3   :  { %v5141_v11 = vadd.f32 %v5140_v44, %v5093_v55  ;;  %v4622_v46 = vpop.f32.mrf.mxu1  ;;  %12494 = vst [vmem:[#allocation14_spill] sm:$0xff] %v11564_v13 }
 0x6c4   :  { %v11552_v42 = vadd.f32 %v4622_v46, %v12491_v51 }
 0x6c5   :  { %v8023_v37 = vpop.f32.mrf.mxu1 }
 0x6c6   :  { %v5094_v38 = vsel %vm12337_vm4, %v11552_v42, 0.0  ;;  %v12495_v37 = vld [vmem:[#allocation10_spill] sm:$0xff]  ;;  %vm12343_vm4 = vcmp.eq.s32.totalorder %v11564_v13, 1 }
 0x6c7   :  { %v5142_v2 = vadd.f32 %v5141_v11, %v5094_v38  ;;  %v4627_v18 = vpop.f32.mrf.mxu1 }
 0x6c8   :  { %v4703_v58 = vadd.f32 %v4627_v18, %v12493_v14  ;;  %v11570_v14 = vpop.permute.xlu0 %4990 }
 0x6c9   :  { %v8026_v44 = vpop.f32.mrf.mxu1  ;;  %12496 = vst [vmem:[#allocation10_spill] sm:$0xff] %v11570_v14 }
 0x6ca   :  { %v5095_v51 = vsel %vm12340_vm6, %v4703_v58, 0.0  ;;  %v12497_v44 = vld [vmem:[#allocation15_spill] sm:$0xff]  ;;  %vm12346_vm6 = vcmp.eq.s32.totalorder %v11570_v14, 1 }
 0x6cb   :  { %v5143_v55 = vadd.f32 %v5142_v2, %v5095_v51  ;;  %v4632_v46 = vpop.f32.mrf.mxu1 }
 0x6cc   :  { %v4704_v59 = vadd.f32 %v4632_v46, %v12495_v37  ;;  %v11576_v37 = vpop.permute.xlu1 %4993 }
 0x6cd   :  { %v8029_v11 = vpop.f32.mrf.mxu1  ;;  %12498 = vst [vmem:[#allocation15_spill] sm:$0xff] %v11576_v37 }
 0x6ce   :  { %v5096_v38 = vsel %vm12343_vm4, %v4704_v59, 0.0  ;;  %v12499_v11 = vld [vmem:[#allocation16_spill] sm:$0xff]  ;;  %vm12349_vm4 = vcmp.eq.s32.totalorder %v11576_v37, 1 }
 0x6cf   :  { %v5144_v47 = vadd.f32 %v5143_v55, %v5096_v38  ;;  %v4637_v18 = vpop.f32.mrf.mxu1 }
 0x6d0   :  { %v4705_v17 = vadd.f32 %v4637_v18, %v12497_v44  ;;  %v11582_v44 = vpop.permute.xlu0 %4996 }
 0x6d1   :  { %v8032_v2 = vpop.f32.mrf.mxu1  ;;  %12500 = vst [vmem:[#allocation16_spill] sm:$0xff] %v11582_v44 }
 0x6d2   :  { %v5097_v51 = vsel %vm12346_vm6, %v4705_v17, 0.0  ;;  %v12501_v2 = vld [vmem:[#allocation17_spill] sm:$0xff]  ;;  %vm5050_vm6 = vcmp.eq.s32.totalorder %v11582_v44, 1 }
 0x6d3   :  { %v5145_v57 = vadd.f32 %v5144_v47, %v5097_v51  ;;  %v4642_v46 = vpop.f32.mrf.mxu1  ;;  %v11586_v51 = vpop.permute.xlu1 %4999 }
 0x6d4   :  { %v4706_v1 = vadd.f32 %v4642_v46, %v12499_v11  ;;  %12502 = vst [vmem:[#allocation17_spill] sm:$0xff] %v11586_v51 }
 0x6d5   :  { %v8035_v55 = vpop.f32.mrf.mxu1 }
 0x6d6   :  { %v5098_v38 = vsel %vm12349_vm4, %v4706_v1, 0.0  ;;  %v12503_v55 = vld [vmem:[#allocation18_spill] sm:$0xff]  ;;  %vm5051_vm4 = vcmp.eq.s32.totalorder %v11586_v51, 1 }
 0x6d7   :  { %v5146_v13 = vadd.f32 %v5145_v57, %v5098_v38  ;;  %v4647_v18 = vpop.f32.mrf.mxu1  ;;  %v5003_v38 = vpop.permute.xlu0 %5002 }
 0x6d8   :  { %v4707_v27 = vadd.f32 %v4647_v18, %v12501_v2  ;;  %vm5052_vm5 = vcmp.eq.s32.totalorder %v5003_v38, 1 }
 0x6d9   :  { %v8038_v47 = vpop.f32.mrf.mxu1 }
 0x6da   :  { %v5099_v46 = vsel %vm5050_vm6, %v4707_v27, 0.0 }
 0x6db   :  { %v5147_v11 = vadd.f32 %v5146_v13, %v5099_v46  ;;  %v4652_v14 = vpop.f32.mrf.mxu1 }
 0x6dc   :  { %v4708_v62 = vadd.f32 %v4652_v14, %v12503_v55 }
 0x6dd   :  { %v8041_v57 = vpop.f32.mrf.mxu1 }
 0x6de   :  { %v5100_v37 = vsel %vm5051_vm4, %v4708_v62, 0.0 }
 0x6df   :  { %v5148_v18 = vadd.f32 %v5147_v11, %v5100_v37  ;;  %v4657_v2 = vpop.f32.mrf.mxu1 }
 0x6e0   :  { %v4709_v47 = vadd.f32 %v4657_v2, %v12504_v31 }
 0x6e1   :  { %v8044_v16 = vpop.f32.mrf.mxu1 }
 0x6e2   :  { %v5101_v44 = vsel %vm5052_vm5, %v4709_v47, 0.0 }
 0x6e3   :  { %v5149_v49 = vadd.f32 %v5148_v18, %v5101_v44 }
 0x6e5   :  { %v5150_v13 = vrot.slane %v5149_v49, 4 }
 0x6e7   :  { %v5151_v46 = vadd.f32 %v5150_v13, %v5149_v49 }
 0x6e9   :  { %v5152_v48 = vrot.slane %v5151_v46, 2 }
 0x6eb   :  { %v5153_v14 = vadd.f32 %v5152_v48, %v5151_v46 }
 0x6ed   :  { %v5154_v55 = vrot.slane %v5153_v14, 1 }
 0x6ef   :  { %v5155_v25 = vadd.f32 %v5154_v55, %v5153_v14 }
 0x6f1   :  { %v11596_v57 = vmul.f32 0.0034722222, %v5155_v25 }
 0x6f3   :  { %v11600_v51 = vsub.f32 %v11534_v36, %v11596_v57  ;;  %v11604_v31 = vsub.f32 %v11543_v50, %v11596_v57  ;;  %v11608_v16 = vsub.f32 %v11552_v42, %v11596_v57  ;;  %v11611_v49 = vsub.f32 %v4703_v58, %v11596_v57 }
 0x6f4   :  { %v11614_v48 = vsub.f32 %v4704_v59, %v11596_v57  ;;  %v11617_v25 = vsub.f32 %v4705_v17, %v11596_v57  ;;  %v11620_v36 = vsub.f32 %v4706_v1, %v11596_v57  ;;  %v11623_v37 = vsub.f32 %v4707_v27, %v11596_v57  ;;  %v12510_v59 = vld [vmem:[#allocation19_spill] sm:$0xff] }
 0x6f5   :  { %v11626_v50 = vsub.f32 %v4708_v62, %v11596_v57  ;;  %v11629_v42 = vsub.f32 %v4709_v47, %v11596_v57  ;;  %v11633_v58 = vsub.f32 %v11175_v45, %v11596_v57  ;;  %v11637_v17 = vsub.f32 %v12510_v59, %v11596_v57 }
 0x6f6   :  { %12505 = vst [vmem:[#allocation18_spill] sm:$0xff] %v11614_v48  ;;  %12506 = vst [vmem:[#allocation20_spill] sm:$0xff] %v11617_v25  ;;  %v11641_v1 = vsub.f32 %v11187_v53, %v11596_v57  ;;  %v11649_v44 = vsub.f32 %v11190_v34, %v11596_v57  ;;  %v11655_v11 = vsub.f32 %v11193_v7, %v11596_v57 }
 0x6f7   :  { %12507 = vst [vmem:[#allocation62_spill] sm:$0xff] %v11620_v36  ;;  %12508 = vst [vmem:[#allocation63_spill] sm:$0xff] %v11623_v37  ;;  %v5206_v27 = vmul.f32 %v11633_v58, %v11633_v58  ;;  %v5207_v62 = vmul.f32 %v11637_v17, %v11637_v17  ;;  %v5254_v45 = vmul.f32 %v11629_v42, %v11629_v42 }
 0x6f8   :  { %12509 = vst [vmem:[#allocation64_spill] sm:$0xff] %v11626_v50  ;;  %v5208_v53 = vmul.f32 %v11641_v1, %v11641_v1  ;;  %v11665_v34 = vsub.f32 %v11196_v3, %v11596_v57  ;;  %v5209_v46 = vmul.f32 %v11649_v44, %v11649_v44  ;;  %v11674_v55 = vsub.f32 %v11199_v32, %v11596_v57 }
 0x6f9   :  { %v5255_v2 = vsel %vm5004_vm7, %v5206_v27, 0.0  ;;  %v5256_v13 = vsel %vm5005_vm0, %v5207_v62, 0.0  ;;  %v11670_v14 = vsel %vm5052_vm5, %v5254_v45, 0.0  ;;  %v5210_v59 = vmul.f32 %v11655_v11, %v11655_v11 }
 0x6fa   :  { %v5304_v7 = vadd.f32 %v5256_v13, %v5255_v2  ;;  %v5257_v62 = vsel %vm5006_vm8, %v5208_v53, 0.0  ;;  %v11682_v3 = vsub.f32 %v11202_v8, %v11596_v57  ;;  %v5211_v38 = vmul.f32 %v11665_v34, %v11665_v34 }
 0x6fb   :  { %v5258_v45 = vsel %vm5007_vm9, %v5209_v46, 0.0  ;;  %v11690_v32 = vsub.f32 %v11205_v24, %v11596_v57  ;;  %v5212_v47 = vmul.f32 %v11674_v55, %v11674_v55  ;;  %v5259_v13 = vsel %vm5008_vm10, %v5210_v59, 0.0 }
 0x6fc   :  { %v5305_v18 = vadd.f32 %v5304_v7, %v5257_v62  ;;  %v11698_v8 = vsub.f32 %v11208_v63, %v11596_v57  ;;  %v5213_v54 = vmul.f32 %v11682_v3, %v11682_v3  ;;  %v5260_v27 = vsel %vm5009_vm11, %v5211_v38, 0.0 }
 0x6fd   :  { %v11706_v24 = vsub.f32 %v11213_v29, %v11596_v57  ;;  %v11714_v63 = vsub.f32 %v11218_v23, %v11596_v57  ;;  %v11722_v29 = vsub.f32 %v11225_v61, %v11596_v57  ;;  %v11730_v23 = vsub.f32 %v11230_v22, %v11596_v57 }
 0x6fe   :  { %v5306_v2 = vadd.f32 %v5305_v18, %v5258_v45  ;;  %v5214_v18 = vmul.f32 %v11690_v32, %v11690_v32  ;;  %v5261_v45 = vsel %vm5010_vm12, %v5212_v47, 0.0  ;;  %v5215_v53 = vmul.f32 %v11698_v8, %v11698_v8 }
 0x6ff   :  { %v5216_v46 = vmul.f32 %v11706_v24, %v11706_v24  ;;  %v5217_v59 = vmul.f32 %v11714_v63, %v11714_v63  ;;  %v11738_v61 = vsub.f32 %v11235_v12, %v11596_v57  ;;  %v11746_v22 = vsub.f32 %v11242_v56, %v11596_v57 }
 0x700   :  { %v5307_v7 = vadd.f32 %v5306_v2, %v5259_v13  ;;  %v5262_v13 = vsel %vm5011_vm13, %v5213_v54, 0.0  ;;  %v5264_v54 = vsel %vm5013_vm15, %v5215_v53, 0.0  ;;  %v5219_v10 = vmul.f32 %v11730_v23, %v11730_v23 }
 0x701   :  { %v5265_v38 = vsel %vm5014_vm1, %v5216_v46, 0.0  ;;  %v11754_v12 = vsub.f32 %v11247_v33, %v11596_v57  ;;  %vm12521_vm0 = vcmp.eq.s32.totalorder %v11262_v40, 1  ;;  %v11762_v56 = vsub.f32 %v11252_v19, %v11596_v57 }
 0x702   :  { %v5308_v62 = vadd.f32 %v5307_v7, %v5260_v27  ;;  %v5263_v27 = vsel %vm5012_vm14, %v5214_v18, 0.0  ;;  %v11770_v33 = vsub.f32 %v11259_v52, %v11596_v57  ;;  %v11778_v19 = vsub.f32 %v11265_v41, %v11596_v57 }
 0x703   :  { %v5222_v40 = vmul.f32 %v11754_v12, %v11754_v12  ;;  %v5223_v53 = vmul.f32 %v11762_v56, %v11762_v56  ;;  %vm12526_vm9 = vcmp.eq.s32.totalorder %v11286_v43, 1  ;;  %v11786_v52 = vsub.f32 %v11281_v30, %v11596_v57 }
 0x704   :  { %v5309_v2 = vadd.f32 %v5308_v62, %v5261_v45  ;;  %v11794_v41 = vsub.f32 %v11289_v5, %v11596_v57  ;;  %v5225_v43 = vmul.f32 %v11778_v19, %v11778_v19  ;;  %v11802_v30 = vsub.f32 %v11302_v21, %v11596_v57 }
 0x705   :  { %vm12531_vm12 = vcmp.eq.s32.totalorder %v11321_v26, 1  ;;  %v11810_v5 = vsub.f32 %v11315_v60, %v11596_v57  ;;  %v11818_v21 = vsub.f32 %v11330_v20, %v11596_v57  ;;  %v11826_v60 = vsub.f32 %v11343_v9, %v11596_v57  ;;  %v12536_v20 = vld [vmem:[#allocation35_spill] sm:$0xff] }
 0x706   :  { %v5310_v7 = vadd.f32 %v5309_v2, %v5262_v13  ;;  %v5218_v2 = vmul.f32 %v11722_v29, %v11722_v29  ;;  %v5228_v26 = vmul.f32 %v11802_v30, %v11802_v30  ;;  %vm12535_vm14 = vcmp.eq.s32.totalorder %v11349_v35, 1 }
 0x707   :  { %v11842_v9 = vsub.f32 %v11371_v39, %v11596_v57  ;;  %v5231_v35 = vmul.f32 %v11826_v60, %v11826_v60  ;;  %v11858_v39 = vsub.f32 %v11397_v28, %v11596_v57  ;;  %v11874_v28 = vsub.f32 %v11425_v15, %v11596_v57  ;;  %v12551_v15 = vld [vmem:[#allocation49_spill] sm:$0xff] }
 0x708   :  { %v5311_v62 = vadd.f32 %v5310_v7, %v5263_v27  ;;  %v5266_v7 = vsel %vm5015_vm2, %v5217_v59, 0.0  ;;  %v5220_v27 = vmul.f32 %v11738_v61, %v11738_v61  ;;  %v5267_v46 = vsel %vm12521_vm0, %v5218_v2, 0.0  ;;  %v12522_v59 = vld [vmem:[#allocation29_spill] sm:$0xff]  ;;  %v12524_v2 = vld [vmem:[#allocation30_spill] sm:$0xff] }
 0x709   :  { %vm12523_vm7 = vcmp.eq.s32.totalorder %v12522_v59, 1  ;;  %vm12525_vm8 = vcmp.eq.s32.totalorder %v12524_v2, 1 }
 0x70a   :  { %v5312_v45 = vadd.f32 %v5311_v62, %v5264_v54  ;;  %v5221_v54 = vmul.f32 %v11746_v22, %v11746_v22 }
 0x70c   :  { %v5313_v13 = vadd.f32 %v5312_v45, %v5265_v38  ;;  %v5268_v45 = vsel %vm12523_vm7, %v5219_v10, 0.0  ;;  %v5269_v38 = vsel %vm12525_vm8, %v5220_v27, 0.0  ;;  %v5270_v10 = vsel %vm12526_vm9, %v5221_v54, 0.0  ;;  %v12527_v27 = vld [vmem:[#allocation31_spill] sm:$0xff]  ;;  %v12529_v54 = vld [vmem:[#allocation32_spill] sm:$0xff] }
 0x70d   :  { %vm12528_vm10 = vcmp.eq.s32.totalorder %v12527_v27, 1  ;;  %vm12530_vm11 = vcmp.eq.s32.totalorder %v12529_v54, 1  ;;  %v11834_v54 = vsub.f32 %v12536_v20, %v11596_v57 }
 0x70e   :  { %v5314_v47 = vadd.f32 %v5313_v13, %v5266_v7  ;;  %v5272_v59 = vsel %vm12530_vm11, %v5223_v53, 0.0 }
 0x710   :  { %v5315_v62 = vadd.f32 %v5314_v47, %v5267_v46  ;;  %v5224_v47 = vmul.f32 %v11770_v33, %v11770_v33  ;;  %v5271_v46 = vsel %vm12528_vm10, %v5222_v40, 0.0 }
 0x712   :  { %v5316_v18 = vadd.f32 %v5315_v62, %v5268_v45  ;;  %v5273_v40 = vsel %vm12531_vm12, %v5224_v47, 0.0 }
 0x714   :  { %v5317_v13 = vadd.f32 %v5316_v18, %v5269_v38  ;;  %v5226_v18 = vmul.f32 %v11786_v52, %v11786_v52  ;;  %v5227_v38 = vmul.f32 %v11794_v41, %v11794_v41 }
 0x716   :  { %v5318_v7 = vadd.f32 %v5317_v13, %v5270_v10  ;;  %v12532_v13 = vld [vmem:[#allocation33_spill] sm:$0xff]  ;;  %v5275_v47 = vsel %vm5024_vm3, %v5226_v18, 0.0 }
 0x717   :  { %vm12533_vm13 = vcmp.eq.s32.totalorder %v12532_v13, 1 }
 0x718   :  { %v5319_v62 = vadd.f32 %v5318_v7, %v5271_v46  ;;  %v5274_v53 = vsel %vm12533_vm13, %v5225_v43, 0.0  ;;  %v5229_v46 = vmul.f32 %v11810_v5, %v11810_v5 }
 0x71a   :  { %v5320_v45 = vadd.f32 %v5319_v62, %v5272_v59  ;;  %v5276_v62 = vsel %vm12535_vm14, %v5227_v38, 0.0  ;;  %v5230_v59 = vmul.f32 %v11818_v21, %v11818_v21 }
 0x71c   :  { %v5321_v2 = vadd.f32 %v5320_v45, %v5273_v40  ;;  %v12537_v45 = vld [vmem:[#allocation36_spill] sm:$0xff] }
 0x71d   :  { %vm12538_vm15 = vcmp.eq.s32.totalorder %v12537_v45, 1 }
 0x71e   :  { %v5322_v10 = vadd.f32 %v5321_v2, %v5274_v53  ;;  %v5277_v18 = vsel %vm12538_vm15, %v5228_v26, 0.0  ;;  %v12539_v2 = vld [vmem:[#allocation37_spill] sm:$0xff]  ;;  %v11850_v53 = vsub.f32 %v11384_v0, %v11596_v57  ;;  %v12541_v26 = vld [vmem:[#allocation38_spill] sm:$0xff]  ;;  %v11866_v0 = vsub.f32 %v11412_v6, %v11596_v57 }
 0x71f   :  { %vm12540_vm1 = vcmp.eq.s32.totalorder %v12539_v2, 1  ;;  %vm12542_vm2 = vcmp.eq.s32.totalorder %v12541_v26, 1  ;;  %v11882_v6 = vsub.f32 %v11469_v4, %v11596_v57  ;;  %v12554_v4 = vld [vmem:[#allocation51_spill] sm:$0xff] }
 0x720   :  { %v5323_v27 = vadd.f32 %v5322_v10, %v5275_v47  ;;  %v5278_v38 = vsel %vm12540_vm1, %v5229_v46, 0.0  ;;  %v5232_v10 = vmul.f32 %v11834_v54, %v11834_v54  ;;  %v5279_v7 = vsel %vm12542_vm2, %v5230_v59, 0.0  ;;  %v12543_v46 = vld [vmem:[#allocation39_spill] sm:$0xff]  ;;  %v12545_v59 = vld [vmem:[#allocation40_spill] sm:$0xff] }
 0x721   :  { %vm12544_vm3 = vcmp.eq.s32.totalorder %v12543_v46, 1  ;;  %v5234_v20 = vmul.f32 %v11850_v53, %v11850_v53  ;;  %vm12546_vm5 = vcmp.eq.s32.totalorder %v12545_v59, 1  ;;  %v5237_v46 = vmul.f32 %v11874_v28, %v11874_v28 }
 0x722   :  { %v5324_v43 = vadd.f32 %v5323_v27, %v5276_v62  ;;  %v5233_v27 = vmul.f32 %v11842_v9, %v11842_v9  ;;  %v5280_v62 = vsel %vm12544_vm3, %v5231_v35, 0.0  ;;  %v5281_v45 = vsel %vm12546_vm5, %v5232_v10, 0.0  ;;  %v12547_v35 = vld [vmem:[#allocation41_spill] sm:$0xff]  ;;  %v12549_v10 = vld [vmem:[#allocation42_spill] sm:$0xff] }
 0x723   :  { %vm12548_vm0 = vcmp.eq.s32.totalorder %v12547_v35, 1  ;;  %vm12550_vm7 = vcmp.eq.s32.totalorder %v12549_v10, 1  ;;  %v11898_v59 = vsub.f32 %v12554_v4, %v11596_v57 }
 0x724   :  { %v5325_v40 = vadd.f32 %v5324_v43, %v5277_v18  ;;  %v5282_v2 = vsel %vm12548_vm0, %v5233_v27, 0.0  ;;  %v5283_v26 = vsel %vm12550_vm7, %v5234_v20, 0.0  ;;  %v12552_v27 = vld [vmem:[#allocation43_spill] sm:$0xff]  ;;  %v12556_v20 = vld [vmem:[#allocation44_spill] sm:$0xff] }
 0x725   :  { %vm12553_vm8 = vcmp.eq.s32.totalorder %v12552_v27, 1  ;;  %12555 = vst [vmem:[#allocation19_spill] sm:$0xff] %v11898_v59  ;;  %vm12557_vm9 = vcmp.eq.s32.totalorder %v12556_v20, 1  ;;  %v12565_v20 = vld [vmem:[#allocation56_spill] sm:$0xff] }
 0x726   :  { %v5326_v13 = vadd.f32 %v5325_v40, %v5278_v38  ;;  %v5235_v40 = vmul.f32 %v11858_v39, %v11858_v39 }
 0x728   :  { %v5327_v47 = vadd.f32 %v5326_v13, %v5279_v7  ;;  %v5236_v13 = vmul.f32 %v11866_v0, %v11866_v0 }
 0x72a   :  { %v5328_v43 = vadd.f32 %v5327_v47, %v5280_v62  ;;  %v11890_v47 = vsub.f32 %v12551_v15, %v11596_v57  ;;  %v5284_v62 = vsel %vm12553_vm8, %v5235_v40, 0.0  ;;  %v12560_v40 = vld [vmem:[#allocation45_spill] sm:$0xff]  ;;  %v12562_v15 = vld [vmem:[#allocation54_spill] sm:$0xff] }
 0x72b   :  { %vm12561_vm10 = vcmp.eq.s32.totalorder %v12560_v40, 1  ;;  %v11914_v27 = vsub.f32 %v12562_v15, %v11596_v57 }
 0x72c   :  { %v5329_v18 = vadd.f32 %v5328_v43, %v5281_v45  ;;  %v5238_v45 = vmul.f32 %v11882_v6, %v11882_v6  ;;  %v5239_v10 = vmul.f32 %v11890_v47, %v11890_v47 }
 0x72e   :  { %v5330_v38 = vadd.f32 %v5329_v18, %v5282_v2  ;;  %v5285_v18 = vsel %vm12557_vm9, %v5236_v13, 0.0  ;;  %v12558_v2 = vld [vmem:[#allocation52_spill] sm:$0xff]  ;;  %v12563_v13 = vld [vmem:[#allocation46_spill] sm:$0xff] }
 0x72f   :  { %vm12564_vm11 = vcmp.eq.s32.totalorder %v12563_v13, 1  ;;  %v5242_v13 = vmul.f32 %v11914_v27, %v11914_v27 }
 0x730   :  { %v5331_v7 = vadd.f32 %v5330_v38, %v5283_v26  ;;  %v11906_v38 = vsub.f32 %v12558_v2, %v11596_v57  ;;  %v5286_v26 = vsel %vm12561_vm10, %v5237_v46, 0.0  ;;  %v12566_v46 = vld [vmem:[#allocation47_spill] sm:$0xff] }
 0x731   :  { %vm12567_vm12 = vcmp.eq.s32.totalorder %v12566_v46, 1 }
 0x732   :  { %v5332_v43 = vadd.f32 %v5331_v7, %v5284_v62  ;;  %12559 = vst [vmem:[#allocation11_spill] sm:$0xff] %v11906_v38  ;;  %v5240_v62 = vmul.f32 %v11898_v59, %v11898_v59  ;;  %v5241_v2 = vmul.f32 %v11906_v38, %v11906_v38  ;;  %v12571_v59 = vld [vmem:[#allocation50_spill] sm:$0xff] }
 0x733   :  { %vm12572_vm14 = vcmp.eq.s32.totalorder %v12571_v59, 1  ;;  %v12577_v59 = vld [vmem:[#allocation58_spill] sm:$0xff] }
 0x734   :  { %v5333_v35 = vadd.f32 %v5332_v43, %v5285_v18  ;;  %v5287_v43 = vsel %vm12564_vm11, %v5238_v45, 0.0  ;;  %v11922_v18 = vsub.f32 %v12565_v20, %v11596_v57  ;;  %v12569_v45 = vld [vmem:[#allocation48_spill] sm:$0xff]  ;;  %v5290_v38 = vsel %vm12572_vm14, %v5241_v2, 0.0 }
 0x735   :  { %vm12570_vm13 = vcmp.eq.s32.totalorder %v12569_v45, 1  ;;  %v12575_v45 = vld [vmem:[#allocation55_spill] sm:$0xff]  ;;  %vm12578_vm2 = vcmp.eq.s32.totalorder %v12577_v59, 1  ;;  %v12583_v59 = vld [vmem:[#allocation61_spill] sm:$0xff] }
 0x736   :  { %v5334_v7 = vadd.f32 %v5333_v35, %v5286_v26  ;;  %v5288_v35 = vsel %vm12567_vm12, %v5239_v10, 0.0  ;;  %v12568_v26 = vld [vmem:[#allocation57_spill] sm:$0xff]  ;;  %v5243_v20 = vmul.f32 %v11922_v18, %v11922_v18  ;;  %vm12576_vm1 = vcmp.eq.s32.totalorder %v12575_v45, 1  ;;  %v12581_v45 = vld [vmem:[#allocation60_spill] sm:$0xff] }
 0x737   :  { %v11930_v15 = vsub.f32 %v12568_v26, %v11596_v57  ;;  %v5245_v26 = vmul.f32 %v11600_v51, %v11600_v51  ;;  %vm12582_vm5 = vcmp.eq.s32.totalorder %v12581_v45, 1  ;;  %vm12584_vm0 = vcmp.eq.s32.totalorder %v12583_v59, 1  ;;  %v12587_v45 = vld [vmem:[#allocation14_spill] sm:$0xff] }
 0x738   :  { %v5335_v4 = vadd.f32 %v5334_v7, %v5287_v43  ;;  %v5289_v7 = vsel %vm12570_vm13, %v5240_v62, 0.0  ;;  %v5292_v62 = vsel %vm12576_vm1, %v5243_v20, 0.0  ;;  %vm12588_vm8 = vcmp.eq.s32.totalorder %v12587_v45, 1  ;;  %v12589_v59 = vld [vmem:[#allocation10_spill] sm:$0xff] }
 0x739   :  { %v5244_v10 = vmul.f32 %v11930_v15, %v11930_v15  ;;  %vm12590_vm9 = vcmp.eq.s32.totalorder %v12589_v59, 1 }
 0x73a   :  { %v5336_v40 = vadd.f32 %v5335_v4, %v5288_v35  ;;  %v12573_v4 = vld [vmem:[#allocation53_spill] sm:$0xff] }
 0x73b   :  { %vm12574_vm15 = vcmp.eq.s32.totalorder %v12573_v4, 1  ;;  %v12579_v4 = vld [vmem:[#allocation59_spill] sm:$0xff] }
 0x73c   :  { %v5337_v43 = vadd.f32 %v5336_v40, %v5289_v7  ;;  %v5291_v57 = vsel %vm12574_vm15, %v5242_v13, 0.0  ;;  %v5246_v7 = vmul.f32 %v11604_v31, %v11604_v31  ;;  %vm12580_vm3 = vcmp.eq.s32.totalorder %v12579_v4, 1  ;;  %v12585_v4 = vld [vmem:[#allocation13_spill] sm:$0xff] }
 0x73d   :  { %v5294_v13 = vsel %vm12580_vm3, %v5245_v26, 0.0  ;;  %vm12586_vm7 = vcmp.eq.s32.totalorder %v12585_v4, 1  ;;  %v12591_v4 = vld [vmem:[#allocation15_spill] sm:$0xff] }
 0x73e   :  { %v5338_v46 = vadd.f32 %v5337_v43, %v5290_v38  ;;  %v5293_v38 = vsel %vm12578_vm2, %v5244_v10, 0.0  ;;  %v5247_v43 = vmul.f32 %v11608_v16, %v11608_v16  ;;  %v5295_v20 = vsel %vm12582_vm5, %v5246_v7, 0.0 }
 0x73f   :  { %vm12592_vm10 = vcmp.eq.s32.totalorder %v12591_v4, 1 }
 0x740   :  { %v5339_v35 = vadd.f32 %v5338_v46, %v5291_v57  ;;  %v5248_v57 = vmul.f32 %v11611_v49, %v11611_v49  ;;  %v5296_v10 = vsel %vm12584_vm0, %v5247_v43, 0.0 }
 0x742   :  { %v5340_v40 = vadd.f32 %v5339_v35, %v5292_v62  ;;  %v5249_v62 = vmul.f32 %v11614_v48, %v11614_v48  ;;  %v5297_v26 = vsel %vm12586_vm7, %v5248_v57, 0.0 }
 0x744   :  { %v5341_v2 = vadd.f32 %v5340_v40, %v5293_v38  ;;  %v5250_v38 = vmul.f32 %v11617_v25, %v11617_v25  ;;  %v5298_v7 = vsel %vm12588_vm8, %v5249_v62, 0.0 }
 0x746   :  { %v5342_v46 = vadd.f32 %v5341_v2, %v5294_v13  ;;  %v5251_v13 = vmul.f32 %v11620_v36, %v11620_v36  ;;  %v5299_v43 = vsel %vm12590_vm9, %v5250_v38, 0.0 }
 0x748   :  { %v5343_v35 = vadd.f32 %v5342_v46, %v5295_v20  ;;  %v5252_v20 = vmul.f32 %v11623_v37, %v11623_v37  ;;  %v5300_v57 = vsel %vm12592_vm10, %v5251_v13, 0.0  ;;  %v5359_v13 = vld [vmem:[%s12233_s5] sm:$0x1]  ;;  %s8146_s5 = smov [#allocation6]  }
 0x74a   :  { %v5344_v40 = vadd.f32 %v5343_v35, %v5296_v10  ;;  %v5253_v10 = vmul.f32 %v11626_v50, %v11626_v50  ;;  %v5301_v36 = vsel %vm5050_vm6, %v5252_v20, 0.0 }
 0x74c   :  { %v5345_v2 = vadd.f32 %v5344_v40, %v5297_v26 }
 0x74e   :  { %v5346_v46 = vadd.f32 %v5345_v2, %v5298_v7  ;;  %v5302_v2 = vsel %vm5051_vm4, %v5253_v10, 0.0 }
 0x750   :  { %v5347_v35 = vadd.f32 %v5346_v46, %v5299_v43 }
 0x752   :  { %v5348_v40 = vadd.f32 %v5347_v35, %v5300_v57  ;;  %v12595_v35 = vld [vmem:[#allocation9_spill] sm:$0xff] }
 0x753   :  { %v12596_v10 = vsub.s32 0, %v12595_v35 }
 0x754   :  { %v5349_v45 = vadd.f32 %v5348_v40, %v5301_v36 }
 0x756   :  { %v5350_v7 = vadd.f32 %v5349_v45, %v5302_v2 }
 0x758   :  { %v5351_v37 = vadd.f32 %v5350_v7, %v11670_v14 }
 0x75a   :  { %v5352_v59 = vrot.slane %v5351_v37, 4 }
 0x75c   :  { %v5353_v38 = vadd.f32 %v5352_v59, %v5351_v37  ;;  %v11993_v37 = vld [vmem:[%s12234_s6] ss:$0 sm:$0xff]  ;;  %s5577_s6 = sshll.u32 %s8146_s5, 4  ;;  %s5578_s6 = int_to_ptr.vmem [resolvable:$true] %s5577_s6 }
 0x75d   :  { %s8116_s3 = scalar_lea.vmem %s5578_s6, 6272  ;;  %p8121_p6 = scmp.lt.s32.totalorder %s5578_s6, %s5578_s6 }
 0x75e   :  { %v5354_v46 = vrot.slane %v5353_v38, 2  ;;  %p8117_p5 = scmp.ne.s32.totalorder %s5578_s6, %s8116_s3  ;;  %p8122_p7 = scmp.lt.s32.totalorder %s8116_s3, %s8116_s3 }
 0x760   :  { %v5355_v43 = vadd.f32 %v5354_v46, %v5353_v38  ;;  %v12597_v46 = vld [vmem:[#allocation19_spill] sm:$0xff]  ;;  %p8123_p8 = por %p8122_p7, %p8121_p6 }
 0x762   :  { %v5356_v25 = vrot.slane %v5355_v43, 1  ;;  %p8124_p9 = pnand %p8123_p8, %p8117_p5 }
 0x764   :  { %v5357_v50 = vadd.f32 %v5356_v25, %v5355_v43  ;;  %v12598_v43 = vld [vmem:[#allocation11_spill] sm:$0xff] }
 0x766   :  { %v5358_v48 = vmul.f32 0.0034722222, %v5357_v50 }
 0x768   :  { %v5360_v4 = vadd.f32 1e-05, %v5358_v48 }
 0x76a   :  { %8088 = vrsqrt.f32 %v5360_v4  ;;  %v12599_v4 = vld [vmem:[#allocation18_spill] sm:$0xff] }
 0x777   :  { %v8089_v36 = vpop.eup %8088 }
 0x778   :  { %v5362_v20 = vmul.f32 %v8089_v36, %v5359_v13  ;;  %v12600_v13 = vld [vmem:[#allocation20_spill] sm:$0xff] }
 0x77a   :  { %v5367_v57 = vrot.slane %v5362_v20, %v12596_v10  ;;  %v12601_v20 = vld [vmem:[#allocation62_spill] sm:$0xff]  ;;  %v12602_v10 = vld [vmem:[#allocation63_spill] sm:$0xff] }
 0x77c   :  { %v5417_v14 = vmul.f32 %v5367_v57, %v11629_v42  ;;  %v5369_v25 = vmul.f32 %v5367_v57, %v11633_v58  ;;  %v5370_v48 = vmul.f32 %v5367_v57, %v11637_v17  ;;  %v5371_v50 = vmul.f32 %v5367_v57, %v11641_v1 }
 0x77d   :  { %v5372_v40 = vmul.f32 %v5367_v57, %v11649_v44  ;;  %v5373_v26 = vmul.f32 %v5367_v57, %v11655_v11  ;;  %v5374_v45 = vmul.f32 %v5367_v57, %v11665_v34  ;;  %v5375_v62 = vmul.f32 %v5367_v57, %v11674_v55 }
 0x77e   :  { %v5473_v2 = vadd.f32 %v11993_v37, %v5417_v14  ;;  %v5376_v7 = vmul.f32 %v5367_v57, %v11682_v3  ;;  %v5377_v42 = vmul.f32 %v5367_v57, %v11690_v32  ;;  %v5378_v58 = vmul.f32 %v5367_v57, %v11698_v8  ;;  %v12603_v14 = vld [vmem:[#allocation64_spill] sm:$0xff] }
 0x77f   :  { %v5379_v17 = vmul.f32 %v5367_v57, %v11706_v24  ;;  %v5380_v1 = vmul.f32 %v5367_v57, %v11714_v63  ;;  %v5381_v44 = vmul.f32 %v5367_v57, %v11722_v29  ;;  %v5382_v11 = vmul.f32 %v5367_v57, %v11730_v23 }
 0x780   :  { %v5522_v59 = vmax.f32 %v5473_v2, 0.0  ;;  %v5383_v34 = vmul.f32 %v5367_v57, %v11738_v61  ;;  %v5384_v55 = vmul.f32 %v5367_v57, %v11746_v22  ;;  %v5385_v38 = vmul.f32 %v5367_v57, %v11754_v12 }
 0x781   :  { %v5386_v3 = vmul.f32 %v5367_v57, %v11762_v56  ;;  %v5387_v32 = vmul.f32 %v5367_v57, %v11770_v33  ;;  %v5388_v8 = vmul.f32 %v5367_v57, %v11778_v19  ;;  %v5389_v24 = vmul.f32 %v5367_v57, %v11786_v52 }
 0x782   :  { %5571 = vst [vmem:[#allocation6 + $0x180] sm:$0xff] %v5522_v59  ;;  %v5390_v63 = vmul.f32 %v5367_v57, %v11794_v41  ;;  %v5391_v29 = vmul.f32 %v5367_v57, %v11802_v30  ;;  %v5392_v23 = vmul.f32 %v5367_v57, %v11810_v5  ;;  %v5393_v61 = vmul.f32 %v5367_v57, %v11818_v21 }
 0x783   :  { %v5394_v22 = vmul.f32 %v5367_v57, %v11826_v60  ;;  %v5395_v12 = vmul.f32 %v5367_v57, %v11834_v54  ;;  %v5396_v56 = vmul.f32 %v5367_v57, %v11842_v9  ;;  %v5397_v33 = vmul.f32 %v5367_v57, %v11850_v53 }
 0x784   :  { %v5398_v19 = vmul.f32 %v5367_v57, %v11858_v39  ;;  %v5399_v52 = vmul.f32 %v5367_v57, %v11866_v0  ;;  %v5400_v41 = vmul.f32 %v5367_v57, %v11874_v28  ;;  %v5401_v30 = vmul.f32 %v5367_v57, %v11882_v6 }
 0x785   :  { %v5402_v5 = vmul.f32 %v5367_v57, %v11890_v47  ;;  %v5403_v21 = vmul.f32 %v5367_v57, %v12597_v46  ;;  %v5404_v60 = vmul.f32 %v5367_v57, %v12598_v43  ;;  %v5405_v54 = vmul.f32 %v5367_v57, %v11914_v27 }
 0x786   :  { %v5406_v9 = vmul.f32 %v5367_v57, %v11922_v18  ;;  %v5407_v53 = vmul.f32 %v5367_v57, %v11930_v15  ;;  %v5408_v39 = vmul.f32 %v5367_v57, %v11600_v51  ;;  %v5409_v0 = vmul.f32 %v5367_v57, %v11604_v31 }
 0x787   :  { %v5410_v28 = vmul.f32 %v5367_v57, %v11608_v16  ;;  %v5411_v6 = vmul.f32 %v5367_v57, %v11611_v49  ;;  %v5412_v47 = vmul.f32 %v5367_v57, %v12599_v4  ;;  %v5413_v36 = vmul.f32 %v5367_v57, %v12600_v13 }
 0x788   :  { %v5414_v35 = vmul.f32 %v5367_v57, %v12601_v20  ;;  %v5415_v27 = vmul.f32 %v5367_v57, %v12602_v10  ;;  %v5416_v18 = vmul.f32 %v5367_v57, %v12603_v14  ;;  %v5425_v15 = vadd.f32 %v11993_v37, %v5369_v25 }
 0x789   :  { %v5426_v51 = vadd.f32 %v11993_v37, %v5370_v48  ;;  %v5427_v31 = vadd.f32 %v11993_v37, %v5371_v50  ;;  %v5428_v16 = vadd.f32 %v11993_v37, %v5372_v40  ;;  %v5429_v49 = vadd.f32 %v11993_v37, %v5373_v26 }
 0x78a   :  { %v12051_v2 = vadd.f32 %v11993_v37, %v5374_v45  ;;  %v12054_v59 = vadd.f32 %v11993_v37, %v5375_v62  ;;  %v12057_v46 = vadd.f32 %v11993_v37, %v5376_v7  ;;  %v12060_v57 = vadd.f32 %v11993_v37, %v5377_v42 }
 0x78b   :  { %v12063_v25 = vadd.f32 %v11993_v37, %v5378_v58  ;;  %v12066_v48 = vadd.f32 %v11993_v37, %v5379_v17  ;;  %v12069_v50 = vadd.f32 %v11993_v37, %v5380_v1  ;;  %v12072_v40 = vadd.f32 %v11993_v37, %v5381_v44 }
 0x78c   :  { %v12075_v26 = vadd.f32 %v11993_v37, %v5382_v11  ;;  %v12078_v45 = vadd.f32 %v11993_v37, %v5383_v34  ;;  %v12081_v62 = vadd.f32 %v11993_v37, %v5384_v55  ;;  %v12084_v7 = vadd.f32 %v11993_v37, %v5385_v38 }
 0x78d   :  { %v12087_v42 = vadd.f32 %v11993_v37, %v5386_v3  ;;  %v12090_v58 = vadd.f32 %v11993_v37, %v5387_v32  ;;  %v12093_v17 = vadd.f32 %v11993_v37, %v5388_v8  ;;  %v12096_v1 = vadd.f32 %v11993_v37, %v5389_v24 }
 0x78e   :  { %v12099_v44 = vadd.f32 %v11993_v37, %v5390_v63  ;;  %v12102_v11 = vadd.f32 %v11993_v37, %v5391_v29  ;;  %v12105_v34 = vadd.f32 %v11993_v37, %v5392_v23  ;;  %v12108_v55 = vadd.f32 %v11993_v37, %v5393_v61 }
 0x78f   :  { %v12111_v38 = vadd.f32 %v11993_v37, %v5394_v22  ;;  %v12114_v3 = vadd.f32 %v11993_v37, %v5395_v12  ;;  %v12117_v32 = vadd.f32 %v11993_v37, %v5396_v56  ;;  %v12120_v8 = vadd.f32 %v11993_v37, %v5397_v33 }
 0x790   :  { %v12123_v24 = vadd.f32 %v11993_v37, %v5398_v19  ;;  %v12126_v63 = vadd.f32 %v11993_v37, %v5399_v52  ;;  %v12129_v29 = vadd.f32 %v11993_v37, %v5400_v41  ;;  %v12132_v23 = vadd.f32 %v11993_v37, %v5401_v30 }
 0x791   :  { %v12135_v61 = vadd.f32 %v11993_v37, %v5402_v5  ;;  %v12138_v22 = vadd.f32 %v11993_v37, %v5403_v21  ;;  %v12141_v12 = vadd.f32 %v11993_v37, %v5404_v60  ;;  %v12144_v56 = vadd.f32 %v11993_v37, %v5405_v54 }
 0x792   :  { %v12147_v33 = vadd.f32 %v11993_v37, %v5406_v9  ;;  %v12150_v19 = vadd.f32 %v11993_v37, %v5407_v53  ;;  %v12153_v52 = vadd.f32 %v11993_v37, %v5408_v39  ;;  %v12156_v41 = vadd.f32 %v11993_v37, %v5409_v0 }
 0x793   :  { %v12159_v30 = vadd.f32 %v11993_v37, %v5410_v28  ;;  %v12162_v5 = vadd.f32 %v11993_v37, %v5411_v6  ;;  %v12165_v21 = vadd.f32 %v11993_v37, %v5412_v47  ;;  %v12168_v43 = vadd.f32 %v11993_v37, %v5413_v36 }
 0x794   :  { %v12171_v60 = vadd.f32 %v11993_v37, %v5414_v35  ;;  %v12174_v54 = vadd.f32 %v11993_v37, %v5415_v27  ;;  %v12177_v9 = vadd.f32 %v11993_v37, %v5416_v18  ;;  %v5474_v53 = vmax.f32 %v5425_v15, 0.0 }
 0x795   :  { %v5475_v39 = vmax.f32 %v5426_v51, 0.0  ;;  %v5476_v0 = vmax.f32 %v5427_v31, 0.0  ;;  %v5477_v28 = vmax.f32 %v5428_v16, 0.0  ;;  %v5478_v6 = vmax.f32 %v5429_v49, 0.0 }
 0x796   :  { %v5479_v4 = vmax.f32 %v12051_v2, 0.0  ;;  %v5480_v47 = vmax.f32 %v12054_v59, 0.0  ;;  %v5481_v13 = vmax.f32 %v12057_v46, 0.0  ;;  %v5482_v36 = vmax.f32 %v12060_v57, 0.0  ;;  %5523 = vst [vmem:[#allocation6] sm:$0xff] %v5474_v53 }
 0x797   :  { %v5483_v20 = vmax.f32 %v12063_v25, 0.0  ;;  %v5484_v35 = vmax.f32 %v12066_v48, 0.0  ;;  %v5485_v37 = vmax.f32 %v12069_v50, 0.0  ;;  %v5486_v10 = vmax.f32 %v12072_v40, 0.0  ;;  %5524 = vst [vmem:[#allocation6 + $0x8] sm:$0xff] %v5475_v39  ;;  %5525 = vst [vmem:[#allocation6 + $0x10] sm:$0xff] %v5476_v0 }
 0x798   :  { %5526 = vst [vmem:[#allocation6 + $0x18] sm:$0xff] %v5477_v28  ;;  %5527 = vst [vmem:[#allocation6 + $0x20] sm:$0xff] %v5478_v6  ;;  %v5487_v27 = vmax.f32 %v12075_v26, 0.0  ;;  %v5488_v14 = vmax.f32 %v12078_v45, 0.0  ;;  %v5489_v18 = vmax.f32 %v12081_v62, 0.0  ;;  %v5490_v15 = vmax.f32 %v12084_v7, 0.0 }
 0x799   :  { %5528 = vst [vmem:[#allocation6 + $0x28] sm:$0xff] %v5479_v4  ;;  %5529 = vst [vmem:[#allocation6 + $0x30] sm:$0xff] %v5480_v47  ;;  %v5491_v51 = vmax.f32 %v12087_v42, 0.0  ;;  %v5492_v31 = vmax.f32 %v12090_v58, 0.0  ;;  %v5493_v16 = vmax.f32 %v12093_v17, 0.0  ;;  %v5494_v49 = vmax.f32 %v12096_v1, 0.0 }
 0x79a   :  { %5530 = vst [vmem:[#allocation6 + $0x38] sm:$0xff] %v5481_v13  ;;  %5531 = vst [vmem:[#allocation6 + $0x40] sm:$0xff] %v5482_v36  ;;  %v5495_v2 = vmax.f32 %v12099_v44, 0.0  ;;  %v5496_v59 = vmax.f32 %v12102_v11, 0.0  ;;  %v5497_v46 = vmax.f32 %v12105_v34, 0.0  ;;  %v5498_v57 = vmax.f32 %v12108_v55, 0.0 }
 0x79b   :  { %5532 = vst [vmem:[#allocation6 + $0x48] sm:$0xff] %v5483_v20  ;;  %5533 = vst [vmem:[#allocation6 + $0x50] sm:$0xff] %v5484_v35  ;;  %v5499_v25 = vmax.f32 %v12111_v38, 0.0  ;;  %v5500_v48 = vmax.f32 %v12114_v3, 0.0  ;;  %v5501_v50 = vmax.f32 %v12117_v32, 0.0  ;;  %v5502_v40 = vmax.f32 %v12120_v8, 0.0 }
 0x79c   :  { %5534 = vst [vmem:[#allocation6 + $0x58] sm:$0xff] %v5485_v37  ;;  %5535 = vst [vmem:[#allocation6 + $0x60] sm:$0xff] %v5486_v10  ;;  %v5503_v26 = vmax.f32 %v12123_v24, 0.0  ;;  %v5504_v45 = vmax.f32 %v12126_v63, 0.0  ;;  %v5505_v62 = vmax.f32 %v12129_v29, 0.0  ;;  %v5506_v7 = vmax.f32 %v12132_v23, 0.0 }
 0x79d   :  { %5536 = vst [vmem:[#allocation6 + $0x68] sm:$0xff] %v5487_v27  ;;  %5537 = vst [vmem:[#allocation6 + $0x70] sm:$0xff] %v5488_v14  ;;  %v5507_v42 = vmax.f32 %v12135_v61, 0.0  ;;  %v5508_v58 = vmax.f32 %v12138_v22, 0.0  ;;  %v5509_v17 = vmax.f32 %v12141_v12, 0.0  ;;  %v5510_v1 = vmax.f32 %v12144_v56, 0.0 }
 0x79e   :  { %5538 = vst [vmem:[#allocation6 + $0x78] sm:$0xff] %v5489_v18  ;;  %5539 = vst [vmem:[#allocation6 + $0x80] sm:$0xff] %v5490_v15  ;;  %v5511_v44 = vmax.f32 %v12147_v33, 0.0  ;;  %v5512_v11 = vmax.f32 %v12150_v19, 0.0  ;;  %v5513_v34 = vmax.f32 %v12153_v52, 0.0  ;;  %v5514_v55 = vmax.f32 %v12156_v41, 0.0 }
 0x79f   :  { %5540 = vst [vmem:[#allocation6 + $0x88] sm:$0xff] %v5491_v51  ;;  %5541 = vst [vmem:[#allocation6 + $0x90] sm:$0xff] %v5492_v31  ;;  %v5515_v38 = vmax.f32 %v12159_v30, 0.0  ;;  %v5516_v3 = vmax.f32 %v12162_v5, 0.0  ;;  %v5517_v32 = vmax.f32 %v12165_v21, 0.0  ;;  %v5518_v8 = vmax.f32 %v12168_v43, 0.0 }
 0x7a0   :  { %5542 = vst [vmem:[#allocation6 + $0x98] sm:$0xff] %v5493_v16  ;;  %5543 = vst [vmem:[#allocation6 + $0xa0] sm:$0xff] %v5494_v49  ;;  %v5519_v24 = vmax.f32 %v12171_v60, 0.0  ;;  %v5520_v63 = vmax.f32 %v12174_v54, 0.0  ;;  %v5521_v29 = vmax.f32 %v12177_v9, 0.0 }
 0x7a1   :  { %5544 = vst [vmem:[#allocation6 + $0xa8] sm:$0xff] %v5495_v2  ;;  %5545 = vst [vmem:[#allocation6 + $0xb0] sm:$0xff] %v5496_v59 }
 0x7a2   :  { %5546 = vst [vmem:[#allocation6 + $0xb8] sm:$0xff] %v5497_v46  ;;  %5547 = vst [vmem:[#allocation6 + $0xc0] sm:$0xff] %v5498_v57 }
 0x7a3   :  { %5548 = vst [vmem:[#allocation6 + $0xc8] sm:$0xff] %v5499_v25  ;;  %5549 = vst [vmem:[#allocation6 + $0xd0] sm:$0xff] %v5500_v48 }
 0x7a4   :  { %5550 = vst [vmem:[#allocation6 + $0xd8] sm:$0xff] %v5501_v50  ;;  %5551 = vst [vmem:[#allocation6 + $0xe0] sm:$0xff] %v5502_v40 }
 0x7a5   :  { %5552 = vst [vmem:[#allocation6 + $0xe8] sm:$0xff] %v5503_v26  ;;  %5553 = vst [vmem:[#allocation6 + $0xf0] sm:$0xff] %v5504_v45 }
 0x7a6   :  { %5554 = vst [vmem:[#allocation6 + $0xf8] sm:$0xff] %v5505_v62  ;;  %5555 = vst [vmem:[#allocation6 + $0x100] sm:$0xff] %v5506_v7 }
 0x7a7   :  { %5556 = vst [vmem:[#allocation6 + $0x108] sm:$0xff] %v5507_v42  ;;  %5557 = vst [vmem:[#allocation6 + $0x110] sm:$0xff] %v5508_v58 }
 0x7a8   :  { %5558 = vst [vmem:[#allocation6 + $0x118] sm:$0xff] %v5509_v17  ;;  %5559 = vst [vmem:[#allocation6 + $0x120] sm:$0xff] %v5510_v1 }
 0x7a9   :  { %5560 = vst [vmem:[#allocation6 + $0x128] sm:$0xff] %v5511_v44  ;;  %5561 = vst [vmem:[#allocation6 + $0x130] sm:$0xff] %v5512_v11 }
 0x7aa   :  { %5562 = vst [vmem:[#allocation6 + $0x138] sm:$0xff] %v5513_v34  ;;  %5563 = vst [vmem:[#allocation6 + $0x140] sm:$0xff] %v5514_v55 }
 0x7ab   :  { %5564 = vst [vmem:[#allocation6 + $0x148] sm:$0xff] %v5515_v38  ;;  %5565 = vst [vmem:[#allocation6 + $0x150] sm:$0xff] %v5516_v3 }
 0x7ac   :  { %5566 = vst [vmem:[#allocation6 + $0x158] sm:$0xff] %v5517_v32  ;;  %5567 = vst [vmem:[#allocation6 + $0x160] sm:$0xff] %v5518_v8 }
 0x7ad   :  { %5568 = vst [vmem:[#allocation6 + $0x168] sm:$0xff] %v5519_v24  ;;  %5569 = vst [vmem:[#allocation6 + $0x170] sm:$0xff] %v5520_v63 }
 0x7ae   :  { %5570 = vst [vmem:[#allocation6 + $0x178] sm:$0xff] %v5521_v29 }
 0x7af   :  { %8127 = shalt.err (!%p8124_p9)
}
 0x7b0   :  { %5583 = dma.vmem_to_hbm [thread:$0]  %s5578_s6, 6272, %s12236_s8, [#allocation5], %s8141_s30, %s8141_s30, %s8142_s9  }
 0x7b1   :  { %8138 = dma.done.wait [#allocation5], 6272  }
 0x7b2   :  { %8139 = vsyncadd [#allocation5], 4294961024 }
 0x7b3   :  { %5587 = vsyncpa [#allocation4], 1 }
 0x7b4   :  { %5588 = vsyncpa [#allocation5], 1 }

</bundles_post_ra>
